<compile_context>
chip_gen: v5e
topology: v5e:2x2
jax: 0.10.0
libtpu: 0.0.40
codegen_flags: <defaults>
</compile_context>

<pallas_src>
import functools

import jax
import jax.numpy as jnp
import numpy as np
from jax import lax
from jax.experimental import pallas as pl
from jax.experimental.pallas import tpu as pltpu


def _fused_recurrent_conv_kernel(x_ref, w_ref, b_ref, m_ref, o_ref,
                                 pad_ref, stk_ref, *, cin, npp, wp, hpwp, halo):
    """One grid step == one recurrent conv step.

    x_ref   : (Cin,  N*Pp)        padded-flattened input (zero halo), VMEM, loaded once
    w_ref   : (Cout, 27*Cin)      weights, column = tap*Cin + ci
    b_ref   : (Cout, N*Pp)        lane-dense bias
    m_ref   : (Cout, N*Pp)        interior mask (1 interior / 0 halo)
    o_ref   : (Cout, N*Pp)        recurrent state x1 (padded-flattened), resident in VMEM
    pad_ref : (Cin,  N*Pp+2*halo) zero-halo'd staging buffer for x + x1
    stk_ref : (27*Cin, N*Pp)      stacked shifted tap windows (MXU operand)
    """
    step = pl.program_id(0)

    # One-time init: zero the recurrent state and the halo'd staging buffer.
    @pl.when(step == 0)
    def _init():
        o_ref[...] = jnp.zeros_like(o_ref)
        pad_ref[...] = jnp.zeros_like(pad_ref)

    # Recurrent elementwise add: s = x + x1   (x1 == 0 at step 0).
    pad_ref[:, pl.ds(halo, npp)] = x_ref[...] + o_ref[...]

    # Gather the 27 shifted tap windows as pure static lane-offset loads.
    t = 0
    for kd in (-1, 0, 1):
        for kh in (-1, 0, 1):
            for kw in (-1, 0, 1):
                off = kd * hpwp + kh * wp + kw
                stk_ref[pl.ds(t * cin, cin), :] = pad_ref[:, pl.ds(halo + off, npp)]
                t += 1

    # Channel x tap contraction on the MXU: (Cout, 27*Cin) @ (27*Cin, N*Pp).
    acc = jnp.dot(w_ref[...], stk_ref[...],
                  preferred_element_type=jnp.float32,
                  precision=lax.Precision.HIGHEST)

    # Bias + ReLU; the mask re-zeroes the halo so padding stays valid next step.
    o_ref[...] = jnp.maximum(acc + b_ref[...], 0.0) * m_ref[...]


def recurrent_conv(x, w, b, t):
    """Pallas version of Recurrent_Conv.forward.

    x: (N, C, D, H, W) f32, w: (C, C, 3, 3, 3) f32 (OIDHW), b: (C,) f32, t >= 1.
    """
    if t < 1:
        raise ValueError("Recurrent_Conv requires t >= 1 (x1 undefined for t == 0).")
    N, Cin, D, H, W = x.shape
    Cout = w.shape[0]
    assert Cin == Cout, "recurrence x + x1 requires in_ch == out_ch"

    Dp, Hp, Wp = D + 2, H + 2, W + 2
    Pp = Dp * Hp * Wp
    NPp = N * Pp
    HALO = 128  # lane halo of the staging buffer (>= max tap offset = Hp*Wp + Wp + 1)

    # ---------------- host-side layout prep (tiny, fused by XLA) ----------------
    xp = jnp.pad(x.astype(jnp.float32), ((0, 0), (0, 0), (1, 1), (1, 1), (1, 1)))
    x_flat = jnp.transpose(xp, (1, 0, 2, 3, 4)).reshape(Cin, NPp)

    # (Cout, 27*Cin), column index = tap*Cin + ci, tap = kd*9 + kh*3 + kw.
    w_mat = jnp.transpose(w.astype(jnp.float32).reshape(Cout, Cin, 27),
                          (0, 2, 1)).reshape(Cout, 27 * Cin)

    b_full = jnp.broadcast_to(b.astype(jnp.float32)[:, None], (Cout, NPp))

    m3 = jnp.zeros((Dp, Hp, Wp), jnp.float32).at[1:-1, 1:-1, 1:-1].set(1.0)
    m_full = jnp.broadcast_to(m3.reshape(1, 1, Pp), (Cout, N, Pp)).reshape(Cout, NPp)

    kernel = functools.partial(_fused_recurrent_conv_kernel,
                               cin=Cin, npp=NPp, wp=Wp, hpwp=Hp * Wp, halo=HALO)

    const = lambda i: (0, 0)  # every operand is one VMEM-resident block (DMA'd once)
    out_flat = pl.pallas_call(
        kernel,
        grid=(t + 1,),                                   # all recurrent steps, one launch
        in_specs=[
            pl.BlockSpec((Cin, NPp), const),             # x (padded, flattened)
            pl.BlockSpec((Cout, 27 * Cin), const),       # weights
            pl.BlockSpec((Cout, NPp), const),            # lane-dense bias
            pl.BlockSpec((Cout, NPp), const),            # interior mask
        ],
        out_specs=pl.BlockSpec((Cout, NPp), const),      # state, written to HBM once
        out_shape=jax.ShapeDtypeStruct((Cout, NPp), jnp.float32),
        scratch_shapes=[
            pltpu.VMEM((Cin, NPp + 2 * HALO), jnp.float32),  # zero-halo'd (x + state)
            pltpu.VMEM((27 * Cin, NPp), jnp.float32),        # stacked tap windows
        ],
        compiler_params=pltpu.CompilerParams(
            dimension_semantics=("arbitrary",)),         # recurrence is sequential
    )(x_flat, w_mat, b_full, m_full)

    out = out_flat.reshape(Cout, N, Dp, Hp, Wp)[:, :, 1:-1, 1:-1, 1:-1]
    return jnp.transpose(out, (1, 0, 2, 3, 4))


# ---------------- pure-JAX reference (for correctness check) ----------------
def _conv_relu_ref(x, w, b):
    y = lax.conv_general_dilated(
        x, w, window_strides=(1, 1, 1), padding="SAME",
        dimension_numbers=("NCDHW", "OIDHW", "NCDHW"),
        precision=lax.Precision.HIGHEST)
    return jnp.maximum(y + b[None, :, None, None, None], 0.0)


def recurrent_conv_ref(x, w, b, t):
    x1 = _conv_relu_ref(x, w, b)
    for _ in range(t):
        x1 = _conv_relu_ref(x + x1, w, b)
    return x1


if __name__ == "__main__":
    N, C, D, H, W = 2, 4, 4, 8, 8   # out_ch = 4
    t = 2

    key = jax.random.PRNGKey(0)
    kx, kw, kb = jax.random.split(key, 3)
    x = jax.random.normal(kx, (N, C, D, H, W), jnp.float32)
    w = 0.1 * jax.random.normal(kw, (C, C, 3, 3, 3), jnp.float32)  # OIDHW
    b = 0.1 * jax.random.normal(kb, (C,), jnp.float32)

    run = jax.jit(recurrent_conv, static_argnums=3)
    out = jax.block_until_ready(run(x, w, b, t))
    ref = jax.block_until_ready(recurrent_conv_ref(x, w, b, t))

    np.testing.assert_allclose(np.asarray(out), np.asarray(ref),
                               rtol=1e-4, atol=1e-4)
    print("KERNEL_OK")
</pallas_src>

<mosaic_0001>
module attributes {stable_mosaic.version = 11 : i64} {
  func.func @_fused_recurrent_conv_kernel(%arg0: i32, %arg1: memref<4x1200xf32, #tpu.memory_space<vmem>>, %arg2: memref<4x108xf32, #tpu.memory_space<vmem>>, %arg3: memref<4x1200xf32, #tpu.memory_space<vmem>>, %arg4: memref<4x1200xf32, #tpu.memory_space<vmem>>, %arg5: memref<4x1200xf32, #tpu.memory_space<vmem>>, %arg6: memref<4x1456xf32, #tpu.memory_space<vmem>>, %arg7: memref<108x1200xf32, #tpu.memory_space<vmem>>) attributes {dimension_semantics = [#tpu.dimension_semantics<arbitrary>], iteration_bounds = array<i64: 3>, scalar_prefetch = 0 : i64, scratch_operands = 2 : i64, tpu.core_type = #tpu.core_type<tc>, window_params = [{pipeline_mode = #tpu.pipeline_mode<synchronous>, transform_indices = @transform_0, window_bounds = array<i64: 4, 1200>}, {pipeline_mode = #tpu.pipeline_mode<synchronous>, transform_indices = @transform_1, window_bounds = array<i64: 4, 108>}, {pipeline_mode = #tpu.pipeline_mode<synchronous>, transform_indices = @transform_2, window_bounds = array<i64: 4, 1200>}, {pipeline_mode = #tpu.pipeline_mode<synchronous>, transform_indices = @transform_3, window_bounds = array<i64: 4, 1200>}, {pipeline_mode = #tpu.pipeline_mode<synchronous>, transform_indices = @transform_4, window_bounds = array<i64: 4, 1200>}]} {
    %c0_i32 = arith.constant 0 : i32
    %0 = arith.cmpi eq, %arg0, %c0_i32 : i32
    %1 = arith.extui %0 : i1 to i32
    %c0_i32_0 = arith.constant 0 : i32
    %2 = arith.cmpi ne, %1, %c0_i32_0 : i32
    scf.if %2 {
      %cst_73 = arith.constant 0.000000e+00 : f32
      %71 = vector.broadcast %cst_73 : f32 to vector<4x1200xf32>
      %c0_74 = arith.constant 0 : index
      %c0_75 = arith.constant 0 : index
      %72 = vector.load %arg5[%c0_74, %c0_75] : memref<4x1200xf32, #tpu.memory_space<vmem>>, vector<4x1200xf32>
      tpu.vector_store %arg5[%c0_74, %c0_75], %71 {strides = array<i32>} : memref<4x1200xf32, #tpu.memory_space<vmem>>, vector<4x1200xf32>,
      %cst_76 = arith.constant 0.000000e+00 : f32
      %73 = vector.broadcast %cst_76 : f32 to vector<4x1456xf32>
      %c0_77 = arith.constant 0 : index
      %c0_78 = arith.constant 0 : index
      %74 = vector.load %arg6[%c0_77, %c0_78] : memref<4x1456xf32, #tpu.memory_space<vmem>>, vector<4x1456xf32>
      tpu.vector_store %arg6[%c0_77, %c0_78], %73 {strides = array<i32>} : memref<4x1456xf32, #tpu.memory_space<vmem>>, vector<4x1456xf32>,
    } else {
    }
    %c0 = arith.constant 0 : index
    %c0_1 = arith.constant 0 : index
    %3 = vector.load %arg1[%c0, %c0_1] : memref<4x1200xf32, #tpu.memory_space<vmem>>, vector<4x1200xf32>
    %c0_2 = arith.constant 0 : index
    %c0_3 = arith.constant 0 : index
    %4 = vector.load %arg5[%c0_2, %c0_3] : memref<4x1200xf32, #tpu.memory_space<vmem>>, vector<4x1200xf32>
    %5 = arith.addf %3, %4 : vector<4x1200xf32>
    %c0_4 = arith.constant 0 : index
    %c128 = arith.constant 128 : index
    %6 = vector.load %arg6[%c0_4, %c128] : memref<4x1456xf32, #tpu.memory_space<vmem>>, vector<4x1200xf32>
    tpu.vector_store %arg6[%c0_4, %c128], %5 {strides = array<i32>} : memref<4x1456xf32, #tpu.memory_space<vmem>>, vector<4x1200xf32>,
    %c0_5 = arith.constant 0 : index
    %c17 = arith.constant 17 : index
    %7 = vector.load %arg6[%c0_5, %c17] : memref<4x1456xf32, #tpu.memory_space<vmem>>, vector<4x1200xf32>
    %c0_6 = arith.constant 0 : index
    %c0_7 = arith.constant 0 : index
    %8 = vector.load %arg7[%c0_6, %c0_7] : memref<108x1200xf32, #tpu.memory_space<vmem>>, vector<4x1200xf32>
    tpu.vector_store %arg7[%c0_6, %c0_7], %7 {strides = array<i32>} : memref<108x1200xf32, #tpu.memory_space<vmem>>, vector<4x1200xf32>,
    %c0_8 = arith.constant 0 : index
    %c18 = arith.constant 18 : index
    %9 = vector.load %arg6[%c0_8, %c18] : memref<4x1456xf32, #tpu.memory_space<vmem>>, vector<4x1200xf32>
    %c4 = arith.constant 4 : index
    %c0_9 = arith.constant 0 : index
    %10 = vector.load %arg7[%c4, %c0_9] : memref<108x1200xf32, #tpu.memory_space<vmem>>, vector<4x1200xf32>
    tpu.vector_store %arg7[%c4, %c0_9], %9 {strides = array<i32>} : memref<108x1200xf32, #tpu.memory_space<vmem>>, vector<4x1200xf32>,
    %c0_10 = arith.constant 0 : index
    %c19 = arith.constant 19 : index
    %11 = vector.load %arg6[%c0_10, %c19] : memref<4x1456xf32, #tpu.memory_space<vmem>>, vector<4x1200xf32>
    %c8 = arith.constant 8 : index
    %c0_11 = arith.constant 0 : index
    %12 = vector.load %arg7[%c8, %c0_11] : memref<108x1200xf32, #tpu.memory_space<vmem>>, vector<4x1200xf32>
    tpu.vector_store %arg7[%c8, %c0_11], %11 {strides = array<i32>} : memref<108x1200xf32, #tpu.memory_space<vmem>>, vector<4x1200xf32>,
    %c0_12 = arith.constant 0 : index
    %c27 = arith.constant 27 : index
    %13 = vector.load %arg6[%c0_12, %c27] : memref<4x1456xf32, #tpu.memory_space<vmem>>, vector<4x1200xf32>
    %c12 = arith.constant 12 : index
    %c0_13 = arith.constant 0 : index
    %14 = vector.load %arg7[%c12, %c0_13] : memref<108x1200xf32, #tpu.memory_space<vmem>>, vector<4x1200xf32>
    tpu.vector_store %arg7[%c12, %c0_13], %13 {strides = array<i32>} : memref<108x1200xf32, #tpu.memory_space<vmem>>, vector<4x1200xf32>,
    %c0_14 = arith.constant 0 : index
    %c28 = arith.constant 28 : index
    %15 = vector.load %arg6[%c0_14, %c28] : memref<4x1456xf32, #tpu.memory_space<vmem>>, vector<4x1200xf32>
    %c16 = arith.constant 16 : index
    %c0_15 = arith.constant 0 : index
    %16 = vector.load %arg7[%c16, %c0_15] : memref<108x1200xf32, #tpu.memory_space<vmem>>, vector<4x1200xf32>
    tpu.vector_store %arg7[%c16, %c0_15], %15 {strides = array<i32>} : memref<108x1200xf32, #tpu.memory_space<vmem>>, vector<4x1200xf32>,
    %c0_16 = arith.constant 0 : index
    %c29 = arith.constant 29 : index
    %17 = vector.load %arg6[%c0_16, %c29] : memref<4x1456xf32, #tpu.memory_space<vmem>>, vector<4x1200xf32>
    %c20 = arith.constant 20 : index
    %c0_17 = arith.constant 0 : index
    %18 = vector.load %arg7[%c20, %c0_17] : memref<108x1200xf32, #tpu.memory_space<vmem>>, vector<4x1200xf32>
    tpu.vector_store %arg7[%c20, %c0_17], %17 {strides = array<i32>} : memref<108x1200xf32, #tpu.memory_space<vmem>>, vector<4x1200xf32>,
    %c0_18 = arith.constant 0 : index
    %c37 = arith.constant 37 : index
    %19 = vector.load %arg6[%c0_18, %c37] : memref<4x1456xf32, #tpu.memory_space<vmem>>, vector<4x1200xf32>
    %c24 = arith.constant 24 : index
    %c0_19 = arith.constant 0 : index
    %20 = vector.load %arg7[%c24, %c0_19] : memref<108x1200xf32, #tpu.memory_space<vmem>>, vector<4x1200xf32>
    tpu.vector_store %arg7[%c24, %c0_19], %19 {strides = array<i32>} : memref<108x1200xf32, #tpu.memory_space<vmem>>, vector<4x1200xf32>,
    %c0_20 = arith.constant 0 : index
    %c38 = arith.constant 38 : index
    %21 = vector.load %arg6[%c0_20, %c38] : memref<4x1456xf32, #tpu.memory_space<vmem>>, vector<4x1200xf32>
    %c28_21 = arith.constant 28 : index
    %c0_22 = arith.constant 0 : index
    %22 = vector.load %arg7[%c28_21, %c0_22] : memref<108x1200xf32, #tpu.memory_space<vmem>>, vector<4x1200xf32>
    tpu.vector_store %arg7[%c28_21, %c0_22], %21 {strides = array<i32>} : memref<108x1200xf32, #tpu.memory_space<vmem>>, vector<4x1200xf32>,
    %c0_23 = arith.constant 0 : index
    %c39 = arith.constant 39 : index
    %23 = vector.load %arg6[%c0_23, %c39] : memref<4x1456xf32, #tpu.memory_space<vmem>>, vector<4x1200xf32>
    %c32 = arith.constant 32 : index
    %c0_24 = arith.constant 0 : index
    %24 = vector.load %arg7[%c32, %c0_24] : memref<108x1200xf32, #tpu.memory_space<vmem>>, vector<4x1200xf32>
    tpu.vector_store %arg7[%c32, %c0_24], %23 {strides = array<i32>} : memref<108x1200xf32, #tpu.memory_space<vmem>>, vector<4x1200xf32>,
    %c0_25 = arith.constant 0 : index
    %c117 = arith.constant 117 : index
    %25 = vector.load %arg6[%c0_25, %c117] : memref<4x1456xf32, #tpu.memory_space<vmem>>, vector<4x1200xf32>
    %c36 = arith.constant 36 : index
    %c0_26 = arith.constant 0 : index
    %26 = vector.load %arg7[%c36, %c0_26] : memref<108x1200xf32, #tpu.memory_space<vmem>>, vector<4x1200xf32>
    tpu.vector_store %arg7[%c36, %c0_26], %25 {strides = array<i32>} : memref<108x1200xf32, #tpu.memory_space<vmem>>, vector<4x1200xf32>,
    %c0_27 = arith.constant 0 : index
    %c118 = arith.constant 118 : index
    %27 = vector.load %arg6[%c0_27, %c118] : memref<4x1456xf32, #tpu.memory_space<vmem>>, vector<4x1200xf32>
    %c40 = arith.constant 40 : index
    %c0_28 = arith.constant 0 : index
    %28 = vector.load %arg7[%c40, %c0_28] : memref<108x1200xf32, #tpu.memory_space<vmem>>, vector<4x1200xf32>
    tpu.vector_store %arg7[%c40, %c0_28], %27 {strides = array<i32>} : memref<108x1200xf32, #tpu.memory_space<vmem>>, vector<4x1200xf32>,
    %c0_29 = arith.constant 0 : index
    %c119 = arith.constant 119 : index
    %29 = vector.load %arg6[%c0_29, %c119] : memref<4x1456xf32, #tpu.memory_space<vmem>>, vector<4x1200xf32>
    %c44 = arith.constant 44 : index
    %c0_30 = arith.constant 0 : index
    %30 = vector.load %arg7[%c44, %c0_30] : memref<108x1200xf32, #tpu.memory_space<vmem>>, vector<4x1200xf32>
    tpu.vector_store %arg7[%c44, %c0_30], %29 {strides = array<i32>} : memref<108x1200xf32, #tpu.memory_space<vmem>>, vector<4x1200xf32>,
    %c0_31 = arith.constant 0 : index
    %c127 = arith.constant 127 : index
    %31 = vector.load %arg6[%c0_31, %c127] : memref<4x1456xf32, #tpu.memory_space<vmem>>, vector<4x1200xf32>
    %c48 = arith.constant 48 : index
    %c0_32 = arith.constant 0 : index
    %32 = vector.load %arg7[%c48, %c0_32] : memref<108x1200xf32, #tpu.memory_space<vmem>>, vector<4x1200xf32>
    tpu.vector_store %arg7[%c48, %c0_32], %31 {strides = array<i32>} : memref<108x1200xf32, #tpu.memory_space<vmem>>, vector<4x1200xf32>,
    %c0_33 = arith.constant 0 : index
    %c128_34 = arith.constant 128 : index
    %33 = vector.load %arg6[%c0_33, %c128_34] : memref<4x1456xf32, #tpu.memory_space<vmem>>, vector<4x1200xf32>
    %c52 = arith.constant 52 : index
    %c0_35 = arith.constant 0 : index
    %34 = vector.load %arg7[%c52, %c0_35] : memref<108x1200xf32, #tpu.memory_space<vmem>>, vector<4x1200xf32>
    tpu.vector_store %arg7[%c52, %c0_35], %33 {strides = array<i32>} : memref<108x1200xf32, #tpu.memory_space<vmem>>, vector<4x1200xf32>,
    %c0_36 = arith.constant 0 : index
    %c129 = arith.constant 129 : index
    %35 = vector.load %arg6[%c0_36, %c129] : memref<4x1456xf32, #tpu.memory_space<vmem>>, vector<4x1200xf32>
    %c56 = arith.constant 56 : index
    %c0_37 = arith.constant 0 : index
    %36 = vector.load %arg7[%c56, %c0_37] : memref<108x1200xf32, #tpu.memory_space<vmem>>, vector<4x1200xf32>
    tpu.vector_store %arg7[%c56, %c0_37], %35 {strides = array<i32>} : memref<108x1200xf32, #tpu.memory_space<vmem>>, vector<4x1200xf32>,
    %c0_38 = arith.constant 0 : index
    %c137 = arith.constant 137 : index
    %37 = vector.load %arg6[%c0_38, %c137] : memref<4x1456xf32, #tpu.memory_space<vmem>>, vector<4x1200xf32>
    %c60 = arith.constant 60 : index
    %c0_39 = arith.constant 0 : index
    %38 = vector.load %arg7[%c60, %c0_39] : memref<108x1200xf32, #tpu.memory_space<vmem>>, vector<4x1200xf32>
    tpu.vector_store %arg7[%c60, %c0_39], %37 {strides = array<i32>} : memref<108x1200xf32, #tpu.memory_space<vmem>>, vector<4x1200xf32>,
    %c0_40 = arith.constant 0 : index
    %c138 = arith.constant 138 : index
    %39 = vector.load %arg6[%c0_40, %c138] : memref<4x1456xf32, #tpu.memory_space<vmem>>, vector<4x1200xf32>
    %c64 = arith.constant 64 : index
    %c0_41 = arith.constant 0 : index
    %40 = vector.load %arg7[%c64, %c0_41] : memref<108x1200xf32, #tpu.memory_space<vmem>>, vector<4x1200xf32>
    tpu.vector_store %arg7[%c64, %c0_41], %39 {strides = array<i32>} : memref<108x1200xf32, #tpu.memory_space<vmem>>, vector<4x1200xf32>,
    %c0_42 = arith.constant 0 : index
    %c139 = arith.constant 139 : index
    %41 = vector.load %arg6[%c0_42, %c139] : memref<4x1456xf32, #tpu.memory_space<vmem>>, vector<4x1200xf32>
    %c68 = arith.constant 68 : index
    %c0_43 = arith.constant 0 : index
    %42 = vector.load %arg7[%c68, %c0_43] : memref<108x1200xf32, #tpu.memory_space<vmem>>, vector<4x1200xf32>
    tpu.vector_store %arg7[%c68, %c0_43], %41 {strides = array<i32>} : memref<108x1200xf32, #tpu.memory_space<vmem>>, vector<4x1200xf32>,
    %c0_44 = arith.constant 0 : index
    %c217 = arith.constant 217 : index
    %43 = vector.load %arg6[%c0_44, %c217] : memref<4x1456xf32, #tpu.memory_space<vmem>>, vector<4x1200xf32>
    %c72 = arith.constant 72 : index
    %c0_45 = arith.constant 0 : index
    %44 = vector.load %arg7[%c72, %c0_45] : memref<108x1200xf32, #tpu.memory_space<vmem>>, vector<4x1200xf32>
    tpu.vector_store %arg7[%c72, %c0_45], %43 {strides = array<i32>} : memref<108x1200xf32, #tpu.memory_space<vmem>>, vector<4x1200xf32>,
    %c0_46 = arith.constant 0 : index
    %c218 = arith.constant 218 : index
    %45 = vector.load %arg6[%c0_46, %c218] : memref<4x1456xf32, #tpu.memory_space<vmem>>, vector<4x1200xf32>
    %c76 = arith.constant 76 : index
    %c0_47 = arith.constant 0 : index
    %46 = vector.load %arg7[%c76, %c0_47] : memref<108x1200xf32, #tpu.memory_space<vmem>>, vector<4x1200xf32>
    tpu.vector_store %arg7[%c76, %c0_47], %45 {strides = array<i32>} : memref<108x1200xf32, #tpu.memory_space<vmem>>, vector<4x1200xf32>,
    %c0_48 = arith.constant 0 : index
    %c219 = arith.constant 219 : index
    %47 = vector.load %arg6[%c0_48, %c219] : memref<4x1456xf32, #tpu.memory_space<vmem>>, vector<4x1200xf32>
    %c80 = arith.constant 80 : index
    %c0_49 = arith.constant 0 : index
    %48 = vector.load %arg7[%c80, %c0_49] : memref<108x1200xf32, #tpu.memory_space<vmem>>, vector<4x1200xf32>
    tpu.vector_store %arg7[%c80, %c0_49], %47 {strides = array<i32>} : memref<108x1200xf32, #tpu.memory_space<vmem>>, vector<4x1200xf32>,
    %c0_50 = arith.constant 0 : index
    %c227 = arith.constant 227 : index
    %49 = vector.load %arg6[%c0_50, %c227] : memref<4x1456xf32, #tpu.memory_space<vmem>>, vector<4x1200xf32>
    %c84 = arith.constant 84 : index
    %c0_51 = arith.constant 0 : index
    %50 = vector.load %arg7[%c84, %c0_51] : memref<108x1200xf32, #tpu.memory_space<vmem>>, vector<4x1200xf32>
    tpu.vector_store %arg7[%c84, %c0_51], %49 {strides = array<i32>} : memref<108x1200xf32, #tpu.memory_space<vmem>>, vector<4x1200xf32>,
    %c0_52 = arith.constant 0 : index
    %c228 = arith.constant 228 : index
    %51 = vector.load %arg6[%c0_52, %c228] : memref<4x1456xf32, #tpu.memory_space<vmem>>, vector<4x1200xf32>
    %c88 = arith.constant 88 : index
    %c0_53 = arith.constant 0 : index
    %52 = vector.load %arg7[%c88, %c0_53] : memref<108x1200xf32, #tpu.memory_space<vmem>>, vector<4x1200xf32>
    tpu.vector_store %arg7[%c88, %c0_53], %51 {strides = array<i32>} : memref<108x1200xf32, #tpu.memory_space<vmem>>, vector<4x1200xf32>,
    %c0_54 = arith.constant 0 : index
    %c229 = arith.constant 229 : index
    %53 = vector.load %arg6[%c0_54, %c229] : memref<4x1456xf32, #tpu.memory_space<vmem>>, vector<4x1200xf32>
    %c92 = arith.constant 92 : index
    %c0_55 = arith.constant 0 : index
    %54 = vector.load %arg7[%c92, %c0_55] : memref<108x1200xf32, #tpu.memory_space<vmem>>, vector<4x1200xf32>
    tpu.vector_store %arg7[%c92, %c0_55], %53 {strides = array<i32>} : memref<108x1200xf32, #tpu.memory_space<vmem>>, vector<4x1200xf32>,
    %c0_56 = arith.constant 0 : index
    %c237 = arith.constant 237 : index
    %55 = vector.load %arg6[%c0_56, %c237] : memref<4x1456xf32, #tpu.memory_space<vmem>>, vector<4x1200xf32>
    %c96 = arith.constant 96 : index
    %c0_57 = arith.constant 0 : index
    %56 = vector.load %arg7[%c96, %c0_57] : memref<108x1200xf32, #tpu.memory_space<vmem>>, vector<4x1200xf32>
    tpu.vector_store %arg7[%c96, %c0_57], %55 {strides = array<i32>} : memref<108x1200xf32, #tpu.memory_space<vmem>>, vector<4x1200xf32>,
    %c0_58 = arith.constant 0 : index
    %c238 = arith.constant 238 : index
    %57 = vector.load %arg6[%c0_58, %c238] : memref<4x1456xf32, #tpu.memory_space<vmem>>, vector<4x1200xf32>
    %c100 = arith.constant 100 : index
    %c0_59 = arith.constant 0 : index
    %58 = vector.load %arg7[%c100, %c0_59] : memref<108x1200xf32, #tpu.memory_space<vmem>>, vector<4x1200xf32>
    tpu.vector_store %arg7[%c100, %c0_59], %57 {strides = array<i32>} : memref<108x1200xf32, #tpu.memory_space<vmem>>, vector<4x1200xf32>,
    %c0_60 = arith.constant 0 : index
    %c239 = arith.constant 239 : index
    %59 = vector.load %arg6[%c0_60, %c239] : memref<4x1456xf32, #tpu.memory_space<vmem>>, vector<4x1200xf32>
    %c104 = arith.constant 104 : index
    %c0_61 = arith.constant 0 : index
    %60 = vector.load %arg7[%c104, %c0_61] : memref<108x1200xf32, #tpu.memory_space<vmem>>, vector<4x1200xf32>
    tpu.vector_store %arg7[%c104, %c0_61], %59 {strides = array<i32>} : memref<108x1200xf32, #tpu.memory_space<vmem>>, vector<4x1200xf32>,
    %c0_62 = arith.constant 0 : index
    %c0_63 = arith.constant 0 : index
    %61 = vector.load %arg2[%c0_62, %c0_63] : memref<4x108xf32, #tpu.memory_space<vmem>>, vector<4x108xf32>
    %c0_64 = arith.constant 0 : index
    %c0_65 = arith.constant 0 : index
    %62 = vector.load %arg7[%c0_64, %c0_65] : memref<108x1200xf32, #tpu.memory_space<vmem>>, vector<108x1200xf32>
    %cst = arith.constant dense<0.000000e+00> : vector<4x1200xf32>
    %63 = tpu.matmul %61, %62, %cst {dimension_numbers = #tpu.dot_dimension_numbers<[1], [0], [0], [1], [0, 0, 1, 1], [], []>, precision = #tpu.contract_precision<fp32>} : vector<4x108xf32>, vector<108x1200xf32>, vector<4x1200xf32> -> vector<4x1200xf32>
    %c0_66 = arith.constant 0 : index
    %c0_67 = arith.constant 0 : index
    %64 = vector.load %arg3[%c0_66, %c0_67] : memref<4x1200xf32, #tpu.memory_space<vmem>>, vector<4x1200xf32>
    %65 = arith.addf %63, %64 : vector<4x1200xf32>
    %cst_68 = arith.constant 0.000000e+00 : f32
    %66 = vector.broadcast %cst_68 : f32 to vector<4x1200xf32>
    %67 = arith.maximumf %65, %66 : vector<4x1200xf32>
    %c0_69 = arith.constant 0 : index
    %c0_70 = arith.constant 0 : index
    %68 = vector.load %arg4[%c0_69, %c0_70] : memref<4x1200xf32, #tpu.memory_space<vmem>>, vector<4x1200xf32>
    %69 = arith.mulf %67, %68 : vector<4x1200xf32>
    %c0_71 = arith.constant 0 : index
    %c0_72 = arith.constant 0 : index
    %70 = vector.load %arg5[%c0_71, %c0_72] : memref<4x1200xf32, #tpu.memory_space<vmem>>, vector<4x1200xf32>
    tpu.vector_store %arg5[%c0_71, %c0_72], %69 {strides = array<i32>} : memref<4x1200xf32, #tpu.memory_space<vmem>>, vector<4x1200xf32>,
    return
  }
  func.func @transform_0(%arg0: i32) -> (i32, i32) {
    %c0_i32 = arith.constant 0 : i32
    %c0_i32_0 = arith.constant 0 : i32
    %c0_i32_1 = arith.constant 0 : i32
    return %c0_i32, %c0_i32_0 : i32, i32
  }
  func.func @transform_1(%arg0: i32) -> (i32, i32) {
    %c0_i32 = arith.constant 0 : i32
    %c0_i32_0 = arith.constant 0 : i32
    %c0_i32_1 = arith.constant 0 : i32
    return %c0_i32, %c0_i32_0 : i32, i32
  }
  func.func @transform_2(%arg0: i32) -> (i32, i32) {
    %c0_i32 = arith.constant 0 : i32
    %c0_i32_0 = arith.constant 0 : i32
    %c0_i32_1 = arith.constant 0 : i32
    return %c0_i32, %c0_i32_0 : i32, i32
  }
  func.func @transform_3(%arg0: i32) -> (i32, i32) {
    %c0_i32 = arith.constant 0 : i32
    %c0_i32_0 = arith.constant 0 : i32
    %c0_i32_1 = arith.constant 0 : i32
    return %c0_i32, %c0_i32_0 : i32, i32
  }
  func.func @transform_4(%arg0: i32) -> (i32, i32) {
    %c0_i32 = arith.constant 0 : i32
    %c0_i32_0 = arith.constant 0 : i32
    %c0_i32_1 = arith.constant 0 : i32
    return %c0_i32, %c0_i32_0 : i32, i32
  }
}

</mosaic_0001>

<bundles_post_ra>
// kernel: recurrent_conv.1
= control target key start
LH: loop header
LB: loop body
LE: loop exit
PB: predicated region body
PF: predicated region fallthrough
CT: control target
= control target key end

     0   :  { %s5953_s15 = smov 0   ;;  %s10075_s0 = inlined_call_operand.vmem [shape: f32[4,1200], index: 0, kind: input, shape index: {}]   ;;  %s10076_s1 = inlined_call_operand.vmem [shape: f32[4,108], index: 1, kind: input, shape index: {}]   ;;  %s10077_s2 = inlined_call_operand.vmem [shape: f32[4,1200], index: 2, kind: input, shape index: {}]   ;;  %s10078_s3 = inlined_call_operand.vmem [shape: f32[4,1200], index: 3, kind: input, shape index: {}]   ;;  %s10079_s4 = inlined_call_operand.vmem [shape: f32[4,1200], index: 4, kind: output, shape index: {}]  }
   0x1 LB: > { %s5852_s16 = sadd.s32 4294967295, %s5899_s15   ;;  %p5854_p0 = scmp.ge.s32.totalorder %s5899_s15, 1  ;;  %s5899_s15 = sphi %s5953_s15, %s14_s15  }
   0x2   : > { %p147_p1 = scmp.lt.s32.totalorder %s5899_s15, 4 }
   0x4   : > { %p148_p2 = pnand %p5854_p0, %p147_p1 }
   0x6   : > { %151 = sbr.rel (%p148_p2) target bundleno = 1310 (0x51e), region = 36 }
   0xb   : > { %p5855_p3 = scmp.ne.s32.totalorder %s5852_s16, 0 }
   0xd   : > { %166 = sbr.rel (%p5855_p3) target bundleno = 30 (0x1e), region = 40 }
  0x12   : > { %v5901_v0 = vmov 0.0   ;;  %vm171_vm0 = vcmask 1043456   ;;  %vm172_vm1 = vcmask 392196  }
  0x13   : > { %167 = vst [vmem:[%s10079_s4] sm:$0xff] %v5901_v0  ;;  %vm173_vm2 = vmor %vm172_vm1, %vm171_vm0 }
  0x14   : > { %168 = vst [vmem:[%s10079_s4 + $0x8] sm:$0xff] %v5901_v0 }
  0x15   : > { %169 = vst [vmem:[%s10079_s4 + $0x10] sm:$0xff] %v5901_v0 }
  0x16   : > { %170 = vst [vmem:[%s10079_s4 + $0x18] sm:$0xff] %v5901_v0 }
  0x17   : > { %175 = vst [vmem:[#allocation2] sm:$0xff] %v5901_v0 }
  0x18   : > { %176 = vst [vmem:[#allocation2 + $0x8] sm:$0xff] %v5901_v0 }
  0x19   : > { %177 = vst [vmem:[#allocation2 + $0x10] sm:$0xff] %v5901_v0 }
  0x1a   : > { %178 = vst [vmem:[#allocation2 + $0x18] sm:$0xff] %v5901_v0 }
  0x1b   : > { %179 = vst [vmem:[#allocation2 + $0x20] sm:$0xff] %v5901_v0 }
  0x1c   : > { %174 = vst.msk [vmem:[%s10079_s4 + $0x20] sm:$0xff] %vm173_vm2, %v5901_v0 }
  0x1d   : > { %180 = vst.msk [vmem:[#allocation2 + $0x28] sm:$0xff] %vm173_vm2, %v5901_v0 }
  0x1e PF: > { %v182_v1 = vld [vmem:[%s10075_s0 + $0x8] sm:$0xff]  ;;  %v183_v2 = vld [vmem:[%s10075_s0 + $0x10] sm:$0xff]  ;;  %v181_v6 = vld [vmem:[%s10075_s0] sm:$0xff]  ;;  %vm200_vm3 = vcmask 1043456   ;;  %vm10101_vm4 = vcmask 392196   ;;  %v10227_v16 = vmov 0 }
  0x1f   : > { %v187_v3 = vld [vmem:[%s10079_s4 + $0x8] sm:$0xff]  ;;  %v188_v4 = vld [vmem:[%s10079_s4 + $0x10] sm:$0xff]  ;;  %v186_v7 = vld [vmem:[%s10079_s4] sm:$0xff]  ;;  %s5902_s22 = smov 111   ;;  %s5903_s23 = smov 110   ;;  %vm252_vm6 = vcmask 908288  }
  0x20   : > { %v192_v5 = vadd.f32 %v187_v3, %v182_v1  ;;  %v193_v8 = vadd.f32 %v188_v4, %v183_v2  ;;  %v191_v9 = vadd.f32 %v186_v7, %v181_v6  ;;  %v184_v10 = vld [vmem:[%s10075_s0 + $0x18] sm:$0xff]  ;;  %v185_v12 = vld [vmem:[%s10075_s0 + $0x20] sm:$0xff]  ;;  %vm6008_vm5 = vmor %vm10101_vm4, %vm200_vm3  ;;  %s5904_s24 = smov 109   ;;  %s5905_s25 = smov 101   ;;  %vm332_vm7 = vcmask 900096  }
  0x21   : > { %v189_v11 = vld [vmem:[%s10079_s4 + $0x18] sm:$0xff]  ;;  %v10228_v16 = vsel %vm6008_vm5, 4294967295, %v10227_v16  ;;  %s5906_s26 = smov 100   ;;  %s5907_s27 = smov 99   ;;  %vm10082_vm8 = vcmask 388096   ;;  %vm410_vm9 = vcmask 891904  }
  0x22   : > { %197 = vst [vmem:[#allocation2 + $0xc] sm:$0xff] %v192_v5  ;;  %v194_v13 = vadd.f32 %v189_v11, %v184_v10  ;;  %s5908_s28 = smov 91   ;;  %s5909_s29 = smov 90   ;;  %vm489_vm10 = vcmask 826368   ;;  %vm567_vm11 = vcmask 818176   ;;  %vm646_vm12 = vcmask 809984  }
  0x23   : > { %v190_v14 = vld [vmem:[%s10079_s4 + $0x20] sm:$0xff]  ;;  %198 = vst [vmem:[#allocation2 + $0x14] sm:$0xff] %v193_v8  ;;  %s5910_s30 = smov 89   ;;  %s5911_s5 = smov 11   ;;  %vm724_vm13 = vcmask 744448   ;;  %vm803_vm14 = vcmask 736256  }
  0x24   : > { %v195_v15 = vadd.f32 %v190_v14, %v185_v12  ;;  %10229 = vst [vmem:[#allocation4_spill] sm:$0xff] %v10228_v16  ;;  %s5912_s6 = smov 10   ;;  %s5913_s7 = smov 9   ;;  %vm881_vm15 = vcmask 728064   ;;  %vm966_vm0 = vcmask 89088   ;;  %vm1051_vm1 = vcmask 80896  }
  0x25   : > { %196 = vst [vmem:[#allocation2 + $0x4] sm:$0xff] %v191_v9  ;;  %s5914_s8 = smov 1   ;;  %s5915_s9 = smov 37   ;;  %vm1137_vm2 = vcmask 72704  }
  0x26   : > { %199 = vst [vmem:[#allocation2 + $0x1c] sm:$0xff] %v194_v13  ;;  %s5916_s10 = smov 39   ;;  %s5917_s11 = smov 29  }
  0x27   : > { %203 = vst.msk [vmem:[#allocation2 + $0x24] sm:$0xff] %vm6008_vm5, %v195_v15  ;;  %s5918_s12 = smov 38   ;;  %s5919_s13 = smov 28  }
  0x28   : > { %s5920_s14 = smov 118   ;;  %s5921_s16 = smov 27  }
  0x29   : > { %s5922_s17 = smov 127   ;;  %s5923_s18 = smov 117  }
  0x2a   : > { %v6014_v17 = vld [vmem:[#allocation2 + $0x10] sm:$0xff]  ;;  %s5924_s19 = smov 119   ;;  %s5925_s20 = smov 19  }
  0x2b   : > { %218 = vst [vmem:[#allocation1 + $0x20] ss:$2 sm:$0xff] %v6014_v17  ;;  %s5926_s21 = smov 18  }
  0x2c   : > { %v6017_v18 = vld [vmem:[#allocation2 + $0x8] sm:$0xff]  ;;  %v6019_v19 = vld [vmem:[#allocation2] sm:$0xff] }
  0x2d   : > { %216 = vst [vmem:[#allocation1 + $0x10] ss:$2 sm:$0xff] %v6017_v18  ;;  %v6022_v20 = vld [vmem:[#allocation2 + $0x18] sm:$0xff] }
  0x2e   : > { %214 = vst [vmem:[#allocation1] ss:$2 sm:$0xff] %v6019_v19  ;;  %v6027_v23 = vld [vmem:[#allocation2 + $0x20] sm:$0xff] }
  0x2f   : > { %220 = vst [vmem:[#allocation1 + $0x30] ss:$2 sm:$0xff] %v6022_v20 }
  0x32   : > { %v225_v21 = vld.sshfl [vmem:[#allocation1 + $0x20] sm:$0xff pattern:$0x75316420]  ;;  %v226_v26 = vld.sshfl [vmem:[#allocation1 + $0x28] sm:$0xff pattern:$0x75316420] }
  0x33   : > { %240 = vrot.lane.b32.xlu2 %v225_v21, %s5902_s22  ;;  %298 = vst [vmem:[#allocation1 + $0x21] ss:$2 sm:$0xff] %v6014_v17 }
  0x34   : > { %v223_v22 = vld.sshfl [vmem:[#allocation1 + $0x10] sm:$0xff pattern:$0x75316420]  ;;  %v224_v27 = vld.sshfl [vmem:[#allocation1 + $0x18] sm:$0xff pattern:$0x75316420] }
  0x35   : > { %236 = vrot.lane.b32.xlu1 %v223_v22, %s5902_s22  ;;  %v221_v24 = vld.sshfl [vmem:[#allocation1] sm:$0xff pattern:$0x75316420]  ;;  %v222_v25 = vld.sshfl [vmem:[#allocation1 + $0x8] sm:$0xff pattern:$0x75316420] }
  0x36   : > { %232 = vrot.lane.b32.xlu0 %v221_v24, %s5902_s22  ;;  %229 = vst [vmem:[#allocation1] ss:$2 sm:$0xff] %v6027_v23  ;;  %v228_v28 = vld.sshfl [vmem:[#allocation1 + $0x38] sm:$0xff pattern:$0x75316420] }
  0x37   : > { %296 = vst [vmem:[#allocation1 + $0x11] ss:$2 sm:$0xff] %v6017_v18  ;;  %v227_v29 = vld.sshfl [vmem:[#allocation1 + $0x30] sm:$0xff pattern:$0x75316420] }
  0x38   : > { %300 = vst [vmem:[#allocation1 + $0x31] ss:$2 sm:$0xff] %v6022_v20 }
  0x3a   : > { %v305_v34 = vld.sshfl [vmem:[#allocation1 + $0x20] sm:$0xff pattern:$0x75316420]  ;;  %v306_v35 = vld.sshfl [vmem:[#allocation1 + $0x28] sm:$0xff pattern:$0x75316420] }
  0x3b   : > { %242 = vrot.lane.b32.xlu2 %v226_v26, %s5902_s22  ;;  %376 = vst [vmem:[#allocation1 + $0x20] ss:$2 sm:$0xff] %v6014_v17 }
  0x3d   : > { %238 = vrot.lane.b32.xlu1 %v224_v27, %s5902_s22  ;;  %v230_v30 = vld.sshfl [vmem:[#allocation1] sm:$0xff pattern:$0x75316420]  ;;  %v231_v31 = vld.sshfl [vmem:[#allocation1 + $0x8] sm:$0xff pattern:$0x75316420] }
  0x3e   : > { %234 = vrot.lane.b32.xlu0 %v222_v25, %s5902_s22  ;;  %v304_v32 = vld.sshfl [vmem:[#allocation1 + $0x18] sm:$0xff pattern:$0x75316420]  ;;  %v303_v33 = vld.sshfl [vmem:[#allocation1 + $0x10] sm:$0xff pattern:$0x75316420] }
  0x3f   : > { %294 = vst [vmem:[#allocation1 + $0x1] ss:$2 sm:$0xff] %v6019_v19  ;;  %v308_v36 = vld.sshfl [vmem:[#allocation1 + $0x38] sm:$0xff pattern:$0x75316420] }
  0x40   : > { %374 = vst [vmem:[#allocation1 + $0x10] ss:$2 sm:$0xff] %v6017_v18  ;;  %v307_v37 = vld.sshfl [vmem:[#allocation1 + $0x30] sm:$0xff pattern:$0x75316420] }
  0x41   : > { %378 = vst [vmem:[#allocation1 + $0x30] ss:$2 sm:$0xff] %v6022_v20 }
  0x42   : > { %v384_v44 = vld.sshfl [vmem:[#allocation1 + $0x28] sm:$0xff pattern:$0x75316420]  ;;  %v383_v45 = vld.sshfl [vmem:[#allocation1 + $0x20] sm:$0xff pattern:$0x75316420] }
  0x43   : > { %248 = vrot.lane.b32.xlu2 %v230_v30, %s5902_s22  ;;  %455 = vst [vmem:[#allocation1 + $0x21] ss:$2 sm:$0xff] %v6014_v17 }
  0x45   : > { %246 = vrot.lane.b32.xlu1 %v228_v28, %s5902_s22 }
  0x46   : > { %244 = vrot.lane.b32.xlu0 %v227_v29, %s5902_s22  ;;  %v302_v38 = vld.sshfl [vmem:[#allocation1 + $0x8] sm:$0xff pattern:$0x75316420]  ;;  %v301_v39 = vld.sshfl [vmem:[#allocation1] sm:$0xff pattern:$0x75316420] }
  0x47   : > { %309 = vst [vmem:[#allocation1 + $0x1] ss:$2 sm:$0xff] %v6027_v23  ;;  %v381_v40 = vld.sshfl [vmem:[#allocation1 + $0x10] sm:$0xff pattern:$0x75316420] }
  0x48   : > { %v382_v41 = vld.sshfl [vmem:[#allocation1 + $0x18] sm:$0xff pattern:$0x75316420]  ;;  %v385_v46 = vld.sshfl [vmem:[#allocation1 + $0x30] sm:$0xff pattern:$0x75316420] }
  0x49   : > { %453 = vst [vmem:[#allocation1 + $0x11] ss:$2 sm:$0xff] %v6017_v18  ;;  %v386_v49 = vld.sshfl [vmem:[#allocation1 + $0x38] sm:$0xff pattern:$0x75316420] }
  0x4a   : > { %457 = vst [vmem:[#allocation1 + $0x31] ss:$2 sm:$0xff] %v6022_v20  ;;  %v463_v55 = vld.sshfl [vmem:[#allocation1 + $0x28] sm:$0xff pattern:$0x75316420] }
  0x4b   : > { %320 = vrot.lane.b32.xlu2 %v305_v34, %s5903_s23  ;;  %v462_v56 = vld.sshfl [vmem:[#allocation1 + $0x20] sm:$0xff pattern:$0x75316420] }
  0x4c   : > { %533 = vst [vmem:[#allocation1 + $0x20] ss:$2 sm:$0xff] %v6014_v17 }
  0x4d   : > { %318 = vrot.lane.b32.xlu1 %v304_v32, %s5903_s23 }
  0x4e   : > { %250 = vrot.lane.b32.xlu0 %v231_v31, %s5902_s22  ;;  %v311_v42 = vld.sshfl [vmem:[#allocation1 + $0x8] sm:$0xff pattern:$0x75316420]  ;;  %v310_v43 = vld.sshfl [vmem:[#allocation1] sm:$0xff pattern:$0x75316420] }
  0x4f   : > { %372 = vst [vmem:[#allocation1] ss:$2 sm:$0xff] %v6019_v19  ;;  %s5927_s22 = smov 17  }
  0x50   : > { %v460_v54 = vld.sshfl [vmem:[#allocation1 + $0x10] sm:$0xff pattern:$0x75316420]  ;;  %v461_v57 = vld.sshfl [vmem:[#allocation1 + $0x18] sm:$0xff pattern:$0x75316420] }
  0x51   : > { %531 = vst [vmem:[#allocation1 + $0x10] ss:$2 sm:$0xff] %v6017_v18  ;;  %v465_v60 = vld.sshfl [vmem:[#allocation1 + $0x38] sm:$0xff pattern:$0x75316420] }
  0x52   : > { %v464_v61 = vld.sshfl [vmem:[#allocation1 + $0x30] sm:$0xff pattern:$0x75316420] }
  0x53   : > { %314 = vrot.lane.b32.xlu2 %v302_v38, %s5903_s23  ;;  %535 = vst [vmem:[#allocation1 + $0x30] ss:$2 sm:$0xff] %v6022_v20  ;;  %v540_v4 = vld.sshfl [vmem:[#allocation1 + $0x20] sm:$0xff pattern:$0x75316420] }
  0x54   : > { %v541_v7 = vld.sshfl [vmem:[#allocation1 + $0x28] sm:$0xff pattern:$0x75316420] }
  0x55   : > { %312 = vrot.lane.b32.xlu1 %v301_v39, %s5903_s23  ;;  %612 = vst [vmem:[#allocation1 + $0x21] ss:$2 sm:$0xff] %v6014_v17 }
  0x56   : > { %316 = vrot.lane.b32.xlu0 %v303_v33, %s5903_s23  ;;  %v379_v47 = vld.sshfl [vmem:[#allocation1] sm:$0xff pattern:$0x75316420]  ;;  %v380_v48 = vld.sshfl [vmem:[#allocation1 + $0x8] sm:$0xff pattern:$0x75316420] }
  0x57   : > { %387 = vst [vmem:[#allocation1] ss:$2 sm:$0xff] %v6027_v23 }
  0x58   : > { %v538_v2 = vld.sshfl [vmem:[#allocation1 + $0x10] sm:$0xff pattern:$0x75316420]  ;;  %v539_v3 = vld.sshfl [vmem:[#allocation1 + $0x18] sm:$0xff pattern:$0x75316420] }
  0x59   : > { %610 = vst [vmem:[#allocation1 + $0x11] ss:$2 sm:$0xff] %v6017_v18 }
  0x5a   : > { %v543_v8 = vld.sshfl [vmem:[#allocation1 + $0x38] sm:$0xff pattern:$0x75316420]  ;;  %v542_v9 = vld.sshfl [vmem:[#allocation1 + $0x30] sm:$0xff pattern:$0x75316420] }
  0x5b   : > { %326 = vrot.lane.b32.xlu2 %v308_v36, %s5903_s23  ;;  %614 = vst [vmem:[#allocation1 + $0x31] ss:$2 sm:$0xff] %v6022_v20 }
  0x5c   : > { %v6115_v28 = vld.sshfl [vmem:[#allocation1 + $0x28] sm:$0xff pattern:$0x75316420]  ;;  %v6117_v29 = vld.sshfl [vmem:[#allocation1 + $0x20] sm:$0xff pattern:$0x75316420] }
  0x5d   : > { %324 = vrot.lane.b32.xlu1 %v307_v37, %s5903_s23  ;;  %690 = vst [vmem:[#allocation1 + $0x20] ss:$2 sm:$0xff] %v6014_v17 }
  0x5e   : > { %322 = vrot.lane.b32.xlu0 %v306_v35, %s5903_s23  ;;  %v389_v50 = vld.sshfl [vmem:[#allocation1 + $0x8] sm:$0xff pattern:$0x75316420]  ;;  %v388_v51 = vld.sshfl [vmem:[#allocation1] sm:$0xff pattern:$0x75316420] }
  0x5f   : > { %451 = vst [vmem:[#allocation1 + $0x1] ss:$2 sm:$0xff] %v6019_v19 }
  0x60   : > { %v617_v24 = vld.sshfl [vmem:[#allocation1 + $0x10] sm:$0xff pattern:$0x75316420]  ;;  %v618_v25 = vld.sshfl [vmem:[#allocation1 + $0x18] sm:$0xff pattern:$0x75316420] }
  0x61   : > { %688 = vst [vmem:[#allocation1 + $0x10] ss:$2 sm:$0xff] %v6017_v18 }
  0x62   : > { %v621_v35 = vld.sshfl [vmem:[#allocation1 + $0x30] sm:$0xff pattern:$0x75316420]  ;;  %v6128_v36 = vld.sshfl [vmem:[#allocation1 + $0x38] sm:$0xff pattern:$0x75316420] }
  0x63   : > { %390 = vrot.lane.b32.xlu2 %v379_v47, %s5904_s24  ;;  %692 = vst [vmem:[#allocation1 + $0x30] ss:$2 sm:$0xff] %v6022_v20 }
  0x65   : > { %330 = vrot.lane.b32.xlu1 %v311_v42, %s5903_s23 }
  0x66   : > { %328 = vrot.lane.b32.xlu0 %v310_v43, %s5903_s23  ;;  %v459_v52 = vld.sshfl [vmem:[#allocation1 + $0x8] sm:$0xff pattern:$0x75316420]  ;;  %v458_v53 = vld.sshfl [vmem:[#allocation1] sm:$0xff pattern:$0x75316420] }
  0x67   : > { %466 = vst [vmem:[#allocation1 + $0x1] ss:$2 sm:$0xff] %v6027_v23 }
  0x6b   : > { %396 = vrot.lane.b32.xlu2 %v382_v41, %s5904_s24 }
  0x6d   : > { %394 = vrot.lane.b32.xlu1 %v381_v40, %s5904_s24 }
  0x6e   : > { %392 = vrot.lane.b32.xlu0 %v380_v48, %s5904_s24  ;;  %v467_v58 = vld.sshfl [vmem:[#allocation1] sm:$0xff pattern:$0x75316420]  ;;  %v468_v59 = vld.sshfl [vmem:[#allocation1 + $0x8] sm:$0xff pattern:$0x75316420] }
  0x6f   : > { %529 = vst [vmem:[#allocation1] ss:$2 sm:$0xff] %v6019_v19 }
  0x73   : > { %402 = vrot.lane.b32.xlu2 %v385_v46, %s5904_s24 }
  0x75   : > { %400 = vrot.lane.b32.xlu1 %v384_v44, %s5904_s24 }
  0x76   : > { %398 = vrot.lane.b32.xlu0 %v383_v45, %s5904_s24  ;;  %v537_v62 = vld.sshfl [vmem:[#allocation1 + $0x8] sm:$0xff pattern:$0x75316420]  ;;  %v536_v63 = vld.sshfl [vmem:[#allocation1] sm:$0xff pattern:$0x75316420] }
  0x77   : > { %544 = vst [vmem:[#allocation1] ss:$2 sm:$0xff] %v6027_v23 }
  0x7b   : > { %408 = vrot.lane.b32.xlu2 %v389_v50, %s5904_s24 }
  0x7d   : > { %406 = vrot.lane.b32.xlu1 %v388_v51, %s5904_s24 }
  0x7e   : > { %404 = vrot.lane.b32.xlu0 %v386_v49, %s5904_s24  ;;  %v6069_v0 = vld.sshfl [vmem:[#allocation1 + $0x8] sm:$0xff pattern:$0x75316420]  ;;  %v6071_v1 = vld.sshfl [vmem:[#allocation1] sm:$0xff pattern:$0x75316420] }
  0x7f   : > { %608 = vst [vmem:[#allocation1 + $0x1] ss:$2 sm:$0xff] %v6019_v19 }
  0x83   : > { %473 = vrot.lane.b32.xlu2 %v460_v54, %s5905_s25  ;;  %v6160_v54 = vld.sshfl [vmem:[#allocation1 + $0x20] sm:$0xff pattern:$0x75316420] }
  0x85   : > { %471 = vrot.lane.b32.xlu1 %v459_v52, %s5905_s25  ;;  %v695_v52 = vld.sshfl [vmem:[#allocation1 + $0x10] sm:$0xff pattern:$0x75316420] }
  0x86   : > { %469 = vrot.lane.b32.xlu0 %v458_v53, %s5905_s25  ;;  %v6078_v5 = vld.sshfl [vmem:[#allocation1] sm:$0xff pattern:$0x75316420]  ;;  %v6080_v6 = vld.sshfl [vmem:[#allocation1 + $0x8] sm:$0xff pattern:$0x75316420] }
  0x87   : > { %623 = vst [vmem:[#allocation1 + $0x1] ss:$2 sm:$0xff] %v6027_v23  ;;  %v6157_v53 = vld.sshfl [vmem:[#allocation1 + $0x28] sm:$0xff pattern:$0x75316420] }
  0x88   : > { %769 = vst [vmem:[#allocation1 + $0x21] ss:$2 sm:$0xff] %v6014_v17 }
  0x8b   : > { %479 = vrot.lane.b32.xlu2 %v463_v55, %s5905_s25 }
  0x8d   : > { %477 = vrot.lane.b32.xlu1 %v462_v56, %s5905_s25  ;;  %v241_v10 = vpop.permute.xlu2 %240  ;;  %v6165_v56 = vld.sshfl [vmem:[#allocation1 + $0x18] sm:$0xff pattern:$0x75316420] }
  0x8e   : > { %475 = vrot.lane.b32.xlu0 %v461_v57, %s5905_s25  ;;  %v6088_v11 = vld.sshfl [vmem:[#allocation1 + $0x8] sm:$0xff pattern:$0x75316420]  ;;  %v6090_v12 = vld.sshfl [vmem:[#allocation1] sm:$0xff pattern:$0x75316420] }
  0x8f   : > { %686 = vst [vmem:[#allocation1] ss:$2 sm:$0xff] %v6019_v19 }
  0x90   : > { %767 = vst [vmem:[#allocation1 + $0x11] ss:$2 sm:$0xff] %v6017_v18 }
  0x93   : > { %485 = vrot.lane.b32.xlu2 %v467_v58, %s5905_s25 }
  0x95   : > { %483 = vrot.lane.b32.xlu1 %v465_v60, %s5905_s25  ;;  %v243_v13 = vpop.permute.xlu2 %242 }
  0x96   : > { %481 = vrot.lane.b32.xlu0 %v464_v61, %s5905_s25  ;;  %v257_v14 = vsel %vm252_vm6, %v241_v10, %v243_v13  ;;  %v6097_v15 = vld.sshfl [vmem:[#allocation1 + $0x8] sm:$0xff pattern:$0x75316420]  ;;  %v6099_v21 = vld.sshfl [vmem:[#allocation1] sm:$0xff pattern:$0x75316420] }
  0x97   : > { %276 = vst [vmem:[#allocation3 + $0x20] sm:$0xf] %v257_v14 }
  0x98   : > { %701 = vst [vmem:[#allocation1] ss:$2 sm:$0xff] %v6027_v23 }
  0x9b   : > { %549 = vrot.lane.b32.xlu2 %v537_v62, %s5906_s26 }
  0x9d   : > { %547 = vrot.lane.b32.xlu1 %v536_v63, %s5906_s26  ;;  %v6105_v22 = vpop.permute.xlu2 %248  ;;  %v6184_v63 = vld.sshfl [vmem:[#allocation1 + $0x38] sm:$0xff pattern:$0x75316420] }
  0x9e   : > { %487 = vrot.lane.b32.xlu0 %v468_v59, %s5905_s25 }
  0x9f   : > { %v6108_v26 = vld.sshfl [vmem:[#allocation1] sm:$0xff pattern:$0x75316420]  ;;  %v6110_v27 = vld.sshfl [vmem:[#allocation1 + $0x8] sm:$0xff pattern:$0x75316420] }
  0xa0   : > { %765 = vst [vmem:[#allocation1 + $0x1] ss:$2 sm:$0xff] %v6019_v19 }
  0xa3   : > { %555 = vrot.lane.b32.xlu2 %v540_v4, %s5906_s26  ;;  %v6195_v4 = vld.sshfl [vmem:[#allocation1 + $0x18] sm:$0xff pattern:$0x75316420] }
  0xa5   : > { %553 = vrot.lane.b32.xlu1 %v539_v3, %s5906_s26  ;;  %v6120_v30 = vpop.permute.xlu2 %320  ;;  %v6193_v3 = vld.sshfl [vmem:[#allocation1 + $0x10] sm:$0xff pattern:$0x75316420] }
  0xa6   : > { %551 = vrot.lane.b32.xlu0 %v538_v2, %s5906_s26  ;;  %845 = vst [vmem:[#allocation1 + $0x10] ss:$2 sm:$0xff] %v6017_v18 }
  0xa7   : > { %v237_v31 = vpop.permute.xlu1 %236  ;;  %v6123_v33 = vld.sshfl [vmem:[#allocation1 + $0x8] sm:$0xff pattern:$0x75316420]  ;;  %v6125_v34 = vld.sshfl [vmem:[#allocation1] sm:$0xff pattern:$0x75316420] }
  0xa8   : > { %v233_v32 = vpop.permute.xlu0 %232  ;;  %780 = vst [vmem:[#allocation1 + $0x1] ss:$2 sm:$0xff] %v6027_v23 }
  0xab   : > { %561 = vrot.lane.b32.xlu2 %v543_v8, %s5906_s26 }
  0xad   : > { %559 = vrot.lane.b32.xlu1 %v542_v9, %s5906_s26  ;;  %v6134_v37 = vpop.permute.xlu2 %314 }
  0xae   : > { %557 = vrot.lane.b32.xlu0 %v541_v7, %s5906_s26 }
  0xaf   : > { %v239_v38 = vpop.permute.xlu1 %238  ;;  %v6140_v44 = vld.sshfl [vmem:[#allocation1 + $0x8] sm:$0xff pattern:$0x75316420]  ;;  %v6142_v45 = vld.sshfl [vmem:[#allocation1] sm:$0xff pattern:$0x75316420] }
  0xb0   : > { %v255_v39 = vsel %vm252_vm6, %v237_v31, %v239_v38  ;;  %v256_v40 = vsel %vm252_vm6, %v239_v38, %v241_v10  ;;  %v235_v41 = vpop.permute.xlu0 %234  ;;  %843 = vst [vmem:[#allocation1] ss:$2 sm:$0xff] %v6019_v19  ;;  %v776_v38 = vld.sshfl [vmem:[#allocation1 + $0x20] sm:$0xff pattern:$0x75316420] }
  0xb1   : > { %274 = vst [vmem:[#allocation3 + $0x10] sm:$0xf] %v255_v39  ;;  %v253_v42 = vsel %vm252_vm6, %v233_v32, %v235_v41  ;;  %v254_v43 = vsel %vm252_vm6, %v235_v41, %v237_v31  ;;  %v916_v39 = vld [vmem:[#allocation2 + $0x28] sm:$0xf] }
  0xb2   : > { %275 = vst [vmem:[#allocation3 + $0x18] sm:$0xf] %v256_v40 }
  0xb3   : > { %272 = vst [vmem:[#allocation3] sm:$0xf] %v253_v42  ;;  %626 = vrot.lane.b32.xlu2 %v6078_v5, %s5907_s27 }
  0xb4   : > { %273 = vst [vmem:[#allocation3 + $0x8] sm:$0xf] %v254_v43 }
  0xb5   : > { %565 = vrot.lane.b32.xlu1 %v6069_v0, %s5906_s26  ;;  %v6151_v46 = vpop.permute.xlu2 %326  ;;  %v6186_v0 = vld.sshfl [vmem:[#allocation1 + $0x30] sm:$0xff pattern:$0x75316420] }
  0xb6   : > { %563 = vrot.lane.b32.xlu0 %v6071_v1, %s5906_s26  ;;  %771 = vst [vmem:[#allocation1 + $0x31] ss:$2 sm:$0xff] %v6022_v20 }
  0xb7   : > { %v247_v47 = vpop.permute.xlu1 %246  ;;  %v6162_v55 = vld.sshfl [vmem:[#allocation1] sm:$0xff pattern:$0x75316420]  ;;  %v6173_v58 = vld.sshfl [vmem:[#allocation1 + $0x8] sm:$0xff pattern:$0x75316420] }
  0xb8   : > { %v260_v48 = vsel %vm252_vm6, %v247_v47, %v6105_v22  ;;  %v245_v49 = vpop.permute.xlu0 %244  ;;  %858 = vst [vmem:[#allocation1] ss:$2 sm:$0xff] %v6027_v23 }
  0xb9   : > { %279 = vst [vmem:[#allocation3 + $0x38] sm:$0xf] %v260_v48  ;;  %v258_v50 = vsel %vm252_vm6, %v243_v13, %v245_v49  ;;  %v259_v51 = vsel %vm252_vm6, %v245_v49, %v247_v47 }
  0xba   : > { %277 = vst [vmem:[#allocation3 + $0x28] sm:$0xf] %v258_v50 }
  0xbb   : > { %278 = vst [vmem:[#allocation3 + $0x30] sm:$0xf] %v259_v51  ;;  %632 = vrot.lane.b32.xlu2 %v618_v25, %s5907_s27 }
  0xbd   : > { %630 = vrot.lane.b32.xlu1 %v617_v24, %s5907_s27  ;;  %v6170_v57 = vpop.permute.xlu2 %390  ;;  %v6218_v24 = vld.sshfl [vmem:[#allocation1 + $0x18] sm:$0xff pattern:$0x75316420]  ;;  %v6258_v42 = vld.sshfl [vmem:[#allocation1 + $0x30] sm:$0xff pattern:$0x75316420] }
  0xbe   : > { %628 = vrot.lane.b32.xlu0 %v6080_v6, %s5907_s27  ;;  %v6256_v41 = vld.sshfl [vmem:[#allocation1 + $0x38] sm:$0xff pattern:$0x75316420] }
  0xbf   : > { %v319_v59 = vpop.permute.xlu1 %318  ;;  %v6200_v7 = vld.sshfl [vmem:[#allocation1 + $0x8] sm:$0xff pattern:$0x75316420]  ;;  %v6205_v10 = vld.sshfl [vmem:[#allocation1] sm:$0xff pattern:$0x75316420] }
  0xc0   : > { %v336_v60 = vsel %vm332_vm7, %v319_v59, %v6120_v30  ;;  %v251_v61 = vpop.permute.xlu0 %250  ;;  %924 = vst [vmem:[#allocation1 + $0x1] ss:$2 sm:$0xff] %v6019_v19 }
  0xc1   : > { %355 = vst [vmem:[#allocation3 + $0x18] sm:$0xf0] %v336_v60  ;;  %v261_v62 = vsel %vm252_vm6, %v6105_v22, %v251_v61  ;;  %v6216_v22 = vld.sshfl [vmem:[#allocation1 + $0x10] sm:$0xff pattern:$0x75316420]  ;;  %vm10081_vm6 = vcmask 7168  }
  0xc2   : > { %280 = vst [vmem:[#allocation3 + $0x40] sm:$0xf] %v261_v62 }
  0xc3   : > { %282 = vst.msk [vmem:[#allocation3 + $0x48] sm:$0xf] %vm10082_vm8, %v251_v61  ;;  %638 = vrot.lane.b32.xlu2 %v621_v35, %s5907_s27 }
  0xc4   : > { %926 = vst [vmem:[#allocation1 + $0x11] ss:$2 sm:$0xff] %v6017_v18 }
  0xc5   : > { %636 = vrot.lane.b32.xlu1 %v6115_v28, %s5907_s27  ;;  %v6190_v1 = vpop.permute.xlu2 %396  ;;  %849 = vst [vmem:[#allocation1 + $0x30] ss:$2 sm:$0xff] %v6022_v20 }
  0xc6   : > { %634 = vrot.lane.b32.xlu0 %v6117_v29, %s5907_s27 }
  0xc7   : > { %v313_v2 = vpop.permute.xlu1 %312  ;;  %v6226_v29 = vld.sshfl [vmem:[#allocation1 + $0x8] sm:$0xff pattern:$0x75316420]  ;;  %v6229_v31 = vld.sshfl [vmem:[#allocation1] sm:$0xff pattern:$0x75316420] }
  0xc8   : > { %v317_v5 = vpop.permute.xlu0 %316  ;;  %v333_v6 = vsel %vm332_vm7, %v313_v2, %v6134_v37  ;;  %939 = vst [vmem:[#allocation1 + $0x1] ss:$2 sm:$0xff] %v6027_v23 }
  0xc9   : > { %v334_v8 = vsel %vm332_vm7, %v6134_v37, %v317_v5  ;;  %v335_v9 = vsel %vm332_vm7, %v317_v5, %v319_v59  ;;  %352 = vst [vmem:[#allocation3] sm:$0xf0] %v333_v6  ;;  %v6287_v59 = vld [vmem:[#allocation2 + $0x20] sm:$0xff] }
  0xca   : > { %353 = vst [vmem:[#allocation3 + $0x8] sm:$0xf0] %v334_v8 }
  0xcb   : > { %354 = vst [vmem:[#allocation3 + $0x10] sm:$0xf0] %v335_v9  ;;  %644 = vrot.lane.b32.xlu2 %v6088_v11, %s5907_s27  ;;  %v6246_v23 = vld.sshfl [vmem:[#allocation1 + $0x10] sm:$0xff pattern:$0x75316420] }
  0xcd   : > { %642 = vrot.lane.b32.xlu1 %v6090_v12, %s5907_s27  ;;  %v6214_v13 = vpop.permute.xlu2 %402 }
  0xce   : > { %640 = vrot.lane.b32.xlu0 %v6128_v36, %s5907_s27 }
  0xcf   : > { %v325_v14 = vpop.permute.xlu1 %324  ;;  %v6263_v48 = vld.sshfl [vmem:[#allocation1] sm:$0xff pattern:$0x75316420]  ;;  %v6268_v51 = vld.sshfl [vmem:[#allocation1 + $0x8] sm:$0xff pattern:$0x75316420] }
  0xd0   : > { %v323_v25 = vpop.permute.xlu0 %322  ;;  %v339_v28 = vsel %vm332_vm7, %v325_v14, %v6151_v46  ;;  %1009 = vst [vmem:[#allocation1] ss:$2 sm:$0xff] %v6019_v19 }
  0xd1   : > { %v337_v11 = vsel %vm332_vm7, %v6120_v30, %v323_v25  ;;  %v338_v12 = vsel %vm332_vm7, %v323_v25, %v325_v14  ;;  %358 = vst [vmem:[#allocation3 + $0x30] sm:$0xf0] %v339_v28  ;;  %v1082_v28 = vld [vmem:[#allocation2] sm:$0xff] }
  0xd2   : > { %356 = vst [vmem:[#allocation3 + $0x20] sm:$0xf0] %v337_v11 }
  0xd3   : > { %357 = vst [vmem:[#allocation3 + $0x28] sm:$0xf0] %v338_v12  ;;  %708 = vrot.lane.b32.xlu2 %v695_v52, %s5908_s28  ;;  %v6329_v12 = vld.sshfl [vmem:[#allocation1 + $0x38] sm:$0xff pattern:$0x75316420] }
  0xd5   : > { %706 = vrot.lane.b32.xlu1 %v6097_v15, %s5908_s28  ;;  %v409_v30 = vpop.permute.xlu2 %408  ;;  %v6241_v15 = vld.sshfl [vmem:[#allocation1 + $0x28] sm:$0xff pattern:$0x75316420] }
  0xd6   : > { %704 = vrot.lane.b32.xlu0 %v6099_v21, %s5908_s28  ;;  %439 = vst.msk [vmem:[#allocation3 + $0x98] sm:$0xf] %vm10082_vm8, %v409_v30  ;;  %v6250_v21 = vld.sshfl [vmem:[#allocation1 + $0x18] sm:$0xff pattern:$0x75316420] }
  0xd7   : > { %v331_v32 = vpop.permute.xlu1 %330  ;;  %847 = vst [vmem:[#allocation1 + $0x20] ss:$2 sm:$0xff] %v6014_v17  ;;  %v6289_v60 = vld.sshfl [vmem:[#allocation1] sm:$0xff pattern:$0x75316420] }
  0xd8   : > { %361 = vst.msk [vmem:[#allocation3 + $0x48] sm:$0xf0] %vm10101_vm4, %v331_v32  ;;  %v329_v35 = vpop.permute.xlu0 %328  ;;  %v6293_v61 = vld.sshfl [vmem:[#allocation1 + $0x8] sm:$0xff pattern:$0x75316420] }
  0xd9   : > { %v340_v36 = vsel %vm332_vm7, %v6151_v46, %v329_v35  ;;  %v341_v37 = vsel %vm332_vm7, %v329_v35, %v331_v32  ;;  %940 = vst [vmem:[#allocation1 + $0x11] ss:$2 sm:$0xff] %v916_v39  ;;  %v1083_v39 = vld [vmem:[#allocation2 + $0x8] sm:$0xff]  ;;  %vm1841_vm7 = vcmask 302080  }
  0xda   : > { %359 = vst [vmem:[#allocation3 + $0x38] sm:$0xf0] %v340_v36 }
  0xdb   : > { %360 = vst [vmem:[#allocation3 + $0x40] sm:$0xf0] %v341_v37  ;;  %714 = vrot.lane.b32.xlu2 %v6157_v53, %s5908_s28 }
  0xdc   : > { %1024 = vst [vmem:[#allocation1] ss:$2 sm:$0xff] %v6287_v59 }
  0xdd   : > { %712 = vrot.lane.b32.xlu1 %v6160_v54, %s5908_s28  ;;  %v6254_v40 = vpop.permute.xlu2 %473 }
  0xde   : > { %710 = vrot.lane.b32.xlu0 %v6165_v56, %s5908_s28  ;;  %v6313_v2 = vld.sshfl [vmem:[#allocation1 + $0x20] sm:$0xff pattern:$0x75316420] }
  0xdf   : > { %v395_v43 = vpop.permute.xlu1 %394 }
  0xe0   : > { %v413_v46 = vsel %vm410_vm9, %v395_v43, %v6190_v1  ;;  %v393_v47 = vpop.permute.xlu0 %392  ;;  %v6279_v54 = vld.sshfl [vmem:[#allocation1 + $0x10] sm:$0xff pattern:$0x75316420] }
  0xe1   : > { %432 = vst [vmem:[#allocation3 + $0x60] sm:$0xf] %v413_v46  ;;  %v411_v49 = vsel %vm410_vm9, %v6170_v57, %v393_v47  ;;  %v412_v50 = vsel %vm410_vm9, %v393_v47, %v395_v43  ;;  %v1087_v47 = vld [vmem:[#allocation2 + $0x28] sm:$0xf] }
  0xe2   : > { %430 = vst [vmem:[#allocation3 + $0x50] sm:$0xf] %v411_v49 }
  0xe3   : > { %431 = vst [vmem:[#allocation3 + $0x58] sm:$0xf] %v412_v50  ;;  %720 = vrot.lane.b32.xlu2 %v6108_v26, %s5908_s28  ;;  %v6322_v9 = vld.sshfl [vmem:[#allocation1 + $0x8] sm:$0xff pattern:$0x75316420] }
  0xe4   : > { %1011 = vst [vmem:[#allocation1 + $0x10] ss:$2 sm:$0xff] %v6017_v18 }
  0xe5   : > { %718 = vrot.lane.b32.xlu1 %v6184_v63, %s5908_s28  ;;  %v6277_v52 = vpop.permute.xlu2 %479 }
  0xe6   : > { %716 = vrot.lane.b32.xlu0 %v6186_v0, %s5908_s28 }
  0xe7   : > { %v401_v53 = vpop.permute.xlu1 %400 }
  0xe8   : > { %v416_v56 = vsel %vm410_vm9, %v401_v53, %v6214_v13  ;;  %v399_v57 = vpop.permute.xlu0 %398 }
  0xe9   : > { %435 = vst [vmem:[#allocation3 + $0x78] sm:$0xf] %v416_v56  ;;  %v414_v19 = vsel %vm410_vm9, %v6190_v1, %v399_v57  ;;  %v415_v26 = vsel %vm410_vm9, %v399_v57, %v401_v53 }
  0xea   : > { %433 = vst [vmem:[#allocation3 + $0x68] sm:$0xf] %v414_v19 }
  0xeb   : > { %434 = vst [vmem:[#allocation3 + $0x70] sm:$0xf] %v415_v26  ;;  %785 = vrot.lane.b32.xlu2 %v6123_v33, %s5909_s29  ;;  %v6315_v5 = vld.sshfl [vmem:[#allocation1 + $0x18] sm:$0xff pattern:$0x75316420] }
  0xed   : > { %783 = vrot.lane.b32.xlu1 %v6125_v34, %s5909_s29  ;;  %v6300_v18 = vpop.permute.xlu2 %485  ;;  %v6307_v34 = vld.sshfl [vmem:[#allocation1 + $0x28] sm:$0xff pattern:$0x75316420] }
  0xee   : > { %722 = vrot.lane.b32.xlu0 %v6110_v27, %s5908_s28  ;;  %v6309_v27 = vld.sshfl [vmem:[#allocation1 + $0x10] sm:$0xff pattern:$0x75316420]  ;;  %928 = vst [vmem:[#allocation1 + $0x21] ss:$2 sm:$0xff] %v6014_v17 }
  0xef   : > { %v407_v62 = vpop.permute.xlu1 %406 }
  0xf0   : > { %v405_v63 = vpop.permute.xlu0 %404  ;;  %v419_v0 = vsel %vm410_vm9, %v407_v62, %v409_v30 }
  0xf1   : > { %v417_v1 = vsel %vm410_vm9, %v6214_v13, %v405_v63  ;;  %v418_v33 = vsel %vm410_vm9, %v405_v63, %v407_v62  ;;  %438 = vst [vmem:[#allocation3 + $0x90] sm:$0xf] %v419_v0  ;;  %v1002_v13 = vld [vmem:[#allocation2 + $0x28] sm:$0xf]  ;;  %vm1927_vm9 = vcmask 236544  }
  0xf2   : > { %436 = vst [vmem:[#allocation3 + $0x80] sm:$0xf] %v417_v1 }
  0xf3   : > { %437 = vst [vmem:[#allocation3 + $0x88] sm:$0xf] %v418_v33  ;;  %791 = vrot.lane.b32.xlu2 %v776_v38, %s5909_s29  ;;  %v1173_v33 = vld [vmem:[#allocation2 + $0x28] sm:$0xf] }
  0xf4   : > { %1025 = vst [vmem:[#allocation1 + $0x10] ss:$2 sm:$0xff] %v1002_v13 }
  0xf5   : > { %789 = vrot.lane.b32.xlu1 %v6195_v4, %s5909_s29  ;;  %v6319_v6 = vpop.permute.xlu2 %549  ;;  %v6326_v4 = vld.sshfl [vmem:[#allocation1] sm:$0xff pattern:$0x75316420] }
  0xf6   : > { %787 = vrot.lane.b32.xlu0 %v6193_v3, %s5909_s29  ;;  %v856_v3 = vld.sshfl [vmem:[#allocation1 + $0x30] sm:$0xff pattern:$0x75316420]  ;;  %1095 = vst [vmem:[#allocation1 + $0x1] ss:$2 sm:$0xff] %v1082_v28 }
  0xf7   : > { %v472_v8 = vpop.permute.xlu1 %471  ;;  %930 = vst [vmem:[#allocation1 + $0x31] ss:$2 sm:$0xff] %v6022_v20 }
  0xf8   : > { %v491_v14 = vsel %vm489_vm10, %v472_v8, %v6254_v40  ;;  %v470_v25 = vpop.permute.xlu0 %469 }
  0xf9   : > { %510 = vst [vmem:[#allocation3 + $0x58] sm:$0xf0] %v491_v14  ;;  %v490_v11 = vsel %vm489_vm10, %v470_v25, %v472_v8 }
  0xfa   : > { %509 = vst [vmem:[#allocation3 + $0x50] sm:$0xf0] %v490_v11  ;;  %v6429_v11 = vld [vmem:[#allocation2 + $0xc] sm:$0xff] }
  0xfb   : > { %797 = vrot.lane.b32.xlu2 %v6256_v41, %s5909_s29  ;;  %v6345_v20 = vld.sshfl [vmem:[#allocation1 + $0x10] sm:$0xff pattern:$0x75316420] }
  0xfc   : > { %1097 = vst [vmem:[#allocation1 + $0x11] ss:$2 sm:$0xff] %v1083_v39 }
  0xfd   : > { %795 = vrot.lane.b32.xlu1 %v6258_v42, %s5909_s29  ;;  %v6338_v17 = vpop.permute.xlu2 %555  ;;  %v6347_v38 = vld.sshfl [vmem:[#allocation1 + $0x8] sm:$0xff pattern:$0x75316420] }
  0xfe   : > { %793 = vrot.lane.b32.xlu0 %v6241_v15, %s5909_s29  ;;  %v6349_v15 = vld.sshfl [vmem:[#allocation1] sm:$0xff pattern:$0x75316420] }
  0xff   : > { %v478_v30 = vpop.permute.xlu1 %477  ;;  %1110 = vst [vmem:[#allocation1 + $0x1] ss:$2 sm:$0xff] %v6287_v59 }
 0x100   : > { %v494_v32 = vsel %vm489_vm10, %v478_v30, %v6277_v52  ;;  %v476_v35 = vpop.permute.xlu0 %475 }
 0x101   : > { %513 = vst [vmem:[#allocation3 + $0x70] sm:$0xf0] %v494_v32  ;;  %v492_v36 = vsel %vm489_vm10, %v6254_v40, %v476_v35  ;;  %v493_v37 = vsel %vm489_vm10, %v476_v35, %v478_v30 }
 0x102   : > { %511 = vst [vmem:[#allocation3 + $0x60] sm:$0xf0] %v492_v36  ;;  %v936_v36 = vld.sshfl [vmem:[#allocation1 + $0x28] sm:$0xff pattern:$0x75316420] }
 0x103   : > { %512 = vst [vmem:[#allocation3 + $0x68] sm:$0xf0] %v493_v37  ;;  %861 = vrot.lane.b32.xlu2 %v6162_v55, %s5910_s30  ;;  %v935_v37 = vld.sshfl [vmem:[#allocation1 + $0x20] sm:$0xff pattern:$0x75316420] }
 0x105   : > { %801 = vrot.lane.b32.xlu1 %v6140_v44, %s5909_s29  ;;  %v6358_v40 = vpop.permute.xlu2 %561  ;;  %v6367_v44 = vld.sshfl [vmem:[#allocation1 + $0x10] sm:$0xff pattern:$0x75316420] }
 0x106   : > { %799 = vrot.lane.b32.xlu0 %v6142_v45, %s5909_s29  ;;  %v6371_v45 = vld.sshfl [vmem:[#allocation1 + $0x18] sm:$0xff pattern:$0x75316420]  ;;  %v6377_v50 = vld.sshfl [vmem:[#allocation1 + $0x8] sm:$0xff pattern:$0x75316420] }
 0x107   : > { %v484_v41 = vpop.permute.xlu1 %483  ;;  %1111 = vst [vmem:[#allocation1 + $0x11] ss:$2 sm:$0xff] %v1087_v47  ;;  %v6379_v53 = vld.sshfl [vmem:[#allocation1] sm:$0xff pattern:$0x75316420] }
 0x108   : > { %v497_v42 = vsel %vm489_vm10, %v484_v41, %v6300_v18  ;;  %v482_v43 = vpop.permute.xlu0 %481  ;;  %1180 = vst [vmem:[#allocation1] ss:$2 sm:$0xff] %v1082_v28 }
 0x109   : > { %516 = vst [vmem:[#allocation3 + $0x88] sm:$0xf0] %v497_v42  ;;  %v495_v55 = vsel %vm489_vm10, %v6277_v52, %v482_v43  ;;  %v496_v46 = vsel %vm489_vm10, %v482_v43, %v484_v41  ;;  %v938_v41 = vld.sshfl [vmem:[#allocation1 + $0x38] sm:$0xff pattern:$0x75316420] }
 0x10a   : > { %514 = vst [vmem:[#allocation3 + $0x78] sm:$0xf0] %v495_v55  ;;  %v937_v55 = vld.sshfl [vmem:[#allocation1 + $0x30] sm:$0xff pattern:$0x75316420] }
 0x10b   : > { %515 = vst [vmem:[#allocation3 + $0x80] sm:$0xf0] %v496_v46  ;;  %867 = vrot.lane.b32.xlu2 %v6218_v24, %s5910_s30  ;;  %v6460_v46 = vld [vmem:[#allocation2 + $0x18] sm:$0xff] }
 0x10c   : > { %1015 = vst [vmem:[#allocation1 + $0x30] ss:$2 sm:$0xff] %v6460_v46 }
 0x10d   : > { %865 = vrot.lane.b32.xlu1 %v6216_v22, %s5910_s30  ;;  %v6375_v49 = vpop.permute.xlu2 %626 }
 0x10e   : > { %863 = vrot.lane.b32.xlu0 %v6173_v58, %s5910_s30  ;;  %v6389_v58 = vld.sshfl [vmem:[#allocation1 + $0x10] sm:$0xff pattern:$0x75316420] }
 0x10f   : > { %v548_v52 = vpop.permute.xlu1 %547  ;;  %1182 = vst [vmem:[#allocation1 + $0x10] ss:$2 sm:$0xff] %v1083_v39  ;;  %v6395_v26 = vld.sshfl [vmem:[#allocation1] sm:$0xff pattern:$0x75316420]  ;;  %v6451_v39 = vld [vmem:[#allocation2 + $0x10] sm:$0xff] }
 0x110   : > { %v488_v24 = vpop.permute.xlu0 %487  ;;  %v568_v56 = vsel %vm567_vm11, %v548_v52, %v6319_v6  ;;  %1013 = vst [vmem:[#allocation1 + $0x20] ss:$2 sm:$0xff] %v6451_v39 }
 0x111   : > { %v498_v22 = vsel %vm489_vm10, %v6300_v18, %v488_v24  ;;  %518 = vst.msk [vmem:[#allocation3 + $0x98] sm:$0xf0] %vm10101_vm4, %v488_v24  ;;  %v6397_v18 = vld.sshfl [vmem:[#allocation1 + $0x8] sm:$0xff pattern:$0x75316420]  ;;  %vm1670_vm10 = vcmask 318464  }
 0x112   : > { %517 = vst [vmem:[#allocation3 + $0x90] sm:$0xf0] %v498_v22 }
 0x113   : > { %587 = vst [vmem:[#allocation3 + $0xa0] sm:$0xf] %v568_v56  ;;  %873 = vrot.lane.b32.xlu2 %v856_v3, %s5910_s30 }
 0x114   : > { %1195 = vst [vmem:[#allocation1] ss:$2 sm:$0xff] %v6287_v59 }
 0x115   : > { %871 = vrot.lane.b32.xlu1 %v6307_v34, %s5910_s30  ;;  %v6393_v57 = vpop.permute.xlu2 %632  ;;  %v6407_v34 = vld [vmem:[#allocation2 + $0x4] sm:$0xff] }
 0x116   : > { %869 = vrot.lane.b32.xlu0 %v6313_v2, %s5910_s30  ;;  %v6411_v2 = vld.sshfl [vmem:[#allocation1 + $0x10] sm:$0xff pattern:$0x75316420]  ;;  %v6413_v59 = vld.sshfl [vmem:[#allocation1 + $0x18] sm:$0xff pattern:$0x75316420] }
 0x117   : > { %v554_v19 = vpop.permute.xlu1 %553  ;;  %1196 = vst [vmem:[#allocation1 + $0x10] ss:$2 sm:$0xff] %v1173_v33  ;;  %v6469_v22 = vld.sshfl [vmem:[#allocation1 + $0x28] sm:$0xff pattern:$0x75316420] }
 0x118   : > { %v552_v62 = vpop.permute.xlu0 %551  ;;  %v571_v63 = vsel %vm567_vm11, %v554_v19, %v6338_v17 }
 0x119   : > { %v569_v0 = vsel %vm567_vm11, %v6319_v6, %v552_v62  ;;  %v570_v1 = vsel %vm567_vm11, %v552_v62, %v554_v19  ;;  %590 = vst [vmem:[#allocation3 + $0xb8] sm:$0xf] %v571_v63  ;;  %v6473_v19 = vld.sshfl [vmem:[#allocation1 + $0x20] sm:$0xff pattern:$0x75316420] }
 0x11a   : > { %588 = vst [vmem:[#allocation3 + $0xa8] sm:$0xf] %v569_v0  ;;  %v1022_v63 = vld.sshfl [vmem:[#allocation1 + $0x30] sm:$0xff pattern:$0x75316420] }
 0x11b   : > { %589 = vst [vmem:[#allocation3 + $0xb0] sm:$0xf] %v570_v1  ;;  %879 = vrot.lane.b32.xlu2 %v6200_v7, %s5910_s30  ;;  %v6419_v13 = vld.sshfl [vmem:[#allocation1] sm:$0xff pattern:$0x75316420] }
 0x11c   : > { %v6421_v14 = vld.sshfl [vmem:[#allocation1 + $0x8] sm:$0xff pattern:$0x75316420]  ;;  %1099 = vst [vmem:[#allocation1 + $0x21] ss:$2 sm:$0xff] %v6451_v39 }
 0x11d   : > { %877 = vrot.lane.b32.xlu1 %v6205_v10, %s5910_s30  ;;  %v6417_v6 = vpop.permute.xlu2 %638  ;;  %1264 = vst [vmem:[#allocation1 + $0x1] ss:$2 sm:$0xff] %v6407_v34  ;;  %v6482_v0 = vld.sshfl [vmem:[#allocation1 + $0x38] sm:$0xff pattern:$0x75316420] }
 0x11e   : > { %875 = vrot.lane.b32.xlu0 %v6329_v12, %s5910_s30  ;;  %v6435_v3 = vld.sshfl [vmem:[#allocation1 + $0x10] sm:$0xff pattern:$0x75316420]  ;;  %1101 = vst [vmem:[#allocation1 + $0x31] ss:$2 sm:$0xff] %v6460_v46 }
 0x11f   : > { %v560_v8 = vpop.permute.xlu1 %559  ;;  %10230 = vst [vmem:[#allocation5_spill] sm:$0xff] %v6435_v3 }
 0x120   : > { %v558_v7 = vpop.permute.xlu0 %557  ;;  %v574_v25 = vsel %vm567_vm11, %v560_v8, %v6358_v40  ;;  %1266 = vst [vmem:[#allocation1 + $0x11] ss:$2 sm:$0xff] %v6429_v11 }
 0x121   : > { %v572_v10 = vsel %vm567_vm11, %v6338_v17, %v558_v7  ;;  %v573_v28 = vsel %vm567_vm11, %v558_v7, %v560_v8  ;;  %593 = vst [vmem:[#allocation3 + $0xd0] sm:$0xf] %v574_v25  ;;  %v6442_v17 = vld [vmem:[#allocation2 + $0x24] sm:$0xff] }
 0x122   : > { %591 = vst [vmem:[#allocation3 + $0xc0] sm:$0xf] %v572_v10 }
 0x123   : > { %592 = vst [vmem:[#allocation3 + $0xc8] sm:$0xf] %v573_v28  ;;  %948 = vrot.lane.b32.xlu2 %v6246_v23, %s5911_s5 }
 0x124   : > { %v1271_v32 = vld.sshfl [vmem:[#allocation1] sm:$0xff pattern:$0x75316420] }
 0x125   : > { %946 = vrot.lane.b32.xlu1 %v6226_v29, %s5911_s5  ;;  %v6439_v12 = vpop.permute.xlu2 %644  ;;  %v1272_v29 = vld.sshfl [vmem:[#allocation1 + $0x8] sm:$0xff pattern:$0x75316420]  ;;  %1292 = vst [vmem:[#allocation3 + $0x1e0] sm:$0xf0] %v1271_v32 }
 0x126   : > { %944 = vrot.lane.b32.xlu0 %v6229_v31, %s5911_s5  ;;  %675 = vst.msk [vmem:[#allocation3 + $0xe8] sm:$0xf0] %vm10101_vm4, %v6439_v12 }
 0x127   : > { %v566_v30 = vpop.permute.xlu1 %565  ;;  %1279 = vst [vmem:[#allocation1 + $0x1] ss:$2 sm:$0xff] %v6442_v17  ;;  %v1273_v42 = vld.sshfl [vmem:[#allocation1 + $0x10] sm:$0xff pattern:$0x75316420] }
 0x128   : > { %596 = vst.msk [vmem:[#allocation3 + $0xe8] sm:$0xf] %vm10082_vm8, %v566_v30  ;;  %v564_v23 = vpop.permute.xlu0 %563 }
 0x129   : > { %v575_v35 = vsel %vm567_vm11, %v6358_v40, %v564_v23  ;;  %v576_v31 = vsel %vm567_vm11, %v564_v23, %v566_v30  ;;  %v1274_v40 = vld.sshfl [vmem:[#allocation1 + $0x18] sm:$0xff pattern:$0x75316420]  ;;  %1294 = vst [vmem:[#allocation3 + $0x1f0] sm:$0xf0] %v1273_v42  ;;  %vm1756_vm11 = vcmask 310272  }
 0x12a   : > { %594 = vst [vmem:[#allocation3 + $0xd8] sm:$0xf] %v575_v35 }
 0x12b   : > { %595 = vst [vmem:[#allocation3 + $0xe0] sm:$0xf] %v576_v31  ;;  %954 = vrot.lane.b32.xlu2 %v936_v36, %s5911_s5 }
 0x12c   : > { %1314 = vst [vmem:[#allocation1 + $0x10] ss:$2 sm:$0xff] %v6429_v11 }
 0x12d   : > { %952 = vrot.lane.b32.xlu1 %v935_v37, %s5911_s5  ;;  %v6458_v43 = vpop.permute.xlu2 %708  ;;  %1295 = vst [vmem:[#allocation3 + $0x1f8] sm:$0xf0] %v1274_v40 }
 0x12e   : > { %950 = vrot.lane.b32.xlu0 %v6250_v21, %s5911_s5  ;;  %v1280_v7 = vld.sshfl [vmem:[#allocation1] sm:$0xff pattern:$0x75316420]  ;;  %v1281_v28 = vld.sshfl [vmem:[#allocation1 + $0x8] sm:$0xff pattern:$0x75316420] }
 0x12f   : > { %v631_v47 = vpop.permute.xlu1 %630  ;;  %1312 = vst [vmem:[#allocation1] ss:$2 sm:$0xff] %v6407_v34 }
 0x130   : > { %v649_v52 = vsel %vm646_vm12, %v631_v47, %v6393_v57  ;;  %v629_v24 = vpop.permute.xlu0 %628  ;;  %1293 = vst [vmem:[#allocation3 + $0x1e8] sm:$0xf0] %v1272_v29  ;;  %v6525_v29 = vld.sshfl [vmem:[#allocation1 + $0x20] sm:$0xff pattern:$0x75316420] }
 0x131   : > { %668 = vst [vmem:[#allocation3 + $0xb0] sm:$0xf0] %v649_v52  ;;  %v647_v56 = vsel %vm646_vm12, %v6375_v49, %v629_v24  ;;  %v648_v21 = vsel %vm646_vm12, %v629_v24, %v631_v47 }
 0x132   : > { %666 = vst [vmem:[#allocation3 + $0xa0] sm:$0xf0] %v647_v56 }
 0x133   : > { %667 = vst [vmem:[#allocation3 + $0xa8] sm:$0xf0] %v648_v21  ;;  %960 = vrot.lane.b32.xlu2 %v6263_v48, %s5911_s5  ;;  %v6477_v62 = vld.sshfl [vmem:[#allocation1 + $0x10] sm:$0xff pattern:$0x75316420] }
 0x134   : > { %v6485_v48 = vld.sshfl [vmem:[#allocation1 + $0x18] sm:$0xff pattern:$0x75316420]  ;;  %1300 = vst [vmem:[#allocation3 + $0x220] sm:$0xf0] %v1280_v7 }
 0x135   : > { %958 = vrot.lane.b32.xlu1 %v938_v41, %s5911_s5  ;;  %v6480_v49 = vpop.permute.xlu2 %714  ;;  %1393 = vst [vmem:[#allocation1 + $0x11] ss:$2 sm:$0xff] %v6429_v11 }
 0x136   : > { %956 = vrot.lane.b32.xlu0 %v937_v55, %s5911_s5  ;;  %v6513_v32 = vld.sshfl [vmem:[#allocation1 + $0x8] sm:$0xff pattern:$0x75316420]  ;;  %1301 = vst.msk [vmem:[#allocation3 + $0x228] sm:$0xf0] %vm10101_vm4, %v1281_v28 }
 0x137   : > { %v637_v1 = vpop.permute.xlu1 %636 }
 0x138   : > { %v652_v33 = vsel %vm646_vm12, %v637_v1, %v6417_v6  ;;  %v635_v8 = vpop.permute.xlu0 %634 }
 0x139   : > { %671 = vst [vmem:[#allocation3 + $0xc8] sm:$0xf0] %v652_v33  ;;  %v650_v25 = vsel %vm646_vm12, %v6393_v57, %v635_v8  ;;  %v651_v10 = vsel %vm646_vm12, %v635_v8, %v637_v1 }
 0x13a   : > { %669 = vst [vmem:[#allocation3 + $0xb8] sm:$0xf0] %v650_v25  ;;  %v6577_v25 = vld [vmem:[#allocation2 + $0x1c] sm:$0xff] }
 0x13b   : > { %670 = vst [vmem:[#allocation3 + $0xc0] sm:$0xf0] %v651_v10  ;;  %1029 = vrot.lane.b32.xlu2 %v6289_v60, %s5912_s6 }
 0x13d   : > { %964 = vrot.lane.b32.xlu1 %v6279_v54, %s5911_s5  ;;  %v6500_v30 = vpop.permute.xlu2 %720  ;;  %v6507_v54 = vld.sshfl [vmem:[#allocation1 + $0x10] sm:$0xff pattern:$0x75316420] }
 0x13e   : > { %962 = vrot.lane.b32.xlu0 %v6268_v51, %s5911_s5  ;;  %v6509_v51 = vld.sshfl [vmem:[#allocation1] sm:$0xff pattern:$0x75316420] }
 0x13f   : > { %v643_v57 = vpop.permute.xlu1 %642  ;;  %1327 = vst [vmem:[#allocation1] ss:$2 sm:$0xff] %v6442_v17 }
 0x140   : > { %v641_v23 = vpop.permute.xlu0 %640  ;;  %v655_v35 = vsel %vm646_vm12, %v643_v57, %v6439_v12 }
 0x141   : > { %v653_v60 = vsel %vm646_vm12, %v6417_v6, %v641_v23  ;;  %v654_v31 = vsel %vm646_vm12, %v641_v23, %v643_v57  ;;  %674 = vst [vmem:[#allocation3 + $0xe0] sm:$0xf0] %v655_v35  ;;  %v6518_v6 = vld.sshfl [vmem:[#allocation1 + $0x18] sm:$0xff pattern:$0x75316420]  ;;  %vm2012_vm12 = vcmask 228352  }
 0x142   : > { %672 = vst [vmem:[#allocation3 + $0xd0] sm:$0xf0] %v653_v60 }
 0x143   : > { %673 = vst [vmem:[#allocation3 + $0xd8] sm:$0xf0] %v654_v31  ;;  %1035 = vrot.lane.b32.xlu2 %v6315_v5, %s5912_s6  ;;  %v6527_v5 = vld.sshfl [vmem:[#allocation1 + $0x28] sm:$0xff pattern:$0x75316420] }
 0x144   : > { %1184 = vst [vmem:[#allocation1 + $0x20] ss:$2 sm:$0xff] %v6451_v39 }
 0x145   : > { %1033 = vrot.lane.b32.xlu1 %v6309_v27, %s5912_s6  ;;  %v6523_v12 = vpop.permute.xlu2 %785  ;;  %1471 = vst [vmem:[#allocation1 + $0x10] ss:$2 sm:$0xff] %v6429_v11 }
 0x146   : > { %1031 = vrot.lane.b32.xlu0 %v6293_v61, %s5912_s6  ;;  %v6534_v61 = vld [vmem:[#allocation2 + $0x14] sm:$0xff]  ;;  %v6539_v40 = vld.sshfl [vmem:[#allocation1 + $0x8] sm:$0xff pattern:$0x75316420] }
 0x147   : > { %v707_v36 = vpop.permute.xlu1 %706  ;;  %v6537_v42 = vld.sshfl [vmem:[#allocation1] sm:$0xff pattern:$0x75316420]  ;;  %10232 = vst [vmem:[#allocation7_spill] sm:$0xff] %v6539_v40 }
 0x148   : > { %v726_v27 = vsel %vm724_vm13, %v707_v36, %v6458_v43  ;;  %v705_v37 = vpop.permute.xlu0 %704  ;;  %10231 = vst [vmem:[#allocation6_spill] sm:$0xff] %v6537_v42 }
 0x149   : > { %745 = vst [vmem:[#allocation3 + $0xf8] sm:$0xf] %v726_v27  ;;  %v725_v41 = vsel %vm724_vm13, %v705_v37, %v707_v36 }
 0x14a   : > { %744 = vst [vmem:[#allocation3 + $0xf0] sm:$0xf] %v725_v41 }
 0x14b   : > { %1041 = vrot.lane.b32.xlu2 %v1022_v63, %s5912_s6  ;;  %1391 = vst [vmem:[#allocation1 + $0x1] ss:$2 sm:$0xff] %v6407_v34  ;;  %v6548_v55 = vld.sshfl [vmem:[#allocation1 + $0x20] sm:$0xff pattern:$0x75316420] }
 0x14c   : > { %v6550_v47 = vld.sshfl [vmem:[#allocation1 + $0x28] sm:$0xff pattern:$0x75316420]  ;;  %v1109_v63 = vld.sshfl [vmem:[#allocation1 + $0x38] sm:$0xff pattern:$0x75316420] }
 0x14d   : > { %1039 = vrot.lane.b32.xlu1 %v6469_v22, %s5912_s6  ;;  %v6546_v39 = vpop.permute.xlu2 %791  ;;  %1268 = vst [vmem:[#allocation1 + $0x21] ss:$2 sm:$0xff] %v6534_v61 }
 0x14e   : > { %1037 = vrot.lane.b32.xlu0 %v6473_v19, %s5912_s6  ;;  %v1108_v19 = vld.sshfl [vmem:[#allocation1 + $0x30] sm:$0xff pattern:$0x75316420] }
 0x14f   : > { %v713_v52 = vpop.permute.xlu1 %712  ;;  %1186 = vst [vmem:[#allocation1 + $0x30] ss:$2 sm:$0xff] %v6460_v46 }
 0x150   : > { %v729_v24 = vsel %vm724_vm13, %v713_v52, %v6480_v49  ;;  %v711_v56 = vpop.permute.xlu0 %710 }
 0x151   : > { %748 = vst [vmem:[#allocation3 + $0x110] sm:$0xf] %v729_v24  ;;  %v727_v21 = vsel %vm724_vm13, %v6458_v43, %v711_v56  ;;  %v728_v22 = vsel %vm724_vm13, %v711_v56, %v713_v52 }
 0x152   : > { %746 = vst [vmem:[#allocation3 + $0x100] sm:$0xf] %v727_v21  ;;  %v6561_v1 = vld.sshfl [vmem:[#allocation1] sm:$0xff pattern:$0x75316420] }
 0x153   : > { %747 = vst [vmem:[#allocation3 + $0x108] sm:$0xf] %v728_v22  ;;  %1047 = vrot.lane.b32.xlu2 %v6322_v9, %s5912_s6  ;;  %v6565_v33 = vld.sshfl [vmem:[#allocation1 + $0x8] sm:$0xff pattern:$0x75316420] }
 0x154   : > { %1406 = vst [vmem:[#allocation1 + $0x1] ss:$2 sm:$0xff] %v6442_v17  ;;  %v1275_v60 = vld.sshfl [vmem:[#allocation1 + $0x20] sm:$0xff pattern:$0x75316420] }
 0x155   : > { %1045 = vrot.lane.b32.xlu1 %v6326_v4, %s5912_s6  ;;  %v6569_v43 = vpop.permute.xlu2 %797  ;;  %1296 = vst [vmem:[#allocation3 + $0x200] sm:$0xf0] %v1275_v60 }
 0x156   : > { %1043 = vrot.lane.b32.xlu0 %v6482_v0, %s5912_s6  ;;  %v6581_v0 = vld.sshfl [vmem:[#allocation1 + $0x30] sm:$0xff pattern:$0x75316420]  ;;  %v6583_v10 = vld.sshfl [vmem:[#allocation1 + $0x38] sm:$0xff pattern:$0x75316420] }
 0x157   : > { %v719_v8 = vpop.permute.xlu1 %718  ;;  %1270 = vst [vmem:[#allocation1 + $0x31] ss:$2 sm:$0xff] %v6577_v25 }
 0x158   : > { %v732_v9 = vsel %vm724_vm13, %v719_v8, %v6500_v30  ;;  %v717_v7 = vpop.permute.xlu0 %716 }
 0x159   : > { %751 = vst [vmem:[#allocation3 + $0x128] sm:$0xf] %v732_v9  ;;  %v730_v46 = vsel %vm724_vm13, %v6480_v49, %v717_v7  ;;  %v731_v4 = vsel %vm724_vm13, %v717_v7, %v719_v8 }
 0x15a   : > { %749 = vst [vmem:[#allocation3 + $0x118] sm:$0xf] %v730_v46 }
 0x15b   : > { %750 = vst [vmem:[#allocation3 + $0x120] sm:$0xf] %v731_v4  ;;  %1117 = vrot.lane.b32.xlu2 %v6347_v38, %s5913_s7  ;;  %v6588_v49 = vld.sshfl [vmem:[#allocation1] sm:$0xff pattern:$0x75316420] }
 0x15c   : > { %10233 = vst [vmem:[#allocation8_spill] sm:$0xff] %v6588_v49  ;;  %v6594_v57 = vld.sshfl [vmem:[#allocation1 + $0x8] sm:$0xff pattern:$0x75316420] }
 0x15d   : > { %1115 = vrot.lane.b32.xlu1 %v6349_v15, %s5913_s7  ;;  %v6592_v28 = vpop.permute.xlu2 %861  ;;  %10234 = vst [vmem:[#allocation9_spill] sm:$0xff] %v6594_v57 }
 0x15e   : > { %1049 = vrot.lane.b32.xlu0 %v6345_v20, %s5912_s6  ;;  %1469 = vst [vmem:[#allocation1] ss:$2 sm:$0xff] %v6407_v34  ;;  %v1276_v20 = vld.sshfl [vmem:[#allocation1 + $0x28] sm:$0xff pattern:$0x75316420] }
 0x15f   : > { %v784_v38 = vpop.permute.xlu1 %783  ;;  %1316 = vst [vmem:[#allocation1 + $0x20] ss:$2 sm:$0xff] %v6534_v61  ;;  %v1277_v24 = vld.sshfl [vmem:[#allocation1 + $0x30] sm:$0xff pattern:$0x75316420] }
 0x160   : > { %v723_v23 = vpop.permute.xlu0 %722  ;;  %v804_v35 = vsel %vm803_vm14, %v784_v38, %v6523_v12  ;;  %1297 = vst [vmem:[#allocation3 + $0x208] sm:$0xf0] %v1276_v20  ;;  %v1278_v56 = vld.sshfl [vmem:[#allocation1 + $0x38] sm:$0xff pattern:$0x75316420] }
 0x161   : > { %v733_v15 = vsel %vm724_vm13, %v6500_v30, %v723_v23  ;;  %753 = vst.msk [vmem:[#allocation3 + $0x138] sm:$0xf] %vm10082_vm8, %v723_v23  ;;  %v6664_v23 = vld.sshfl [vmem:[#allocation1 + $0x10] sm:$0xff pattern:$0x75316420]  ;;  %vm1507_vm13 = vcmask 965632  }
 0x162   : > { %752 = vst [vmem:[#allocation3 + $0x130] sm:$0xf] %v733_v15 }
 0x163   : > { %823 = vst [vmem:[#allocation3 + $0xf0] sm:$0xf0] %v804_v35  ;;  %1123 = vrot.lane.b32.xlu2 %v6525_v29, %s5913_s7  ;;  %v6666_v35 = vld.sshfl [vmem:[#allocation1 + $0x18] sm:$0xff pattern:$0x75316420] }
 0x164   : > { %1298 = vst [vmem:[#allocation3 + $0x210] sm:$0xf0] %v1277_v24 }
 0x165   : > { %1121 = vrot.lane.b32.xlu1 %v6371_v45, %s5913_s7  ;;  %v6609_v31 = vpop.permute.xlu2 %867  ;;  %v6611_v30 = vld.sshfl [vmem:[#allocation1] sm:$0xff pattern:$0x75316420]  ;;  %v6613_v27 = vld.sshfl [vmem:[#allocation1 + $0x8] sm:$0xff pattern:$0x75316420] }
 0x166   : > { %1119 = vrot.lane.b32.xlu0 %v6367_v44, %s5913_s7  ;;  %1484 = vst [vmem:[#allocation1] ss:$2 sm:$0xff] %v6442_v17  ;;  %v6622_v44 = vld.sshfl [vmem:[#allocation1 + $0x20] sm:$0xff pattern:$0x75316420] }
 0x167   : > { %v790_v36 = vpop.permute.xlu1 %789  ;;  %v6624_v52 = vld.sshfl [vmem:[#allocation1 + $0x28] sm:$0xff pattern:$0x75316420]  ;;  %1318 = vst [vmem:[#allocation1 + $0x30] ss:$2 sm:$0xff] %v6577_v25 }
 0x168   : > { %v788_v37 = vpop.permute.xlu0 %787  ;;  %v807_v29 = vsel %vm803_vm14, %v790_v36, %v6546_v39  ;;  %1395 = vst [vmem:[#allocation1 + $0x21] ss:$2 sm:$0xff] %v6534_v61 }
 0x169   : > { %v805_v45 = vsel %vm803_vm14, %v6523_v12, %v788_v37  ;;  %v806_v41 = vsel %vm803_vm14, %v788_v37, %v790_v36  ;;  %826 = vst [vmem:[#allocation3 + $0x108] sm:$0xf0] %v807_v29 }
 0x16a   : > { %824 = vst [vmem:[#allocation3 + $0xf8] sm:$0xf0] %v805_v45 }
 0x16b   : > { %825 = vst [vmem:[#allocation3 + $0x100] sm:$0xf0] %v806_v41  ;;  %1129 = vrot.lane.b32.xlu2 %v1109_v63, %s5913_s7 }
 0x16c   : > { %1299 = vst [vmem:[#allocation3 + $0x218] sm:$0xf0] %v1278_v56 }
 0x16d   : > { %1127 = vrot.lane.b32.xlu1 %v1108_v19, %s5913_s7  ;;  %v6630_v12 = vpop.permute.xlu2 %873  ;;  %v6668_v15 = vld.sshfl [vmem:[#allocation1 + $0x8] sm:$0xff pattern:$0x75316420]  ;;  %1550 = vst [vmem:[#allocation1 + $0x11] ss:$2 sm:$0xff] %v6429_v11 }
 0x16e   : > { %1125 = vrot.lane.b32.xlu0 %v6527_v5, %s5913_s7  ;;  %v6651_v7 = vld.sshfl [vmem:[#allocation1 + $0x30] sm:$0xff pattern:$0x75316420]  ;;  %v6653_v46 = vld.sshfl [vmem:[#allocation1 + $0x38] sm:$0xff pattern:$0x75316420] }
 0x16f   : > { %v796_v21 = vpop.permute.xlu1 %795  ;;  %v6640_v5 = vld.sshfl [vmem:[#allocation1 + $0x20] sm:$0xff pattern:$0x75316420]  ;;  %v6642_v9 = vld.sshfl [vmem:[#allocation1 + $0x28] sm:$0xff pattern:$0x75316420] }
 0x170   : > { %v794_v22 = vpop.permute.xlu0 %793  ;;  %v810_v63 = vsel %vm803_vm14, %v796_v21, %v6569_v43  ;;  %1473 = vst [vmem:[#allocation1 + $0x20] ss:$2 sm:$0xff] %v6534_v61 }
 0x171   : > { %v808_v19 = vsel %vm803_vm14, %v6546_v39, %v794_v22  ;;  %v809_v8 = vsel %vm803_vm14, %v794_v22, %v796_v21  ;;  %829 = vst [vmem:[#allocation3 + $0x120] sm:$0xf0] %v810_v63 }
 0x172   : > { %827 = vst [vmem:[#allocation3 + $0x110] sm:$0xf0] %v808_v19 }
 0x173   : > { %828 = vst [vmem:[#allocation3 + $0x118] sm:$0xf0] %v809_v8  ;;  %1135 = vrot.lane.b32.xlu2 %v6389_v58, %s5913_s7 }
 0x174   : > { %10235 = vst [vmem:[#allocation10_spill] sm:$0xff] %v6653_v46  ;;  %v6718_v22 = vld.sshfl [vmem:[#allocation1 + $0x18] sm:$0xff pattern:$0x75316420] }
 0x175   : > { %1133 = vrot.lane.b32.xlu1 %v6377_v50, %s5913_s7  ;;  %v6649_v39 = vpop.permute.xlu2 %879  ;;  %1397 = vst [vmem:[#allocation1 + $0x31] ss:$2 sm:$0xff] %v6577_v25 }
 0x176   : > { %1131 = vrot.lane.b32.xlu0 %v6379_v53, %s5913_s7  ;;  %910 = vst.msk [vmem:[#allocation3 + $0x188] sm:$0xf] %vm10082_vm8, %v6649_v39  ;;  %v6662_v53 = vld.sshfl [vmem:[#allocation1] sm:$0xff pattern:$0x75316420] }
 0x177   : > { %v802_v4 = vpop.permute.xlu1 %801  ;;  %10236 = vst [vmem:[#allocation11_spill] sm:$0xff] %v6662_v53  ;;  %v6672_v60 = vld.sshfl [vmem:[#allocation1 + $0x20] sm:$0xff pattern:$0x75316420] }
 0x178   : > { %832 = vst.msk [vmem:[#allocation3 + $0x138] sm:$0xf0] %vm10101_vm4, %v802_v4  ;;  %v800_v58 = vpop.permute.xlu0 %799 }
 0x179   : > { %v811_v50 = vsel %vm803_vm14, %v6569_v43, %v800_v58  ;;  %v812_v38 = vsel %vm803_vm14, %v800_v58, %v802_v4  ;;  %10237 = vst [vmem:[#allocation12_spill] sm:$0xff] %v6668_v15  ;;  %v6674_v43 = vld.sshfl [vmem:[#allocation1 + $0x28] sm:$0xff pattern:$0x75316420]  ;;  %vm2098_vm14 = vcmask 220160  }
 0x17a   : > { %830 = vst [vmem:[#allocation3 + $0x128] sm:$0xf0] %v811_v50 }
 0x17b   : > { %831 = vst [vmem:[#allocation3 + $0x130] sm:$0xf0] %v812_v38  ;;  %1204 = vrot.lane.b32.xlu2 %v6411_v2, %s5914_s8 }
 0x17c   : > { %1552 = vst [vmem:[#allocation1 + $0x21] ss:$2 sm:$0xff] %v6534_v61  ;;  %v6688_v29 = vld.sshfl [vmem:[#allocation1 + $0x30] sm:$0xff pattern:$0x75316420] }
 0x17d   : > { %1202 = vrot.lane.b32.xlu1 %v6397_v18, %s5914_s8  ;;  %1548 = vst [vmem:[#allocation1 + $0x1] ss:$2 sm:$0xff] %v6407_v34  ;;  %v949_v50 = vpop.permute.xlu2 %948 }
 0x17e   : > { %1200 = vrot.lane.b32.xlu0 %v6395_v26, %s5914_s8  ;;  %v6690_v26 = vld.sshfl [vmem:[#allocation1 + $0x38] sm:$0xff pattern:$0x75316420] }
 0x17f   : > { %v866_v20 = vpop.permute.xlu1 %865  ;;  %10238 = vst [vmem:[#allocation13_spill] sm:$0xff] %v6690_v26 }
 0x180   : > { %v884_v2 = vsel %vm881_vm15, %v866_v20, %v6609_v31  ;;  %v864_v36 = vpop.permute.xlu0 %863  ;;  %1475 = vst [vmem:[#allocation1 + $0x30] ss:$2 sm:$0xff] %v6577_v25 }
 0x181   : > { %903 = vst [vmem:[#allocation3 + $0x150] sm:$0xf] %v884_v2  ;;  %v882_v37 = vsel %vm881_vm15, %v6592_v28, %v864_v36  ;;  %v883_v18 = vsel %vm881_vm15, %v864_v36, %v866_v20 }
 0x182   : > { %901 = vst [vmem:[#allocation3 + $0x140] sm:$0xf] %v882_v37 }
 0x183   : > { %902 = vst [vmem:[#allocation3 + $0x148] sm:$0xf] %v883_v18  ;;  %v6692_v45 = vld.sshfl [vmem:[#allocation1 + $0x20] sm:$0xff pattern:$0x75316420]  ;;  %1210 = vrot.lane.b32.xlu2 %v6550_v47, %s5914_s8 }
 0x184   : > { %v6694_v41 = vld.sshfl [vmem:[#allocation1 + $0x28] sm:$0xff pattern:$0x75316420]  ;;  %v6701_v28 = vld.sshfl [vmem:[#allocation1] sm:$0xff pattern:$0x75316420] }
 0x185   : > { %1632 = vst [vmem:[#allocation1 + $0x20] ss:$2 sm:$0xff] %v6534_v61  ;;  %1208 = vrot.lane.b32.xlu1 %v6548_v55, %s5914_s8  ;;  %v6706_v24 = vld.sshfl [vmem:[#allocation1 + $0x8] sm:$0xff pattern:$0x75316420] }
 0x186   : > { %1206 = vrot.lane.b32.xlu0 %v6413_v59, %s5914_s8  ;;  %1563 = vst [vmem:[#allocation1 + $0x1] ss:$2 sm:$0xff] %v6442_v17  ;;  %v6716_v59 = vld.sshfl [vmem:[#allocation1 + $0x10] sm:$0xff pattern:$0x75316420] }
 0x187   : > { %v872_v56 = vpop.permute.xlu1 %871  ;;  %v6720_v63 = vld.sshfl [vmem:[#allocation1 + $0x30] sm:$0xff pattern:$0x75316420]  ;;  %v6722_v19 = vld.sshfl [vmem:[#allocation1 + $0x38] sm:$0xff pattern:$0x75316420] }
 0x188   : > { %v887_v47 = vsel %vm881_vm15, %v872_v56, %v6630_v12  ;;  %v870_v21 = vpop.permute.xlu0 %869  ;;  %10239 = vst [vmem:[#allocation14_spill] sm:$0xff] %v6722_v19 }
 0x189   : > { %906 = vst [vmem:[#allocation3 + $0x168] sm:$0xf] %v887_v47  ;;  %v885_v61 = vsel %vm881_vm15, %v6609_v31, %v870_v21  ;;  %v886_v55 = vsel %vm881_vm15, %v870_v21, %v872_v56 }
 0x18a   : > { %904 = vst [vmem:[#allocation3 + $0x158] sm:$0xf] %v885_v61 }
 0x18b   : > { %905 = vst [vmem:[#allocation3 + $0x160] sm:$0xf] %v886_v55  ;;  %1216 = vrot.lane.b32.xlu2 %v6419_v13, %s5914_s8  ;;  %v1706_v55 = vld [vmem:[#allocation2 + $0x2c] sm:$0xf] }
 0x18c   : > { %1554 = vst [vmem:[#allocation1 + $0x31] ss:$2 sm:$0xff] %v6577_v25 }
 0x18d   : > { %1214 = vrot.lane.b32.xlu1 %v6583_v10, %s5914_s8  ;;  %v6729_v31 = vld.sshfl [vmem:[#allocation1] sm:$0xff pattern:$0x75316420]  ;;  %v6731_v13 = vld.sshfl [vmem:[#allocation1 + $0x8] sm:$0xff pattern:$0x75316420] }
 0x18e   : > { %1212 = vrot.lane.b32.xlu0 %v6581_v0, %s5914_s8  ;;  %10240 = vst [vmem:[#allocation15_spill] sm:$0xff] %v6729_v31  ;;  %v1621_v0 = vld [vmem:[#allocation2 + $0x2c] sm:$0xf] }
 0x18f   : > { %v878_v8 = vpop.permute.xlu1 %877  ;;  %10241 = vst [vmem:[#allocation16_spill] sm:$0xff] %v6731_v13 }
 0x190   : > { %1630 = vst [vmem:[#allocation1 + $0x10] ss:$2 sm:$0xff] %v6429_v11  ;;  %v876_v4 = vpop.permute.xlu0 %875  ;;  %v890_v58 = vsel %vm881_vm15, %v878_v8, %v6649_v39 }
 0x191   : > { %1628 = vst [vmem:[#allocation1] ss:$2 sm:$0xff] %v6407_v34  ;;  %v888_v25 = vsel %vm881_vm15, %v6630_v12, %v876_v4  ;;  %v889_v10 = vsel %vm881_vm15, %v876_v4, %v878_v8  ;;  %v955_v12 = vpop.permute.xlu2 %954  ;;  %vm1586_vm15 = vcmask 957440  }
 0x192   : > { %909 = vst [vmem:[#allocation3 + $0x180] sm:$0xf] %v890_v58 }
 0x193   : > { %907 = vst [vmem:[#allocation3 + $0x170] sm:$0xf] %v888_v25 }
 0x194   : > { %908 = vst [vmem:[#allocation3 + $0x178] sm:$0xf] %v889_v10 }
 0x196   : > { %1218 = vrot.lane.b32.xlu0 %v6421_v14, %s5914_s8 }
 0x197   : > { %v6742_v38 = vld.sshfl [vmem:[#allocation1 + $0x10] sm:$0xff pattern:$0x75316420]  ;;  %v6744_v20 = vld.sshfl [vmem:[#allocation1 + $0x18] sm:$0xff pattern:$0x75316420]  ;;  %v947_v21 = vpop.permute.xlu1 %946 }
 0x198   : > { %v1635_v39 = vld.sshfl [vmem:[#allocation1] sm:$0xff pattern:$0x75316420]  ;;  %v6746_v2 = vld.sshfl [vmem:[#allocation1 + $0x8] sm:$0xff pattern:$0x75316420]  ;;  %v945_v61 = vpop.permute.xlu0 %944  ;;  %v968_v8 = vsel %vm966_vm0, %v947_v21, %v949_v50 }
 0x199   : > { %1643 = vst [vmem:[#allocation1] ss:$2 sm:$0xff] %v6442_v17  ;;  %v961_v14 = vpop.permute.xlu2 %960  ;;  %v967_v4 = vsel %vm966_vm0, %v945_v61, %v947_v21 }
 0x19a   : > { %1644 = vst [vmem:[#allocation1 + $0x10] ss:$2 sm:$0xff] %v1621_v0 }
 0x19b   : > { %988 = vst [vmem:[#allocation3 + $0x148] sm:$0xf0] %v968_v8 }
 0x19c   : > { %987 = vst [vmem:[#allocation3 + $0x140] sm:$0xf0] %v967_v4 }
 0x1a0   : > { %v6749_v36 = vld.sshfl [vmem:[#allocation1] sm:$0xff pattern:$0x75316420]  ;;  %v6751_v37 = vld.sshfl [vmem:[#allocation1 + $0x8] sm:$0xff pattern:$0x75316420]  ;;  %v951_v3 = vpop.permute.xlu0 %950 }
 0x1a1   : > { %10242 = vst [vmem:[#allocation17_spill] sm:$0xff] %v6749_v36  ;;  %v6754_v18 = vld.sshfl [vmem:[#allocation1 + $0x10] sm:$0xff pattern:$0x75316420]  ;;  %v1030_v16 = vpop.permute.xlu2 %1029  ;;  %v969_v21 = vsel %vm966_vm0, %v949_v50, %v951_v3 }
 0x1a2   : > { %10243 = vst [vmem:[#allocation18_spill] sm:$0xff] %v6751_v37 }
 0x1a3   : > { %1714 = vst [vmem:[#allocation1 + $0x1] ss:$2 sm:$0xff] %v6407_v34 }
 0x1a4   : > { %10244 = vst [vmem:[#allocation19_spill] sm:$0xff] %v6754_v18  ;;  %v953_v18 = vpop.permute.xlu1 %952 }
 0x1a5   : > { %1716 = vst [vmem:[#allocation1 + $0x11] ss:$2 sm:$0xff] %v6429_v11  ;;  %v971_v57 = vsel %vm966_vm0, %v953_v18, %v955_v12  ;;  %v970_v61 = vsel %vm966_vm0, %v951_v3, %v953_v18 }
 0x1a6   : > { %991 = vst [vmem:[#allocation3 + $0x160] sm:$0xf0] %v971_v57 }
 0x1a7   : > { %989 = vst [vmem:[#allocation3 + $0x150] sm:$0xf0] %v969_v21 }
 0x1a8   : > { %990 = vst [vmem:[#allocation3 + $0x158] sm:$0xf0] %v970_v61  ;;  %v957_v50 = vpop.permute.xlu0 %956  ;;  %v1792_v61 = vld [vmem:[#allocation2 + $0x2c] sm:$0xf] }
 0x1a9   : > { %v972_v57 = vsel %vm966_vm0, %v955_v12, %v957_v50  ;;  %v1036_v21 = vpop.permute.xlu2 %1035 }
 0x1aa   : > { %v6757_v56 = vld.sshfl [vmem:[#allocation1] sm:$0xff pattern:$0x75316420]  ;;  %v6759_v47 = vld.sshfl [vmem:[#allocation1 + $0x8] sm:$0xff pattern:$0x75316420] }
 0x1ab   : > { %1729 = vst [vmem:[#allocation1 + $0x1] ss:$2 sm:$0xff] %v6442_v17 }
 0x1ac   : > { %v6764_v58 = vld.sshfl [vmem:[#allocation1 + $0x10] sm:$0xff pattern:$0x75316420]  ;;  %v6766_v25 = vld.sshfl [vmem:[#allocation1 + $0x18] sm:$0xff pattern:$0x75316420]  ;;  %v959_v40 = vpop.permute.xlu1 %958 }
 0x1ad   : > { %1730 = vst [vmem:[#allocation1 + $0x11] ss:$2 sm:$0xff] %v1706_v55  ;;  %v974_v3 = vsel %vm966_vm0, %v959_v40, %v961_v14  ;;  %v973_v18 = vsel %vm966_vm0, %v957_v50, %v959_v40 }
 0x1ae   : > { %994 = vst [vmem:[#allocation3 + $0x178] sm:$0xf0] %v974_v3 }
 0x1af   : > { %992 = vst [vmem:[#allocation3 + $0x168] sm:$0xf0] %v972_v57 }
 0x1b0   : > { %993 = vst [vmem:[#allocation3 + $0x170] sm:$0xf0] %v973_v18  ;;  %v963_v12 = vpop.permute.xlu0 %962 }
 0x1b1   : > { %v975_v50 = vsel %vm966_vm0, %v961_v14, %v963_v12  ;;  %v1042_v57 = vpop.permute.xlu2 %1041 }
 0x1b2   : > { %v6768_v10 = vld.sshfl [vmem:[#allocation1] sm:$0xff pattern:$0x75316420]  ;;  %v6770_v0 = vld.sshfl [vmem:[#allocation1 + $0x8] sm:$0xff pattern:$0x75316420] }
 0x1b3   : > { %10245 = vst [vmem:[#allocation20_spill] sm:$0xff] %v6768_v10 }
 0x1b4   : > { %10246 = vst [vmem:[#allocation21_spill] sm:$0xff] %v6770_v0  ;;  %v6776_v8 = vld.sshfl [vmem:[#allocation1 + $0x10] sm:$0xff pattern:$0x75316420]  ;;  %v965_v40 = vpop.permute.xlu1 %964 }
 0x1b5   : > { %1799 = vst [vmem:[#allocation1] ss:$2 sm:$0xff] %v6407_v34  ;;  %v976_v3 = vsel %vm966_vm0, %v963_v12, %v965_v40  ;;  %vm2183_vm0 = vcmask 154624  }
 0x1b6   : > { %10247 = vst [vmem:[#allocation22_spill] sm:$0xff] %v6776_v8 }
 0x1b7   : > { %1801 = vst [vmem:[#allocation1 + $0x10] ss:$2 sm:$0xff] %v6429_v11 }
 0x1b8   : > { %995 = vst [vmem:[#allocation3 + $0x180] sm:$0xf0] %v975_v50  ;;  %v1032_v14 = vpop.permute.xlu0 %1031 }
 0x1b9   : > { %996 = vst.msk [vmem:[#allocation3 + $0x188] sm:$0xf0] %vm10101_vm4, %v976_v3  ;;  %v1052_v12 = vsel %vm1051_vm1, %v1030_v16, %v1032_v14  ;;  %v1877_v3 = vld [vmem:[#allocation2 + $0x2c] sm:$0xf] }
 0x1ba   : > { %1072 = vst [vmem:[#allocation3 + $0x190] sm:$0xf] %v1052_v12 }
 0x1bc   : > { %v1806_v55 = vld.sshfl [vmem:[#allocation1] sm:$0xff pattern:$0x75316420]  ;;  %v1807_v4 = vld.sshfl [vmem:[#allocation1 + $0x8] sm:$0xff pattern:$0x75316420] }
 0x1bd   : > { %1819 = vrot.lane.b32.xlu2 %v1806_v55, %s5915_s9  ;;  %1814 = vst [vmem:[#allocation1] ss:$2 sm:$0xff] %v6442_v17  ;;  %1821 = vrot.lane.b32.xlu0 %v1807_v4, %s5915_s9 }
 0x1be   : > { %v6785_v8 = vld.sshfl [vmem:[#allocation1 + $0x10] sm:$0xff pattern:$0x75316420]  ;;  %v6787_v55 = vld.sshfl [vmem:[#allocation1 + $0x18] sm:$0xff pattern:$0x75316420] }
 0x1bf   : > { %1815 = vst [vmem:[#allocation1 + $0x10] ss:$2 sm:$0xff] %v1792_v61 }
 0x1c4   : > { %v6789_v15 = vld.sshfl [vmem:[#allocation1] sm:$0xff pattern:$0x75316420]  ;;  %v6791_v4 = vld.sshfl [vmem:[#allocation1 + $0x8] sm:$0xff pattern:$0x75316420] }
 0x1c5   : > { %10248 = vst [vmem:[#allocation23_spill] sm:$0xff] %v6789_v15  ;;  %1648 = vrot.lane.b32.xlu0 %v1635_v39, %s5916_s10  ;;  %v1034_v39 = vpop.permute.xlu1 %1033 }
 0x1c6   : > { %10249 = vst [vmem:[#allocation24_spill] sm:$0xff] %v6791_v4  ;;  %v6798_v18 = vld.sshfl [vmem:[#allocation1 + $0x10] sm:$0xff pattern:$0x75316420]  ;;  %v1054_v40 = vsel %vm1051_vm1, %v1034_v39, %v1036_v21  ;;  %v1053_v50 = vsel %vm1051_vm1, %v1032_v14, %v1034_v39  ;;  %v1038_v39 = vpop.permute.xlu0 %1037 }
 0x1c7   : > { %1885 = vst [vmem:[#allocation1 + $0x1] ss:$2 sm:$0xff] %v6407_v34 }
 0x1c8   : > { %10250 = vst [vmem:[#allocation25_spill] sm:$0xff] %v6798_v18 }
 0x1c9   : > { %1887 = vst [vmem:[#allocation1 + $0x11] ss:$2 sm:$0xff] %v6429_v11 }
 0x1ca   : > { %1074 = vst [vmem:[#allocation3 + $0x1a0] sm:$0xf] %v1054_v40  ;;  %v1055_v40 = vsel %vm1051_vm1, %v1036_v21, %v1038_v39 }
 0x1cb   : > { %1073 = vst [vmem:[#allocation3 + $0x198] sm:$0xf] %v1053_v50 }
 0x1cc   : > { %1075 = vst [vmem:[#allocation3 + $0x1a8] sm:$0xf] %v1055_v40 }
 0x1cd   : > { %1736 = vrot.lane.b32.xlu0 %v6759_v47, %s5918_s12  ;;  %v1040_v16 = vpop.permute.xlu1 %1039 }
 0x1ce   : > { %v1892_v61 = vld.sshfl [vmem:[#allocation1] sm:$0xff pattern:$0x75316420]  ;;  %v1893_v0 = vld.sshfl [vmem:[#allocation1 + $0x8] sm:$0xff pattern:$0x75316420]  ;;  %v1057_v14 = vsel %vm1051_vm1, %v1040_v16, %v1042_v57  ;;  %v1056_v12 = vsel %vm1051_vm1, %v1038_v39, %v1040_v16 }
 0x1cf   : > { %1905 = vrot.lane.b32.xlu1 %v1892_v61, %s5917_s11  ;;  %1907 = vrot.lane.b32.xlu2 %v1893_v0, %s5917_s11  ;;  %1900 = vst [vmem:[#allocation1 + $0x1] ss:$2 sm:$0xff] %v6442_v17  ;;  %v1048_v0 = vpop.permute.xlu2 %1047 }
 0x1d0   : > { %v6809_v61 = vld.sshfl [vmem:[#allocation1 + $0x10] sm:$0xff pattern:$0x75316420]  ;;  %v6811_v18 = vld.sshfl [vmem:[#allocation1 + $0x18] sm:$0xff pattern:$0x75316420] }
 0x1d1   : > { %1901 = vst [vmem:[#allocation1 + $0x11] ss:$2 sm:$0xff] %v1877_v3 }
 0x1d2   : > { %1077 = vst [vmem:[#allocation3 + $0x1b8] sm:$0xf] %v1057_v14  ;;  %v1963_v14 = vld [vmem:[#allocation2 + $0x2c] sm:$0xf] }
 0x1d3   : > { %1076 = vst [vmem:[#allocation3 + $0x1b0] sm:$0xf] %v1056_v12 }
 0x1d5   : > { %v1046_v37 = vpop.permute.xlu1 %1045 }
 0x1d6   : > { %v6813_v4 = vld.sshfl [vmem:[#allocation1] sm:$0xff pattern:$0x75316420]  ;;  %v6815_v47 = vld.sshfl [vmem:[#allocation1 + $0x8] sm:$0xff pattern:$0x75316420]  ;;  %v1060_v39 = vsel %vm1051_vm1, %v1046_v37, %v1048_v0 }
 0x1d7   : > { %10251 = vst [vmem:[#allocation26_spill] sm:$0xff] %v6813_v4  ;;  %1650 = vrot.lane.b32.xlu1 %v6746_v2, %s5916_s10  ;;  %v1118_v2 = vpop.permute.xlu2 %1117 }
 0x1d8   : > { %10252 = vst [vmem:[#allocation27_spill] sm:$0xff] %v6815_v47  ;;  %v6826_v3 = vld.sshfl [vmem:[#allocation1 + $0x10] sm:$0xff pattern:$0x75316420]  ;;  %v1044_v47 = vpop.permute.xlu0 %1043 }
 0x1d9   : > { %1970 = vst [vmem:[#allocation1] ss:$2 sm:$0xff] %v6407_v34  ;;  %v1058_v21 = vsel %vm1051_vm1, %v1042_v57, %v1044_v47  ;;  %v1059_v16 = vsel %vm1051_vm1, %v1044_v47, %v1046_v37 }
 0x1da   : > { %10253 = vst [vmem:[#allocation28_spill] sm:$0xff] %v6826_v3 }
 0x1db   : > { %1972 = vst [vmem:[#allocation1 + $0x10] ss:$2 sm:$0xff] %v6429_v11 }
 0x1dc   : > { %1078 = vst [vmem:[#allocation3 + $0x1c0] sm:$0xf] %v1058_v21 }
 0x1dd   : > { %1079 = vst [vmem:[#allocation3 + $0x1c8] sm:$0xf] %v1059_v16  ;;  %v1116_v16 = vpop.permute.xlu1 %1115 }
 0x1de   : > { %1080 = vst [vmem:[#allocation3 + $0x1d0] sm:$0xf] %v1060_v39 }
 0x1df   : > { %v6845_v47 = vpop.permute.xlu2 %1123 }
 0x1e0   : > { %v1978_v50 = vld.sshfl [vmem:[#allocation1 + $0x8] sm:$0xff pattern:$0x75316420]  ;;  %v1977_v13 = vld.sshfl [vmem:[#allocation1] sm:$0xff pattern:$0x75316420] }
 0x1e1   : > { %1992 = vrot.lane.b32.xlu2 %v1978_v50, %s5919_s13  ;;  %1990 = vrot.lane.b32.xlu1 %v1977_v13, %s5919_s13  ;;  %1985 = vst [vmem:[#allocation1] ss:$2 sm:$0xff] %v6442_v17 }
 0x1e2   : > { %v6841_v57 = vld.sshfl [vmem:[#allocation1 + $0x10] sm:$0xff pattern:$0x75316420]  ;;  %v6843_v37 = vld.sshfl [vmem:[#allocation1 + $0x18] sm:$0xff pattern:$0x75316420] }
 0x1e3   : > { %1986 = vst [vmem:[#allocation1 + $0x10] ss:$2 sm:$0xff] %v1963_v14  ;;  %v6860_v14 = vld.sshfl [vmem:[#allocation1 + $0x20] sm:$0xff pattern:$0x75316420] }
 0x1e7   : > { %v6856_v39 = vpop.permute.xlu2 %1129 }
 0x1e8   : > { %v6832_v13 = vld.sshfl [vmem:[#allocation1] sm:$0xff pattern:$0x75316420]  ;;  %v6834_v40 = vld.sshfl [vmem:[#allocation1 + $0x8] sm:$0xff pattern:$0x75316420] }
 0x1e9   : > { %10254 = vst [vmem:[#allocation29_spill] sm:$0xff] %v6832_v13  ;;  %1734 = vrot.lane.b32.xlu2 %v6757_v56, %s5918_s12  ;;  %1487 = vrot.lane.b32.xlu1 %v6611_v30, %s5920_s14  ;;  %v1050_v56 = vpop.permute.xlu0 %1049 }
 0x1ea   : > { %10255 = vst [vmem:[#allocation30_spill] sm:$0xff] %v6834_v40  ;;  %v6852_v30 = vld.sshfl [vmem:[#allocation1 + $0x10] sm:$0xff pattern:$0x75316420]  ;;  %v1061_v21 = vsel %vm1051_vm1, %v1048_v0, %v1050_v56  ;;  %vm1429_vm1 = vcmask 973824  }
 0x1eb   : > { %2056 = vst [vmem:[#allocation1 + $0x1] ss:$2 sm:$0xff] %v6407_v34 }
 0x1ec   : > { %10256 = vst [vmem:[#allocation31_spill] sm:$0xff] %v6852_v30  ;;  %v6866_v30 = vld.sshfl [vmem:[#allocation1 + $0x28] sm:$0xff pattern:$0x75316420] }
 0x1ed   : > { %2058 = vst [vmem:[#allocation1 + $0x11] ss:$2 sm:$0xff] %v6429_v11 }
 0x1ee   : > { %1081 = vst.msk [vmem:[#allocation3 + $0x1d8] sm:$0xf] %vm10082_vm8, %v1061_v21  ;;  %vm2354_vm8 = vcmask 138240  }
 0x1f1   : > { %1489 = vrot.lane.b32.xlu2 %v6613_v27, %s5920_s14  ;;  %v1138_v27 = vsel %vm1137_vm2, %v1116_v16, %v1118_v2  ;;  %v1120_v21 = vpop.permute.xlu0 %1119  ;;  %v6879_v16 = vld [vmem:[#allocation2 + $0x14] sm:$0xff] }
 0x1f2   : > { %v2064_v12 = vld.sshfl [vmem:[#allocation1 + $0x8] sm:$0xff pattern:$0x75316420]  ;;  %v2063_v50 = vld.sshfl [vmem:[#allocation1] sm:$0xff pattern:$0x75316420] }
 0x1f3   : > { %2078 = vrot.lane.b32.xlu1 %v2064_v12, %s5921_s16  ;;  %2071 = vst [vmem:[#allocation1 + $0x1] ss:$2 sm:$0xff] %v6442_v17  ;;  %2076 = vrot.lane.b32.xlu0 %v2063_v50, %s5921_s16  ;;  %v2048_v12 = vld [vmem:[#allocation2 + $0x2c] sm:$0xf] }
 0x1f4   : > { %1158 = vst [vmem:[#allocation3 + $0x190] sm:$0xf0] %v1138_v27  ;;  %v6875_v0 = vld.sshfl [vmem:[#allocation1 + $0x10] sm:$0xff pattern:$0x75316420]  ;;  %v1139_v27 = vsel %vm1137_vm2, %v1118_v2, %v1120_v21 }
 0x1f5   : > { %v6877_v56 = vld.sshfl [vmem:[#allocation1 + $0x18] sm:$0xff pattern:$0x75316420]  ;;  %1718 = vst [vmem:[#allocation1 + $0x21] ss:$2 sm:$0xff] %v6879_v16 }
 0x1f6   : > { %2072 = vst [vmem:[#allocation1 + $0x11] ss:$2 sm:$0xff] %v2048_v12 }
 0x1f7   : > { %1159 = vst [vmem:[#allocation3 + $0x198] sm:$0xf0] %v1139_v27 }
 0x1f9   : > { %1330 = vrot.lane.b32.xlu2 %v6509_v51, %s5922_s17  ;;  %v1122_v51 = vpop.permute.xlu1 %1121 }
 0x1fa   : > { %v6862_v50 = vld.sshfl [vmem:[#allocation1] sm:$0xff pattern:$0x75316420]  ;;  %v6864_v3 = vld.sshfl [vmem:[#allocation1 + $0x8] sm:$0xff pattern:$0x75316420]  ;;  %v1141_v40 = vsel %vm1137_vm2, %v1122_v51, %v6845_v47 }
 0x1fb   : > { %10257 = vst [vmem:[#allocation32_spill] sm:$0xff] %v6862_v50  ;;  %1568 = vrot.lane.b32.xlu1 %v6706_v24, %s5923_s18  ;;  %1566 = vrot.lane.b32.xlu0 %v6701_v28, %s5923_s18  ;;  %v1140_v24 = vsel %vm1137_vm2, %v1120_v21, %v1122_v51  ;;  %v1136_v28 = vpop.permute.xlu2 %1135  ;;  %v2134_v21 = vld [vmem:[#allocation2 + $0x2c] sm:$0xf] }
 0x1fc   : > { %10258 = vst [vmem:[#allocation33_spill] sm:$0xff] %v6864_v3  ;;  %v6894_v12 = vld.sshfl [vmem:[#allocation1 + $0x20] sm:$0xff pattern:$0x75316420] }
 0x1fd   : > { %2141 = vst [vmem:[#allocation1] ss:$2 sm:$0xff] %v6407_v34  ;;  %v6891_v2 = vld.sshfl [vmem:[#allocation1 + $0x10] sm:$0xff pattern:$0x75316420] }
 0x1fe   : > { %1160 = vst [vmem:[#allocation3 + $0x1a0] sm:$0xf0] %v1140_v24  ;;  %v1126_v24 = vpop.permute.xlu0 %1125 }
 0x1ff   : > { %1161 = vst [vmem:[#allocation3 + $0x1a8] sm:$0xf0] %v1141_v40  ;;  %v6896_v40 = vld.sshfl [vmem:[#allocation1 + $0x28] sm:$0xff pattern:$0x75316420] }
 0x200   : > { %10259 = vst [vmem:[#allocation34_spill] sm:$0xff] %v6891_v2  ;;  %v1142_v2 = vsel %vm1137_vm2, %v6845_v47, %v1126_v24 }
 0x201   : > { %1411 = vrot.lane.b32.xlu2 %v6565_v33, %s5924_s19  ;;  %2143 = vst [vmem:[#allocation1 + $0x10] ss:$2 sm:$0xff] %v6429_v11  ;;  %v1128_v31 = vpop.permute.xlu1 %1127 }
 0x202   : > { %1803 = vst [vmem:[#allocation1 + $0x20] ss:$2 sm:$0xff] %v6879_v16 }
 0x203   : > { %1162 = vst [vmem:[#allocation3 + $0x1b0] sm:$0xf0] %v1142_v2 }
 0x204   : > { %v2149_v3 = vld.sshfl [vmem:[#allocation1 + $0x8] sm:$0xff pattern:$0x75316420]  ;;  %v2148_v49 = vld.sshfl [vmem:[#allocation1] sm:$0xff pattern:$0x75316420] }
 0x205   : > { %2163 = vrot.lane.b32.xlu1 %v2149_v3, %s5925_s20  ;;  %2156 = vst [vmem:[#allocation1] ss:$2 sm:$0xff] %v6442_v17  ;;  %2161 = vrot.lane.b32.xlu0 %v2148_v49, %s5925_s20  ;;  %v6906_v49 = vpop.permute.xlu2 %1204 }
 0x206   : > { %v1132_v2 = vpop.permute.xlu0 %1131 }
 0x208   : > { %v2150_v3 = vld.sshfl [vmem:[#allocation1 + $0x10] sm:$0xff pattern:$0x75316420]  ;;  %v6910_v51 = vld.sshfl [vmem:[#allocation1 + $0x18] sm:$0xff pattern:$0x75316420] }
 0x209   : > { %2157 = vst [vmem:[#allocation1 + $0x10] ss:$2 sm:$0xff] %v2134_v21  ;;  %v6917_v42 = vld.sshfl [vmem:[#allocation1 + $0x20] sm:$0xff pattern:$0x75316420]  ;;  %v1134_v21 = vpop.permute.xlu1 %1133 }
 0x20c   : > { %v6899_v27 = vld.sshfl [vmem:[#allocation1] sm:$0xff pattern:$0x75316420]  ;;  %v6901_v33 = vld.sshfl [vmem:[#allocation1 + $0x8] sm:$0xff pattern:$0x75316420] }
 0x20d   : > { %10260 = vst [vmem:[#allocation35_spill] sm:$0xff] %v6899_v27  ;;  %1409 = vrot.lane.b32.xlu1 %v6561_v1, %s5924_s19  ;;  %1332 = vrot.lane.b32.xlu0 %v6513_v32, %s5922_s17  ;;  %v1144_v1 = vsel %vm1137_vm2, %v1128_v31, %v6856_v39  ;;  %v6919_v32 = vld.sshfl [vmem:[#allocation1 + $0x28] sm:$0xff pattern:$0x75316420] }
 0x20e   : > { %10261 = vst [vmem:[#allocation36_spill] sm:$0xff] %v6901_v33  ;;  %v1143_v33 = vsel %vm1137_vm2, %v1126_v24, %v1128_v31  ;;  %v1211_v31 = vpop.permute.xlu2 %1210 }
 0x20f   : > { %2227 = vst [vmem:[#allocation1 + $0x1] ss:$2 sm:$0xff] %v6407_v34 }
 0x210   : > { %1163 = vst [vmem:[#allocation3 + $0x1b8] sm:$0xf0] %v1143_v33  ;;  %v6925_v47 = vld.sshfl [vmem:[#allocation1 + $0x10] sm:$0xff pattern:$0x75316420]  ;;  %v1145_v33 = vsel %vm1137_vm2, %v6856_v39, %v1132_v2 }
 0x211   : > { %1164 = vst [vmem:[#allocation3 + $0x1c0] sm:$0xf0] %v1144_v1 }
 0x212   : > { %10262 = vst [vmem:[#allocation37_spill] sm:$0xff] %v6925_v47 }
 0x213   : > { %1889 = vst [vmem:[#allocation1 + $0x21] ss:$2 sm:$0xff] %v6879_v16 }
 0x214   : > { %2229 = vst [vmem:[#allocation1 + $0x11] ss:$2 sm:$0xff] %v6429_v11 }
 0x215   : > { %2165 = vrot.lane.b32.xlu1 %v2150_v3, %s5925_s20  ;;  %1165 = vst [vmem:[#allocation3 + $0x1c8] sm:$0xf0] %v1145_v33  ;;  %v1203_v33 = vpop.permute.xlu1 %1202 }
 0x216   : > { %v2234_v53 = vld.sshfl [vmem:[#allocation1] sm:$0xff pattern:$0x75316420]  ;;  %v2235_v36 = vld.sshfl [vmem:[#allocation1 + $0x8] sm:$0xff pattern:$0x75316420] }
 0x217   : > { %2247 = vrot.lane.b32.xlu2 %v2234_v53, %s5926_s21  ;;  %2242 = vst [vmem:[#allocation1 + $0x1] ss:$2 sm:$0xff] %v6442_v17  ;;  %2249 = vrot.lane.b32.xlu0 %v2235_v36, %s5926_s21  ;;  %v1147_v53 = vsel %vm1137_vm2, %v1134_v21, %v1136_v28  ;;  %v1146_v17 = vsel %vm1137_vm2, %v1132_v2, %v1134_v21  ;;  %v2219_v36 = vld [vmem:[#allocation2 + $0x2c] sm:$0xf]  ;;  %v1201_v2 = vpop.permute.xlu0 %1200  ;;  %vm1350_vm2 = vcmask 1039360  }
 0x218   : > { %1167 = vst.msk [vmem:[#allocation3 + $0x1d8] sm:$0xf0] %vm10101_vm4, %v1147_v53  ;;  %v1217_v53 = vpop.permute.xlu2 %1216  ;;  %vm2564_vm4 = vcmask 883712  }
 0x219   : > { %1166 = vst [vmem:[#allocation3 + $0x1d0] sm:$0xf0] %v1146_v17 }
 0x21a   : > { %v6941_v1 = vld.sshfl [vmem:[#allocation1 + $0x20] sm:$0xff pattern:$0x75316420]  ;;  %v6946_v21 = vld.sshfl [vmem:[#allocation1 + $0x28] sm:$0xff pattern:$0x75316420] }
 0x21b   : > { %v2236_v39 = vld.sshfl [vmem:[#allocation1 + $0x10] sm:$0xff pattern:$0x75316420]  ;;  %v6943_v28 = vld.sshfl [vmem:[#allocation1 + $0x18] sm:$0xff pattern:$0x75316420] }
 0x21c   : > { %2243 = vst [vmem:[#allocation1 + $0x11] ss:$2 sm:$0xff] %v2219_v36 }
 0x21d   : > { %2080 = vrot.lane.b32.xlu1 %v6875_v0, %s5921_s16  ;;  %1974 = vst [vmem:[#allocation1 + $0x20] ss:$2 sm:$0xff] %v6879_v16  ;;  %v1224_v0 = vsel %vm10081_vm6, %v1203_v33, %v6906_v49  ;;  %v1209_v47 = vpop.permute.xlu1 %1208 }
 0x21e   : > { %v6934_v3 = vld.sshfl [vmem:[#allocation1] sm:$0xff pattern:$0x75316420]  ;;  %v6936_v24 = vld.sshfl [vmem:[#allocation1 + $0x8] sm:$0xff pattern:$0x75316420] }
 0x21f   : > { %10263 = vst [vmem:[#allocation38_spill] sm:$0xff] %v6934_v3  ;;  %2251 = vrot.lane.b32.xlu2 %v2236_v39, %s5926_s21  ;;  %v1207_v39 = vpop.permute.xlu0 %1206 }
 0x220   : > { %10264 = vst [vmem:[#allocation39_spill] sm:$0xff] %v6936_v24  ;;  %v1225_v24 = vsel %vm10081_vm6, %v6906_v49, %v1207_v39 }
 0x221   : > { %2312 = vst [vmem:[#allocation1] ss:$2 sm:$0xff] %v6407_v34  ;;  %v1223_v34 = vsel %vm10081_vm6, %v1201_v2, %v1203_v33  ;;  %v1227_v2 = vsel %vm10081_vm6, %v1209_v47, %v1211_v31  ;;  %v1226_v33 = vsel %vm10081_vm6, %v1207_v39, %v1209_v47 }
 0x222   : > { %1244 = vst [vmem:[#allocation3 + $0x1e8] sm:$0xf] %v1224_v0 }
 0x223   : > { %1243 = vst [vmem:[#allocation3 + $0x1e0] sm:$0xf] %v1223_v34  ;;  %v6953_v36 = vld.sshfl [vmem:[#allocation1 + $0x10] sm:$0xff pattern:$0x75316420]  ;;  %v1820_v34 = vpop.permute.xlu2 %1819 }
 0x224   : > { %10265 = vst [vmem:[#allocation40_spill] sm:$0xff] %v6953_v36  ;;  %v6960_v10 = vld.sshfl [vmem:[#allocation1 + $0x20] sm:$0xff pattern:$0x75316420] }
 0x225   : > { %2314 = vst [vmem:[#allocation1 + $0x10] ss:$2 sm:$0xff] %v6429_v11  ;;  %v6964_v0 = vld.sshfl [vmem:[#allocation1 + $0x28] sm:$0xff pattern:$0x75316420] }
 0x226   : > { %1245 = vst [vmem:[#allocation3 + $0x1f0] sm:$0xf] %v1225_v24 }
 0x227   : > { %1823 = vrot.lane.b32.xlu2 %v6785_v8, %s5915_s9  ;;  %1247 = vst [vmem:[#allocation3 + $0x200] sm:$0xf] %v1227_v2  ;;  %v1213_v49 = vpop.permute.xlu0 %1212 }
 0x228   : > { %v2319_v17 = vld.sshfl [vmem:[#allocation1] sm:$0xff pattern:$0x75316420]  ;;  %1246 = vst [vmem:[#allocation3 + $0x1f8] sm:$0xf] %v1226_v33  ;;  %v1228_v47 = vsel %vm10081_vm6, %v1211_v31, %v1213_v49 }
 0x229   : > { %2332 = vrot.lane.b32.xlu1 %v2319_v17, %s5927_s22  ;;  %v2320_v11 = vld.sshfl [vmem:[#allocation1 + $0x8] sm:$0xff pattern:$0x75316420]  ;;  %2060 = vst [vmem:[#allocation1 + $0x21] ss:$2 sm:$0xff] %v6879_v16  ;;  %v1215_v17 = vpop.permute.xlu1 %1214 }
 0x22a   : > { %v1230_v24 = vsel %vm10081_vm6, %v1215_v17, %v1217_v53  ;;  %v1229_v39 = vsel %vm10081_vm6, %v1213_v49, %v1215_v17  ;;  %1248 = vst [vmem:[#allocation3 + $0x208] sm:$0xf] %v1228_v47 }
 0x22b   : > { %1250 = vst [vmem:[#allocation3 + $0x218] sm:$0xf] %v1230_v24 }
 0x22c   : > { %v2321_v8 = vld.sshfl [vmem:[#allocation1 + $0x10] sm:$0xff pattern:$0x75316420]  ;;  %1249 = vst [vmem:[#allocation3 + $0x210] sm:$0xf] %v1229_v39 }
 0x22d   : > { %2336 = vrot.lane.b32.xlu0 %v2321_v8, %s5927_s22  ;;  %v2322_v8 = vld.sshfl [vmem:[#allocation1 + $0x18] sm:$0xff pattern:$0x75316420]  ;;  %v7018_v39 = vld.sshfl [vmem:[#allocation1 + $0x30] sm:$0xff pattern:$0x75316420] }
 0x22f   : > { %2334 = vrot.lane.b32.xlu2 %v2320_v11, %s5927_s22  ;;  %v6987_v31 = vpop.permute.xlu0 %1218 }
 0x230   : > { %v6974_v2 = vld.sshfl [vmem:[#allocation1 + $0x20] sm:$0xff pattern:$0x75316420]  ;;  %v6976_v33 = vld.sshfl [vmem:[#allocation1 + $0x28] sm:$0xff pattern:$0x75316420]  ;;  %v1231_v11 = vsel %vm10081_vm6, %v1217_v53, %v6987_v31 }
 0x231   : > { %1652 = vrot.lane.b32.xlu1 %v6742_v38, %s5916_s10  ;;  %v6980_v38 = vpop.permute.xlu2 %1907  ;;  %2145 = vst [vmem:[#allocation1 + $0x20] ss:$2 sm:$0xff] %v6879_v16  ;;  %vm2269_vm6 = vcmask 146432  }
 0x232   : > { %10266 = vst [vmem:[#allocation41_spill] sm:$0xff] %v6987_v31 }
 0x233   : > { %1251 = vst [vmem:[#allocation3 + $0x220] sm:$0xf] %v1231_v11  ;;  %v7020_v11 = vld.sshfl [vmem:[#allocation1 + $0x38] sm:$0xff pattern:$0x75316420] }
 0x234   : > { %10267 = vst [vmem:[#allocation42_spill] sm:$0xff] %v7020_v11 }
 0x235   : > { %1994 = vrot.lane.b32.xlu0 %v6841_v57, %s5919_s13 }
 0x237   : > { %1738 = vrot.lane.b32.xlu2 %v6764_v58, %s5918_s12  ;;  %v7001_v58 = vpop.permute.xlu0 %1821 }
 0x238   : > { %v2152_v49 = vld.sshfl [vmem:[#allocation1 + $0x20] sm:$0xff pattern:$0x75316420]  ;;  %v6991_v17 = vld.sshfl [vmem:[#allocation1 + $0x28] sm:$0xff pattern:$0x75316420]  ;;  %v1842_v57 = vsel %vm1841_vm7, %v1820_v34, %v7001_v58 }
 0x239   : > { %1570 = vrot.lane.b32.xlu1 %v6716_v59, %s5923_s18  ;;  %2231 = vst [vmem:[#allocation1 + $0x21] ss:$2 sm:$0xff] %v6879_v16 }
 0x23a   : > { %1862 = vst [vmem:[#allocation3 + $0x320] sm:$0xf] %v1842_v57 }
 0x23b   : > { %v6999_v59 = vpop.permute.xlu2 %1992 }
 0x23d   : > { %1909 = vrot.lane.b32.xlu0 %v6809_v61, %s5917_s11 }
 0x23f   : > { %1334 = vrot.lane.b32.xlu2 %v6477_v62, %s5922_s17  ;;  %v1649_v24 = vpop.permute.xlu0 %1648 }
 0x240   : > { %v7005_v53 = vld.sshfl [vmem:[#allocation1 + $0x20] sm:$0xff pattern:$0x75316420]  ;;  %v7007_v47 = vld.sshfl [vmem:[#allocation1 + $0x28] sm:$0xff pattern:$0x75316420] }
 0x241   : > { %2338 = vrot.lane.b32.xlu1 %v2322_v8, %s5927_s22  ;;  %2316 = vst [vmem:[#allocation1 + $0x20] ss:$2 sm:$0xff] %v6879_v16  ;;  %v1906_v62 = vpop.permute.xlu1 %1905 }
 0x242   : > { %v1928_v34 = vsel %vm1927_vm9, %v1906_v62, %v6980_v38 }
 0x243   : > { %v1735_v61 = vpop.permute.xlu2 %1734  ;;  %1948 = vst [vmem:[#allocation3 + $0x320] sm:$0xf0] %v1928_v34 }
 0x245   : > { %1491 = vrot.lane.b32.xlu0 %v6664_v23, %s5920_s14 }
 0x247   : > { %2167 = vrot.lane.b32.xlu2 %v6910_v51, %s5925_s20  ;;  %v7035_v51 = vpop.permute.xlu0 %1736 }
 0x248   : > { %v1757_v8 = vsel %vm1756_vm11, %v1735_v61, %v7035_v51 }
 0x249   : > { %1996 = vrot.lane.b32.xlu1 %v6843_v37, %s5919_s13  ;;  %v7024_v37 = vld [vmem:[#allocation2 + $0x1c] sm:$0xff]  ;;  %v7030_v23 = vpop.permute.xlu1 %1650  ;;  %1777 = vst [vmem:[#allocation3 + $0x2d0] sm:$0xf0] %v1757_v8 }
 0x24a   : > { %1634 = vst [vmem:[#allocation1 + $0x30] ss:$2 sm:$0xff] %v7024_v37  ;;  %v1671_v16 = vsel %vm1670_vm10, %v1649_v24, %v7030_v23 }
 0x24b   : > { %1691 = vst [vmem:[#allocation3 + $0x2d0] sm:$0xf] %v1671_v16 }
 0x24d   : > { %1413 = vrot.lane.b32.xlu0 %v6507_v54, %s5924_s19 }
 0x24f   : > { %2082 = vrot.lane.b32.xlu2 %v6877_v56, %s5921_s16 }
 0x251   : > { %1825 = vrot.lane.b32.xlu1 %v6787_v55, %s5915_s9  ;;  %v7037_v55 = vpop.permute.xlu2 %1489  ;;  %v7043_v54 = vld.sshfl [vmem:[#allocation1 + $0x30] sm:$0xff pattern:$0x75316420]  ;;  %v7045_v56 = vld.sshfl [vmem:[#allocation1 + $0x38] sm:$0xff pattern:$0x75316420] }
 0x252   : > { %10268 = vst [vmem:[#allocation43_spill] sm:$0xff] %v7045_v56 }
 0x253   : > { %v1991_v57 = vpop.permute.xlu1 %1990  ;;  %1720 = vst [vmem:[#allocation1 + $0x31] ss:$2 sm:$0xff] %v7024_v37 }
 0x254   : > { %v2013_v62 = vsel %vm2012_vm12, %v1991_v57, %v6999_v59 }
 0x255   : > { %2253 = vrot.lane.b32.xlu0 %v6943_v28, %s5926_s21  ;;  %2033 = vst [vmem:[#allocation3 + $0x370] sm:$0xf] %v2013_v62 }
 0x257   : > { %1911 = vrot.lane.b32.xlu2 %v6811_v18, %s5917_s11 }
 0x259   : > { %1740 = vrot.lane.b32.xlu1 %v6766_v25, %s5918_s12  ;;  %v1331_v61 = vpop.permute.xlu2 %1330  ;;  %v2323_v25 = vld.sshfl [vmem:[#allocation1 + $0x20] sm:$0xff pattern:$0x75316420] }
 0x25a   : > { %v7056_v34 = vld.sshfl [vmem:[#allocation1 + $0x30] sm:$0xff pattern:$0x75316420]  ;;  %v7058_v24 = vld.sshfl [vmem:[#allocation1 + $0x38] sm:$0xff pattern:$0x75316420] }
 0x25b   : > { %10269 = vst [vmem:[#allocation44_spill] sm:$0xff] %v7058_v24  ;;  %v1488_v18 = vpop.permute.xlu1 %1487  ;;  %v2396_v24 = vld [vmem:[#allocation3 + $0x50] sm:$0xff] }
 0x25c   : > { %1805 = vst [vmem:[#allocation1 + $0x30] ss:$2 sm:$0xff] %v7024_v37  ;;  %v1508_v28 = vsel %vm1507_vm13, %v1488_v18, %v7037_v55 }
 0x25d   : > { %2340 = vrot.lane.b32.xlu0 %v2323_v25, %s5927_s22  ;;  %1527 = vst [vmem:[#allocation3 + $0x280] sm:$0xf] %v1508_v28 }
 0x25f   : > { %2169 = vrot.lane.b32.xlu2 %v2152_v49, %s5925_s20 }
 0x261   : > { %1493 = vrot.lane.b32.xlu1 %v6666_v35, %s5920_s14  ;;  %v7065_v16 = vpop.permute.xlu2 %1411 }
 0x263   : > { %v7069_v35 = vld.sshfl [vmem:[#allocation1 + $0x30] sm:$0xff pattern:$0x75316420]  ;;  %v7071_v8 = vld.sshfl [vmem:[#allocation1 + $0x38] sm:$0xff pattern:$0x75316420] }
 0x264   : > { %10270 = vst [vmem:[#allocation45_spill] sm:$0xff] %v7071_v8 }
 0x265   : > { %1654 = vrot.lane.b32.xlu0 %v6744_v20, %s5916_s10  ;;  %v7077_v49 = vpop.permute.xlu1 %2078  ;;  %1891 = vst [vmem:[#allocation1 + $0x31] ss:$2 sm:$0xff] %v7024_v37  ;;  %v2077_v57 = vpop.permute.xlu0 %2076 }
 0x266   : > { %v2099_v62 = vsel %vm2098_vm14, %v2077_v57, %v7077_v49 }
 0x267   : > { %1572 = vrot.lane.b32.xlu2 %v6718_v22, %s5923_s18  ;;  %2119 = vst [vmem:[#allocation3 + $0x370] sm:$0xf0] %v2099_v62 }
 0x269   : > { %2084 = vrot.lane.b32.xlu1 %v6974_v2, %s5921_s16 }
 0x26c   : > { %v7084_v2 = vld.sshfl [vmem:[#allocation1 + $0x30] sm:$0xff pattern:$0x75316420]  ;;  %v7086_v25 = vld.sshfl [vmem:[#allocation1 + $0x38] sm:$0xff pattern:$0x75316420] }
 0x26d   : > { %10271 = vst [vmem:[#allocation46_spill] sm:$0xff] %v7086_v25  ;;  %2255 = vrot.lane.b32.xlu0 %v7005_v53, %s5926_s21  ;;  %v7092_v20 = vpop.permute.xlu1 %1568  ;;  %v1567_v18 = vpop.permute.xlu0 %1566 }
 0x26e   : > { %1976 = vst [vmem:[#allocation1 + $0x30] ss:$2 sm:$0xff] %v7024_v37 }
 0x26f   : > { %1336 = vrot.lane.b32.xlu2 %v6485_v48, %s5922_s17 }
 0x271   : > { %1827 = vrot.lane.b32.xlu1 %v6917_v42, %s5915_s9  ;;  %v2248_v22 = vpop.permute.xlu2 %2247  ;;  %v1587_v42 = vsel %vm1586_vm15, %v1567_v18, %v7092_v20 }
 0x272   : > { %1606 = vst [vmem:[#allocation3 + $0x280] sm:$0xf0] %v1587_v42 }
 0x275   : > { %1998 = vrot.lane.b32.xlu0 %v6960_v10, %s5919_s13  ;;  %v7103_v53 = vld.sshfl [vmem:[#allocation1 + $0x30] sm:$0xff pattern:$0x75316420]  ;;  %v7105_v57 = vld.sshfl [vmem:[#allocation1 + $0x38] sm:$0xff pattern:$0x75316420] }
 0x276   : > { %2062 = vst [vmem:[#allocation1 + $0x31] ss:$2 sm:$0xff] %v7024_v37 }
 0x277   : > { %1913 = vrot.lane.b32.xlu2 %v6941_v1, %s5917_s11  ;;  %v2164_v48 = vpop.permute.xlu1 %2163  ;;  %v2162_v28 = vpop.permute.xlu0 %2161 }
 0x278   : > { %v2184_v18 = vsel %vm2183_vm0, %v2162_v28, %v2164_v48 }
 0x279   : > { %1742 = vrot.lane.b32.xlu1 %v6894_v12, %s5918_s12  ;;  %v7107_v62 = vpop.permute.xlu2 %2251  ;;  %2204 = vst [vmem:[#allocation3 + $0x3c0] sm:$0xf] %v2184_v18 }
 0x27d   : > { %1415 = vrot.lane.b32.xlu0 %v6518_v6, %s5924_s19  ;;  %v7119_v42 = vld.sshfl [vmem:[#allocation1 + $0x30] sm:$0xff pattern:$0x75316420]  ;;  %v7124_v18 = vld.sshfl [vmem:[#allocation1 + $0x38] sm:$0xff pattern:$0x75316420] }
 0x27e   : > { %10272 = vst [vmem:[#allocation47_spill] sm:$0xff] %v7124_v18 }
 0x27f   : > { %1495 = vrot.lane.b32.xlu2 %v6672_v60, %s5920_s14  ;;  %v1410_v10 = vpop.permute.xlu1 %1409  ;;  %v1333_v1 = vpop.permute.xlu0 %1332  ;;  %2147 = vst [vmem:[#allocation1 + $0x30] ss:$2 sm:$0xff] %v7024_v37 }
 0x280   : > { %v1430_v12 = vsel %vm1429_vm1, %v1410_v10, %v7065_v16 }
 0x281   : > { %1338 = vrot.lane.b32.xlu1 %v6622_v44, %s5922_s17  ;;  %v7121_v28 = vpop.permute.xlu2 %1823  ;;  %1449 = vst [vmem:[#allocation3 + $0x230] sm:$0xf0] %v1430_v12  ;;  %v1351_v44 = vsel %vm1350_vm2, %v1331_v61, %v1333_v1 }
 0x282   : > { %v1843_v6 = vsel %vm1841_vm7, %v7001_v58, %v7121_v28  ;;  %1370 = vst [vmem:[#allocation3 + $0x230] sm:$0xf] %v1351_v44 }
 0x283   : > { %1863 = vst [vmem:[#allocation3 + $0x328] sm:$0xf] %v1843_v6 }
 0x285   : > { %1656 = vrot.lane.b32.xlu0 %v6860_v14, %s5916_s10 }
 0x286   : > { %v7142_v6 = vld.sshfl [vmem:[#allocation1 + $0x38] sm:$0xff pattern:$0x75316420] }
 0x287   : > { %1417 = vrot.lane.b32.xlu2 %v6640_v5, %s5924_s19  ;;  %v2166_v60 = vpop.permute.xlu1 %2165  ;;  %10273 = vst [vmem:[#allocation48_spill] sm:$0xff] %v7142_v6 }
 0x288   : > { %v2185_v61 = vsel %vm2183_vm0, %v2164_v48, %v2166_v60  ;;  %v2324_v48 = vld.sshfl [vmem:[#allocation1 + $0x28] sm:$0xff pattern:$0x75316420] }
 0x289   : > { %2171 = vrot.lane.b32.xlu1 %v6991_v17, %s5925_s20  ;;  %v2250_v10 = vpop.permute.xlu0 %2249  ;;  %v2335_v12 = vpop.permute.xlu2 %2334  ;;  %2205 = vst [vmem:[#allocation3 + $0x3c8] sm:$0xf] %v2185_v61  ;;  %v7140_v17 = vld.sshfl [vmem:[#allocation1 + $0x30] sm:$0xff pattern:$0x75316420] }
 0x28a   : > { %v2270_v58 = vsel %vm2269_vm6, %v2248_v22, %v2250_v10  ;;  %v2271_v44 = vsel %vm2269_vm6, %v2250_v10, %v7107_v62  ;;  %2233 = vst [vmem:[#allocation1 + $0x31] ss:$2 sm:$0xff] %v7024_v37 }
 0x28b   : > { %2290 = vst [vmem:[#allocation3 + $0x3c0] sm:$0xf0] %v2270_v58 }
 0x28c   : > { %2291 = vst [vmem:[#allocation3 + $0x3c8] sm:$0xf0] %v2271_v44  ;;  %v2486_v44 = vld [vmem:[#allocation3 + $0x320] sm:$0xff] }
 0x28d   : > { %1574 = vrot.lane.b32.xlu0 %v6692_v45, %s5923_s18 }
 0x28f   : > { %2257 = vrot.lane.b32.xlu2 %v7007_v47, %s5926_s21  ;;  %v7151_v5 = vpop.permute.xlu1 %2080 }
 0x290   : > { %v2100_v14 = vsel %vm2098_vm14, %v7077_v49, %v7151_v5 }
 0x291   : > { %2086 = vrot.lane.b32.xlu1 %v6976_v33, %s5921_s16  ;;  %v7156_v22 = vpop.permute.xlu2 %1738  ;;  %2120 = vst [vmem:[#allocation3 + $0x378] sm:$0xf0] %v2100_v14  ;;  %v7161_v61 = vld.sshfl [vmem:[#allocation1 + $0x30] sm:$0xff pattern:$0x75316420] }
 0x292   : > { %v1758_v33 = vsel %vm1756_vm11, %v7035_v51, %v7156_v22  ;;  %v7163_v45 = vld.sshfl [vmem:[#allocation1 + $0x38] sm:$0xff pattern:$0x75316420] }
 0x293   : > { %1778 = vst [vmem:[#allocation3 + $0x2d8] sm:$0xf0] %v1758_v33  ;;  %v2506_v58 = vld [vmem:[#allocation3 + $0x3c0] sm:$0xff] }
 0x294   : > { %2318 = vst [vmem:[#allocation1 + $0x30] ss:$2 sm:$0xff] %v7024_v37  ;;  %v7178_v37 = vand.u32 4294901760, %v2506_v58 }
 0x295   : > { %2342 = vrot.lane.b32.xlu0 %v2324_v48, %s5927_s22 }
 0x296   : > { %v7205_v36 = vsub.f32 %v2506_v58, %v7178_v37  ;;  %v2466_v58 = vld [vmem:[#allocation3 + $0x280] sm:$0xff] }
 0x297   : > { %1829 = vrot.lane.b32.xlu2 %v6919_v32, %s5915_s9 }
 0x299   : > { %1658 = vrot.lane.b32.xlu1 %v6866_v30, %s5916_s10  ;;  %v7172_v49 = vpop.permute.xlu2 %1334  ;;  %v2496_v30 = vld [vmem:[#allocation3 + $0x370] sm:$0xff] }
 0x29a   : > { %v1352_v10 = vsel %vm1350_vm2, %v1333_v1, %v7172_v49  ;;  %v7189_v33 = vand.u32 4294901760, %v2496_v30 }
 0x29b   : > { %v2333_v47 = vpop.permute.xlu1 %2332  ;;  %1371 = vst [vmem:[#allocation3 + $0x238] sm:$0xf] %v1352_v10  ;;  %v2325_v31 = vld.sshfl [vmem:[#allocation1 + $0x30] sm:$0xff pattern:$0x75316420] }
 0x29c   : > { %v2355_v51 = vsel %vm2354_vm8, %v2333_v47, %v2335_v12 }
 0x29d   : > { %2375 = vst [vmem:[#allocation3 + $0x410] sm:$0xf] %v2355_v51  ;;  %2000 = vrot.lane.b32.xlu0 %v6964_v0, %s5919_s13  ;;  %v7196_v51 = vand.u32 4294901760, %v2486_v44 }
 0x29f   : > { %1744 = vrot.lane.b32.xlu2 %v6896_v40, %s5918_s12  ;;  %v7191_v48 = vpop.permute.xlu0 %2336 }
 0x2a0   : > { %v2356_v40 = vsel %vm2354_vm8, %v2335_v12, %v7191_v48  ;;  %v7215_v12 = vsub.f32 %v2496_v30, %v7189_v33 }
 0x2a1   : > { %1576 = vrot.lane.b32.xlu1 %v6694_v41, %s5923_s18  ;;  %v2476_v41 = vld [vmem:[#allocation3 + $0x2d0] sm:$0xff]  ;;  %v7193_v47 = vpop.permute.xlu2 %2167  ;;  %2376 = vst [vmem:[#allocation3 + $0x418] sm:$0xf] %v2356_v40  ;;  %v2446_v40 = vld [vmem:[#allocation3 + $0x1e0] sm:$0xff] }
 0x2a2   : > { %v2186_v10 = vsel %vm2183_vm0, %v2166_v60, %v7193_v47  ;;  %v7207_v4 = vand.u32 4294901760, %v2476_v41  ;;  %v7219_v60 = vsub.f32 %v2486_v44, %v7196_v51 }
 0x2a3   : > { %v7184_v32 = vpop.permute.xlu1 %1652  ;;  %2206 = vst [vmem:[#allocation3 + $0x3d0] sm:$0xf] %v2186_v10  ;;  %v2456_v10 = vld [vmem:[#allocation3 + $0x230] sm:$0xff] }
 0x2a4   : > { %v1672_v1 = vsel %vm1670_vm10, %v7030_v23, %v7184_v32  ;;  %v2516_v14 = vld [vmem:[#allocation3 + $0x410] sm:$0xf]  ;;  %v7232_v30 = vsub.f32 %v2476_v41, %v7207_v4  ;;  %v7250_v15 = vand.u32 4294901760, %v2456_v10 }
 0x2a5   : > { %1692 = vst [vmem:[#allocation3 + $0x2d8] sm:$0xf] %v1672_v1  ;;  %v2569_v0 = vsel %vm200_vm3, %v2516_v14, 0  ;;  %1915 = vrot.lane.b32.xlu0 %v6946_v21, %s5917_s11 }
 0x2a6   : > { %v7202_v23 = vand.u32 4294901760, %v2569_v0  ;;  %10275 = vst [vmem:[#allocation50_spill] sm:$0xff] %v7250_v15 }
 0x2a7   : > { %1340 = vrot.lane.b32.xlu2 %v6624_v52, %s5922_s17  ;;  %v7245_v26 = vpop.permute.xlu0 %1994 }
 0x2a8   : > { %2601 = vmatpush.msra.mxu0 %v7202_v23  ;;  %2781 = vmatpush.msra.mxu3 %v7202_v23  ;;  %v7212_v1 = vsub.f32 %v2569_v0, %v7202_v23  ;;  %v7242_v0 = vand.u32 4294901760, %v2466_v58 }
 0x2a9   : > { %2344 = vrot.lane.b32.xlu1 %v2325_v31, %s5927_s22  ;;  %v7247_v41 = vpop.permute.xlu2 %2082 }
 0x2aa   : > { %2603 = vmatpush.msra.mxu0 %v7178_v37  ;;  %2732 = vmatpush.msra.mxu2 %v7212_v1  ;;  %v10084_v14 = vand.u32 4294901760, %v7212_v1  ;;  %10274 = vst [vmem:[#allocation49_spill] sm:$0xff] %v7242_v0  ;;  %v2101_v52 = vsel %vm2098_vm14, %v7151_v5, %v7247_v41  ;;  %v10278_v5 = vand.u32 4294901760, %v7215_v12  ;;  %v7274_v50 = vsub.f32 %v2466_v58, %v7242_v0  ;;  %v2426_v58 = vld [vmem:[#allocation3 + $0x140] sm:$0xff] }
 0x2ab   : > { %v7229_v31 = vpop.permute.xlu1 %1570  ;;  %2783 = vmatpush.msra.mxu3 %v7178_v37  ;;  %2121 = vst [vmem:[#allocation3 + $0x380] sm:$0xf0] %v2101_v52 }
 0x2ac   : > { %v1588_v44 = vsel %vm1586_vm15, %v7092_v20, %v7229_v31  ;;  %2605 = vmatpush.msra.mxu0 %v7189_v33  ;;  %v2642_v21 = vsub.f32 %v7212_v1, %v10084_v14  ;;  %2735 = vmatpush.msra.mxu2 %v7205_v36  ;;  %v2014_v14 = vsel %vm2012_vm12, %v6999_v59, %v7245_v26  ;;  %v7265_v20 = vand.u32 4294901760, %v2446_v40 }
 0x2ad   : > { %1607 = vst [vmem:[#allocation3 + $0x288] sm:$0xf0] %v1588_v44  ;;  %2785 = vmatpush.msra.mxu3 %v7189_v33  ;;  %v10276_v44 = vand.u32 4294901760, %v7205_v36  ;;  %v10279_v59 = vand.u32 4294901760, %v7219_v60  ;;  %1497 = vrot.lane.b32.xlu0 %v6674_v43, %s5920_s14 }
 0x2ae   : > { %2607 = vmatpush.msra.mxu0 %v7196_v51  ;;  %v2643_v46 = vand.u32 4294901760, %v2642_v21  ;;  %2034 = vst [vmem:[#allocation3 + $0x378] sm:$0xf] %v2014_v14  ;;  %2738 = vmatpush.msra.mxu2 %v7215_v12  ;;  %v2654_v21 = vsub.f32 %v7215_v12, %v10278_v5  ;;  %v2517_v14 = vld [vmem:[#allocation3 + $0x418] sm:$0xf]  ;;  %v7284_v5 = vsub.f32 %v2456_v10, %v7250_v15 }
 0x2af   : > { %v2648_v13 = vsub.f32 %v7205_v36, %v10276_v44  ;;  %10277 = vst [vmem:[#allocation51_spill] sm:$0xff] %v7265_v20  ;;  %2787 = vmatpush.msra.mxu3 %v7196_v51  ;;  %v2436_v44 = vld [vmem:[#allocation3 + $0x190] sm:$0xff]  ;;  %v2660_v11 = vsub.f32 %v7219_v60, %v10279_v59  ;;  %2173 = vrot.lane.b32.xlu2 %v7140_v17, %s5925_s20  ;;  %v2572_v27 = vsel %vm200_vm3, %v2517_v14, 0  ;;  %v1910_v19 = vpop.permute.xlu0 %1909  ;;  %v2406_v17 = vld [vmem:[#allocation3 + $0xa0] sm:$0xff] }
 0x2b0   : > { %2609 = vmatpush.msra.mxu0 %v7207_v4  ;;  %2644 = vmatpush.msra.mxu1 %v2643_v46  ;;  %v7292_v3 = vand.u32 4294901760, %v2436_v44  ;;  %v7298_v59 = vsub.f32 %v2446_v40, %v7265_v20  ;;  %v2655_v10 = vand.u32 4294901760, %v2654_v21  ;;  %v7310_v40 = vand.u32 4294901760, %v2426_v58 }
 0x2b1   : > { %2741 = vmatpush.msra.mxu2 %v7219_v60  ;;  %2789 = vmatpush.msra.mxu3 %v7207_v4  ;;  %v2649_v52 = vand.u32 4294901760, %v2648_v13  ;;  %v10281_v13 = vand.u32 4294901760, %v7232_v30  ;;  %v7306_v25 = vpop.permute.xlu2 %1911  ;;  %v2661_v21 = vand.u32 4294901760, %v2660_v11  ;;  %v7323_v56 = vand.u32 4294901760, %v2572_v27 }
 0x2b2   : > { %2002 = vrot.lane.b32.xlu1 %v7103_v53, %s5919_s13  ;;  %10280 = vst [vmem:[#allocation52_spill] sm:$0xff] %v7292_v3  ;;  %2611 = vmatpush.msra.mxu0 %v7242_v0  ;;  %v10282_v11 = vand.u32 4294901760, %v7274_v50 }
 0x2b3   : > { %v7290_v46 = vpop.permute.xlu1 %2338  ;;  %v2666_v53 = vsub.f32 %v7232_v30, %v10281_v13  ;;  %2650 = vmatpush.msra.mxu1 %v2649_v52  ;;  %2744 = vmatpush.msra.mxu2 %v7232_v30  ;;  %v2416_v52 = vld [vmem:[#allocation3 + $0xf0] sm:$0xff]  ;;  %v1929_v13 = vsel %vm1927_vm9, %v6980_v38, %v1910_v19  ;;  %v2507_v38 = vld [vmem:[#allocation3 + $0x3c8] sm:$0xff]  ;;  %v7355_v8 = vsub.f32 %v2572_v27, %v7323_v56 }
 0x2b4   : > { %v2357_v43 = vsel %vm2354_vm8, %v7191_v48, %v7290_v46  ;;  %2791 = vmatpush.msra.mxu3 %v7242_v0  ;;  %v1930_v48 = vsel %vm1927_vm9, %v1910_v19, %v7306_v25  ;;  %2613 = vmatpush.msra.mxu0 %v7250_v15  ;;  %1949 = vst [vmem:[#allocation3 + $0x328] sm:$0xf0] %v1929_v13  ;;  %v7329_v13 = vand.u32 4294901760, %v2416_v52  ;;  %v7343_v18 = vand.u32 4294901760, %v2507_v38 }
 0x2b5   : > { %2377 = vst [vmem:[#allocation3 + $0x420] sm:$0xf] %v2357_v43  ;;  %2656 = vmatpush.msra.mxu1 %v2655_v10  ;;  %2747 = vmatpush.msra.mxu2 %v7274_v50  ;;  %v7321_v43 = vsub.f32 %v2436_v44, %v7292_v3  ;;  %v2667_v19 = vand.u32 4294901760, %v2666_v53  ;;  %v2672_v10 = vsub.f32 %v7274_v50, %v10282_v11  ;;  %v10285_v53 = vand.u32 4294901760, %v7284_v5  ;;  %v2386_v11 = vld [vmem:[#allocation3] sm:$0xff]  ;;  %v2497_v14 = vld [vmem:[#allocation3 + $0x378] sm:$0xff] }
 0x2b6   : > { %2793 = vmatpush.msra.mxu3 %v7250_v15  ;;  %1950 = vst [vmem:[#allocation3 + $0x330] sm:$0xf0] %v1930_v48  ;;  %2615 = vmatpush.msra.mxu0 %v7265_v20  ;;  %v7335_v44 = vsub.f32 %v2426_v58, %v7310_v40  ;;  %v7337_v48 = vand.u32 4294901760, %v2406_v17  ;;  %v7366_v15 = vsub.f32 %v2416_v52, %v7329_v13 }
 0x2b7   : > { %2662 = vmatpush.msra.mxu1 %v2661_v21  ;;  %10283 = vst [vmem:[#allocation53_spill] sm:$0xff] %v7329_v13  ;;  %2750 = vmatpush.msra.mxu2 %v7284_v5  ;;  %v2678_v21 = vsub.f32 %v7284_v5, %v10285_v53  ;;  %v2673_v53 = vand.u32 4294901760, %v2672_v10 }
 0x2b8   : > { %2795 = vmatpush.msra.mxu3 %v7265_v20  ;;  %10284 = vst [vmem:[#allocation54_spill] sm:$0xff] %v7337_v48  ;;  %2617 = vmatpush.msra.mxu0 %v7292_v3  ;;  %v7351_v20 = vand.u32 4294901760, %v2396_v24  ;;  %v7376_v10 = vsub.f32 %v2406_v17, %v7337_v48  ;;  %v7391_v17 = vsub.f32 %v2507_v38, %v7343_v18 }
 0x2b9   : > { %2668 = vmatpush.msra.mxu1 %v2667_v19  ;;  %1419 = vrot.lane.b32.xlu0 %v6642_v9, %s5924_s19  ;;  %v7368_v19 = vpop.permute.xlu0 %1491  ;;  %v7370_v27 = vpop.permute.xlu2 %2169 }
 0x2ba   : > { %2088 = vrot.lane.b32.xlu2 %v7119_v42, %s5921_s16  ;;  %10287 = vst [vmem:[#allocation56_spill] sm:$0xff] %v7351_v20  ;;  %2753 = vmatpush.msra.mxu2 %v7298_v59  ;;  %v10288_v42 = vand.u32 4294901760, %v7298_v59  ;;  %v1509_v52 = vsel %vm1507_vm13, %v7037_v55, %v7368_v19 }
 0x2bb   : > { %v7349_v58 = vpop.permute.xlu1 %1996  ;;  %2797 = vmatpush.msra.mxu3 %v7292_v3  ;;  %10289 = vst [vmem:[#allocation57_spill] sm:$0xff] %v7370_v27  ;;  %1917 = vrot.lane.b32.xlu1 %v7084_v2, %s5917_s11  ;;  %v2187_v2 = vsel %vm2183_vm0, %v7193_v47, %v7370_v27  ;;  %v2487_v3 = vld [vmem:[#allocation3 + $0x328] sm:$0xff] }
 0x2bc   : > { %10286 = vst [vmem:[#allocation55_spill] sm:$0xff] %v7349_v58  ;;  %v2015_v9 = vsel %vm2012_vm12, %v7245_v26, %v7349_v58  ;;  %v2684_v6 = vsub.f32 %v7298_v59, %v10288_v42  ;;  %2619 = vmatpush.msra.mxu0 %v7310_v40  ;;  %v7378_v26 = vand.u32 4294901760, %v2386_v11  ;;  %v7381_v58 = vand.u32 4294901760, %v2497_v14  ;;  %2674 = vmatpush.msra.mxu1 %v2673_v53  ;;  %v2304_v53 = vld [vmem:[#allocation2 + $0x24] sm:$0xff] }
 0x2bd   : > { %2035 = vst [vmem:[#allocation3 + $0x380] sm:$0xf] %v2015_v9  ;;  %2756 = vmatpush.msra.mxu2 %v7321_v43  ;;  %v2679_v9 = vand.u32 4294901760, %v2678_v21  ;;  %2799 = vmatpush.msra.mxu3 %v7310_v40  ;;  %v10291_v42 = vand.u32 4294901760, %v7321_v43  ;;  %v7399_v47 = vand.u32 4294901760, %v2487_v3  ;;  %v7403_v21 = vsub.f32 %v2396_v24, %v7351_v20 }
 0x2be   : > { %10290 = vst [vmem:[#allocation58_spill] sm:$0xff] %v7378_v26  ;;  %2621 = vmatpush.msra.mxu0 %v7329_v13  ;;  %v2685_v38 = vand.u32 4294901760, %v2684_v6  ;;  %v7417_v24 = vsub.f32 %v2386_v11, %v7378_v26 }
 0x2bf   : > { %1528 = vst [vmem:[#allocation3 + $0x288] sm:$0xf] %v1509_v52  ;;  %v2690_v55 = vsub.f32 %v7321_v43, %v10291_v42  ;;  %2680 = vmatpush.msra.mxu1 %v2679_v9  ;;  %2759 = vmatpush.msra.mxu2 %v7335_v44  ;;  %v2477_v52 = vld [vmem:[#allocation3 + $0x2d8] sm:$0xff]  ;;  %v10292_v42 = vand.u32 4294901760, %v7335_v44  ;;  %v7413_v9 = vsub.f32 %v2497_v14, %v7381_v58 }
 0x2c0   : > { %2207 = vst [vmem:[#allocation3 + $0x3d8] sm:$0xf] %v2187_v2  ;;  %2801 = vmatpush.msra.mxu3 %v7329_v13  ;;  %2623 = vmatpush.msra.mxu0 %v7337_v48  ;;  %v10294_v2 = vand.u32 4294901760, %v7355_v8  ;;  %v7430_v27 = vsub.f32 %v2487_v3, %v7399_v47  ;;  %v7432_v11 = vand.u32 4294901760, %v2477_v52 }
 0x2c1   : > { %v2696_v0 = vsub.f32 %v7335_v44, %v10292_v42  ;;  %10293 = vst [vmem:[#allocation59_spill] sm:$0xff] %v7413_v9  ;;  %2686 = vmatpush.msra.mxu1 %v2685_v38  ;;  %2762 = vmatpush.msra.mxu2 %v7366_v15  ;;  %v2691_v42 = vand.u32 4294901760, %v2690_v55  ;;  %v7443_v6 = vpop.permute.xlu0 %1413  ;;  %v7445_v3 = vpop.permute.xlu2 %1572 }
 0x2c2   : > { %2259 = vrot.lane.b32.xlu0 %v7161_v61, %s5926_s21  ;;  %1660 = vrot.lane.b32.xlu2 %v7043_v54, %s5916_s10  ;;  %v2957_v14 = vsub.f32 %v7355_v8, %v10294_v2  ;;  %10295 = vst [vmem:[#allocation60_spill] sm:$0xff] %v7430_v27  ;;  %v10296_v61 = vand.u32 4294901760, %v7366_v15  ;;  %v1589_v2 = vsel %vm1586_vm15, %v7229_v31, %v7445_v3 }
 0x2c3   : > { %v7427_v38 = vpop.permute.xlu1 %1825  ;;  %2327 = vst [vmem:[#allocation1] ss:$2 sm:$0xff] %v2304_v53  ;;  %2803 = vmatpush.msra.mxu3 %v7337_v48  ;;  %2625 = vmatpush.msra.mxu0 %v7351_v20  ;;  %v2697_v53 = vand.u32 4294901760, %v2696_v0  ;;  %v10299_v48 = vand.u32 4294901760, %v7376_v10  ;;  %v10300_v0 = vand.u32 4294901760, %v7391_v17  ;;  %v7468_v31 = vsub.f32 %v2477_v52, %v7432_v11 }
 0x2c4   : > { %v1844_v54 = vsel %vm1841_vm7, %v7121_v28, %v7427_v38  ;;  %v2702_v55 = vsub.f32 %v7366_v15, %v10296_v61  ;;  %10297 = vst [vmem:[#allocation61_spill] sm:$0xff] %v7443_v6  ;;  %2692 = vmatpush.msra.mxu1 %v2691_v42  ;;  %2765 = vmatpush.msra.mxu2 %v7376_v10  ;;  %v10303_v52 = vand.u32 4294901760, %v7413_v9 }
 0x2c5   : > { %10298 = vst [vmem:[#allocation62_spill] sm:$0xff] %v7445_v3  ;;  %v2708_v13 = vsub.f32 %v7376_v10, %v10299_v48  ;;  %v1431_v61 = vsel %vm1429_vm1, %v7065_v16, %v7443_v6  ;;  %2805 = vmatpush.msra.mxu3 %v7351_v20  ;;  %1499 = vrot.lane.b32.xlu1 %v6720_v63, %s5920_s14  ;;  %v2958_v16 = vand.u32 4294901760, %v2957_v14  ;;  %v2447_v63 = vld [vmem:[#allocation3 + $0x1e8] sm:$0xff]  ;;  %v10302_v14 = vand.u32 4294901760, %v7212_v1 }
 0x2c6   : > { %1864 = vst [vmem:[#allocation3 + $0x330] sm:$0xf] %v1844_v54  ;;  %v2963_v42 = vsub.f32 %v7391_v17, %v10300_v0  ;;  %v2467_v54 = vld [vmem:[#allocation3 + $0x288] sm:$0xff]  ;;  %2627 = vmatpush.msra.mxu0 %v7378_v26  ;;  %2698 = vmatpush.msra.mxu1 %v2697_v53  ;;  %v2703_v0 = vand.u32 4294901760, %v2702_v55  ;;  %v2969_v53 = vsub.f32 %v7413_v9, %v10303_v52  ;;  %v10304_v55 = vand.u32 4294901760, %v7417_v24  ;;  %v2417_v52 = vld [vmem:[#allocation3 + $0xf8] sm:$0xff] }
 0x2c7   : > { %1450 = vst [vmem:[#allocation3 + $0x238] sm:$0xf0] %v1431_v61  ;;  %v7470_v3 = vand.u32 4294901760, %v2467_v54  ;;  %2768 = vmatpush.msra.mxu2 %v7403_v21  ;;  %2807 = vmatpush.msra.mxu3 %v7378_v26  ;;  %v10301_v61 = vand.u32 4294901760, %v7403_v21  ;;  %v2427_v1 = vld [vmem:[#allocation3 + $0x148] sm:$0xff] }
 0x2c8   : > { %1608 = vst [vmem:[#allocation3 + $0x290] sm:$0xf0] %v1589_v2  ;;  %2820 = vmatpush.msrb.mxu0 %v10302_v14  ;;  %v2437_v2 = vld [vmem:[#allocation3 + $0x198] sm:$0xff]  ;;  %2704 = vmatpush.msra.mxu1 %v2703_v0  ;;  %v2720_v6 = vsub.f32 %v7417_v24, %v10304_v55  ;;  %v10305_v14 = vand.u32 4294901760, %v7430_v27  ;;  %v10306_v55 = vand.u32 4294901760, %v7205_v36 }
 0x2c9   : > { %v2714_v48 = vsub.f32 %v7403_v21, %v10301_v61  ;;  %2959 = vmatpush.msrb.mxu3 %v2958_v16  ;;  %v7483_v28 = vsub.f32 %v2467_v54, %v7470_v3  ;;  %2771 = vmatpush.msra.mxu2 %v7417_v24  ;;  %v7489_v61 = vand.u32 4294901760, %v2447_v63  ;;  %v2964_v16 = vand.u32 4294901760, %v2963_v42  ;;  %v7511_v42 = vpop.permute.xlu2 %1336 }
 0x2ca   : > { %1831 = vrot.lane.b32.xlu0 %v7069_v35, %s5915_s9  ;;  %1578 = vrot.lane.b32.xlu2 %v7018_v39, %s5923_s18  ;;  %v2709_v54 = vand.u32 4294901760, %v2708_v13  ;;  %v2975_v0 = vsub.f32 %v7430_v27, %v10305_v14  ;;  %v7507_v35 = vand.u32 4294901760, %v2437_v2  ;;  %v7509_v13 = vpop.permute.xlu0 %2253  ;;  %v2970_v14 = vand.u32 4294901760, %v2969_v53  ;;  %v2326_v53 = vld.sshfl [vmem:[#allocation1 + $0x38] sm:$0xff pattern:$0x75316420] }
 0x2cb   : > { %v7499_v26 = vpop.permute.xlu1 %1740  ;;  %2824 = vmatpush.msrb.mxu0 %v10306_v55  ;;  %2916 = vmatpush.msrb.mxu2 %v7323_v56  ;;  %v2715_v20 = vand.u32 4294901760, %v2714_v48  ;;  %v7514_v55 = vand.u32 4294901760, %v2427_v1  ;;  %v2272_v48 = vsel %vm2269_vm6, %v7107_v62, %v7509_v13  ;;  %v10307_v27 = vand.u32 4294901760, %v7215_v12  ;;  %v2407_v12 = vld [vmem:[#allocation3 + $0xa8] sm:$0xff] }
 0x2cc   : > { %v1759_v39 = vsel %vm1756_vm11, %v7156_v22, %v7499_v26  ;;  %2965 = vmatpush.msrb.mxu3 %v2964_v16  ;;  %2710 = vmatpush.msra.mxu1 %v2709_v54  ;;  %v1353_v22 = vsel %vm1350_vm2, %v7172_v49, %v7511_v42  ;;  %v7526_v54 = vsub.f32 %v2447_v63, %v7489_v61  ;;  %v2721_v36 = vand.u32 4294901760, %v2720_v6  ;;  %v2385_v6 = vld [vmem:[%s10076_s1] sm:$0xf] }
 0x2cd   : > { %1779 = vst [vmem:[#allocation3 + $0x2e0] sm:$0xf0] %v1759_v39  ;;  %2828 = vmatpush.msrb.mxu0 %v10307_v27  ;;  %2918 = vmatpush.msrb.mxu2 %v7343_v18  ;;  %v2976_v39 = vand.u32 4294901760, %v2975_v0  ;;  %v10308_v62 = vand.u32 4294901760, %v7468_v31  ;;  %v10309_v27 = vand.u32 4294901760, %v7219_v60  ;;  %v7538_v63 = vsub.f32 %v2437_v2, %v7507_v35 }
 0x2ce   : > { %v2457_v16 = vld [vmem:[#allocation3 + $0x238] sm:$0xff]  ;;  %2292 = vst [vmem:[#allocation3 + $0x3d0] sm:$0xf0] %v2272_v48  ;;  %2971 = vmatpush.msrb.mxu3 %v2970_v14  ;;  %2716 = vmatpush.msra.mxu1 %v2715_v20  ;;  %v7540_v20 = vand.u32 4294901760, %v2417_v52  ;;  %v10310_v0 = vand.u32 4294901760, %v7483_v28  ;;  %v7553_v2 = vsub.f32 %v2427_v1, %v7514_v55  ;;  %v10311_v14 = vand.u32 4294901760, %v7232_v30 }
 0x2cf   : > { %v2981_v9 = vsub.f32 %v7468_v31, %v10308_v62  ;;  %v7531_v49 = vand.u32 4294901760, %v2457_v16  ;;  %1372 = vst [vmem:[#allocation3 + $0x240] sm:$0xf] %v1353_v22  ;;  %1421 = vrot.lane.b32.xlu1 %v6688_v29, %s5924_s19  ;;  %2832 = vmatpush.msrb.mxu0 %v10309_v27  ;;  %v10102_v48 = vand.u32 4294901760, %v7526_v54  ;;  %v2397_v22 = vld [vmem:[#allocation3 + $0x58] sm:$0xff]  ;;  %v7564_v27 = vand.u32 4294901760, %v2407_v12 }
 0x2d0   : > { %2920 = vmatpush.msrb.mxu2 %v7381_v58  ;;  %2977 = vmatpush.msrb.mxu3 %v2976_v39  ;;  %v2987_v29 = vsub.f32 %v7483_v28, %v10310_v0  ;;  %v2566_v1 = vsel %vm2564_vm4, %v2385_v6, 0  ;;  %v10312_v6 = vand.u32 4294901760, %v7274_v50  ;;  %vm10496_vm4 = vcmask 392196  }
 0x2d1   : > { %v7550_v60 = vsub.f32 %v2457_v16, %v7531_v49  ;;  %2722 = vmatpush.msra.mxu1 %v2721_v36  ;;  %2836 = vmatpush.msrb.mxu0 %v10311_v14  ;;  %v2982_v39 = vand.u32 4294901760, %v2981_v9  ;;  %v7574_v9 = vsub.f32 %v2417_v52, %v7540_v20  ;;  %v3010_v14 = vand.u32 4294901760, %v7553_v2  ;;  %v2387_v52 = vld [vmem:[#allocation3 + $0x8] sm:$0xff] }
 0x2d2   : > { %1746 = vrot.lane.b32.xlu0 %v7056_v34, %s5918_s12  ;;  %2346 = vrot.lane.b32.xlu2 %v2326_v53, %s5927_s22  ;;  %v7576_v36 = vpop.permute.xlu0 %2340  ;;  %v7578_v53 = vpop.permute.xlu2 %1913 }
 0x2d3   : > { %v2992_v62 = vand.u32 4294901760, %v7550_v60  ;;  %v7562_v16 = vpop.permute.xlu1 %1493  ;;  %2881 = vmatpush.msrb.mxu1 %v7202_v23  ;;  %2922 = vmatpush.msrb.mxu2 %v7399_v47  ;;  %v2988_v23 = vand.u32 4294901760, %v2987_v29  ;;  %v2358_v30 = vsel %vm2354_vm8, %v7290_v46, %v7576_v36  ;;  %v1931_v50 = vsel %vm1927_vm9, %v7306_v25, %v7578_v53 }
 0x2d4   : > { %v1510_v34 = vsel %vm1507_vm13, %v7368_v19, %v7562_v16  ;;  %2983 = vmatpush.msrb.mxu3 %v2982_v39  ;;  %2840 = vmatpush.msrb.mxu0 %v10312_v6  ;;  %v7586_v19 = vand.u32 4294901760, %v2397_v22  ;;  %v2999_v29 = vsub.f32 %v7526_v54, %v10102_v48  ;;  %v7599_v39 = vand.u32 4294901760, %v2566_v1  ;;  %2378 = vst [vmem:[#allocation3 + $0x428] sm:$0xf] %v2358_v30 }
 0x2d5   : > { %v2993_v0 = vsub.f32 %v7550_v60, %v2992_v62  ;;  %1529 = vst [vmem:[#allocation3 + $0x290] sm:$0xf] %v1510_v34  ;;  %2883 = vmatpush.msrb.mxu1 %v7178_v37  ;;  %2924 = vmatpush.msrb.mxu2 %v7432_v11  ;;  %v10314_v34 = vand.u32 4294901760, %v7284_v5  ;;  %v7604_v6 = vsub.f32 %v2407_v12, %v7564_v27  ;;  %v10315_v25 = vand.u32 4294901760, %v7538_v63 }
 0x2d6   : > { %10313 = vst [vmem:[#allocation63_spill] sm:$0xff] %v7599_v39  ;;  %2989 = vmatpush.msrb.mxu3 %v2988_v23  ;;  %v3016_v48 = vand.u32 4294901760, %v7574_v9  ;;  %v7612_v30 = vand.u32 4294901760, %v2387_v52  ;;  %v7617_v5 = vsub.f32 %v2397_v22, %v7586_v19  ;;  %v10316_v12 = vand.u32 4294901760, %v7298_v59  ;;  %2724 = vmatmul.f32.vlgmr.msra.gmra.mxu1 %v7599_v39 }
 0x2d7   : > { %2844 = vmatpush.msrb.mxu0 %v10314_v34  ;;  %v2994_v46 = vand.u32 4294901760, %v2993_v0  ;;  %1951 = vst [vmem:[#allocation3 + $0x338] sm:$0xf0] %v1931_v50  ;;  %2885 = vmatpush.msrb.mxu1 %v7189_v33  ;;  %v3005_v37 = vsub.f32 %v7538_v63, %v10315_v25  ;;  %v3000_v33 = vand.u32 4294901760, %v2999_v29  ;;  %v3011_v23 = vsub.f32 %v7553_v2, %v3010_v14  ;;  %v10321_v25 = vld [vmem:[#allocation49_spill] sm:$0xff] }
 0x2d8   : > { %2926 = vmatpush.msrb.mxu2 %v7470_v3  ;;  %2261 = vrot.lane.b32.xlu1 %v7163_v45, %s5926_s21  ;;  %v7626_v0 = vsub.f32 %v2566_v1, %v7599_v39  ;;  %v3022_v45 = vand.u32 4294901760, %v7604_v6  ;;  %v3017_v22 = vsub.f32 %v7574_v9, %v3016_v48  ;;  %v10318_v29 = vand.u32 4294901760, %v7321_v43 }
 0x2d9   : > { %2995 = vmatpush.msrb.mxu3 %v2994_v46  ;;  %2848 = vmatpush.msrb.mxu0 %v10316_v12  ;;  %v3028_v34 = vand.u32 4294901760, %v7617_v5  ;;  %v10322_v12 = vand.u32 4294901760, %v7366_v15 }
 0x2da   : > { %2887 = vmatpush.msrb.mxu1 %v7196_v51  ;;  %10317 = vst [vmem:[#allocation64_spill] sm:$0xff] %v7626_v0  ;;  %1342 = vrot.lane.b32.xlu0 %v6651_v7, %s5922_s17  ;;  %v3006_v51 = vand.u32 4294901760, %v3005_v37  ;;  %v7643_v7 = vsub.f32 %v2387_v52, %v7612_v30  ;;  %v7647_v50 = vpop.permute.xlu2 %1495  ;;  %v3012_v52 = vand.u32 4294901760, %v3011_v23  ;;  %v7661_v43 = vand.u32 4294901760, %v7626_v0 }
 0x2db   : > { %2004 = vrot.lane.b32.xlu2 %v7105_v57, %s5919_s13  ;;  %v7633_v59 = vpop.permute.xlu1 %2084  ;;  %2928 = vmatpush.msrb.mxu2 %v7531_v49  ;;  %v7645_v57 = vpop.permute.xlu0 %1654  ;;  %v3018_v37 = vand.u32 4294901760, %v3017_v22  ;;  %v10325_v22 = vld [vmem:[#allocation45_spill] sm:$0xff] }
 0x2dc   : > { %3001 = vmatpush.msrb.mxu3 %v3000_v33  ;;  %v2102_v1 = vsel %vm2098_vm14, %v7247_v41, %v7633_v59  ;;  %2852 = vmatpush.msrb.mxu0 %v10318_v29  ;;  %v1673_v46 = vsel %vm1670_vm10, %v7184_v32, %v7645_v57  ;;  %v1511_v41 = vsel %vm1507_vm13, %v7562_v16, %v7647_v50  ;;  %v3034_v16 = vand.u32 4294901760, %v7643_v7  ;;  %v10323_v33 = vld [vmem:[#allocation50_spill] sm:$0xff] }
 0x2dd   : > { %2889 = vmatpush.msrb.mxu1 %v7207_v4  ;;  %2122 = vst [vmem:[#allocation3 + $0x388] sm:$0xf0] %v2102_v1  ;;  %2930 = vmatpush.msrb.mxu2 %v7489_v61  ;;  %v10320_v4 = vand.u32 4294901760, %v7335_v44  ;;  %v3023_v32 = vsub.f32 %v7604_v6, %v3022_v45  ;;  %v3029_v44 = vsub.f32 %v7617_v5, %v3028_v34  ;;  %v2329_v1 = vld.sshfl [vmem:[#allocation1] sm:$0xff pattern:$0x75316420] }
 0x2de   : > { %3007 = vmatpush.msrb.mxu3 %v3006_v51  ;;  %10319 = vst [vmem:[#allocation65_spill] sm:$0xff] %v7661_v43  ;;  %v2631_v23 = vsub.f32 %v7626_v0, %v7661_v43  ;;  %v10324_v51 = vld [vmem:[#allocation48_spill] sm:$0xff]  ;;  %2774 = vmatmul.f32.vlgmr.msra.gmra.mxu2 %v7626_v0 }
 0x2df   : > { %1693 = vst [vmem:[#allocation3 + $0x2e0] sm:$0xf] %v1673_v46  ;;  %2856 = vmatpush.msrb.mxu0 %v10320_v4  ;;  %2891 = vmatpush.msrb.mxu1 %v10321_v25  ;;  %v3024_v15 = vand.u32 4294901760, %v3023_v32  ;;  %v10326_v46 = vand.u32 4294901760, %v7376_v10 }
 0x2e0   : > { %1530 = vst [vmem:[#allocation3 + $0x298] sm:$0xf] %v1511_v41  ;;  %2932 = vmatpush.msrb.mxu2 %v7507_v35  ;;  %3013 = vmatpush.msrb.mxu3 %v3012_v52  ;;  %v10327_v41 = vld [vmem:[#allocation51_spill] sm:$0xff]  ;;  %v3035_v52 = vsub.f32 %v7643_v7, %v3034_v16 }
 0x2e1   : > { %2860 = vmatpush.msrb.mxu0 %v10322_v12  ;;  %2893 = vmatpush.msrb.mxu1 %v10323_v33  ;;  %v3030_v12 = vand.u32 4294901760, %v3029_v44  ;;  %v7703_v33 = vand.u32 4294901760, %v2631_v23  ;;  %v10333_v44 = vld [vmem:[#allocation53_spill] sm:$0xff] }
 0x2e2   : > { %2934 = vmatpush.msrb.mxu2 %v7514_v55  ;;  %3019 = vmatpush.msrb.mxu3 %v3018_v37  ;;  %v7696_v32 = vpop.permute.xlu2 %1417  ;;  %v10328_v37 = vand.u32 4294901760, %v7403_v21  ;;  %v10332_v21 = vld [vmem:[#allocation47_spill] sm:$0xff] }
 0x2e3   : > { %2175 = vrot.lane.b32.xlu0 %v10324_v51, %s5925_s20  ;;  %1833 = vrot.lane.b32.xlu2 %v10325_v22, %s5915_s9  ;;  %v7684_v29 = vpop.permute.xlu1 %1827  ;;  %v2256_v25 = vpop.permute.xlu0 %2255  ;;  %10329 = vst [vmem:[#allocation49_spill] sm:$0xff] %v7703_v33  ;;  %v10331_v51 = vand.u32 4294901760, %v7417_v24  ;;  %v3036_v22 = vand.u32 4294901760, %v3035_v52  ;;  %v10337_v52 = vld [vmem:[#allocation54_spill] sm:$0xff] }
 0x2e4   : > { %2864 = vmatpush.msrb.mxu0 %v10326_v46  ;;  %2895 = vmatpush.msrb.mxu1 %v10327_v41  ;;  %v1845_v4 = vsel %vm1841_vm7, %v7427_v38, %v7684_v29  ;;  %v2273_v10 = vsel %vm2269_vm6, %v7509_v13, %v2256_v25  ;;  %v10330_v38 = vld [vmem:[#allocation52_spill] sm:$0xff]  ;;  %v10335_v46 = vand.u32 4294901760, %v7355_v8 }
 0x2e5   : > { %2936 = vmatpush.msrb.mxu2 %v7540_v20  ;;  %3025 = vmatpush.msrb.mxu3 %v3024_v15  ;;  %1865 = vst [vmem:[#allocation3 + $0x338] sm:$0xf] %v1845_v4  ;;  %v10334_v15 = vld [vmem:[#allocation55_spill] sm:$0xff]  ;;  %v10336_v41 = vld [vmem:[#allocation44_spill] sm:$0xff] }
 0x2e6   : > { %2348 = vrot.lane.b32.xlu1 %v2329_v1, %s5927_s22  ;;  %2868 = vmatpush.msrb.mxu0 %v10328_v37  ;;  %2293 = vst [vmem:[#allocation3 + $0x3d8] sm:$0xf0] %v2273_v10  ;;  %v10338_v4 = vld [vmem:[#allocation43_spill] sm:$0xff]  ;;  %v10340_v37 = vand.u32 4294901760, %v7391_v17 }
 0x2e7   : > { %2897 = vmatpush.msrb.mxu1 %v10330_v38  ;;  %2938 = vmatpush.msrb.mxu2 %v7564_v27  ;;  %v10339_v10 = vld [vmem:[#allocation59_spill] sm:$0xff]  ;;  %v10343_v38 = vld [vmem:[#allocation60_spill] sm:$0xff] }
 0x2e8   : > { %3031 = vmatpush.msrb.mxu3 %v3030_v12  ;;  %2872 = vmatpush.msrb.mxu0 %v10331_v51  ;;  %v10344_v51 = vand.u32 4294901760, %v10339_v10 }
 0x2e9   : > { %2899 = vmatpush.msrb.mxu1 %v7310_v40  ;;  %2940 = vmatpush.msrb.mxu2 %v7586_v19 }
 0x2ea   : > { %3037 = vmatpush.msrb.mxu3 %v3036_v22  ;;  %2633 = vmatmul.f32.vlgmr.msra.gmra.mxu0 %v7703_v33  ;;  %v7726_v23 = vpop.permute.xlu2 %2257 }
 0x2eb   : > { %2090 = vrot.lane.b32.xlu0 %v10332_v21, %s5921_s16  ;;  %2811 = vmatmul.f32.vlgmr.msra.gmra.mxu3 %v7661_v43  ;;  %v7715_v13 = vpop.permute.xlu1 %1742  ;;  %v7722_v24 = vpop.permute.xlu0 %1998  ;;  %v10345_v21 = vld [vmem:[#allocation58_spill] sm:$0xff] }
 0x2ec   : > { %3047 = vmatpush.msra.mxu0 %v7355_v8  ;;  %3196 = vmatpush.msra.mxu3 %v7323_v56  ;;  %v1760_v40 = vsel %vm1756_vm11, %v7499_v26, %v7715_v13  ;;  %v2016_v1 = vsel %vm2012_vm12, %v10334_v15, %v7722_v24  ;;  %v2274_v26 = vsel %vm2269_vm6, %v2256_v25, %v7726_v23  ;;  %v10341_v8 = vld [vmem:[#allocation46_spill] sm:$0xff]  ;;  %v10342_v25 = vld [vmem:[#allocation56_spill] sm:$0xff] }
 0x2ed   : > { %2901 = vmatpush.msrb.mxu1 %v10333_v44  ;;  %2942 = vmatpush.msrb.mxu2 %v7612_v30  ;;  %1780 = vst [vmem:[#allocation3 + $0x2e8] sm:$0xf0] %v1760_v40  ;;  %v10346_v44 = vld [vmem:[#allocation61_spill] sm:$0xff] }
 0x2ee   : > { %3050 = vmatpush.msra.mxu0 %v7391_v17  ;;  %2036 = vst [vmem:[#allocation3 + $0x388] sm:$0xf] %v2016_v1  ;;  %3198 = vmatpush.msra.mxu3 %v7343_v18 }
 0x2ef   : > { %3135 = vmatpush.msra.mxu2 %v10335_v46  ;;  %1748 = vrot.lane.b32.xlu2 %v10336_v41, %s5918_s12  ;;  %2294 = vst [vmem:[#allocation3 + $0x3e0] sm:$0xf0] %v2274_v26  ;;  %v10347_v26 = vand.u32 4294901760, %v10343_v38  ;;  %v10348_v46 = vand.u32 4294901760, %v7468_v31  ;;  %v10351_v41 = vld [vmem:[#allocation38_spill] sm:$0xff] }
 0x2f0   : > { %2903 = vmatpush.msrb.mxu1 %v10337_v52  ;;  %1662 = vrot.lane.b32.xlu1 %v10338_v4, %s5916_s10  ;;  %v10353_v4 = vand.u32 4294901760, %v7483_v28 }
 0x2f1   : > { %3053 = vmatpush.msra.mxu0 %v10339_v10  ;;  %3139 = vmatpush.msra.mxu2 %v10340_v37 }
 0x2f2   : > { %3200 = vmatpush.msra.mxu3 %v7381_v58  ;;  %2905 = vmatpush.msrb.mxu1 %v10342_v25  ;;  %v7760_v40 = vpop.permute.xlu2 %1829  ;;  %v10359_v25 = vld [vmem:[#allocation62_spill] sm:$0xff] }
 0x2f3   : > { %1919 = vrot.lane.b32.xlu0 %v10341_v8, %s5917_s11  ;;  %v7750_v12 = vpop.permute.xlu1 %1338  ;;  %3056 = vmatpush.msra.mxu0 %v10343_v38  ;;  %v1416_v17 = vpop.permute.xlu0 %1415 }
 0x2f4   : > { %3143 = vmatpush.msra.mxu2 %v10344_v51  ;;  %v1354_v22 = vsel %vm1350_vm2, %v7511_v42, %v7750_v12  ;;  %3202 = vmatpush.msra.mxu3 %v7399_v47  ;;  %v1432_v15 = vsel %vm1429_vm1, %v10346_v44, %v1416_v17  ;;  %v1433_v1 = vsel %vm1429_vm1, %v1416_v17, %v7696_v32 }
 0x2f5   : > { %2907 = vmatpush.msrb.mxu1 %v10345_v21  ;;  %1373 = vst [vmem:[#allocation3 + $0x248] sm:$0xf] %v1354_v22  ;;  %3059 = vmatpush.msra.mxu0 %v7468_v31  ;;  %v1846_v42 = vsel %vm1841_vm7, %v7684_v29, %v7760_v40  ;;  %v10349_v29 = vld [vmem:[#allocation14_spill] sm:$0xff] }
 0x2f6   : > { %1451 = vst [vmem:[#allocation3 + $0x240] sm:$0xf0] %v1432_v15  ;;  %3147 = vmatpush.msra.mxu2 %v10347_v26  ;;  %3204 = vmatpush.msra.mxu3 %v7432_v11  ;;  %v2488_v22 = vld [vmem:[#allocation3 + $0x330] sm:$0xff]  ;;  %v2478_v15 = vld [vmem:[#allocation3 + $0x2e0] sm:$0xff] }
 0x2f7   : > { %3096 = vmatpush.msra.mxu1 %v7323_v56  ;;  %1452 = vst [vmem:[#allocation3 + $0x248] sm:$0xf0] %v1433_v1  ;;  %3062 = vmatpush.msra.mxu0 %v7483_v28  ;;  %v10350_v56 = vld [vmem:[#allocation35_spill] sm:$0xff]  ;;  %v10361_v21 = vld [vmem:[#allocation10_spill] sm:$0xff]  ;;  %v7898_v44 = vand.u32 4294901760, %v2488_v22 }
 0x2f8   : > { %3151 = vmatpush.msra.mxu2 %v10348_v46  ;;  %1866 = vst [vmem:[#allocation3 + $0x340] sm:$0xf] %v1846_v42  ;;  %3206 = vmatpush.msra.mxu3 %v7470_v3  ;;  %v2468_v26 = vld [vmem:[#allocation3 + $0x290] sm:$0xff] }
 0x2f9   : > { %3098 = vmatpush.msra.mxu1 %v7343_v18  ;;  %1501 = vrot.lane.b32.xlu2 %v10349_v29, %s5920_s14  ;;  %v10352_v18 = vld [vmem:[#allocation57_spill] sm:$0xff] }
 0x2fa   : > { %2263 = vrot.lane.b32.xlu1 %v10351_v41, %s5926_s21  ;;  %3065 = vmatpush.msra.mxu0 %v7550_v60  ;;  %v7796_v37 = vpop.permute.xlu2 %1744  ;;  %v10355_v60 = vand.u32 4294901760, %v7538_v63 }
 0x2fb   : > { %2177 = vrot.lane.b32.xlu0 %v10350_v56, %s5925_s20  ;;  %v7786_v52 = vpop.permute.xlu1 %2171  ;;  %3100 = vmatpush.msra.mxu1 %v7381_v58  ;;  %v1657_v10 = vpop.permute.xlu0 %1656  ;;  %v1761_v58 = vsel %vm1756_vm11, %v7715_v13, %v7796_v37 }
 0x2fc   : > { %v2188_v31 = vsel %vm2183_vm0, %v10352_v18, %v7786_v52  ;;  %3155 = vmatpush.msra.mxu2 %v10353_v4  ;;  %3208 = vmatpush.msra.mxu3 %v7531_v49  ;;  %v1674_v8 = vsel %vm1670_vm10, %v7645_v57, %v1657_v10  ;;  %1781 = vst [vmem:[#allocation3 + $0x2f0] sm:$0xf0] %v1761_v58  ;;  %v10357_v57 = vld [vmem:[#allocation32_spill] sm:$0xff]  ;;  %v2448_v4 = vld [vmem:[#allocation3 + $0x1f0] sm:$0xff] }
 0x2fd   : > { %2208 = vst [vmem:[#allocation3 + $0x3e0] sm:$0xf] %v2188_v31  ;;  %2874 = vmatmul.f32.vlgmr.msrb.gmra.mxu0 %v7599_v39  ;;  %3102 = vmatpush.msra.mxu1 %v7399_v47  ;;  %v10354_v47 = vand.u32 4294901760, %v7526_v54  ;;  %v2458_v41 = vld [vmem:[#allocation3 + $0x240] sm:$0xff]  ;;  %v7936_v31 = vand.u32 4294901760, %v2468_v26 }
 0x2fe   : > { %1694 = vst [vmem:[#allocation3 + $0x2e8] sm:$0xf] %v1674_v8  ;;  %3068 = vmatpush.msra.mxu0 %v7526_v54  ;;  %3159 = vmatpush.msra.mxu2 %v2992_v62  ;;  %v2518_v62 = vld [vmem:[#allocation3 + $0x420] sm:$0xf]  ;;  %v10356_v54 = vld [vmem:[#allocation42_spill] sm:$0xff]  ;;  %v7949_v58 = vand.u32 4294901760, %v2458_v41 }
 0x2ff   : > { %3210 = vmatpush.msra.mxu3 %v7489_v61  ;;  %2909 = vmatmul.f32.vlgmr.msrb.gmra.mxu1 %v7599_v39  ;;  %v2575_v51 = vsel %vm200_vm3, %v2518_v62, 0  ;;  %v10365_v62 = vld [vmem:[#allocation26_spill] sm:$0xff] }
 0x300   : > { %3071 = vmatpush.msra.mxu0 %v7538_v63  ;;  %3104 = vmatpush.msra.mxu1 %v7432_v11  ;;  %v10358_v63 = vld [vmem:[#allocation29_spill] sm:$0xff] }
 0x301   : > { %3163 = vmatpush.msra.mxu2 %v10354_v47  ;;  %3212 = vmatpush.msra.mxu3 %v7507_v35  ;;  %v7956_v47 = vand.u32 4294901760, %v2448_v4 }
 0x302   : > { %3074 = vmatpush.msra.mxu0 %v7553_v2  ;;  %3106 = vmatpush.msra.mxu1 %v7470_v3  ;;  %v7831_v3 = vpop.permute.xlu2 %1340  ;;  %v2508_v2 = vld [vmem:[#allocation3 + $0x3d0] sm:$0xff] }
 0x303   : > { %v7817_v28 = vpop.permute.xlu1 %2086  ;;  %3167 = vmatpush.msra.mxu2 %v10355_v60  ;;  %3214 = vmatpush.msra.mxu3 %v7514_v55  ;;  %v7829_v13 = vpop.permute.xlu0 %1574  ;;  %v1355_v38 = vsel %vm1350_vm2, %v7750_v12, %v7831_v3  ;;  %v7868_v12 = vand.u32 4294901760, %v2508_v2  ;;  %v2438_v60 = vld [vmem:[#allocation3 + $0x1a0] sm:$0xff] }
 0x304   : > { %v2103_v11 = vsel %vm2098_vm14, %v7633_v59, %v7817_v28  ;;  %1580 = vrot.lane.b32.xlu0 %v10356_v54, %s5923_s18  ;;  %2092 = vrot.lane.b32.xlu2 %v10357_v57, %s5921_s16  ;;  %v1590_v59 = vsel %vm1586_vm15, %v10359_v25, %v7829_v13  ;;  %1374 = vst [vmem:[#allocation3 + $0x250] sm:$0xf] %v1355_v38  ;;  %v10366_v57 = vld [vmem:[#allocation20_spill] sm:$0xff]  ;;  %v7975_v25 = vand.u32 4294901760, %v2438_v60 }
 0x305   : > { %2123 = vst [vmem:[#allocation3 + $0x390] sm:$0xf0] %v2103_v11  ;;  %2006 = vrot.lane.b32.xlu1 %v10358_v63, %s5919_s13  ;;  %3077 = vmatpush.msra.mxu0 %v7574_v9  ;;  %v7963_v54 = vsub.f32 %v2468_v26, %v7936_v31  ;;  %v2519_v63 = vld [vmem:[#allocation3 + $0x428] sm:$0xf] }
 0x306   : > { %3108 = vmatpush.msra.mxu1 %v7531_v49  ;;  %3171 = vmatpush.msra.mxu2 %v3010_v14  ;;  %1609 = vst [vmem:[#allocation3 + $0x298] sm:$0xf0] %v1590_v59  ;;  %v7853_v49 = vand.u32 4294901760, %v2575_v51 }
 0x307   : > { %3216 = vmatpush.msra.mxu3 %v7540_v20  ;;  %3080 = vmatpush.msra.mxu0 %v7604_v6 }
 0x308   : > { %3110 = vmatpush.msra.mxu1 %v7489_v61  ;;  %3175 = vmatpush.msra.mxu2 %v3016_v48  ;;  %v2498_v61 = vld [vmem:[#allocation3 + $0x380] sm:$0xff] }
 0x309   : > { %3218 = vmatpush.msra.mxu3 %v7564_v27  ;;  %2948 = vmatmul.f32.vlgmr.msrb.gmra.mxu2 %v7703_v33 }
 0x30a   : > { %3083 = vmatpush.msra.mxu0 %v7617_v5  ;;  %3112 = vmatpush.msra.mxu1 %v7507_v35  ;;  %v7870_v35 = vpop.permute.xlu2 %2173  ;;  %v10362_v5 = vld [vmem:[#allocation23_spill] sm:$0xff] }
 0x30b   : > { %v7857_v14 = vpop.permute.xlu1 %1658  ;;  %3179 = vmatpush.msra.mxu2 %v3022_v45  ;;  %3220 = vmatpush.msra.mxu3 %v7586_v19  ;;  %v7866_v9 = vpop.permute.xlu0 %2342  ;;  %10360 = vst [vmem:[#allocation50_spill] sm:$0xff] %v7870_v35  ;;  %v7879_v45 = vsub.f32 %v2575_v51, %v7853_v49  ;;  %v2189_v17 = vsel %vm2183_vm0, %v7786_v52, %v7870_v35  ;;  %v10381_v35 = vld [vmem:[#allocation8_spill] sm:$0xff] }
 0x30c   : > { %v1675_v48 = vsel %vm1670_vm10, %v1657_v10, %v7857_v14  ;;  %3039 = vmatmul.f32.vlgmr.msrb.gmra.mxu3 %v7599_v39  ;;  %3086 = vmatpush.msra.mxu0 %v7643_v7  ;;  %v2359_v6 = vsel %vm2354_vm8, %v7576_v36, %v7866_v9  ;;  %2209 = vst [vmem:[#allocation3 + $0x3e8] sm:$0xf] %v2189_v17  ;;  %v10363_v36 = vld [vmem:[#allocation13_spill] sm:$0xff] }
 0x30d   : > { %1695 = vst [vmem:[#allocation3 + $0x2f0] sm:$0xf] %v1675_v48  ;;  %3114 = vmatpush.msra.mxu1 %v7514_v55  ;;  %3183 = vmatpush.msra.mxu2 %v3028_v34  ;;  %v7887_v55 = vand.u32 4294901760, %v2498_v61  ;;  %v7896_v34 = vsub.f32 %v2508_v2, %v7868_v12  ;;  %v10110_v1 = vand.u32 4294901760, %v7879_v45 }
 0x30e   : > { %3222 = vmatpush.msra.mxu3 %v7612_v30  ;;  %1344 = vrot.lane.b32.xlu0 %v10361_v21, %s5922_s17  ;;  %2379 = vst [vmem:[#allocation3 + $0x430] sm:$0xf] %v2359_v6  ;;  %v2428_v6 = vld [vmem:[#allocation3 + $0x150] sm:$0xff] }
 0x30f   : > { %1835 = vrot.lane.b32.xlu2 %v10362_v5, %s5915_s9  ;;  %3231 = vmatpush.msrb.mxu0 %v7853_v49  ;;  %v7907_v42 = vsub.f32 %v2498_v61, %v7887_v55  ;;  %v10109_v56 = vand.u32 4294901760, %v7896_v34  ;;  %v7986_v61 = vsub.f32 %v2448_v4, %v7956_v47  ;;  %v10368_v5 = vld [vmem:[#allocation17_spill] sm:$0xff]  ;;  %v2509_v4 = vld [vmem:[#allocation3 + $0x3d8] sm:$0xff] }
 0x310   : > { %3411 = vmatpush.msrb.mxu3 %v7853_v49  ;;  %1423 = vrot.lane.b32.xlu1 %v10363_v36, %s5924_s19 }
 0x311   : > { %3116 = vmatpush.msra.mxu1 %v7540_v20  ;;  %3187 = vmatpush.msra.mxu2 %v3034_v16  ;;  %v7913_v20 = vand.u32 4294901760, %v2478_v15  ;;  %v7921_v16 = vsub.f32 %v2488_v22, %v7898_v44  ;;  %v10107_v8 = vand.u32 4294901760, %v7907_v42  ;;  %v2418_v22 = vld [vmem:[#allocation3 + $0x100] sm:$0xff] }
 0x312   : > { %3233 = vmatpush.msrb.mxu0 %v7868_v12  ;;  %3413 = vmatpush.msrb.mxu3 %v7868_v12 }
 0x313   : > { %3362 = vmatpush.msrb.mxu2 %v7879_v45  ;;  %v7909_v46 = vpop.permute.xlu1 %1576  ;;  %3118 = vmatpush.msra.mxu1 %v7564_v27  ;;  %v7923_v29 = vpop.permute.xlu0 %2000  ;;  %v3272_v27 = vsub.f32 %v7879_v45, %v10110_v1 }
 0x314   : > { %v1591_v7 = vsel %vm1586_vm15, %v7829_v13, %v7909_v46  ;;  %3189 = vmatmul.f32.vlgmr.msra.gmra.mxu2 %v7599_v39  ;;  %3235 = vmatpush.msrb.mxu0 %v7887_v55  ;;  %v7926_v52 = vpop.permute.xlu2 %2088  ;;  %v2017_v18 = vsel %vm2012_vm12, %v7722_v24, %v7923_v29  ;;  %v7947_v24 = vsub.f32 %v2478_v15, %v7913_v20  ;;  %v10103_v15 = vand.u32 4294901760, %v7963_v54 }
 0x315   : > { %10364 = vst [vmem:[#allocation48_spill] sm:$0xff] %v7926_v52  ;;  %3365 = vmatpush.msrb.mxu2 %v7896_v34  ;;  %3415 = vmatpush.msrb.mxu3 %v7887_v55  ;;  %v2104_v10 = vsel %vm2098_vm14, %v7817_v28, %v7926_v52  ;;  %v10106_v28 = vand.u32 4294901760, %v7921_v16  ;;  %v3273_v11 = vand.u32 4294901760, %v3272_v27  ;;  %v3284_v13 = vsub.f32 %v7907_v42, %v10107_v8 }
 0x316   : > { %1610 = vst [vmem:[#allocation3 + $0x2a0] sm:$0xf0] %v1591_v7  ;;  %3120 = vmatpush.msra.mxu1 %v7586_v19  ;;  %3089 = vmatmul.f32.vlgmr.msra.gmra.mxu0 %v7626_v0  ;;  %v3278_v19 = vsub.f32 %v7896_v34, %v10109_v56  ;;  %v10105_v59 = vand.u32 4294901760, %v7947_v24  ;;  %v2578_v7 = vsel %vm200_vm3, %v2519_v63, 0  ;;  %v8012_v27 = vand.u32 4294901760, %v2428_v6 }
 0x317   : > { %2037 = vst [vmem:[#allocation3 + $0x390] sm:$0xf] %v2017_v18  ;;  %3224 = vmatmul.f32.vlgmr.msra.gmra.mxu3 %v7599_v39  ;;  %3237 = vmatpush.msrb.mxu0 %v7898_v44  ;;  %v3290_v2 = vsub.f32 %v7921_v16, %v10106_v28  ;;  %v2489_v28 = vld [vmem:[#allocation3 + $0x338] sm:$0xff] }
 0x318   : > { %2124 = vst [vmem:[#allocation3 + $0x398] sm:$0xf0] %v2104_v10  ;;  %3368 = vmatpush.msrb.mxu2 %v7907_v42  ;;  %3417 = vmatpush.msrb.mxu3 %v7898_v44  ;;  %v3279_v51 = vand.u32 4294901760, %v3278_v19  ;;  %v8019_v19 = vsub.f32 %v2438_v60, %v7975_v25  ;;  %v8032_v60 = vand.u32 4294901760, %v2509_v4  ;;  %v2305_v39 = vld [vmem:[#allocation2 + $0x2c] sm:$0xf] }
 0x319   : > { %3122 = vmatpush.msra.mxu1 %v7612_v30  ;;  %1921 = vrot.lane.b32.xlu0 %v10365_v62, %s5917_s11  ;;  %v7973_v30 = vsub.f32 %v2458_v41, %v7949_v58  ;;  %v2408_v41 = vld [vmem:[#allocation3 + $0xb0] sm:$0xff]  ;;  %v3291_v10 = vand.u32 4294901760, %v3290_v2  ;;  %v8021_v62 = vand.u32 4294901760, %v2578_v7  ;;  %2328 = vst [vmem:[#allocation1 + $0x10] ss:$2 sm:$0xff] %v2305_v39 }
 0x31a   : > { %1750 = vrot.lane.b32.xlu2 %v10366_v57, %s5918_s12  ;;  %3126 = vmatmul.f32.vlgmr.msra.gmra.mxu1 %v7661_v43  ;;  %v10108_v57 = vand.u32 4294901760, %v7986_v61  ;;  %v8030_v63 = vand.u32 4294901760, %v2408_v41  ;;  %v8079_v56 = vsub.f32 %v2509_v4, %v8032_v60  ;;  %v2469_v4 = vld [vmem:[#allocation3 + $0x298] sm:$0xff] }
 0x31b   : > { %3239 = vmatpush.msrb.mxu0 %v7913_v20  ;;  %3274 = vmatpush.msrb.mxu1 %v3273_v11  ;;  %v7978_v38 = vpop.permute.xlu1 %2344  ;;  %v7988_v48 = vpop.permute.xlu0 %1915  ;;  %v10104_v18 = vand.u32 4294901760, %v7973_v30  ;;  %v3302_v11 = vsub.f32 %v7963_v54, %v10103_v15  ;;  %v8053_v15 = vsub.f32 %v2578_v7, %v8021_v62 }
 0x31c   : > { %3371 = vmatpush.msrb.mxu2 %v7921_v16  ;;  %3419 = vmatpush.msrb.mxu3 %v7913_v20  ;;  %v7990_v17 = vpop.permute.xlu2 %1660  ;;  %v2360_v21 = vsel %vm2354_vm8, %v7866_v9, %v7978_v38  ;;  %v1932_v36 = vsel %vm1927_vm9, %v7578_v53, %v7988_v48  ;;  %v3285_v9 = vand.u32 4294901760, %v3284_v13  ;;  %v3296_v53 = vsub.f32 %v7947_v24, %v10105_v59  ;;  %v2499_v13 = vld [vmem:[#allocation3 + $0x388] sm:$0xff] }
 0x31d   : > { %10367 = vst [vmem:[#allocation45_spill] sm:$0xff] %v7990_v17  ;;  %1664 = vrot.lane.b32.xlu1 %v10368_v5, %s5916_s10  ;;  %3241 = vmatpush.msrb.mxu0 %v7936_v31  ;;  %v1676_v26 = vsel %vm1670_vm10, %v7857_v14, %v7990_v17  ;;  %v8014_v14 = vand.u32 4294901760, %v2418_v22  ;;  %v8041_v5 = vsub.f32 %v2428_v6, %v8012_v27  ;;  %v8141_v17 = vand.u32 4294901760, %v2469_v4 }
 0x31e   : > { %2380 = vst [vmem:[#allocation3 + $0x438] sm:$0xf] %v2360_v21  ;;  %3280 = vmatpush.msrb.mxu1 %v3279_v51  ;;  %3374 = vmatpush.msrb.mxu2 %v7947_v24  ;;  %v10371_v51 = vld [vmem:[#allocation11_spill] sm:$0xff]  ;;  %v3297_v2 = vand.u32 4294901760, %v3296_v53  ;;  %v3308_v21 = vsub.f32 %v7973_v30, %v10104_v18  ;;  %v8055_v18 = vand.u32 4294901760, %v2499_v13  ;;  %v8086_v1 = vsub.f32 %v2408_v41, %v8030_v63 }
 0x31f   : > { %1952 = vst [vmem:[#allocation3 + $0x340] sm:$0xf0] %v1932_v36  ;;  %3421 = vmatpush.msrb.mxu3 %v7936_v31  ;;  %3243 = vmatpush.msrb.mxu0 %v7949_v58  ;;  %v8044_v36 = vsub.f32 %v2418_v22, %v8014_v14  ;;  %v3303_v22 = vand.u32 4294901760, %v3302_v11  ;;  %v8099_v41 = vand.u32 4294901760, %v2489_v28 }
 0x320   : > { %10369 = vst [vmem:[#allocation51_spill] sm:$0xff] %v8014_v14  ;;  %3286 = vmatpush.msrb.mxu1 %v3285_v9  ;;  %3377 = vmatpush.msrb.mxu2 %v7963_v54  ;;  %v2388_v9 = vld [vmem:[#allocation3 + $0x10] sm:$0xff] }
 0x321   : > { %1696 = vst [vmem:[#allocation3 + $0x2f8] sm:$0xf] %v1676_v26  ;;  %3423 = vmatpush.msrb.mxu3 %v7949_v58  ;;  %3245 = vmatpush.msrb.mxu0 %v7956_v47  ;;  %v2398_v26 = vld [vmem:[#allocation3 + $0x60] sm:$0xff] }
 0x322   : > { %3292 = vmatpush.msrb.mxu1 %v3291_v10  ;;  %3380 = vmatpush.msrb.mxu2 %v7973_v30  ;;  %10370 = vst [vmem:[#allocation52_spill] sm:$0xff] %v8030_v63  ;;  %v10372_v10 = vld [vmem:[#allocation6_spill] sm:$0xff]  ;;  %v8074_v11 = vand.u32 4294901760, %v2398_v26 }
 0x323   : > { %3425 = vmatpush.msrb.mxu3 %v7956_v47  ;;  %1503 = vrot.lane.b32.xlu0 %v10371_v51, %s5920_s14  ;;  %v10111_v51 = vand.u32 4294901760, %v8019_v19  ;;  %v8050_v53 = vpop.permute.xlu0 %1497 }
 0x324   : > { %1346 = vrot.lane.b32.xlu2 %v10372_v10, %s5922_s17  ;;  %3247 = vmatpush.msrb.mxu0 %v7975_v25  ;;  %v8057_v6 = vpop.permute.xlu2 %1578  ;;  %v3314_v10 = vsub.f32 %v7986_v61, %v10108_v57  ;;  %v1512_v59 = vsel %vm1507_vm13, %v7647_v50, %v8050_v53  ;;  %v8069_v8 = vpop.permute.xlu1 %2002  ;;  %10375 = vst [vmem:[#allocation53_spill] sm:$0xff] %v8074_v11  ;;  %v8076_v57 = vand.u32 4294901760, %v2388_v9 }
 0x325   : > { %10373 = vst [vmem:[#allocation47_spill] sm:$0xff] %v8057_v6  ;;  %3298 = vmatpush.msrb.mxu1 %v3297_v2  ;;  %3383 = vmatpush.msrb.mxu2 %v7986_v61  ;;  %v1592_v7 = vsel %vm1586_vm15, %v7909_v46, %v8057_v6  ;;  %v10374_v2 = vld [vmem:[#allocation15_spill] sm:$0xff]  ;;  %v2018_v50 = vsel %vm2012_vm12, %v7923_v29, %v8069_v8  ;;  %v3309_v46 = vand.u32 4294901760, %v3308_v21 }
 0x326   : > { %3427 = vmatpush.msrb.mxu3 %v7975_v25  ;;  %1582 = vrot.lane.b32.xlu1 %v10374_v2, %s5923_s18  ;;  %1531 = vst [vmem:[#allocation3 + $0x2a0] sm:$0xf] %v1512_v59  ;;  %v10114_v2 = vand.u32 4294901760, %v8041_v5  ;;  %v3320_v29 = vsub.f32 %v8019_v19, %v10111_v51  ;;  %v8097_v21 = vsub.f32 %v2499_v13, %v8055_v18  ;;  %v10378_v13 = vand.u32 4294901760, %v8053_v15 }
 0x327   : > { %10376 = vst [vmem:[#allocation55_spill] sm:$0xff] %v8076_v57  ;;  %3249 = vmatpush.msrb.mxu0 %v8012_v27  ;;  %3304 = vmatpush.msrb.mxu1 %v3303_v22  ;;  %v2479_v22 = vld [vmem:[#allocation3 + $0x2e8] sm:$0xff]  ;;  %v8105_v59 = vsub.f32 %v2398_v26, %v8074_v11  ;;  %v8108_v51 = vsub.f32 %v2388_v9, %v8076_v57 }
 0x328   : > { %1611 = vst [vmem:[#allocation3 + $0x2a8] sm:$0xf0] %v1592_v7  ;;  %3386 = vmatpush.msrb.mxu2 %v8019_v19  ;;  %3429 = vmatpush.msrb.mxu3 %v8012_v27  ;;  %v3315_v7 = vand.u32 4294901760, %v3314_v10  ;;  %v3326_v10 = vsub.f32 %v8041_v5, %v10114_v2  ;;  %v8119_v6 = vand.u32 4294901760, %v2479_v22  ;;  %v3321_v9 = vand.u32 4294901760, %v3320_v29  ;;  %v10382_v29 = vld [vmem:[#allocation36_spill] sm:$0xff] }
 0x329   : > { %2038 = vst [vmem:[#allocation3 + $0x398] sm:$0xf] %v2018_v50  ;;  %3251 = vmatpush.msrb.mxu0 %v8014_v14  ;;  %3310 = vmatpush.msrb.mxu1 %v3309_v46  ;;  %v10377_v50 = vand.u32 4294901760, %v8044_v36  ;;  %v8128_v2 = vsub.f32 %v2489_v28, %v8099_v41 }
 0x32a   : > { %3389 = vmatpush.msrb.mxu2 %v8041_v5  ;;  %3431 = vmatpush.msrb.mxu3 %v8014_v14 }
 0x32b   : > { %3253 = vmatpush.msrb.mxu0 %v8030_v63  ;;  %3316 = vmatpush.msrb.mxu1 %v3315_v7  ;;  %v3332_v46 = vsub.f32 %v8044_v36, %v10377_v50  ;;  %v3587_v7 = vsub.f32 %v8053_v15, %v10378_v13  ;;  %10379 = vst [vmem:[#allocation44_spill] sm:$0xff] %v8128_v2  ;;  %v8130_v52 = vpop.permute.xlu0 %1419  ;;  %v2459_v50 = vld [vmem:[#allocation3 + $0x248] sm:$0xff] }
 0x32c   : > { %3392 = vmatpush.msrb.mxu2 %v8044_v36  ;;  %3433 = vmatpush.msrb.mxu3 %v8030_v63  ;;  %v8132_v26 = vpop.permute.xlu2 %2346  ;;  %v2330_v63 = vld.sshfl [vmem:[#allocation1 + $0x8] sm:$0xff pattern:$0x75316420]  ;;  %v1434_v13 = vsel %vm1429_vm1, %v7696_v32, %v8130_v52  ;;  %v3327_v32 = vand.u32 4294901760, %v3326_v10  ;;  %v8158_v39 = vand.u32 4294901760, %v2459_v50  ;;  %v10126_v10 = vand.u32 4294901760, %v8128_v2 }
 0x32d   : > { %10380 = vst [vmem:[#allocation54_spill] sm:$0xff] %v8132_v26  ;;  %1425 = vrot.lane.b32.xlu0 %v10381_v35, %s5924_s19  ;;  %2179 = vrot.lane.b32.xlu2 %v10382_v29, %s5925_s20  ;;  %v2361_v28 = vsel %vm2354_vm8, %v7978_v38, %v8132_v26  ;;  %v10383_v35 = vand.u32 4294901760, %v8079_v56  ;;  %v8151_v14 = vpop.permute.xlu1 %1917  ;;  %v8156_v38 = vsub.f32 %v2479_v22, %v8119_v6  ;;  %v2439_v26 = vld [vmem:[#allocation3 + $0x1a8] sm:$0xff] }
 0x32e   : > { %3255 = vmatpush.msrb.mxu0 %v8074_v11  ;;  %3322 = vmatpush.msrb.mxu1 %v3321_v9  ;;  %1453 = vst [vmem:[#allocation3 + $0x250] sm:$0xf0] %v1434_v13  ;;  %v2449_v9 = vld [vmem:[#allocation3 + $0x1f8] sm:$0xff]  ;;  %v10385_v13 = vand.u32 4294901760, %v8086_v1 }
 0x32f   : > { %v3593_v0 = vsub.f32 %v8079_v56, %v10383_v35  ;;  %10384 = vst [vmem:[#allocation43_spill] sm:$0xff] %v8151_v14  ;;  %3395 = vmatpush.msrb.mxu2 %v8086_v1  ;;  %3435 = vmatpush.msrb.mxu3 %v8074_v11  ;;  %v1933_v35 = vsel %vm1927_vm9, %v7988_v48, %v8151_v14  ;;  %v3333_v11 = vand.u32 4294901760, %v3332_v46  ;;  %v10386_v48 = vand.u32 4294901760, %v8097_v21 }
 0x330   : > { %2381 = vst [vmem:[#allocation3 + $0x440] sm:$0xf] %v2361_v28  ;;  %2350 = vrot.lane.b32.xlu1 %v2330_v63, %s5927_s22  ;;  %3257 = vmatpush.msrb.mxu0 %v8076_v57  ;;  %v3338_v29 = vsub.f32 %v8086_v1, %v10385_v13  ;;  %v3588_v28 = vand.u32 4294901760, %v3587_v7  ;;  %v8175_v14 = vsub.f32 %v2469_v4, %v8141_v17  ;;  %v10387_v13 = vand.u32 4294901760, %v7879_v45 }
 0x331   : > { %1953 = vst [vmem:[#allocation3 + $0x348] sm:$0xf0] %v1933_v35  ;;  %3328 = vmatpush.msrb.mxu1 %v3327_v32  ;;  %3398 = vmatpush.msrb.mxu2 %v8105_v59  ;;  %v3599_v63 = vsub.f32 %v8097_v21, %v10386_v48  ;;  %v8180_v22 = vand.u32 4294901760, %v2449_v9  ;;  %v3594_v32 = vand.u32 4294901760, %v3593_v0  ;;  %v10388_v46 = vand.u32 4294901760, %v8105_v59  ;;  %v2429_v48 = vld [vmem:[#allocation3 + $0x158] sm:$0xff] }
 0x332   : > { %3437 = vmatpush.msrb.mxu3 %v8076_v57  ;;  %3450 = vmatpush.msra.mxu0 %v10387_v13  ;;  %v8187_v4 = vsub.f32 %v2459_v50, %v8158_v39  ;;  %v10389_v45 = vand.u32 4294901760, %v7896_v34  ;;  %v3339_v13 = vand.u32 4294901760, %v3338_v29  ;;  %v3605_v0 = vsub.f32 %v8128_v2, %v10126_v10  ;;  %v2419_v10 = vld [vmem:[#allocation3 + $0x108] sm:$0xff] }
 0x333   : > { %3334 = vmatpush.msrb.mxu1 %v3333_v11  ;;  %v3344_v7 = vsub.f32 %v8105_v59, %v10388_v46  ;;  %3401 = vmatpush.msrb.mxu2 %v8108_v51  ;;  %v10390_v11 = vand.u32 4294901760, %v8108_v51  ;;  %v8200_v35 = vand.u32 4294901760, %v2439_v26  ;;  %v3600_v34 = vand.u32 4294901760, %v3599_v63 }
 0x334   : > { %3589 = vmatpush.msra.mxu3 %v3588_v28  ;;  %3454 = vmatpush.msra.mxu0 %v10389_v45  ;;  %v8198_v46 = vpop.permute.xlu0 %2259  ;;  %v10392_v57 = vand.u32 4294901760, %v7907_v42  ;;  %v8215_v2 = vsub.f32 %v2449_v9, %v8180_v22  ;;  %v8217_v63 = vand.u32 4294901760, %v2429_v48  ;;  %v10394_v42 = vld [vmem:[#allocation39_spill] sm:$0xff]  ;;  %v3606_v9 = vand.u32 4294901760, %v3605_v0 }
 0x335   : > { %v3350_v28 = vsub.f32 %v8108_v51, %v10390_v11  ;;  %v8202_v50 = vpop.permute.xlu2 %2004  ;;  %3546 = vmatpush.msra.mxu2 %v8021_v62  ;;  %v2275_v45 = vsel %vm2269_vm6, %v7726_v23, %v8198_v46  ;;  %3340 = vmatpush.msrb.mxu1 %v3339_v13  ;;  %v10393_v23 = vand.u32 4294901760, %v8156_v38  ;;  %v2409_v13 = vld [vmem:[#allocation3 + $0xb8] sm:$0xff] }
 0x336   : > { %10391 = vst [vmem:[#allocation59_spill] sm:$0xff] %v8202_v50  ;;  %3595 = vmatpush.msra.mxu3 %v3594_v32  ;;  %v2019_v11 = vsel %vm2012_vm12, %v8069_v8, %v8202_v50  ;;  %3458 = vmatpush.msra.mxu0 %v10392_v57  ;;  %v3345_v32 = vand.u32 4294901760, %v3344_v7  ;;  %v10395_v57 = vld [vmem:[#allocation33_spill] sm:$0xff]  ;;  %v10396_v7 = vand.u32 4294901760, %v7921_v16  ;;  %v10397_v8 = vand.u32 4294901760, %v8175_v14 }
 0x337   : > { %2295 = vst [vmem:[#allocation3 + $0x3e8] sm:$0xf0] %v2275_v45  ;;  %3548 = vmatpush.msra.mxu2 %v8032_v60  ;;  %v3611_v29 = vsub.f32 %v8156_v38, %v10393_v23  ;;  %2265 = vrot.lane.b32.xlu0 %v10394_v42, %s5926_s21  ;;  %v8229_v45 = vsub.f32 %v2439_v26, %v8200_v35  ;;  %v3351_v23 = vand.u32 4294901760, %v3350_v28  ;;  %v8238_v50 = vpop.permute.xlu1 %1499  ;;  %v8245_v42 = vand.u32 4294901760, %v2409_v13 }
 0x338   : > { %3601 = vmatpush.msra.mxu3 %v3600_v34  ;;  %2039 = vst [vmem:[#allocation3 + $0x3a0] sm:$0xf] %v2019_v11  ;;  %2094 = vrot.lane.b32.xlu2 %v10395_v57, %s5921_s16  ;;  %v8231_v34 = vand.u32 4294901760, %v2419_v10  ;;  %v3617_v11 = vsub.f32 %v8175_v14, %v10397_v8  ;;  %v8243_v26 = vsub.f32 %v2429_v48, %v8217_v63  ;;  %v10398_v28 = vand.u32 4294901760, %v7947_v24  ;;  %v10400_v24 = vld [vmem:[#allocation30_spill] sm:$0xff] }
 0x339   : > { %3346 = vmatpush.msrb.mxu1 %v3345_v32  ;;  %3462 = vmatpush.msra.mxu0 %v10396_v7  ;;  %v2399_v32 = vld [vmem:[#allocation3 + $0x68] sm:$0xff]  ;;  %v1513_v16 = vsel %vm1507_vm13, %v8050_v53, %v8238_v50  ;;  %v3612_v8 = vand.u32 4294901760, %v3611_v29  ;;  %v10399_v57 = vand.u32 4294901760, %v8187_v4  ;;  %v3634_v48 = vand.u32 4294901760, %v8229_v45 }
 0x33a   : > { %3550 = vmatpush.msra.mxu2 %v8055_v18  ;;  %3607 = vmatpush.msra.mxu3 %v3606_v9  ;;  %1532 = vst [vmem:[#allocation3 + $0x2a8] sm:$0xf] %v1513_v16  ;;  %v8259_v7 = vsub.f32 %v2419_v10, %v8231_v34  ;;  %v3618_v29 = vand.u32 4294901760, %v3617_v11  ;;  %v10401_v10 = vand.u32 4294901760, %v7963_v54  ;;  %v8279_v11 = vsub.f32 %v2409_v13, %v8245_v42 }
 0x33b   : > { %3352 = vmatpush.msrb.mxu1 %v3351_v23  ;;  %3466 = vmatpush.msra.mxu0 %v10398_v28  ;;  %v3623_v9 = vsub.f32 %v8187_v4, %v10399_v57  ;;  %v2389_v23 = vld [vmem:[#allocation3 + $0x18] sm:$0xff]  ;;  %v10402_v57 = vand.u32 4294901760, %v8215_v2  ;;  %v10403_v54 = vand.u32 4294901760, %v7973_v30  ;;  %v10405_v30 = vand.u32 4294901760, %v7986_v61 }
 0x33c   : > { %3552 = vmatpush.msra.mxu2 %v8099_v41  ;;  %v1832_v53 = vpop.permute.xlu0 %1831  ;;  %3613 = vmatpush.msra.mxu3 %v3612_v8  ;;  %v3646_v13 = vand.u32 4294901760, %v8259_v7  ;;  %v10406_v61 = vand.u32 4294901760, %v8019_v19 }
 0x33d   : > { %3511 = vmatpush.msra.mxu1 %v7853_v49  ;;  %v8261_v0 = vpop.permute.xlu2 %1833  ;;  %2008 = vrot.lane.b32.xlu1 %v10400_v24, %s5919_s13  ;;  %v1847_v16 = vsel %vm1841_vm7, %v7760_v40, %v1832_v53  ;;  %v8267_v49 = vand.u32 4294901760, %v2399_v32  ;;  %v3629_v8 = vsub.f32 %v8215_v2, %v10402_v57  ;;  %v3640_v24 = vand.u32 4294901760, %v8243_v26 }
 0x33e   : > { %v1848_v28 = vsel %vm1841_vm7, %v1832_v53, %v8261_v0  ;;  %3470 = vmatpush.msra.mxu0 %v10401_v10  ;;  %1867 = vst [vmem:[#allocation3 + $0x348] sm:$0xf] %v1847_v16  ;;  %3554 = vmatpush.msra.mxu2 %v8119_v6  ;;  %v3624_v40 = vand.u32 4294901760, %v3623_v9  ;;  %v8282_v53 = vand.u32 4294901760, %v2389_v23  ;;  %v10404_v9 = vld [vmem:[#allocation18_spill] sm:$0xff] }
 0x33f   : > { %3513 = vmatpush.msra.mxu1 %v7868_v12  ;;  %3619 = vmatpush.msra.mxu3 %v3618_v29  ;;  %1868 = vst [vmem:[#allocation3 + $0x350] sm:$0xf] %v1848_v28  ;;  %v3635_v12 = vsub.f32 %v8229_v45, %v3634_v48  ;;  %v8293_v29 = vsub.f32 %v2399_v32, %v8267_v49  ;;  %v3630_v16 = vand.u32 4294901760, %v3629_v8  ;;  %v3652_v28 = vand.u32 4294901760, %v8279_v11 }
 0x340   : > { %3474 = vmatpush.msra.mxu0 %v10403_v54  ;;  %3556 = vmatpush.msra.mxu2 %v8141_v17  ;;  %v8306_v32 = vsub.f32 %v2389_v23, %v8282_v53  ;;  %v3647_v8 = vsub.f32 %v8259_v7, %v3646_v13  ;;  %v10407_v54 = vand.u32 4294901760, %v8041_v5 }
 0x341   : > { %3515 = vmatpush.msra.mxu1 %v7887_v55  ;;  %3625 = vmatpush.msra.mxu3 %v3624_v40  ;;  %v3641_v55 = vsub.f32 %v8243_v26, %v3640_v24  ;;  %v8308_v10 = vpop.permute.xlu1 %1421  ;;  %v3636_v57 = vand.u32 4294901760, %v3635_v12  ;;  %v3658_v23 = vand.u32 4294901760, %v8293_v29 }
 0x342   : > { %1666 = vrot.lane.b32.xlu2 %v10404_v9, %s5916_s10  ;;  %3478 = vmatpush.msra.mxu0 %v10405_v30  ;;  %v3653_v9 = vsub.f32 %v8279_v11, %v3652_v28 }
 0x343   : > { %3517 = vmatpush.msra.mxu1 %v7898_v44  ;;  %3558 = vmatpush.msra.mxu2 %v8158_v39  ;;  %v1435_v44 = vsel %vm1429_vm1, %v8130_v52, %v8308_v10  ;;  %v3642_v12 = vand.u32 4294901760, %v3641_v55  ;;  %v3648_v52 = vand.u32 4294901760, %v3647_v8  ;;  %v3659_v5 = vsub.f32 %v8293_v29, %v3658_v23 }
 0x344   : > { %3631 = vmatpush.msra.mxu3 %v3630_v16  ;;  %3482 = vmatpush.msra.mxu0 %v10406_v61  ;;  %v1747_v40 = vpop.permute.xlu0 %1746  ;;  %1454 = vst [vmem:[#allocation3 + $0x258] sm:$0xf0] %v1435_v44  ;;  %v3654_v16 = vand.u32 4294901760, %v3653_v9  ;;  %v10410_v55 = vand.u32 4294901760, %v8086_v1  ;;  %v10412_v8 = vand.u32 4294901760, %v8105_v59  ;;  %v10413_v44 = vand.u32 4294901760, %v8108_v51 }
 0x345   : > { %3519 = vmatpush.msra.mxu1 %v7913_v20  ;;  %3560 = vmatpush.msra.mxu2 %v8180_v22  ;;  %v1762_v19 = vsel %vm1756_vm11, %v7796_v37, %v1747_v40  ;;  %v3664_v20 = vand.u32 4294901760, %v8306_v32  ;;  %v10408_v37 = vand.u32 4294901760, %v8044_v36  ;;  %v3660_v1 = vand.u32 4294901760, %v3659_v5  ;;  %v10417_v9 = vld [vmem:[#allocation50_spill] sm:$0xff]  ;;  %v10419_v5 = vld [vmem:[#allocation52_spill] sm:$0xff] }
 0x346   : > { %3637 = vmatpush.msra.mxu3 %v3636_v57  ;;  %3486 = vmatpush.msra.mxu0 %v10407_v54  ;;  %1782 = vst [vmem:[#allocation3 + $0x2f8] sm:$0xf0] %v1762_v19  ;;  %v10411_v57 = vld [vmem:[#allocation24_spill] sm:$0xff] }
 0x347   : > { %3521 = vmatpush.msra.mxu1 %v7936_v31  ;;  %3562 = vmatpush.msra.mxu2 %v8200_v35  ;;  %v10409_v31 = vld [vmem:[#allocation16_spill] sm:$0xff] }
 0x348   : > { %3643 = vmatpush.msra.mxu3 %v3642_v12  ;;  %3490 = vmatpush.msra.mxu0 %v10408_v37  ;;  %v10416_v12 = vld [vmem:[#allocation64_spill] sm:$0xff] }
 0x349   : > { %3523 = vmatpush.msra.mxu1 %v7949_v58  ;;  %3564 = vmatpush.msra.mxu2 %v8217_v63  ;;  %v8338_v30 = vpop.permute.xlu2 %1748  ;;  %v3665_v58 = vsub.f32 %v8306_v32, %v3664_v20 }
 0x34a   : > { %3649 = vmatpush.msra.mxu3 %v3648_v52  ;;  %1584 = vrot.lane.b32.xlu2 %v10409_v31, %s5923_s18  ;;  %v1763_v36 = vsel %vm1756_vm11, %v1747_v40, %v8338_v30  ;;  %v8362_v40 = vpop.permute.xlu1 %2261  ;;  %v10418_v52 = vand.u32 4294901760, %v8053_v15  ;;  %v10420_v31 = vand.u32 4294901760, %v8079_v56 }
 0x34b   : > { %3494 = vmatpush.msra.mxu0 %v10410_v55  ;;  %3525 = vmatpush.msra.mxu1 %v7956_v47  ;;  %1783 = vst [vmem:[#allocation3 + $0x300] sm:$0xf0] %v1763_v36  ;;  %v3666_v19 = vand.u32 4294901760, %v3665_v58  ;;  %v2276_v59 = vsel %vm2269_vm6, %v8198_v46, %v8362_v40  ;;  %v10415_v46 = vld [vmem:[#allocation51_spill] sm:$0xff]  ;;  %v10423_v55 = vld [vmem:[#allocation53_spill] sm:$0xff]  ;;  %v10424_v58 = vld [vmem:[#allocation44_spill] sm:$0xff] }
 0x34c   : > { %3566 = vmatpush.msra.mxu2 %v8231_v34  ;;  %3655 = vmatpush.msra.mxu3 %v3654_v16  ;;  %v8351_v61 = vpop.permute.xlu0 %1342  ;;  %2296 = vst [vmem:[#allocation3 + $0x3f0] sm:$0xf0] %v2276_v59  ;;  %v10421_v16 = vld [vmem:[#allocation54_spill] sm:$0xff] }
 0x34d   : > { %1837 = vrot.lane.b32.xlu0 %v10411_v57, %s5915_s9  ;;  %3498 = vmatpush.msra.mxu0 %v10412_v8  ;;  %v1356_v47 = vsel %vm1350_vm2, %v7831_v3, %v8351_v61  ;;  %v10414_v3 = vld [vmem:[#allocation27_spill] sm:$0xff]  ;;  %v10425_v57 = vand.u32 4294901760, %v8097_v21  ;;  %v10427_v8 = vld [vmem:[#allocation12_spill] sm:$0xff] }
 0x34e   : > { %3527 = vmatpush.msra.mxu1 %v7975_v25  ;;  %3568 = vmatpush.msra.mxu2 %v8245_v42  ;;  %1375 = vst [vmem:[#allocation3 + $0x258] sm:$0xf] %v1356_v47  ;;  %v2331_v25 = vld.sshfl [vmem:[#allocation1 + $0x10] sm:$0xff pattern:$0x75316420] }
 0x34f   : > { %3661 = vmatpush.msra.mxu3 %v3660_v1  ;;  %3502 = vmatpush.msra.mxu0 %v10413_v44  ;;  %v10428_v47 = vld [vmem:[#allocation63_spill] sm:$0xff]  ;;  %v10429_v44 = vld [vmem:[#allocation48_spill] sm:$0xff] }
 0x350   : > { %3529 = vmatpush.msra.mxu1 %v8012_v27  ;;  %3570 = vmatpush.msra.mxu2 %v8267_v49 }
 0x351   : > { %3667 = vmatpush.msra.mxu3 %v3666_v19  ;;  %1923 = vrot.lane.b32.xlu1 %v10414_v3, %s5917_s11  ;;  %v10431_v3 = vld [vmem:[#allocation31_spill] sm:$0xff] }
 0x352   : > { %3263 = vmatmul.f32.vlgmr.msrb.gmra.mxu0 %v7703_v33  ;;  %3441 = vmatmul.f32.vlgmr.msrb.gmra.mxu3 %v7661_v43 }
 0x353   : > { %3677 = vmatpush.msrb.mxu0 %v8053_v15  ;;  %3826 = vmatpush.msrb.mxu3 %v8021_v62  ;;  %v8377_v51 = vpop.permute.xlu2 %1501  ;;  %v10422_v15 = vld [vmem:[#allocation21_spill] sm:$0xff] }
 0x354   : > { %3531 = vmatpush.msra.mxu1 %v10415_v46  ;;  %3572 = vmatpush.msra.mxu2 %v8282_v53  ;;  %v1514_v54 = vsel %vm1507_vm13, %v8238_v50, %v8377_v51 }
 0x355   : > { %v8381_v27 = vpop.permute.xlu0 %2175  ;;  %2352 = vrot.lane.b32.xlu2 %v2331_v25, %s5927_s22  ;;  %3404 = vmatmul.f32.vlgmr.msrb.gmra.mxu2 %v10416_v12  ;;  %1533 = vst [vmem:[#allocation3 + $0x2b0] sm:$0xf] %v1514_v54  ;;  %v10433_v54 = vand.u32 4294901760, %v8175_v14 }
 0x356   : > { %v2190_v37 = vsel %vm2183_vm0, %v10417_v9, %v8381_v27  ;;  %3680 = vmatpush.msrb.mxu0 %v8079_v56  ;;  %3765 = vmatpush.msrb.mxu2 %v10418_v52  ;;  %v10426_v56 = vld [vmem:[#allocation55_spill] sm:$0xff]  ;;  %v10434_v9 = vld [vmem:[#allocation45_spill] sm:$0xff] }
 0x357   : > { %2210 = vst [vmem:[#allocation3 + $0x3f0] sm:$0xf] %v2190_v37  ;;  %3828 = vmatpush.msrb.mxu3 %v8032_v60  ;;  %3533 = vmatpush.msra.mxu1 %v10419_v5  ;;  %v10437_v52 = vld [vmem:[#allocation7_spill] sm:$0xff]  ;;  %v10439_v5 = vand.u32 4294901760, %v8215_v2 }
 0x358   : > { %v8396_v50 = vpop.permute.xlu1 %2348  ;;  %3683 = vmatpush.msrb.mxu0 %v8097_v21  ;;  %3769 = vmatpush.msrb.mxu2 %v10420_v31  ;;  %v10430_v21 = vand.u32 4294901760, %v10424_v58  ;;  %v2520_v31 = vld [vmem:[#allocation3 + $0x430] sm:$0xf] }
 0x359   : > { %v2362_v36 = vsel %vm2354_vm8, %v10421_v16, %v8396_v50  ;;  %3830 = vmatpush.msrb.mxu3 %v8055_v18  ;;  %1752 = vrot.lane.b32.xlu0 %v10422_v15, %s5918_s12 }
 0x35a   : > { %2382 = vst [vmem:[#allocation3 + $0x448] sm:$0xf] %v2362_v36  ;;  %3535 = vmatpush.msra.mxu1 %v10423_v55  ;;  %3686 = vmatpush.msrb.mxu0 %v10424_v58  ;;  %v10441_v36 = vld [vmem:[#allocation28_spill] sm:$0xff] }
 0x35b   : > { %3773 = vmatpush.msrb.mxu2 %v10425_v57  ;;  %3832 = vmatpush.msrb.mxu3 %v8099_v41  ;;  %v10445_v57 = vld [vmem:[#allocation47_spill] sm:$0xff] }
 0x35c   : > { %3537 = vmatpush.msra.mxu1 %v10426_v56  ;;  %1505 = vrot.lane.b32.xlu1 %v10427_v8, %s5920_s14 }
 0x35d   : > { %v2091_v1 = vpop.permute.xlu0 %2090  ;;  %3354 = vmatmul.f32.vlgmr.msrb.gmra.mxu1 %v10428_v47  ;;  %3689 = vmatpush.msrb.mxu0 %v8156_v38 }
 0x35e   : > { %v2105_v19 = vsel %vm2098_vm14, %v10429_v44, %v2091_v1  ;;  %3726 = vmatpush.msrb.mxu1 %v8021_v62  ;;  %3777 = vmatpush.msrb.mxu2 %v10430_v21  ;;  %v8422_v59 = vpop.permute.xlu2 %2092  ;;  %v10432_v62 = vand.u32 4294901760, %v8156_v38  ;;  %v2460_v44 = vld [vmem:[#allocation3 + $0x250] sm:$0xff] }
 0x35f   : > { %2125 = vst [vmem:[#allocation3 + $0x3a0] sm:$0xf0] %v2105_v19  ;;  %3834 = vmatpush.msrb.mxu3 %v8119_v6  ;;  %2010 = vrot.lane.b32.xlu2 %v10431_v3, %s5919_s13  ;;  %v2106_v25 = vsel %vm2098_vm14, %v2091_v1, %v8422_v59  ;;  %v2440_v19 = vld [vmem:[#allocation3 + $0x1b0] sm:$0xff] }
 0x360   : > { %3692 = vmatpush.msrb.mxu0 %v8175_v14  ;;  %3728 = vmatpush.msrb.mxu1 %v8032_v60  ;;  %2126 = vst [vmem:[#allocation3 + $0x3a8] sm:$0xf0] %v2106_v25  ;;  %v10436_v14 = vld [vmem:[#allocation43_spill] sm:$0xff] }
 0x361   : > { %3781 = vmatpush.msrb.mxu2 %v10432_v62  ;;  %3836 = vmatpush.msrb.mxu3 %v8141_v17  ;;  %v2450_v62 = vld [vmem:[#allocation3 + $0x200] sm:$0xff] }
 0x362   : > { %3695 = vmatpush.msrb.mxu0 %v8187_v4  ;;  %3730 = vmatpush.msrb.mxu1 %v8055_v18  ;;  %v8436_v46 = vpop.permute.xlu1 %1662  ;;  %v10435_v18 = vand.u32 4294901760, %v8187_v4  ;;  %v2526_v4 = vld [vmem:[%s10077_s2] sm:$0xff] }
 0x363   : > { %3785 = vmatpush.msrb.mxu2 %v10433_v54  ;;  %3838 = vmatpush.msrb.mxu3 %v8158_v39  ;;  %v1677_v60 = vsel %vm1670_vm10, %v10434_v9, %v8436_v46  ;;  %2536 = vst [vmem:[#allocation1] ss:$2 sm:$0xff] %v2526_v4  ;;  %v8578_v54 = vand.u32 4294901760, %v2460_v44  ;;  %v8580_v9 = vand.u32 4294901760, %v2440_v19 }
 0x364   : > { %3504 = vmatmul.f32.vlgmr.msra.gmra.mxu0 %v10428_v47  ;;  %3732 = vmatpush.msrb.mxu1 %v8099_v41  ;;  %1697 = vst [vmem:[#allocation3 + $0x300] sm:$0xf] %v1677_v60  ;;  %v10438_v41 = vld [vmem:[#allocation9_spill] sm:$0xff] }
 0x365   : > { %v8446_v38 = vpop.permute.xlu0 %1919  ;;  %3698 = vmatpush.msrb.mxu0 %v8215_v2  ;;  %3789 = vmatpush.msrb.mxu2 %v10435_v18  ;;  %v2581_v2 = vsel %vm200_vm3, %v2520_v31, 0  ;;  %10448 = vst [vmem:[#allocation61_spill] sm:$0xff] %v8580_v9 }
 0x366   : > { %v1934_v37 = vsel %vm1927_vm9, %v10436_v14, %v8446_v38  ;;  %3840 = vmatpush.msrb.mxu3 %v8180_v22  ;;  %1348 = vrot.lane.b32.xlu0 %v10437_v52, %s5922_s17  ;;  %v2430_v14 = vld [vmem:[#allocation3 + $0x160] sm:$0xff]  ;;  %v8593_v52 = vand.u32 4294901760, %v2450_v62 }
 0x367   : > { %1954 = vst [vmem:[#allocation3 + $0x350] sm:$0xf0] %v1934_v37  ;;  %1427 = vrot.lane.b32.xlu1 %v10438_v41, %s5924_s19  ;;  %3539 = vmatmul.f32.vlgmr.msra.gmra.mxu1 %v10428_v47  ;;  %v2521_v37 = vld [vmem:[#allocation3 + $0x438] sm:$0xf] }
 0x368   : > { %3701 = vmatpush.msrb.mxu0 %v8229_v45  ;;  %3734 = vmatpush.msrb.mxu1 %v8119_v6  ;;  %10449 = vst [vmem:[#allocation14_spill] sm:$0xff] %v8593_v52 }
 0x369   : > { %3793 = vmatpush.msrb.mxu2 %v10439_v5  ;;  %3842 = vmatpush.msrb.mxu3 %v8200_v35  ;;  %v8468_v16 = vpop.permute.xlu2 %1835 }
 0x36a   : > { %10440 = vst [vmem:[#allocation46_spill] sm:$0xff] %v8468_v16  ;;  %1925 = vrot.lane.b32.xlu2 %v10441_v36, %s5917_s11  ;;  %3704 = vmatpush.msrb.mxu0 %v8243_v26  ;;  %v1849_v6 = vsel %vm1841_vm7, %v8261_v0, %v8468_v16  ;;  %v2510_v0 = vld [vmem:[#allocation3 + $0x3e0] sm:$0xff]  ;;  %v2500_v26 = vld [vmem:[#allocation3 + $0x390] sm:$0xff]  ;;  %v8606_v36 = vsub.f32 %v2460_v44, %v8578_v54  ;;  %v8725_v16 = vpop.f32.mrf.mxu1 }
 0x36b   : > { %3736 = vmatpush.msrb.mxu1 %v8141_v17  ;;  %3797 = vmatpush.msrb.mxu2 %v3634_v48  ;;  %1869 = vst [vmem:[#allocation3 + $0x358] sm:$0xf] %v1849_v6  ;;  %v8506_v48 = vand.u32 4294901760, %v2510_v0  ;;  %v8608_v6 = vand.u32 4294901760, %v2430_v14 }
 0x36c   : > { %3844 = vmatpush.msrb.mxu3 %v8217_v63  ;;  %3707 = vmatpush.msrb.mxu0 %v8259_v7  ;;  %v8484_v55 = vpop.permute.xlu1 %2263  ;;  %v10443_v7 = vld [vmem:[#allocation5_spill] sm:$0xff] }
 0x36d   : > { %v8482_v15 = vpop.permute.xlu0 %2177  ;;  %10442 = vst [vmem:[#allocation56_spill] sm:$0xff] %v8484_v55  ;;  %3738 = vmatpush.msrb.mxu1 %v8158_v39  ;;  %3801 = vmatpush.msrb.mxu2 %v3640_v24  ;;  %v2277_v45 = vsel %vm2269_vm6, %v8362_v40, %v8484_v55  ;;  %v8500_v39 = vand.u32 4294901760, %v2581_v2  ;;  %v2480_v40 = vld [vmem:[#allocation3 + $0x2f0] sm:$0xff] }
 0x36e   : > { %v2191_v17 = vsel %vm2183_vm0, %v8381_v27, %v8482_v15  ;;  %3846 = vmatpush.msrb.mxu3 %v8231_v34  ;;  %3710 = vmatpush.msrb.mxu0 %v8279_v11  ;;  %2297 = vst [vmem:[#allocation3 + $0x3f8] sm:$0xf0] %v2277_v45  ;;  %v8527_v11 = vsub.f32 %v2510_v0, %v8506_v48 }
 0x36f   : > { %2211 = vst [vmem:[#allocation3 + $0x3f8] sm:$0xf] %v2191_v17  ;;  %3740 = vmatpush.msrb.mxu1 %v8180_v22  ;;  %3805 = vmatpush.msrb.mxu2 %v3646_v13  ;;  %v2490_v22 = vld [vmem:[#allocation3 + $0x340] sm:$0xff]  ;;  %v8515_v24 = vsub.f32 %v2581_v2, %v8500_v39  ;;  %v8517_v13 = vand.u32 4294901760, %v2500_v26  ;;  %v8611_v2 = vsub.f32 %v2440_v19, %v8580_v9  ;;  %v2511_v19 = vld [vmem:[#allocation3 + $0x3e8] sm:$0xff] }
 0x370   : > { %3848 = vmatpush.msrb.mxu3 %v8245_v42  ;;  %3578 = vmatmul.f32.vlgmr.msra.gmra.mxu2 %v7703_v33  ;;  %v10135_v1 = vand.u32 4294901760, %v8527_v11  ;;  %10451 = vst [vmem:[#allocation38_spill] sm:$0xff] %v8608_v6 }
 0x371   : > { %3713 = vmatpush.msrb.mxu0 %v8293_v29  ;;  %3742 = vmatpush.msrb.mxu1 %v8200_v35  ;;  %v10136_v58 = vand.u32 4294901760, %v8515_v24 }
 0x372   : > { %3809 = vmatpush.msrb.mxu2 %v3652_v28  ;;  %3850 = vmatpush.msrb.mxu3 %v8267_v49  ;;  %v8529_v28 = vand.u32 4294901760, %v2490_v22  ;;  %v3908_v60 = vsub.f32 %v8527_v11, %v10135_v1 }
 0x373   : > { %3669 = vmatmul.f32.vlgmr.msra.gmra.mxu3 %v10428_v47  ;;  %1220 = vrot.lane.b32.xlu2 %v10443_v7, %s5914_s8 }
 0x374   : > { %3716 = vmatpush.msrb.mxu0 %v8306_v32  ;;  %3744 = vmatpush.msrb.mxu1 %v8217_v63  ;;  %v8521_v35 = vpop.permute.xlu2 %1750  ;;  %v8536_v63 = vand.u32 4294901760, %v2480_v40  ;;  %v3909_v45 = vand.u32 4294901760, %v3908_v60 }
 0x375   : > { %10444 = vst [vmem:[#allocation60_spill] sm:$0xff] %v8521_v35  ;;  %3813 = vmatpush.msrb.mxu2 %v3658_v23  ;;  %3852 = vmatpush.msrb.mxu3 %v8282_v53  ;;  %v1764_v27 = vsel %vm1756_vm11, %v8338_v30, %v8521_v35  ;;  %v8544_v23 = vsub.f32 %v2500_v26, %v8517_v13  ;;  %v2470_v30 = vld [vmem:[#allocation3 + $0x2a0] sm:$0xff]  ;;  %v2481_v35 = vld [vmem:[#allocation3 + $0x2f8] sm:$0xff] }
 0x376   : > { %3861 = vmatpush.msra.mxu0 %v8500_v39  ;;  %1784 = vst [vmem:[#allocation3 + $0x308] sm:$0xf0] %v1764_v27  ;;  %v8538_v29 = vpop.permute.xlu0 %1580  ;;  %3746 = vmatpush.msrb.mxu1 %v8231_v34  ;;  %v10447_v34 = vld [vmem:[#allocation59_spill] sm:$0xff]  ;;  %v8565_v21 = vand.u32 4294901760, %v2470_v30  ;;  %v8568_v3 = vsub.f32 %v2480_v40, %v8536_v63  ;;  %v8618_v26 = vld [vmem:[#allocation3 + $0xc0] sm:$0xff]  ;;  %v10452_v27 = vld [vmem:[#allocation37_spill] sm:$0xff] }
 0x377   : > { %4041 = vmatpush.msra.mxu3 %v8500_v39  ;;  %3817 = vmatpush.msrb.mxu2 %v3664_v20  ;;  %v1593_v56 = vsel %vm1586_vm15, %v10445_v57, %v8538_v29  ;;  %v8550_v8 = vpop.permute.xlu1 %2006  ;;  %v8560_v20 = vsub.f32 %v2490_v22, %v8529_v28  ;;  %v10134_v25 = vand.u32 4294901760, %v8544_v23  ;;  %v2400_v22 = vld [vmem:[#allocation3 + $0x70] sm:$0xff]  ;;  %v8631_v57 = vsub.f32 %v2450_v62, %v8593_v52 }
 0x378   : > { %10446 = vst [vmem:[#allocation58_spill] sm:$0xff] %v8550_v8  ;;  %3863 = vmatpush.msra.mxu0 %v8506_v48  ;;  %v2020_v32 = vsel %vm2012_vm12, %v10447_v34, %v8550_v8  ;;  %3748 = vmatpush.msrb.mxu1 %v8245_v42  ;;  %v3902_v42 = vsub.f32 %v8515_v24, %v10136_v58  ;;  %v10131_v41 = vand.u32 4294901760, %v8568_v3  ;;  %v2420_v34 = vld [vmem:[#allocation3 + $0x110] sm:$0xff]  ;;  %v10137_v62 = vand.u32 4294901760, %v8606_v36 }
 0x379   : > { %3992 = vmatpush.msra.mxu2 %v8515_v24  ;;  %1612 = vst [vmem:[#allocation3 + $0x2b0] sm:$0xf0] %v1593_v56  ;;  %4043 = vmatpush.msra.mxu3 %v8506_v48  ;;  %v10132_v18 = vand.u32 4294901760, %v8560_v20  ;;  %v3914_v31 = vsub.f32 %v8544_v23, %v10134_v25  ;;  %v8646_v60 = vand.u32 4294901760, %v8618_v26 }
 0x37a   : > { %2040 = vst [vmem:[#allocation3 + $0x3a8] sm:$0xf] %v2020_v32  ;;  %3819 = vmatmul.f32.vlgmr.msrb.gmra.mxu2 %v10428_v47  ;;  %3865 = vmatpush.msra.mxu0 %v8517_v13  ;;  %v3903_v5 = vand.u32 4294901760, %v3902_v42 }
 0x37b   : > { %3995 = vmatpush.msra.mxu2 %v8527_v11  ;;  %4045 = vmatpush.msra.mxu3 %v8517_v13  ;;  %v3920_v0 = vsub.f32 %v8560_v20, %v10132_v18  ;;  %v3915_v32 = vand.u32 4294901760, %v3914_v31  ;;  %10453 = vst [vmem:[#allocation57_spill] sm:$0xff] %v8646_v60  ;;  %v8651_v31 = vand.u32 4294901760, %v2420_v34  ;;  %v8675_v18 = vld.sshfl [vmem:[#allocation1 + $0x8] sm:$0xff pattern:$0x75316420] }
 0x37c   : > { %3750 = vmatpush.msrb.mxu1 %v8267_v49  ;;  %3719 = vmatmul.f32.vlgmr.msrb.gmra.mxu0 %v10416_v12  ;;  %v8591_v49 = vsub.f32 %v2470_v30, %v8565_v21  ;;  %v3926_v30 = vsub.f32 %v8568_v3, %v10131_v41 }
 0x37d   : > { %3854 = vmatmul.f32.vlgmr.msrb.gmra.mxu3 %v10428_v47  ;;  %3867 = vmatpush.msra.mxu0 %v8529_v28  ;;  %10455 = vst [vmem:[#allocation32_spill] sm:$0xff] %v8651_v31  ;;  %v8690_v1 = vsub.f32 %v2420_v34, %v8651_v31 }
 0x37e   : > { %3998 = vmatpush.msra.mxu2 %v8544_v23  ;;  %4047 = vmatpush.msra.mxu3 %v8529_v28  ;;  %v8596_v4 = vpop.permute.xlu2 %1346  ;;  %v10133_v56 = vand.u32 4294901760, %v8591_v49 }
 0x37f   : > { %10450 = vst [vmem:[#allocation35_spill] sm:$0xff] %v8596_v4  ;;  %3752 = vmatpush.msrb.mxu1 %v8282_v53  ;;  %3869 = vmatpush.msra.mxu0 %v8536_v63  ;;  %v2584_v53 = vsel %vm200_vm3, %v2521_v37, 0  ;;  %v8648_v37 = vand.u32 4294901760, %v2400_v22 }
 0x380   : > { %3756 = vmatmul.f32.vlgmr.msrb.gmra.mxu1 %v7661_v43  ;;  %4001 = vmatpush.msra.mxu2 %v8560_v20  ;;  %v1345_v17 = vpop.permute.xlu0 %1344  ;;  %v8637_v44 = vand.u32 4294901760, %v2584_v53  ;;  %v8748_v43 = vand.u32 4294901760, %v2481_v35 }
 0x381   : > { %3904 = vmatpush.msra.mxu1 %v3903_v5  ;;  %4049 = vmatpush.msra.mxu3 %v8536_v63  ;;  %v1357_v7 = vsel %vm1350_vm2, %v8351_v61, %v1345_v17  ;;  %v1358_v40 = vsel %vm1350_vm2, %v1345_v17, %v8596_v4  ;;  %10454 = vst [vmem:[#allocation42_spill] sm:$0xff] %v8648_v37  ;;  %v3921_v5 = vand.u32 4294901760, %v3920_v0  ;;  %v2390_v0 = vld [vmem:[#allocation3 + $0x20] sm:$0xff]  ;;  %v10461_v4 = vand.u32 4294901760, %v8611_v2 }
 0x382   : > { %2181 = vrot.lane.b32.xlu0 %v10452_v27, %s5925_s20  ;;  %3871 = vmatpush.msra.mxu0 %v8565_v21  ;;  %1376 = vst [vmem:[#allocation3 + $0x260] sm:$0xf] %v1357_v7  ;;  %v8634_v61 = vpop.permute.xlu1 %1423  ;;  %v3927_v7 = vand.u32 4294901760, %v3926_v30  ;;  %v10140_v27 = vand.u32 4294901760, %v8631_v57  ;;  %v8671_v41 = vsub.f32 %v2584_v53, %v8637_v44  ;;  %v8692_v58 = vand.u32 4294901760, %v2390_v0 }
 0x383   : > { %3910 = vmatpush.msra.mxu1 %v3909_v45  ;;  %4004 = vmatpush.msra.mxu2 %v8568_v3  ;;  %1377 = vst [vmem:[#allocation3 + $0x268] sm:$0xf] %v1358_v40  ;;  %v1436_v42 = vsel %vm1429_vm1, %v8308_v10, %v8634_v61  ;;  %v8654_v10 = vsub.f32 %v2430_v14, %v8608_v6  ;;  %v2501_v45 = vld [vmem:[#allocation3 + $0x398] sm:$0xff]  ;;  %v8666_v14 = vld.sshfl [vmem:[#allocation1] sm:$0xff pattern:$0x75316420] }
 0x384   : > { %4051 = vmatpush.msra.mxu3 %v8565_v21  ;;  %3873 = vmatpush.msra.mxu0 %v8578_v54  ;;  %1455 = vst [vmem:[#allocation3 + $0x260] sm:$0xf0] %v1436_v42  ;;  %v3932_v40 = vsub.f32 %v8591_v49, %v10133_v56  ;;  %v8668_v42 = vpop.f32.mrf.mxu0  ;;  %v10458_v56 = vld [vmem:[#allocation40_spill] sm:$0xff]  ;;  %v8683_v25 = vand.u32 4294901760, %v2501_v45 }
 0x385   : > { %3916 = vmatpush.msra.mxu1 %v3915_v32  ;;  %4007 = vmatpush.msra.mxu2 %v8591_v49  ;;  %v8663_v32 = vand.u32 4294901760, %v2511_v19  ;;  %10456 = vst [vmem:[#allocation29_spill] sm:$0xff] %v8671_v41  ;;  %v10465_v34 = vand.u32 4294901760, %v8654_v10 }
 0x386   : > { %4053 = vmatpush.msra.mxu3 %v8578_v54  ;;  %3875 = vmatpush.msra.mxu0 %v8593_v52  ;;  %10459 = vst [vmem:[#allocation10_spill] sm:$0xff] %v8692_v58  ;;  %v3933_v17 = vand.u32 4294901760, %v3932_v40  ;;  %v3950_v40 = vsub.f32 %v8611_v2, %v10461_v4  ;;  %v8728_v4 = vsub.f32 %v2501_v45, %v8683_v25 }
 0x387   : > { %3922 = vmatpush.msra.mxu1 %v3921_v5  ;;  %4010 = vmatpush.msra.mxu2 %v8606_v36  ;;  %v8673_v30 = vpop.permute.xlu2 %2179  ;;  %v3938_v5 = vsub.f32 %v8606_v36, %v10137_v62  ;;  %v2530_v62 = vld [vmem:[%s10077_s2 + $0x20] sm:$0xff]  ;;  %v3956_v12 = vsub.f32 %v8654_v10, %v10465_v34  ;;  %v2461_v34 = vld [vmem:[#allocation3 + $0x258] sm:$0xff] }
 0x388   : > { %10457 = vst [vmem:[#allocation62_spill] sm:$0xff] %v8673_v30  ;;  %4055 = vmatpush.msra.mxu3 %v8593_v52  ;;  %2267 = vrot.lane.b32.xlu1 %v10458_v56, %s5926_s21  ;;  %v2192_v53 = vsel %vm2183_vm0, %v8482_v15, %v8673_v30  ;;  %v2491_v56 = vld [vmem:[#allocation3 + $0x348] sm:$0xff]  ;;  %v3944_v15 = vsub.f32 %v8631_v57, %v10140_v27  ;;  %v10460_v30 = vld [vmem:[#allocation34_spill] sm:$0xff]  ;;  %v8787_v8 = vand.u32 4294901760, %v2461_v34  ;;  %v2441_v52 = vld [vmem:[#allocation3 + $0x1b8] sm:$0xff] }
 0x389   : > { %3877 = vmatpush.msra.mxu0 %v8580_v9  ;;  %3928 = vmatpush.msra.mxu1 %v3927_v7  ;;  %2212 = vst [vmem:[#allocation3 + $0x400] sm:$0xf] %v2192_v53  ;;  %v8704_v7 = vsub.f32 %v2400_v22, %v8648_v37  ;;  %v8706_v53 = vpop.f32.mrf.mxu2  ;;  %v8716_v27 = vsub.f32 %v8618_v26, %v8646_v60  ;;  %v8730_v47 = vand.u32 4294901760, %v2491_v56 }
 0x38a   : > { %4013 = vmatpush.msra.mxu2 %v8631_v57  ;;  %4057 = vmatpush.msra.mxu3 %v8580_v9  ;;  %2551 = vst [vmem:[#allocation1] ss:$2 sm:$0xff] %v2530_v62  ;;  %v8720_v22 = vsub.f32 %v2511_v19, %v8663_v32  ;;  %v3945_v45 = vand.u32 4294901760, %v3944_v15  ;;  %v10468_v19 = vld [vmem:[#allocation25_spill] sm:$0xff] }
 0x38b   : > { %2096 = vrot.lane.b32.xlu0 %v10460_v30, %s5921_s16  ;;  %3879 = vmatpush.msra.mxu0 %v8608_v6  ;;  %v8722_v62 = vpop.permute.xlu0 %1921  ;;  %v3939_v30 = vand.u32 4294901760, %v3938_v5  ;;  %10464 = vst [vmem:[#allocation26_spill] sm:$0xff] %v8728_v4  ;;  %v2471_v5 = vld [vmem:[#allocation3 + $0x2a8] sm:$0xff] }
 0x38c   : > { %10462 = vst [vmem:[#allocation23_spill] sm:$0xff] %v8720_v22  ;;  %3934 = vmatpush.msra.mxu1 %v3933_v17  ;;  %4016 = vmatpush.msra.mxu2 %v8611_v2  ;;  %v1935_v26 = vsel %vm1927_vm9, %v8446_v38, %v8722_v62  ;;  %v8739_v17 = vsub.f32 %v2390_v0, %v8692_v58  ;;  %v8745_v38 = vpop.f32.mrf.mxu3  ;;  %v3951_v0 = vand.u32 4294901760, %v3950_v40  ;;  %v8764_v40 = vand.u32 4294901760, %v2471_v5 }
 0x38d   : > { %10463 = vst [vmem:[#allocation13_spill] sm:$0xff] %v8722_v62  ;;  %4059 = vmatpush.msra.mxu3 %v8608_v6  ;;  %3881 = vmatpush.msra.mxu0 %v8651_v31  ;;  %v2451_v6 = vld [vmem:[#allocation3 + $0x208] sm:$0xff]  ;;  %v8775_v62 = vpop.f32.mrf.mxu0 }
 0x38e   : > { %1955 = vst [vmem:[#allocation3 + $0x358] sm:$0xf0] %v1935_v26  ;;  %3940 = vmatpush.msra.mxu1 %v3939_v30  ;;  %4019 = vmatpush.msra.mxu2 %v8654_v10  ;;  %v10466_v30 = vand.u32 4294901760, %v8671_v41  ;;  %v8807_v55 = vsub.f32 %v2471_v5, %v8764_v40 }
 0x38f   : > { %4061 = vmatpush.msra.mxu3 %v8651_v31  ;;  %3883 = vmatpush.msra.mxu0 %v8646_v60  ;;  %v8757_v33 = vpop.permute.xlu1 %1664  ;;  %v8762_v31 = vsub.f32 %v2491_v56, %v8730_v47 }
 0x390   : > { %v4217_v26 = vsub.f32 %v8671_v41, %v10466_v30  ;;  %3946 = vmatpush.msra.mxu1 %v3945_v45  ;;  %4022 = vmatpush.msra.mxu2 %v8690_v1  ;;  %v1678_v30 = vsel %vm1670_vm10, %v8436_v46, %v8757_v33  ;;  %v10469_v45 = vand.u32 4294901760, %v8690_v1  ;;  %v5758_v41 = vld [vmem:[%s10078_s3] sm:$0xff]  ;;  %v3957_v46 = vand.u32 4294901760, %v3956_v12  ;;  %10475 = vst [vmem:[#allocation15_spill] sm:$0xff] %v8807_v55 }
 0x391   : > { %10467 = vst [vmem:[#allocation20_spill] sm:$0xff] %v8762_v31  ;;  %4063 = vmatpush.msra.mxu3 %v8646_v60  ;;  %1839 = vrot.lane.b32.xlu1 %v10468_v19, %s5915_s9  ;;  %v8777_v56 = vld.sshfl [vmem:[#allocation1] sm:$0xff pattern:$0x75316420]  ;;  %v8785_v19 = vsub.f32 %v2481_v35, %v8748_v43 }
 0x392   : > { %v3962_v15 = vsub.f32 %v8690_v1, %v10469_v45  ;;  %1698 = vst [vmem:[#allocation3 + $0x308] sm:$0xf] %v1678_v30  ;;  %3885 = vmatpush.msra.mxu0 %v8648_v37  ;;  %3952 = vmatpush.msra.mxu1 %v3951_v0  ;;  %v8789_v45 = vpop.permute.xlu2 %2094  ;;  %v2949_v30 = vpop.f32.mrf.mxu2  ;;  %v8791_v9 = vld.sshfl [vmem:[#allocation1 + $0x8] sm:$0xff pattern:$0x75316420]  ;;  %v10474_v0 = vand.u32 4294901760, %v8716_v27 }
 0x393   : > { %10470 = vst [vmem:[#allocation17_spill] sm:$0xff] %v8777_v56  ;;  %4025 = vmatpush.msra.mxu2 %v8716_v27  ;;  %4065 = vmatpush.msra.mxu3 %v8648_v37  ;;  %v10473_v56 = vand.u32 4294901760, %v8720_v22  ;;  %v2107_v60 = vsel %vm2098_vm14, %v8422_v59, %v8789_v45  ;;  %v10476_v59 = vand.u32 4294901760, %v8728_v4  ;;  %v2431_v37 = vld [vmem:[#allocation3 + $0x168] sm:$0xff]  ;;  %v2950_v5 = vadd.f32 %v2949_v30, %v8675_v18 }
 0x394   : > { %10471 = vst [vmem:[#allocation11_spill] sm:$0xff] %v8789_v45  ;;  %v3968_v35 = vsub.f32 %v8716_v27, %v10474_v0  ;;  %3887 = vmatpush.msra.mxu0 %v8692_v58  ;;  %3958 = vmatpush.msra.mxu1 %v3957_v46  ;;  %v3963_v0 = vand.u32 4294901760, %v3962_v15  ;;  %v10477_v46 = vand.u32 4294901760, %v8704_v7  ;;  %v2635_v30 = vadd.f32 %v8668_v42, %v8666_v14 }
 0x395   : > { %10472 = vst [vmem:[#allocation6_spill] sm:$0xff] %v8791_v9  ;;  %v4223_v12 = vsub.f32 %v8720_v22, %v10473_v56  ;;  %v4218_v9 = vand.u32 4294901760, %v4217_v26  ;;  %v8809_v56 = vand.u32 4294901760, %v2451_v6  ;;  %4028 = vmatpush.msra.mxu2 %v8704_v7  ;;  %4067 = vmatpush.msra.mxu3 %v8692_v58  ;;  %v8820_v45 = vpop.permute.xlu0 %1503  ;;  %v8824_v22 = vpop.f32.mrf.mxu1  ;;  %v8828_v58 = vsub.f32 %v2461_v34, %v8787_v8 }
 0x396   : > { %5768 = vst [vmem:[#allocation1] ss:$2 sm:$0xff] %v5758_v41  ;;  %v4229_v41 = vsub.f32 %v8728_v4, %v10476_v59  ;;  %v3974_v26 = vsub.f32 %v8704_v7, %v10477_v46  ;;  %v8830_v59 = vand.u32 4294901760, %v2441_v52  ;;  %v3040_v4 = vpop.f32.mrf.mxu3  ;;  %v1515_v18 = vsel %vm1507_vm13, %v8377_v51, %v8820_v45  ;;  %3964 = vmatpush.msra.mxu1 %v3963_v0  ;;  %v2411_v0 = vld [vmem:[#allocation3 + $0xc8] sm:$0xff] }
 0x397   : > { %2127 = vst [vmem:[#allocation3 + $0x3b0] sm:$0xf0] %v2107_v60  ;;  %v10479_v60 = vand.u32 4294901760, %v8515_v24  ;;  %4219 = vmatpush.msrb.mxu3 %v4218_v9  ;;  %4031 = vmatpush.msra.mxu2 %v8739_v17  ;;  %v4224_v24 = vand.u32 4294901760, %v4223_v12  ;;  %v3969_v9 = vand.u32 4294901760, %v3968_v35  ;;  %v10480_v46 = vand.u32 4294901760, %v8739_v17 }
 0x398   : > { %10478 = vst [vmem:[#allocation8_spill] sm:$0xff] %v8820_v45  ;;  %v10481_v15 = vand.u32 4294901760, %v8527_v11  ;;  %v10482_v51 = vand.u32 4294901760, %v8762_v31  ;;  %v8849_v12 = vsub.f32 %v2451_v6, %v8809_v56  ;;  %v8851_v35 = vand.u32 4294901760, %v2431_v37 }
 0x399   : > { %4080 = vmatpush.msrb.mxu0 %v10479_v60  ;;  %v3980_v34 = vsub.f32 %v8739_v17, %v10480_v46  ;;  %v2421_v60 = vld [vmem:[#allocation3 + $0x118] sm:$0xff]  ;;  %1534 = vst [vmem:[#allocation3 + $0x2b8] sm:$0xf] %v1515_v18  ;;  %4176 = vmatpush.msrb.mxu2 %v8637_v44  ;;  %v8853_v46 = vpop.permute.xlu1 %1582  ;;  %v4230_v11 = vand.u32 4294901760, %v4229_v41  ;;  %v3041_v18 = vadd.f32 %v3040_v4, %v2950_v5  ;;  %v10484_v6 = vand.u32 4294901760, %v8544_v23 }
 0x39a   : > { %v4235_v14 = vsub.f32 %v8762_v31, %v10482_v51  ;;  %4225 = vmatpush.msrb.mxu3 %v4224_v24  ;;  %3970 = vmatpush.msra.mxu1 %v3969_v9  ;;  %v1594_v45 = vsel %vm1586_vm15, %v8538_v29, %v8853_v46  ;;  %v10483_v51 = vld [vmem:[#allocation19_spill] sm:$0xff]  ;;  %v10485_v42 = vand.u32 4294901760, %v8785_v19  ;;  %v8867_v41 = vsub.f32 %v2441_v52, %v8830_v59 }
 0x39b   : > { %4084 = vmatpush.msrb.mxu0 %v10481_v15  ;;  %v3975_v15 = vand.u32 4294901760, %v3974_v26  ;;  %1668 = vrot.lane.b32.xlu0 %v10483_v51, %s5916_s10  ;;  %v8869_v4 = vand.u32 4294901760, %v2421_v60  ;;  %1613 = vst [vmem:[#allocation3 + $0x2b8] sm:$0xf0] %v1594_v45  ;;  %v3090_v26 = vpop.f32.mrf.mxu0  ;;  %v2401_v29 = vld [vmem:[#allocation3 + $0x78] sm:$0xff]  ;;  %v2726_v5 = vadd.f32 %v8725_v16, %v2635_v30  ;;  %v3981_v23 = vand.u32 4294901760, %v3980_v34 }
 0x39c   : > { %v4241_v31 = vsub.f32 %v8785_v19, %v10485_v42  ;;  %4178 = vmatpush.msrb.mxu2 %v8663_v32  ;;  %4231 = vmatpush.msrb.mxu3 %v4230_v11  ;;  %v8873_v9 = vand.u32 4294901760, %v2411_v0  ;;  %v10486_v42 = vld [vmem:[#allocation22_spill] sm:$0xff]  ;;  %v4236_v51 = vand.u32 4294901760, %v4235_v14  ;;  %v10487_v52 = vand.u32 4294901760, %v8807_v55  ;;  %v8884_v16 = vpop.permute.xlu2 %1666  ;;  %v2391_v30 = vld [vmem:[#allocation3 + $0x28] sm:$0xff] }
 0x39d   : > { %4088 = vmatpush.msrb.mxu0 %v10484_v6  ;;  %1754 = vrot.lane.b32.xlu1 %v10486_v42, %s5918_s12  ;;  %v8882_v24 = vsub.f32 %v2431_v37, %v8851_v35  ;;  %10488 = vst [vmem:[#allocation36_spill] sm:$0xff] %v8884_v16  ;;  %v10489_v34 = vand.u32 4294901760, %v8560_v20  ;;  %v1679_v14 = vsel %vm1670_vm10, %v8757_v33, %v8884_v16  ;;  %v10490_v37 = vand.u32 4294901760, %v8828_v58 }
 0x39e   : > { %3976 = vmatpush.msra.mxu1 %v3975_v15  ;;  %v4247_v6 = vsub.f32 %v8807_v55, %v10487_v52  ;;  %4180 = vmatpush.msrb.mxu2 %v8683_v25  ;;  %v3091_v11 = vadd.f32 %v3090_v26, %v3041_v18  ;;  %v8892_v15 = vand.u32 4294901760, %v2401_v29  ;;  %v4242_v42 = vand.u32 4294901760, %v4241_v31  ;;  %1699 = vst [vmem:[#allocation3 + $0x310] sm:$0xf] %v1679_v14 }
 0x39f   : > { %4092 = vmatpush.msrb.mxu0 %v10489_v34  ;;  %4237 = vmatpush.msrb.mxu3 %v4236_v51  ;;  %v4253_v52 = vsub.f32 %v8828_v58, %v10490_v37  ;;  %v4264_v45 = vand.u32 4294901760, %v8867_v41  ;;  %v8899_v20 = vsub.f32 %v2421_v60, %v8869_v4  ;;  %v3127_v34 = vpop.f32.mrf.mxu1  ;;  %v2776_v55 = vadd.f32 %v8706_v53, %v2726_v5  ;;  %v8910_v26 = vpop.permute.xlu0 %1425 }
 0x3a0   : > { %3982 = vmatpush.msra.mxu1 %v3981_v23  ;;  %v10491_v33 = vand.u32 4294901760, %v8568_v3  ;;  %v8906_v31 = vsub.f32 %v2411_v0, %v8873_v9  ;;  %v8908_v18 = vand.u32 4294901760, %v2391_v30  ;;  %4182 = vmatpush.msrb.mxu2 %v8730_v47  ;;  %v4248_v60 = vand.u32 4294901760, %v4247_v6 }
 0x3a1   : > { %4243 = vmatpush.msrb.mxu3 %v4242_v42  ;;  %v10492_v23 = vand.u32 4294901760, %v8849_v12  ;;  %v4270_v3 = vand.u32 4294901760, %v8882_v24  ;;  %v10493_v0 = vand.u32 4294901760, %v8591_v49  ;;  %v3128_v5 = vadd.f32 %v3127_v34, %v3091_v11 }
 0x3a2   : > { %4096 = vmatpush.msrb.mxu0 %v10491_v33  ;;  %4141 = vmatpush.msrb.mxu1 %v8500_v39  ;;  %v1437_v39 = vsel %vm1429_vm1, %v8634_v61, %v8910_v26  ;;  %v4254_v51 = vand.u32 4294901760, %v4253_v52  ;;  %v4265_v6 = vsub.f32 %v8867_v41, %v4264_v45  ;;  %v4276_v14 = vand.u32 4294901760, %v8899_v20  ;;  %v3190_v61 = vpop.f32.mrf.mxu2  ;;  %v8931_v49 = vpop.permute.xlu1 %2350 }
 0x3a3   : > { %v4259_v53 = vsub.f32 %v8849_v12, %v10492_v23  ;;  %1456 = vst [vmem:[#allocation3 + $0x268] sm:$0xf0] %v1437_v39  ;;  %4184 = vmatpush.msrb.mxu2 %v8748_v43  ;;  %4249 = vmatpush.msrb.mxu3 %v4248_v60  ;;  %v8929_v42 = vsub.f32 %v2401_v29, %v8892_v15  ;;  %v10494_v11 = vand.u32 4294901760, %v8606_v36  ;;  %v4282_v36 = vand.u32 4294901760, %v8906_v31 }
 0x3a4   : > { %4100 = vmatpush.msrb.mxu0 %v10493_v0  ;;  %4143 = vmatpush.msrb.mxu1 %v8506_v48  ;;  %v2813_v48 = vadd.f32 %v8745_v38, %v2776_v55  ;;  %v8938_v37 = vsub.f32 %v2391_v30, %v8908_v18  ;;  %v2363_v52 = vsel %vm2354_vm8, %v8396_v50, %v8931_v49  ;;  %v1585_v38 = vpop.permute.xlu2 %1584  ;;  %v4266_v34 = vand.u32 4294901760, %v4265_v6 }
 0x3a5   : > { %4186 = vmatpush.msrb.mxu2 %v8764_v40  ;;  %4255 = vmatpush.msrb.mxu3 %v4254_v51  ;;  %v4260_v29 = vand.u32 4294901760, %v4259_v53  ;;  %v4271_v55 = vsub.f32 %v8882_v24, %v4270_v3  ;;  %2383 = vst [vmem:[#allocation3 + $0x450] sm:$0xf] %v2363_v52  ;;  %v3191_v30 = vadd.f32 %v3190_v61, %v3128_v5  ;;  %v4288_v60 = vand.u32 4294901760, %v8929_v42 }
 0x3a6   : > { %4104 = vmatpush.msrb.mxu0 %v10494_v11  ;;  %4145 = vmatpush.msrb.mxu1 %v8517_v13  ;;  %v10495_v13 = vand.u32 4294901760, %v8631_v57  ;;  %v1595_v50 = vsel %vm1586_vm15, %v8853_v46, %v1585_v38  ;;  %1615 = vst.msk [vmem:[#allocation3 + $0x2c8] sm:$0xf0] %vm10496_vm4, %v1585_v38  ;;  %v4277_v33 = vsub.f32 %v8899_v20, %v4276_v14  ;;  %v3225_v57 = vpop.f32.mrf.mxu3  ;;  %v10497_v23 = vand.u32 4294901760, %v8611_v2 }
 0x3a7   : > { %4188 = vmatpush.msrb.mxu2 %v8787_v8  ;;  %4261 = vmatpush.msrb.mxu3 %v4260_v29  ;;  %1614 = vst [vmem:[#allocation3 + $0x2c0] sm:$0xf0] %v1595_v50  ;;  %v4294_v46 = vand.u32 4294901760, %v8938_v37  ;;  %v4272_v53 = vand.u32 4294901760, %v4271_v55  ;;  %v4283_v39 = vsub.f32 %v8906_v31, %v4282_v36  ;;  %v10498_v0 = vand.u32 4294901760, %v8654_v10  ;;  %v10500_v10 = vld [vmem:[#allocation56_spill] sm:$0xff] }
 0x3a8   : > { %4108 = vmatpush.msrb.mxu0 %v10495_v13  ;;  %4147 = vmatpush.msrb.mxu1 %v8529_v28  ;;  %v2876_v28 = vadd.f32 %v8775_v62, %v2813_v48  ;;  %v3226_v62 = vadd.f32 %v3225_v57, %v3191_v30  ;;  %v4289_v2 = vsub.f32 %v8929_v42, %v4288_v60  ;;  %v10499_v6 = vand.u32 4294901760, %v8690_v1  ;;  %v10502_v1 = vld [vmem:[#allocation14_spill] sm:$0xff]  ;;  %v10504_v55 = vld [vmem:[#allocation61_spill] sm:$0xff] }
 0x3a9   : > { %4190 = vmatpush.msrb.mxu2 %v8809_v56  ;;  %4267 = vmatpush.msrb.mxu3 %v4266_v34  ;;  %v8975_v5 = vpop.permute.xlu0 %2265  ;;  %v4284_v48 = vand.u32 4294901760, %v4283_v39  ;;  %v10503_v29 = vand.u32 4294901760, %v8704_v7  ;;  %v10505_v50 = vld [vmem:[#allocation58_spill] sm:$0xff]  ;;  %vm10508_vm15 = vcmask 388096  }
 0x3aa   : > { %4112 = vmatpush.msrb.mxu0 %v10497_v23  ;;  %4149 = vmatpush.msrb.mxu1 %v8536_v63  ;;  %v4278_v63 = vand.u32 4294901760, %v4277_v33  ;;  %v2911_v51 = vadd.f32 %v8824_v22, %v2876_v28  ;;  %v2278_v61 = vsel %vm2269_vm6, %v10500_v10, %v8975_v5  ;;  %v10501_v22 = vand.u32 4294901760, %v8716_v27  ;;  %v5775_v33 = vld.sshfl [vmem:[#allocation1] sm:$0xff pattern:$0x75316420]  ;;  %v10507_v7 = vld [vmem:[#allocation38_spill] sm:$0xff] }
 0x3ab   : > { %4192 = vmatpush.msrb.mxu2 %v8830_v59  ;;  %4273 = vmatpush.msrb.mxu3 %v4272_v53  ;;  %2298 = vst [vmem:[#allocation3 + $0x400] sm:$0xf0] %v2278_v61  ;;  %v5749_v11 = vmax.f32 %v3226_v62, 0.0  ;;  %v5776_v57 = vld.sshfl [vmem:[#allocation1 + $0x8] sm:$0xff pattern:$0x75316420] }
 0x3ac   : > { %4116 = vmatpush.msrb.mxu0 %v10498_v0  ;;  %4151 = vmatpush.msrb.mxu1 %v8565_v21  ;;  %v4295_v21 = vsub.f32 %v8938_v37, %v4294_v46  ;;  %v5748_v52 = vmax.f32 %v2911_v51, 0.0  ;;  %v10506_v28 = vand.u32 4294901760, %v8739_v17  ;;  %v10509_v53 = vld [vmem:[#allocation49_spill] sm:$0xff]  ;;  %v10512_v17 = vld [vmem:[#allocation32_spill] sm:$0xff]  ;;  %v10514_v51 = vld [vmem:[#allocation23_spill] sm:$0xff] }
 0x3ad   : > { %4194 = vmatpush.msrb.mxu2 %v8851_v35  ;;  %4279 = vmatpush.msrb.mxu3 %v4278_v63  ;;  %v5797_v23 = vmul.f32 %v5776_v57, %v5749_v11  ;;  %v10511_v62 = vld [vmem:[#allocation29_spill] sm:$0xff]  ;;  %v10517_v10 = vld [vmem:[#allocation26_spill] sm:$0xff]  ;;  %v10518_v61 = vand.u32 4294901760, %v10514_v51 }
 0x3ae   : > { %4120 = vmatpush.msrb.mxu0 %v10499_v6  ;;  %4153 = vmatpush.msrb.mxu1 %v8578_v54  ;;  %v4290_v54 = vand.u32 4294901760, %v4289_v2  ;;  %v4296_v38 = vand.u32 4294901760, %v4295_v21  ;;  %v5796_v39 = vmul.f32 %v5775_v33, %v5748_v52  ;;  %v10513_v2 = vld [vmem:[#allocation64_spill] sm:$0xff]  ;;  %v10515_v6 = vand.u32 4294901760, %v10511_v62  ;;  %v10516_v21 = vld [vmem:[#allocation57_spill] sm:$0xff]  ;;  %v10523_v52 = vld [vmem:[#allocation10_spill] sm:$0xff] }
 0x3af   : > { %4196 = vmatpush.msrb.mxu2 %v8869_v4  ;;  %4285 = vmatpush.msrb.mxu3 %v4284_v48  ;;  %v2353_v13 = vpop.permute.xlu2 %2352  ;;  %v2009_v30 = vpop.permute.xlu1 %2008  ;;  %v5816_v0 = vrot.slane %v5797_v23, 4  ;;  %v10531_v33 = vld [vmem:[#allocation13_spill] sm:$0xff] }
 0x3b0   : > { %4124 = vmatpush.msrb.mxu0 %v10501_v22  ;;  %4155 = vmatpush.msrb.mxu1 %v10502_v1  ;;  %v2364_v27 = vsel %vm2354_vm8, %v8931_v49, %v2353_v13  ;;  %v2021_v34 = vsel %vm2012_vm12, %v10505_v50, %v2009_v30  ;;  %v10510_v49 = vld [vmem:[#allocation65_spill] sm:$0xff]  ;;  %v10519_v22 = vld [vmem:[#allocation42_spill] sm:$0xff]  ;;  %v10520_v1 = vld [vmem:[#allocation20_spill] sm:$0xff]  ;;  %v10527_v13 = vand.u32 4294901760, %v8785_v19 }
 0x3b1   : > { %4198 = vmatpush.msrb.mxu2 %v8873_v9  ;;  %4291 = vmatpush.msrb.mxu3 %v4290_v54  ;;  %2384 = vst.msk [vmem:[#allocation3 + $0x458] sm:$0xf] %vm10508_vm15, %v2364_v27  ;;  %v5821_v63 = vsel %vm200_vm3, %v5796_v39, %v5816_v0  ;;  %v10521_v54 = vand.u32 4294901760, %v10517_v10  ;;  %vm10522_vm8 = vmmov %vm10508_vm15  ;;  %v10528_v27 = vld [vmem:[#allocation46_spill] sm:$0xff]  ;;  %v10536_v23 = vld [vmem:[#allocation41_spill] sm:$0xff] }
 0x3b2   : > { %4128 = vmatpush.msrb.mxu0 %v10503_v29  ;;  %4157 = vmatpush.msrb.mxu1 %v10504_v55  ;;  %2041 = vst [vmem:[#allocation3 + $0x3b0] sm:$0xf] %v2021_v34  ;;  %v10524_v29 = vld [vmem:[#allocation63_spill] sm:$0xff]  ;;  %v10525_v55 = vand.u32 4294901760, %v10520_v1  ;;  %v10539_v0 = vld [vmem:[#allocation8_spill] sm:$0xff] }
 0x3b3   : > { %4200 = vmatpush.msrb.mxu2 %v8892_v15  ;;  %4297 = vmatpush.msrb.mxu3 %v4296_v38  ;;  %5831 = vst [vmem:[%s10079_s4] sm:$0xff] %v5821_v63  ;;  %v10526_v38 = vld [vmem:[#allocation15_spill] sm:$0xff] }
 0x3b4   : > { %4132 = vmatpush.msrb.mxu0 %v10506_v28  ;;  %4159 = vmatpush.msrb.mxu1 %v10507_v7 }
 0x3b5   : > { %3893 = vmatmul.f32.vlgmr.msra.gmra.mxu0 %v10509_v53  ;;  %4071 = vmatmul.f32.vlgmr.msra.gmra.mxu3 %v10510_v49 }
 0x3b6   : > { %4307 = vmatpush.msra.mxu0 %v10511_v62  ;;  %4456 = vmatpush.msra.mxu3 %v8637_v44 }
 0x3b7   : > { %4161 = vmatpush.msrb.mxu1 %v10512_v17  ;;  %4202 = vmatpush.msrb.mxu2 %v8908_v18 }
 0x3b8   : > { %4034 = vmatmul.f32.vlgmr.msra.gmra.mxu2 %v10513_v2  ;;  %4310 = vmatpush.msra.mxu0 %v10514_v51 }
 0x3b9   : > { %4395 = vmatpush.msra.mxu2 %v10515_v6  ;;  %4458 = vmatpush.msra.mxu3 %v8663_v32  ;;  %v2011_v48 = vpop.permute.xlu2 %2010 }
 0x3ba   : > { %4163 = vmatpush.msrb.mxu1 %v10516_v21  ;;  %4313 = vmatpush.msra.mxu0 %v10517_v10  ;;  %v2022_v11 = vsel %vm2012_vm12, %v2009_v30, %v2011_v48  ;;  %vm10532_vm12 = vmmov %vm10496_vm4  ;;  %v5759_v21 = vld [vmem:[%s10078_s3 + $0x8] sm:$0xff]  ;;  %v2462_v10 = vld [vmem:[#allocation3 + $0x260] sm:$0xff] }
 0x3bb   : > { %4399 = vmatpush.msra.mxu2 %v10518_v61  ;;  %4460 = vmatpush.msra.mxu3 %v8683_v25  ;;  %2042 = vst.msk [vmem:[#allocation3 + $0x3b8] sm:$0xf] %vm10522_vm8, %v2022_v11  ;;  %vm10538_vm4 = vmmov %vm10522_vm8  ;;  %v2452_v48 = vld [vmem:[#allocation3 + $0x210] sm:$0xff]  ;;  %v2442_v11 = vld [vmem:[#allocation3 + $0x1c0] sm:$0xff] }
 0x3bc   : > { %4165 = vmatpush.msrb.mxu1 %v10519_v22  ;;  %4316 = vmatpush.msra.mxu0 %v10520_v1  ;;  %vm10540_vm15 = vmmov %vm10538_vm4  ;;  %v9164_v22 = vand.u32 4294901760, %v2462_v10 }
 0x3bd   : > { %4403 = vmatpush.msra.mxu2 %v10521_v54  ;;  %4462 = vmatpush.msra.mxu3 %v8730_v47 }
 0x3be   : > { %4167 = vmatpush.msrb.mxu1 %v10523_v52  ;;  %4319 = vmatpush.msra.mxu0 %v8785_v19 }
 0x3bf   : > { %3984 = vmatmul.f32.vlgmr.msra.gmra.mxu1 %v10524_v29  ;;  %4407 = vmatpush.msra.mxu2 %v10525_v55  ;;  %v9042_v30 = vpop.permute.xlu0 %1837  ;;  %v10541_v55 = vld [vmem:[#allocation35_spill] sm:$0xff] }
 0x3c0   : > { %4356 = vmatpush.msra.mxu1 %v8637_v44  ;;  %4464 = vmatpush.msra.mxu3 %v8748_v43  ;;  %v1850_v50 = vsel %vm1841_vm7, %v10528_v27, %v9042_v30  ;;  %v10529_v44 = vand.u32 4294901760, %v10526_v38  ;;  %v2523_v27 = vld [vmem:[#allocation3 + $0x448] sm:$0xf] }
 0x3c1   : > { %4322 = vmatpush.msra.mxu0 %v10526_v38  ;;  %4411 = vmatpush.msra.mxu2 %v10527_v13  ;;  %1870 = vst [vmem:[#allocation3 + $0x360] sm:$0xf] %v1850_v50 }
 0x3c2   : > { %4358 = vmatpush.msra.mxu1 %v8663_v32  ;;  %4466 = vmatpush.msra.mxu3 %v8764_v40  ;;  %v10530_v32 = vand.u32 4294901760, %v8828_v58 }
 0x3c3   : > { %4325 = vmatpush.msra.mxu0 %v8828_v58  ;;  %4415 = vmatpush.msra.mxu2 %v10529_v44  ;;  %v1924_v19 = vpop.permute.xlu1 %1923  ;;  %v2527_v58 = vld [vmem:[%s10077_s2 + $0x8] sm:$0xff] }
 0x3c4   : > { %4360 = vmatpush.msra.mxu1 %v8683_v25  ;;  %4468 = vmatpush.msra.mxu3 %v8787_v8  ;;  %v1926_v34 = vpop.permute.xlu2 %1925  ;;  %v1936_v57 = vsel %vm1927_vm9, %v10531_v33, %v1924_v19  ;;  %v2522_v25 = vld [vmem:[#allocation3 + $0x440] sm:$0xf]  ;;  %2538 = vst [vmem:[#allocation1 + $0x10] ss:$2 sm:$0xff] %v2527_v58  ;;  %v9187_v33 = vand.u32 4294901760, %v2442_v11  ;;  %v2590_v58 = vsel %vm200_vm3, %v2523_v27, 0 }
 0x3c5   : > { %4134 = vmatmul.f32.vlgmr.msrb.gmra.mxu0 %v10524_v29  ;;  %4419 = vmatpush.msra.mxu2 %v10530_v32  ;;  %v1937_v28 = vsel %vm1927_vm9, %v1924_v19, %v1926_v34  ;;  %1956 = vst [vmem:[#allocation3 + $0x360] sm:$0xf0] %v1936_v57  ;;  %v2587_v7 = vsel %vm200_vm3, %v2522_v25, 0  ;;  %vm10537_vm9 = vcmask 7168   ;;  %v2432_v32 = vld [vmem:[#allocation3 + $0x170] sm:$0xff]  ;;  %v9195_v25 = vsub.f32 %v2462_v10, %v9164_v22  ;;  %v2493_v27 = vld [vmem:[#allocation3 + $0x358] sm:$0xff] }
 0x3c6   : > { %4328 = vmatpush.msra.mxu0 %v8849_v12  ;;  %4362 = vmatpush.msra.mxu1 %v8730_v47  ;;  %1957 = vst.msk [vmem:[#allocation3 + $0x368] sm:$0xf0] %vm10532_vm12, %v1937_v28  ;;  %v10533_v47 = vand.u32 4294901760, %v8849_v12  ;;  %v9084_v12 = vand.u32 4294901760, %v2587_v7  ;;  %v2422_v28 = vld [vmem:[#allocation3 + $0x120] sm:$0xff] }
 0x3c7   : > { %4470 = vmatpush.msra.mxu3 %v8809_v56  ;;  %4169 = vmatmul.f32.vlgmr.msrb.gmra.mxu1 %v10524_v29 }
 0x3c8   : > { %4331 = vmatpush.msra.mxu0 %v8867_v41  ;;  %4364 = vmatpush.msra.mxu1 %v8748_v43  ;;  %v2512_v43 = vld [vmem:[#allocation3 + $0x3f0] sm:$0xff]  ;;  %v10535_v41 = vld [vmem:[#allocation60_spill] sm:$0xff] }
 0x3c9   : > { %4423 = vmatpush.msra.mxu2 %v10533_v47  ;;  %4472 = vmatpush.msra.mxu3 %v8830_v59 }
 0x3ca   : > { %4334 = vmatpush.msra.mxu0 %v8882_v24  ;;  %4366 = vmatpush.msra.mxu1 %v8764_v40  ;;  %v2502_v24 = vld [vmem:[#allocation3 + $0x3a0] sm:$0xff] }
 0x3cb   : > { %4427 = vmatpush.msra.mxu2 %v4264_v45  ;;  %4474 = vmatpush.msra.mxu3 %v8851_v35  ;;  %v9086_v40 = vpop.permute.xlu0 %1752  ;;  %v9113_v17 = vand.u32 4294901760, %v2502_v24  ;;  %v9129_v51 = vld.sshfl [vmem:[#allocation1 + $0x10] sm:$0xff pattern:$0x75316420] }
 0x3cc   : > { %4337 = vmatpush.msra.mxu0 %v8899_v20  ;;  %4368 = vmatpush.msra.mxu1 %v8787_v8  ;;  %10534 = vst [vmem:[#allocation39_spill] sm:$0xff] %v9086_v40  ;;  %v1765_v45 = vsel %vm1756_vm11, %v10535_v41, %v9086_v40  ;;  %v9096_v8 = vand.u32 4294901760, %v2512_v43  ;;  %v9106_v20 = vsub.f32 %v2587_v7, %v9084_v12  ;;  %v9139_v6 = vld.sshfl [vmem:[#allocation1 + $0x18] sm:$0xff pattern:$0x75316420] }
 0x3cd   : > { %4431 = vmatpush.msra.mxu2 %v4270_v3  ;;  %4476 = vmatpush.msra.mxu3 %v8869_v4  ;;  %v1221_v3 = vpop.permute.xlu2 %1220  ;;  %1785 = vst [vmem:[#allocation3 + $0x310] sm:$0xf0] %v1765_v45  ;;  %v2412_v45 = vld [vmem:[#allocation3 + $0xd0] sm:$0xff] }
 0x3ce   : > { %4340 = vmatpush.msra.mxu0 %v8906_v31  ;;  %4370 = vmatpush.msra.mxu1 %v8809_v56  ;;  %v1232_v56 = vsel %vm10537_vm9, %v10536_v23, %v1221_v3  ;;  %v1506_v39 = vpop.permute.xlu1 %1505  ;;  %v2482_v31 = vld [vmem:[#allocation3 + $0x300] sm:$0xff]  ;;  %v10179_v63 = vand.u32 4294901760, %v9106_v20  ;;  %5770 = vst [vmem:[#allocation1 + $0x10] ss:$2 sm:$0xff] %v5759_v21  ;;  %v9216_v3 = vand.u32 4294901760, %v2590_v58  ;;  %v2513_v23 = vld [vmem:[#allocation3 + $0x3f8] sm:$0xff] }
 0x3cf   : > { %4435 = vmatpush.msra.mxu2 %v4276_v14  ;;  %4478 = vmatpush.msra.mxu3 %v8873_v9  ;;  %v2492_v14 = vld [vmem:[#allocation3 + $0x350] sm:$0xff]  ;;  %1252 = vst.msk [vmem:[#allocation3 + $0x228] sm:$0xf] %vm10538_vm4, %v1232_v56  ;;  %v1516_v62 = vsel %vm1507_vm13, %v10539_v0, %v1506_v39  ;;  %vm10542_vm13 = vmmov %vm10538_vm4  ;;  %v10171_v0 = vand.u32 4294901760, %v9195_v25  ;;  %v9231_v21 = vand.u32 4294901760, %v2412_v45 }
 0x3d0   : > { %4208 = vmatmul.f32.vlgmr.msrb.gmra.mxu2 %v10509_v53  ;;  %4343 = vmatpush.msra.mxu0 %v8929_v42  ;;  %1535 = vst [vmem:[#allocation3 + $0x2c0] sm:$0xf] %v1516_v62  ;;  %v9135_v42 = vsub.f32 %v2502_v24, %v9113_v17  ;;  %v4532_v61 = vsub.f32 %v9106_v20, %v10179_v63  ;;  %v9214_v24 = vand.u32 4294901760, %v2422_v28  ;;  %v2402_v62 = vld [vmem:[#allocation3 + $0x80] sm:$0xff]  ;;  %v10556_v53 = vand.u32 4294901760, %v9106_v20 }
 0x3d1   : > { %4372 = vmatpush.msra.mxu1 %v8830_v59  ;;  %4439 = vmatpush.msra.mxu2 %v4282_v36  ;;  %v9118_v59 = vsub.f32 %v2512_v43, %v9096_v8  ;;  %1536 = vst.msk [vmem:[#allocation3 + $0x2c8] sm:$0xf] %vm10540_vm15, %v1506_v39  ;;  %v9124_v36 = vand.u32 4294901760, %v2492_v14 }
 0x3d2   : > { %4480 = vmatpush.msra.mxu3 %v8892_v15  ;;  %4346 = vmatpush.msra.mxu0 %v8938_v37  ;;  %v10177_v1 = vand.u32 4294901760, %v9135_v42  ;;  %v4533_v34 = vand.u32 4294901760, %v4532_v61  ;;  %10544 = vst [vmem:[#allocation33_spill] sm:$0xff] %v9214_v24 }
 0x3d3   : > { %4299 = vmatmul.f32.vlgmr.msrb.gmra.mxu3 %v10524_v29  ;;  %4374 = vmatpush.msra.mxu1 %v8851_v35  ;;  %v2472_v35 = vld [vmem:[#allocation3 + $0x2b0] sm:$0xff]  ;;  %v9150_v37 = vsub.f32 %v2492_v14, %v9124_v36  ;;  %v9223_v14 = vsub.f32 %v2442_v11, %v9187_v33  ;;  %10545 = vst [vmem:[#allocation30_spill] sm:$0xff] %v9231_v21 }
 0x3d4   : > { %4443 = vmatpush.msra.mxu2 %v4288_v60  ;;  %4482 = vmatpush.msra.mxu3 %v8908_v18  ;;  %v9137_v60 = vand.u32 4294901760, %v2482_v31  ;;  %v4544_v57 = vsub.f32 %v9135_v42, %v10177_v1  ;;  %v2392_v11 = vld [vmem:[#allocation3 + $0x30] sm:$0xff] }
 0x3d5   : > { %4491 = vmatpush.msrb.mxu0 %v9084_v12  ;;  %4376 = vmatpush.msra.mxu1 %v8869_v4  ;;  %v10178_v4 = vand.u32 4294901760, %v9118_v59  ;;  %v10175_v44 = vand.u32 4294901760, %v9150_v37 }
 0x3d6   : > { %4671 = vmatpush.msrb.mxu3 %v9084_v12  ;;  %4447 = vmatpush.msra.mxu2 %v4294_v46  ;;  %v9152_v46 = vand.u32 4294901760, %v2472_v35  ;;  %v4545_v56 = vand.u32 4294901760, %v4544_v57  ;;  %v9260_v57 = vsub.f32 %v2412_v45, %v9231_v21  ;;  %v3264_v45 = vpop.f32.mrf.mxu0 }
 0x3d7   : > { %4493 = vmatpush.msrb.mxu0 %v9096_v8  ;;  %4378 = vmatpush.msra.mxu1 %v8873_v9  ;;  %v9162_v9 = vsub.f32 %v2482_v31, %v9137_v60  ;;  %v4538_v52 = vsub.f32 %v9118_v59, %v10178_v4  ;;  %v4550_v7 = vsub.f32 %v9150_v37, %v10175_v44  ;;  %v2503_v31 = vld [vmem:[#allocation3 + $0x3a8] sm:$0xff] }
 0x3d8   : > { %4622 = vmatpush.msrb.mxu2 %v9106_v20  ;;  %4673 = vmatpush.msrb.mxu3 %v9096_v8  ;;  %v1349_v54 = vpop.permute.xlu0 %1348  ;;  %v9178_v50 = vsub.f32 %v2472_v35, %v9152_v46 }
 0x3d9   : > { %4449 = vmatmul.f32.vlgmr.msra.gmra.mxu2 %v10524_v29  ;;  %4495 = vmatpush.msrb.mxu0 %v9113_v17  ;;  %v1359_v38 = vsel %vm1350_vm2, %v10541_v55, %v1349_v54  ;;  %1379 = vst.msk [vmem:[#allocation3 + $0x278] sm:$0xf] %vm10542_vm13, %v1349_v54  ;;  %v1428_v13 = vpop.permute.xlu1 %1427  ;;  %v4539_v47 = vand.u32 4294901760, %v4538_v52  ;;  %v4551_v10 = vand.u32 4294901760, %v4550_v7  ;;  %v9238_v54 = vand.u32 4294901760, %v2513_v23  ;;  %vm10564_vm2 = vmmov %vm10538_vm4 }
 0x3da   : > { %4625 = vmatpush.msrb.mxu2 %v9118_v59  ;;  %4675 = vmatpush.msrb.mxu3 %v9113_v17  ;;  %1378 = vst [vmem:[#allocation3 + $0x270] sm:$0xf] %v1359_v38  ;;  %v1438_v19 = vsel %vm1429_vm1, %v8910_v26, %v1428_v13  ;;  %v10174_v26 = vand.u32 4294901760, %v9162_v9  ;;  %vm10543_vm1 = vmmov %vm10532_vm12  ;;  %v10172_v41 = vand.u32 4294901760, %v9178_v50  ;;  %v9243_v52 = vsub.f32 %v2422_v28, %v9214_v24 }
 0x3db   : > { %4380 = vmatpush.msra.mxu1 %v8892_v15  ;;  %4349 = vmatmul.f32.vlgmr.msra.gmra.mxu0 %v10513_v2  ;;  %v9180_v15 = vand.u32 4294901760, %v2452_v48  ;;  %1457 = vst [vmem:[#allocation3 + $0x270] sm:$0xf0] %v1438_v19  ;;  %v9245_v55 = vand.u32 4294901760, %v2402_v62  ;;  %v9248_v38 = vsub.f32 %v2590_v58, %v9216_v3  ;;  %v4568_v19 = vsub.f32 %v9195_v25, %v10171_v0 }
 0x3dc   : > { %4484 = vmatmul.f32.vlgmr.msra.gmra.mxu3 %v10524_v29  ;;  %4497 = vmatpush.msrb.mxu0 %v9124_v36  ;;  %1458 = vst.msk [vmem:[#allocation3 + $0x278] sm:$0xf0] %vm10543_vm1, %v1428_v13  ;;  %v4556_v39 = vsub.f32 %v9162_v9, %v10174_v26  ;;  %v4562_v61 = vsub.f32 %v9178_v50, %v10172_v41  ;;  %v9250_v13 = vand.u32 4294901760, %v2503_v31  ;;  %v9262_v28 = vand.u32 4294901760, %v2392_v11 }
 0x3dd   : > { %4628 = vmatpush.msrb.mxu2 %v9135_v42  ;;  %4677 = vmatpush.msrb.mxu3 %v9124_v36  ;;  %v9209_v43 = vsub.f32 %v2452_v48, %v9180_v15  ;;  %10546 = vst [vmem:[#allocation18_spill] sm:$0xff] %v9245_v55  ;;  %v9277_v0 = vsub.f32 %v2402_v62, %v9245_v55 }
 0x3de   : > { %4382 = vmatpush.msra.mxu1 %v8908_v18  ;;  %4499 = vmatpush.msrb.mxu0 %v9137_v60  ;;  %v9202_v18 = vand.u32 4294901760, %v2432_v32  ;;  %10547 = vst [vmem:[#allocation16_spill] sm:$0xff] %v9248_v38  ;;  %v4563_v7 = vand.u32 4294901760, %v4562_v61  ;;  %v10186_v61 = vand.u32 4294901760, %v9243_v52  ;;  %v9282_v41 = vsub.f32 %v2503_v31, %v9250_v13 }
 0x3df   : > { %4386 = vmatmul.f32.vlgmr.msra.gmra.mxu1 %v10510_v49  ;;  %4631 = vmatpush.msrb.mxu2 %v9150_v37  ;;  %v10173_v48 = vand.u32 4294901760, %v9209_v43  ;;  %10548 = vst [vmem:[#allocation24_spill] sm:$0xff] %v9262_v28  ;;  %v9296_v31 = vsub.f32 %v2392_v11, %v9262_v28  ;;  %v3355_v11 = vpop.f32.mrf.mxu1  ;;  %v3265_v29 = vadd.f32 %v3264_v45, %v9129_v51  ;;  %v9330_v51 = vpop.f32.mrf.mxu3 }
 0x3e0   : > { %4534 = vmatpush.msrb.mxu1 %v4533_v34  ;;  %4679 = vmatpush.msrb.mxu3 %v9137_v60  ;;  %v9229_v35 = vsub.f32 %v2432_v32, %v9202_v18  ;;  %v4557_v32 = vand.u32 4294901760, %v4556_v39  ;;  %v10176_v34 = vand.u32 4294901760, %v9223_v14  ;;  %v9270_v39 = vsub.f32 %v2513_v23, %v9238_v54  ;;  %10550 = vst [vmem:[#allocation51_spill] sm:$0xff] %v9282_v41 }
 0x3e1   : > { %4501 = vmatpush.msrb.mxu0 %v9152_v46  ;;  %4634 = vmatpush.msrb.mxu2 %v9162_v9  ;;  %v4569_v23 = vand.u32 4294901760, %v4568_v19  ;;  %v2463_v19 = vld [vmem:[#allocation3 + $0x268] sm:$0xff] }
 0x3e2   : > { %4540 = vmatpush.msrb.mxu1 %v4539_v47  ;;  %4681 = vmatpush.msrb.mxu3 %v9152_v46  ;;  %v10180_v58 = vand.u32 4294901760, %v9229_v35  ;;  %v2483_v47 = vld [vmem:[#allocation3 + $0x308] sm:$0xff]  ;;  %10549 = vst [vmem:[#allocation27_spill] sm:$0xff] %v9270_v39  ;;  %v4580_v26 = vsub.f32 %v9223_v14, %v10176_v34 }
 0x3e3   : > { %4503 = vmatpush.msrb.mxu0 %v9164_v22  ;;  %4637 = vmatpush.msrb.mxu2 %v9178_v50  ;;  %v9288_v44 = vand.u32 4294901760, %v2483_v47 }
 0x3e4   : > { %4546 = vmatpush.msrb.mxu1 %v4545_v56  ;;  %4683 = vmatpush.msrb.mxu3 %v9164_v22  ;;  %v4574_v56 = vsub.f32 %v9209_v43, %v10173_v48  ;;  %v2473_v48 = vld [vmem:[#allocation3 + $0x2b8] sm:$0xff]  ;;  %v4586_v62 = vsub.f32 %v9229_v35, %v10180_v58  ;;  %v3405_v58 = vpop.f32.mrf.mxu2  ;;  %v4581_v2 = vand.u32 4294901760, %v4580_v26  ;;  %v10553_v26 = vand.u32 4294901760, %v9270_v39 }
 0x3e5   : > { %4505 = vmatpush.msrb.mxu0 %v9180_v15  ;;  %4640 = vmatpush.msrb.mxu2 %v9195_v25  ;;  %v9304_v63 = vand.u32 4294901760, %v2473_v48  ;;  %v9319_v40 = vsub.f32 %v2483_v47, %v9288_v44 }
 0x3e6   : > { %4552 = vmatpush.msrb.mxu1 %v4551_v10  ;;  %4685 = vmatpush.msrb.mxu3 %v9180_v15  ;;  %v9272_v10 = vand.u32 4294901760, %v2493_v27  ;;  %v4575_v34 = vand.u32 4294901760, %v4574_v56  ;;  %v4592_v56 = vsub.f32 %v9243_v52, %v10186_v61  ;;  %v4587_v61 = vand.u32 4294901760, %v4586_v62 }
 0x3e7   : > { %4507 = vmatpush.msrb.mxu0 %v9187_v33  ;;  %4643 = vmatpush.msrb.mxu2 %v9209_v43  ;;  %v4853_v47 = vsub.f32 %v9270_v39, %v10553_v26 }
 0x3e8   : > { %4558 = vmatpush.msrb.mxu1 %v4557_v32  ;;  %4687 = vmatpush.msrb.mxu3 %v9187_v33  ;;  %v10185_v32 = vand.u32 4294901760, %v9248_v38  ;;  %v9302_v4 = vsub.f32 %v2493_v27, %v9272_v10  ;;  %v10552_v27 = vand.u32 4294901760, %v9260_v57  ;;  %v4593_v39 = vand.u32 4294901760, %v4592_v56 }
 0x3e9   : > { %4509 = vmatpush.msrb.mxu0 %v9202_v18  ;;  %4646 = vmatpush.msrb.mxu2 %v9223_v14 }
 0x3ea   : > { %4564 = vmatpush.msrb.mxu1 %v4563_v7  ;;  %4689 = vmatpush.msrb.mxu3 %v9202_v18  ;;  %10551 = vst [vmem:[#allocation50_spill] sm:$0xff] %v9302_v4  ;;  %v2453_v7 = vld [vmem:[#allocation3 + $0x218] sm:$0xff] }
 0x3eb   : > { %4511 = vmatpush.msrb.mxu0 %v9214_v24  ;;  %4649 = vmatpush.msrb.mxu2 %v9229_v35  ;;  %v9339_v62 = vand.u32 4294901760, %v2453_v7 }
 0x3ec   : > { %4570 = vmatpush.msrb.mxu1 %v4569_v23  ;;  %4691 = vmatpush.msrb.mxu3 %v9214_v24  ;;  %v4847_v23 = vsub.f32 %v9248_v38, %v10185_v32  ;;  %v9321_v24 = vand.u32 4294901760, %v2463_v19  ;;  %v2443_v32 = vld [vmem:[#allocation3 + $0x1c8] sm:$0xff]  ;;  %v2433_v38 = vld [vmem:[#allocation3 + $0x178] sm:$0xff] }
 0x3ed   : > { %4513 = vmatpush.msrb.mxu0 %v9231_v21  ;;  %4652 = vmatpush.msrb.mxu2 %v9243_v52  ;;  %v9349_v45 = vand.u32 4294901760, %v2443_v32  ;;  %v9371_v20 = vsub.f32 %v2453_v7, %v9339_v62  ;;  %v10560_v7 = vand.u32 4294901760, %v9319_v40 }
 0x3ee   : > { %4576 = vmatpush.msrb.mxu1 %v4575_v34  ;;  %4693 = vmatpush.msrb.mxu3 %v9231_v21  ;;  %v4598_v34 = vsub.f32 %v9260_v57, %v10552_v27  ;;  %v9337_v21 = vsub.f32 %v2473_v48, %v9304_v63  ;;  %v10554_v27 = vand.u32 4294901760, %v9282_v41  ;;  %v3356_v48 = vadd.f32 %v3355_v11, %v3265_v29 }
 0x3ef   : > { %4515 = vmatpush.msrb.mxu0 %v9245_v55  ;;  %4655 = vmatpush.msrb.mxu2 %v9260_v57  ;;  %v9354_v49 = vsub.f32 %v2463_v19, %v9321_v24  ;;  %v4854_v11 = vand.u32 4294901760, %v4853_v47  ;;  %v10558_v19 = vand.u32 4294901760, %v9302_v4  ;;  %v9377_v16 = vsub.f32 %v2443_v32, %v9349_v45  ;;  %v9389_v32 = vpop.f32.mrf.mxu1 }
 0x3f0   : > { %4582 = vmatpush.msrb.mxu1 %v4581_v2  ;;  %4695 = vmatpush.msrb.mxu3 %v9245_v55  ;;  %v4848_v2 = vand.u32 4294901760, %v4847_v23  ;;  %v4859_v1 = vsub.f32 %v9282_v41, %v10554_v27  ;;  %v10555_v55 = vand.u32 4294901760, %v9277_v0  ;;  %v2423_v23 = vld [vmem:[#allocation3 + $0x128] sm:$0xff]  ;;  %v4599_v27 = vand.u32 4294901760, %v4598_v34  ;;  %v9358_v41 = vpop.f32.mrf.mxu0  ;;  %v2413_v34 = vld [vmem:[#allocation3 + $0xd8] sm:$0xff] }
 0x3f1   : > { %4517 = vmatpush.msrb.mxu0 %v9262_v28  ;;  %4658 = vmatpush.msrb.mxu2 %v9277_v0  ;;  %v4865_v56 = vsub.f32 %v9302_v4, %v10558_v19  ;;  %v3406_v19 = vadd.f32 %v3405_v58, %v3356_v48  ;;  %v10562_v48 = vld [vmem:[#allocation62_spill] sm:$0xff] }
 0x3f2   : > { %v4604_v26 = vsub.f32 %v9277_v0, %v10555_v55  ;;  %4588 = vmatpush.msrb.mxu1 %v4587_v61  ;;  %4697 = vmatpush.msrb.mxu3 %v9262_v28  ;;  %v10557_v55 = vand.u32 4294901760, %v9296_v31  ;;  %v9363_v61 = vand.u32 4294901760, %v2433_v38  ;;  %v9379_v28 = vand.u32 4294901760, %v2423_v23 }
 0x3f3   : > { %4710 = vmatpush.msra.mxu0 %v10556_v53  ;;  %4661 = vmatpush.msrb.mxu2 %v9296_v31  ;;  %v3579_v47 = vpop.f32.mrf.mxu2  ;;  %v4871_v53 = vsub.f32 %v9319_v40, %v10560_v7  ;;  %v4866_v7 = vand.u32 4294901760, %v4865_v56 }
 0x3f4   : > { %4849 = vmatpush.msra.mxu3 %v4848_v2  ;;  %v4610_v29 = vsub.f32 %v9296_v31, %v10557_v55  ;;  %4594 = vmatpush.msrb.mxu1 %v4593_v39  ;;  %v10559_v2 = vand.u32 4294901760, %v9118_v59  ;;  %v4860_v55 = vand.u32 4294901760, %v4859_v1  ;;  %v4605_v39 = vand.u32 4294901760, %v4604_v26  ;;  %v2403_v1 = vld [vmem:[#allocation3 + $0x88] sm:$0xff] }
 0x3f5   : > { %4806 = vmatpush.msra.mxu2 %v9216_v3  ;;  %v3580_v4 = vadd.f32 %v3579_v47, %v9139_v6  ;;  %v10561_v26 = vand.u32 4294901760, %v9135_v42  ;;  %v10563_v59 = vand.u32 4294901760, %v9337_v21  ;;  %v4888_v42 = vand.u32 4294901760, %v9371_v20 }
 0x3f6   : > { %4714 = vmatpush.msra.mxu0 %v10559_v2  ;;  %4855 = vmatpush.msra.mxu3 %v4854_v11  ;;  %v2182_v2 = vpop.permute.xlu0 %2181  ;;  %v4611_v58 = vand.u32 4294901760, %v4610_v29  ;;  %v9393_v11 = vand.u32 4294901760, %v2413_v34  ;;  %v9401_v47 = vsub.f32 %v2433_v38, %v9363_v61  ;;  %v3670_v29 = vpop.f32.mrf.mxu3  ;;  %v9407_v56 = vsub.f32 %v2423_v23, %v9379_v28 }
 0x3f7   : > { %4600 = vmatpush.msrb.mxu1 %v4599_v27  ;;  %4808 = vmatpush.msra.mxu2 %v9238_v54  ;;  %v2193_v27 = vsel %vm2183_vm0, %v10562_v48, %v2182_v2  ;;  %v4877_v6 = vsub.f32 %v9337_v21, %v10563_v59  ;;  %v10565_v2 = vand.u32 4294901760, %v9150_v37  ;;  %v3443_v59 = vadd.f32 %v9330_v51, %v3406_v19  ;;  %vm10569_vm0 = vmmov %vm10543_vm1 }
 0x3f8   : > { %4718 = vmatpush.msra.mxu0 %v10561_v26  ;;  %4861 = vmatpush.msra.mxu3 %v4860_v55  ;;  %2213 = vst.msk [vmem:[#allocation3 + $0x408] sm:$0xf] %vm10564_vm2, %v2193_v27  ;;  %v2393_v26 = vld [vmem:[#allocation3 + $0x38] sm:$0xff]  ;;  %v3671_v55 = vadd.f32 %v3670_v29, %v3580_v4  ;;  %v4872_v48 = vand.u32 4294901760, %v4871_v53  ;;  %v10566_v38 = vand.u32 4294901760, %v9354_v49  ;;  %v4894_v37 = vand.u32 4294901760, %v9377_v16  ;;  %vm10590_vm8 = vmmov %vm10569_vm0 }
 0x3f9   : > { %4606 = vmatpush.msrb.mxu1 %v4605_v39  ;;  %4810 = vmatpush.msra.mxu2 %v9250_v13  ;;  %v9409_v39 = vand.u32 4294901760, %v2403_v1  ;;  %v9420_v4 = vsub.f32 %v2413_v34, %v9393_v11  ;;  %v3720_v23 = vpop.f32.mrf.mxu0  ;;  %v9422_v29 = vand.u32 4294901760, %v2393_v26  ;;  %v4878_v51 = vand.u32 4294901760, %v4877_v6 }
 0x3fa   : > { %4722 = vmatpush.msra.mxu0 %v10565_v2  ;;  %4867 = vmatpush.msra.mxu3 %v4866_v7  ;;  %v4883_v27 = vsub.f32 %v9354_v49, %v10566_v38  ;;  %v10567_v2 = vand.u32 4294901760, %v9162_v9  ;;  %v4889_v53 = vsub.f32 %v9371_v20, %v4888_v42  ;;  %v4900_v19 = vand.u32 4294901760, %v9401_v47  ;;  %v2268_v9 = vpop.permute.xlu1 %2267 }
 0x3fb   : > { %4612 = vmatpush.msrb.mxu1 %v4611_v58  ;;  %4812 = vmatpush.msra.mxu2 %v9272_v10  ;;  %v3721_v58 = vadd.f32 %v3720_v23, %v3671_v55  ;;  %v2279_v34 = vsel %vm2269_vm6, %v8975_v5, %v2268_v9  ;;  %v9435_v7 = vsub.f32 %v2403_v1, %v9409_v39  ;;  %v4912_v5 = vand.u32 4294901760, %v9420_v4  ;;  %vm10573_vm6 = vmmov %vm10569_vm0 }
 0x3fc   : > { %4726 = vmatpush.msra.mxu0 %v10567_v2  ;;  %4873 = vmatpush.msra.mxu3 %v4872_v48  ;;  %v3506_v6 = vadd.f32 %v9358_v41, %v3443_v59  ;;  %v4884_v48 = vand.u32 4294901760, %v4883_v27  ;;  %v4895_v55 = vsub.f32 %v9377_v16, %v4894_v37  ;;  %2299 = vst.msk [vmem:[#allocation3 + $0x408] sm:$0xf0] %vm10569_vm0, %v2279_v34  ;;  %v4890_v38 = vand.u32 4294901760, %v4889_v53  ;;  %v10571_v2 = vld [vmem:[#allocation11_spill] sm:$0xff] }
 0x3fd   : > { %4771 = vmatpush.msra.mxu1 %v9084_v12  ;;  %v10568_v12 = vand.u32 4294901760, %v9178_v50  ;;  %4814 = vmatpush.msra.mxu2 %v9288_v44  ;;  %v4906_v50 = vand.u32 4294901760, %v9407_v56  ;;  %v3757_v1 = vpop.f32.mrf.mxu1  ;;  %v9449_v59 = vsub.f32 %v2393_v26, %v9422_v29  ;;  %v4901_v27 = vsub.f32 %v9401_v47, %v4900_v19 }
 0x3fe   : > { %4879 = vmatpush.msra.mxu3 %v4878_v51  ;;  %v2097_v41 = vpop.permute.xlu0 %2096  ;;  %v3758_v23 = vadd.f32 %v3757_v1, %v3721_v58  ;;  %v10572_v51 = vand.u32 4294901760, %v9209_v43  ;;  %v4918_v26 = vand.u32 4294901760, %v9435_v7  ;;  %v3541_v53 = vadd.f32 %v9389_v32, %v3506_v6 }
 0x3ff   : > { %4730 = vmatpush.msra.mxu0 %v10568_v12  ;;  %4773 = vmatpush.msra.mxu1 %v9096_v8  ;;  %v10570_v8 = vand.u32 4294901760, %v9195_v25  ;;  %v2108_v25 = vsel %vm2098_vm14, %v10571_v2, %v2097_v41  ;;  %v4896_v9 = vand.u32 4294901760, %v4895_v55  ;;  %v4907_v58 = vsub.f32 %v9407_v56, %v4906_v50  ;;  %v5777_v2 = vld.sshfl [vmem:[#allocation1 + $0x10] sm:$0xff pattern:$0x75316420]  ;;  %vm10577_vm14 = vmmov %vm10564_vm2 }
 0x400   : > { %4816 = vmatpush.msra.mxu2 %v9304_v63  ;;  %4885 = vmatpush.msra.mxu3 %v4884_v48  ;;  %2128 = vst.msk [vmem:[#allocation3 + $0x3b8] sm:$0xf0] %vm10573_vm6, %v2108_v25  ;;  %v3855_v34 = vpop.f32.mrf.mxu3  ;;  %v10574_v43 = vand.u32 4294901760, %v9223_v14  ;;  %v4913_v32 = vsub.f32 %v9420_v4, %v4912_v5  ;;  %v4924_v6 = vand.u32 4294901760, %v9449_v59  ;;  %v10575_v55 = vand.u32 4294901760, %v9229_v35 }
 0x401   : > { %4734 = vmatpush.msra.mxu0 %v10570_v8  ;;  %4775 = vmatpush.msra.mxu1 %v9113_v17  ;;  %v3820_v17 = vpop.f32.mrf.mxu2  ;;  %v5778_v14 = vld.sshfl [vmem:[#allocation1 + $0x18] sm:$0xff pattern:$0x75316420]  ;;  %v5750_v41 = vmax.f32 %v3541_v53, 0.0  ;;  %v4908_v1 = vand.u32 4294901760, %v4907_v58  ;;  %v10576_v35 = vand.u32 4294901760, %v9243_v52 }
 0x402   : > { %4818 = vmatpush.msra.mxu2 %v9321_v24  ;;  %4891 = vmatpush.msra.mxu3 %v4890_v38  ;;  %v3821_v12 = vadd.f32 %v3820_v17, %v3758_v23  ;;  %v4925_v25 = vsub.f32 %v9449_v59, %v4924_v6  ;;  %v10578_v17 = vand.u32 4294901760, %v9260_v57  ;;  %v10583_v58 = vld [vmem:[#allocation36_spill] sm:$0xff] }
 0x403   : > { %4738 = vmatpush.msra.mxu0 %v10572_v51  ;;  %4777 = vmatpush.msra.mxu1 %v9124_v36  ;;  %v4902_v36 = vand.u32 4294901760, %v4901_v27  ;;  %v1840_v8 = vpop.permute.xlu1 %1839  ;;  %v10579_v51 = vand.u32 4294901760, %v9277_v0  ;;  %v10582_v0 = vld [vmem:[#allocation65_spill] sm:$0xff] }
 0x404   : > { %4820 = vmatpush.msra.mxu2 %v9339_v62  ;;  %4897 = vmatpush.msra.mxu3 %v4896_v9  ;;  %v3856_v48 = vadd.f32 %v3855_v34, %v3821_v12  ;;  %v1851_v27 = vsel %vm1841_vm7, %v9042_v30, %v1840_v8  ;;  %v5798_v30 = vmul.f32 %v5777_v2, %v5750_v41  ;;  %v4926_v53 = vand.u32 4294901760, %v4925_v25  ;;  %v10584_v34 = vld [vmem:[#allocation16_spill] sm:$0xff]  ;;  %vm10585_vm7 = vmmov %vm10564_vm2  ;;  %v10595_v41 = vld [vmem:[#allocation18_spill] sm:$0xff] }
 0x405   : > { %4742 = vmatpush.msra.mxu0 %v10574_v43  ;;  %4779 = vmatpush.msra.mxu1 %v9137_v60  ;;  %v4919_v60 = vsub.f32 %v9435_v7, %v4918_v26  ;;  %1871 = vst.msk [vmem:[#allocation3 + $0x368] sm:$0xf] %vm10577_vm14, %v1851_v27  ;;  %v10580_v9 = vand.u32 4294901760, %v9296_v31  ;;  %v10586_v31 = vld [vmem:[#allocation33_spill] sm:$0xff]  ;;  %v10587_v43 = vld [vmem:[#allocation39_spill] sm:$0xff]  ;;  %v10598_v27 = vld [vmem:[#allocation24_spill] sm:$0xff] }
 0x406   : > { %4822 = vmatpush.msra.mxu2 %v9349_v45  ;;  %4903 = vmatpush.msra.mxu3 %v4902_v36  ;;  %v5751_v38 = vmax.f32 %v3856_v48, 0.0  ;;  %v10589_v48 = vld [vmem:[#allocation27_spill] sm:$0xff]  ;;  %v10602_v25 = vand.u32 4294901760, %v9337_v21 }
 0x407   : > { %4746 = vmatpush.msra.mxu0 %v10575_v55  ;;  %4781 = vmatpush.msra.mxu1 %v9152_v46  ;;  %v4914_v46 = vand.u32 4294901760, %v4913_v32  ;;  %v10588_v32 = vld [vmem:[#allocation64_spill] sm:$0xff]  ;;  %v10591_v55 = vand.u32 4294901760, %v10584_v34  ;;  %v10594_v8 = vand.u32 4294901760, %v10589_v48  ;;  %v10599_v2 = vld [vmem:[#allocation63_spill] sm:$0xff] }
 0x408   : > { %4824 = vmatpush.msra.mxu2 %v9363_v61  ;;  %4909 = vmatpush.msra.mxu3 %v4908_v1  ;;  %v5799_v23 = vmul.f32 %v5778_v14, %v5751_v38  ;;  %v10593_v14 = vld [vmem:[#allocation51_spill] sm:$0xff]  ;;  %v10596_v1 = vld [vmem:[#allocation50_spill] sm:$0xff] }
 0x409   : > { %4750 = vmatpush.msra.mxu0 %v10576_v35  ;;  %4783 = vmatpush.msra.mxu1 %v9164_v22  ;;  %v4920_v22 = vand.u32 4294901760, %v4919_v60  ;;  %v10592_v60 = vld [vmem:[#allocation30_spill] sm:$0xff]  ;;  %v10597_v38 = vand.u32 4294901760, %v10593_v14  ;;  %v10600_v35 = vand.u32 4294901760, %v10596_v1 }
 0x40a   : > { %4826 = vmatpush.msra.mxu2 %v9379_v28  ;;  %4915 = vmatpush.msra.mxu3 %v4914_v46  ;;  %v5817_v52 = vrot.slane %v5799_v23, 4  ;;  %v10601_v46 = vand.u32 4294901760, %v9319_v40 }
 0x40b   : > { %4754 = vmatpush.msra.mxu0 %v10578_v17  ;;  %4785 = vmatpush.msra.mxu1 %v9180_v15  ;;  %v2444_v17 = vld [vmem:[#allocation3 + $0x1d0] sm:$0xff] }
 0x40c   : > { %4828 = vmatpush.msra.mxu2 %v9393_v11  ;;  %4921 = vmatpush.msra.mxu3 %v4920_v22  ;;  %v5822_v57 = vsel %vm200_vm3, %v5798_v30, %v5817_v52  ;;  %v2525_v30 = vld [vmem:[#allocation3 + $0x458] sm:$0xf] }
 0x40d   : > { %4758 = vmatpush.msra.mxu0 %v10579_v51  ;;  %4787 = vmatpush.msra.mxu1 %v9187_v33  ;;  %5832 = vst [vmem:[%s10079_s4 + $0x8] sm:$0xff] %v5822_v57  ;;  %v1669_v15 = vpop.permute.xlu0 %1668  ;;  %v10581_v33 = vld [vmem:[#allocation49_spill] sm:$0xff]  ;;  %v2434_v57 = vld [vmem:[#allocation3 + $0x180] sm:$0xff] }
 0x40e   : > { %4830 = vmatpush.msra.mxu2 %v9409_v39  ;;  %4927 = vmatpush.msra.mxu3 %v4926_v53  ;;  %v1680_v12 = vsel %vm1670_vm10, %v10583_v58, %v1669_v15 }
 0x40f   : > { %4762 = vmatpush.msra.mxu0 %v10580_v9  ;;  %4789 = vmatpush.msra.mxu1 %v9202_v18  ;;  %1700 = vst.msk [vmem:[#allocation3 + $0x318] sm:$0xf] %vm10585_vm7, %v1680_v12  ;;  %v1755_v18 = vpop.permute.xlu1 %1754  ;;  %v9665_v9 = vand.u32 4294901760, %v2444_v17 }
 0x410   : > { %4523 = vmatmul.f32.vlgmr.msrb.gmra.mxu0 %v10581_v33  ;;  %4701 = vmatmul.f32.vlgmr.msrb.gmra.mxu3 %v10582_v0  ;;  %v1766_v36 = vsel %vm1756_vm11, %v10587_v43, %v1755_v18  ;;  %v2596_v18 = vsel %vm200_vm3, %v2525_v30, 0 }
 0x411   : > { %4937 = vmatpush.msrb.mxu0 %v10584_v34  ;;  %5086 = vmatpush.msrb.mxu3 %v9216_v3  ;;  %1786 = vst.msk [vmem:[#allocation3 + $0x318] sm:$0xf0] %vm10590_vm8, %v1766_v36  ;;  %v2424_v34 = vld [vmem:[#allocation3 + $0x130] sm:$0xff] }
 0x412   : > { %4791 = vmatpush.msra.mxu1 %v10586_v31  ;;  %4832 = vmatpush.msra.mxu2 %v9422_v29  ;;  %v9679_v31 = vand.u32 4294901760, %v2434_v57 }
 0x413   : > { %4664 = vmatmul.f32.vlgmr.msrb.gmra.mxu2 %v10588_v32  ;;  %4940 = vmatpush.msrb.mxu0 %v10589_v48 }
 0x414   : > { %5025 = vmatpush.msrb.mxu2 %v10591_v55  ;;  %5088 = vmatpush.msrb.mxu3 %v9238_v54  ;;  %v2414_v55 = vld [vmem:[#allocation3 + $0xe0] sm:$0xff] }
 0x415   : > { %4793 = vmatpush.msra.mxu1 %v10592_v60  ;;  %4943 = vmatpush.msrb.mxu0 %v10593_v14  ;;  %v9691_v60 = vand.u32 4294901760, %v2424_v34  ;;  %v9693_v14 = vand.u32 4294901760, %v2596_v18 }
 0x416   : > { %5029 = vmatpush.msrb.mxu2 %v10594_v8  ;;  %5090 = vmatpush.msrb.mxu3 %v9250_v13  ;;  %v2515_v8 = vld [vmem:[#allocation3 + $0x408] sm:$0xff] }
 0x417   : > { %4795 = vmatpush.msra.mxu1 %v10595_v41  ;;  %4946 = vmatpush.msrb.mxu0 %v10596_v1  ;;  %10604 = vst [vmem:[#allocation52_spill] sm:$0xff] %v9691_v60 }
 0x418   : > { %5033 = vmatpush.msrb.mxu2 %v10597_v38  ;;  %5092 = vmatpush.msrb.mxu3 %v9272_v10  ;;  %v9700_v38 = vsub.f32 %v2444_v17, %v9665_v9 }
 0x419   : > { %4797 = vmatpush.msra.mxu1 %v10598_v27  ;;  %4949 = vmatpush.msrb.mxu0 %v9319_v40  ;;  %v2524_v40 = vld [vmem:[#allocation3 + $0x450] sm:$0xf] }
 0x41a   : > { %4614 = vmatmul.f32.vlgmr.msrb.gmra.mxu1 %v10599_v2  ;;  %5037 = vmatpush.msrb.mxu2 %v10600_v35  ;;  %v2404_v35 = vld [vmem:[#allocation3 + $0x90] sm:$0xff] }
 0x41b   : > { %4986 = vmatpush.msrb.mxu1 %v9216_v3  ;;  %5094 = vmatpush.msrb.mxu3 %v9288_v44  ;;  %v10603_v3 = vand.u32 4294901760, %v9354_v49 }
 0x41c   : > { %4952 = vmatpush.msrb.mxu0 %v9337_v21  ;;  %5041 = vmatpush.msrb.mxu2 %v10601_v46  ;;  %v2528_v21 = vld [vmem:[%s10077_s2 + $0x10] sm:$0xff]  ;;  %v9706_v46 = vsub.f32 %v2434_v57, %v9679_v31 }
 0x41d   : > { %4988 = vmatpush.msrb.mxu1 %v9238_v54  ;;  %5096 = vmatpush.msrb.mxu3 %v9304_v63  ;;  %2540 = vst [vmem:[#allocation1 + $0x20] ss:$2 sm:$0xff] %v2528_v21  ;;  %v2514_v54 = vld [vmem:[#allocation3 + $0x400] sm:$0xff] }
 0x41e   : > { %4955 = vmatpush.msrb.mxu0 %v9354_v49  ;;  %5045 = vmatpush.msrb.mxu2 %v10602_v25  ;;  %v2593_v49 = vsel %vm200_vm3, %v2524_v40, 0  ;;  %v9708_v25 = vand.u32 4294901760, %v2414_v55  ;;  %v10206_v57 = vand.u32 4294901760, %v9706_v46 }
 0x41f   : > { %4990 = vmatpush.msrb.mxu1 %v9250_v13  ;;  %5098 = vmatpush.msrb.mxu3 %v9321_v24  ;;  %v2494_v13 = vld [vmem:[#allocation3 + $0x360] sm:$0xff] }
 0x420   : > { %4764 = vmatmul.f32.vlgmr.msra.gmra.mxu0 %v10599_v2  ;;  %5049 = vmatpush.msrb.mxu2 %v10603_v3  ;;  %10605 = vst [vmem:[#allocation54_spill] sm:$0xff] %v9708_v25  ;;  %v2505_v3 = vld [vmem:[#allocation3 + $0x3b8] sm:$0xff]  ;;  %v9737_v30 = vsub.f32 %v2414_v55, %v9708_v25 }
 0x421   : > { %4958 = vmatpush.msrb.mxu0 %v9371_v20  ;;  %4992 = vmatpush.msrb.mxu1 %v9272_v10  ;;  %v9607_v20 = vand.u32 4294901760, %v2494_v13  ;;  %v9732_v17 = vand.u32 4294901760, %v2505_v3 }
 0x422   : > { %5100 = vmatpush.msrb.mxu3 %v9339_v62  ;;  %4799 = vmatmul.f32.vlgmr.msra.gmra.mxu1 %v10599_v2 }
 0x423   : > { %4961 = vmatpush.msrb.mxu0 %v9377_v16  ;;  %4994 = vmatpush.msrb.mxu1 %v9288_v44  ;;  %v9578_v44 = vand.u32 4294901760, %v2593_v49  ;;  %v2504_v16 = vld [vmem:[#allocation3 + $0x3b0] sm:$0xff] }
 0x424   : > { %5053 = vmatpush.msrb.mxu2 %v4888_v42  ;;  %5102 = vmatpush.msrb.mxu3 %v9349_v45  ;;  %v9597_v10 = vand.u32 4294901760, %v2504_v16 }
 0x425   : > { %4964 = vmatpush.msrb.mxu0 %v9401_v47  ;;  %4996 = vmatpush.msrb.mxu1 %v9304_v63  ;;  %v9587_v63 = vand.u32 4294901760, %v2514_v54  ;;  %v2474_v47 = vld [vmem:[#allocation3 + $0x2c0] sm:$0xff] }
 0x426   : > { %5057 = vmatpush.msrb.mxu2 %v4894_v37  ;;  %5104 = vmatpush.msrb.mxu3 %v9363_v61 }
 0x427   : > { %4967 = vmatpush.msrb.mxu0 %v9407_v56  ;;  %4998 = vmatpush.msrb.mxu1 %v9321_v24  ;;  %v9593_v24 = vsub.f32 %v2593_v49, %v9578_v44  ;;  %v9612_v56 = vld.sshfl [vmem:[#allocation1 + $0x20] sm:$0xff pattern:$0x75316420] }
 0x428   : > { %5061 = vmatpush.msrb.mxu2 %v4900_v19  ;;  %5106 = vmatpush.msrb.mxu3 %v9379_v28  ;;  %v5760_v19 = vld [vmem:[%s10078_s3 + $0x10] sm:$0xff] }
 0x429   : > { %4970 = vmatpush.msrb.mxu0 %v9420_v4  ;;  %5000 = vmatpush.msrb.mxu1 %v9339_v62  ;;  %v2484_v62 = vld [vmem:[#allocation3 + $0x310] sm:$0xff]  ;;  %v10212_v42 = vand.u32 4294901760, %v9593_v24 }
 0x42a   : > { %5065 = vmatpush.msrb.mxu2 %v4906_v50  ;;  %5108 = vmatpush.msrb.mxu3 %v9393_v11  ;;  %v9620_v37 = vand.u32 4294901760, %v2484_v62  ;;  %v9622_v4 = vld.sshfl [vmem:[#allocation1 + $0x28] sm:$0xff pattern:$0x75316420]  ;;  %v9634_v50 = vand.u32 4294901760, %v2474_v47 }
 0x42b   : > { %4838 = vmatmul.f32.vlgmr.msra.gmra.mxu2 %v10581_v33  ;;  %4973 = vmatpush.msrb.mxu0 %v9435_v7  ;;  %v2464_v7 = vld [vmem:[#allocation3 + $0x270] sm:$0xff]  ;;  %5772 = vst [vmem:[#allocation1 + $0x20] ss:$2 sm:$0xff] %v5760_v19  ;;  %v2495_v19 = vld [vmem:[#allocation3 + $0x368] sm:$0xff] }
 0x42c   : > { %5002 = vmatpush.msrb.mxu1 %v9349_v45  ;;  %5069 = vmatpush.msrb.mxu2 %v4912_v5  ;;  %v9605_v45 = vsub.f32 %v2514_v54, %v9587_v63  ;;  %v9658_v52 = vsub.f32 %v2474_v47, %v9634_v50  ;;  %v2394_v54 = vld [vmem:[#allocation3 + $0x40] sm:$0xff]  ;;  %v9725_v47 = vsub.f32 %v2596_v18, %v9693_v14 }
 0x42d   : > { %5110 = vmatpush.msrb.mxu3 %v9409_v39  ;;  %4976 = vmatpush.msrb.mxu0 %v9449_v59  ;;  %v5162_v59 = vsub.f32 %v9593_v24, %v10212_v42  ;;  %v2445_v42 = vld [vmem:[#allocation3 + $0x1d8] sm:$0xff] }
 0x42e   : > { %4929 = vmatmul.f32.vlgmr.msra.gmra.mxu3 %v10599_v2  ;;  %5004 = vmatpush.msrb.mxu1 %v9363_v61  ;;  %v9618_v61 = vsub.f32 %v2504_v16, %v9597_v10  ;;  %v10209_v5 = vand.u32 4294901760, %v9605_v45  ;;  %v10204_v48 = vand.u32 4294901760, %v9658_v52  ;;  %v9715_v16 = vand.u32 4294901760, %v2515_v8  ;;  %10607 = vst [vmem:[#allocation53_spill] sm:$0xff] %v9725_v47 }
 0x42f   : > { %5073 = vmatpush.msrb.mxu2 %v4918_v26  ;;  %5112 = vmatpush.msrb.mxu3 %v9422_v29  ;;  %v2454_v26 = vld [vmem:[#allocation3 + $0x220] sm:$0xff]  ;;  %v10210_v55 = vand.u32 4294901760, %v9725_v47 }
 0x430   : > { %5121 = vmatpush.msra.mxu0 %v9578_v44  ;;  %5006 = vmatpush.msrb.mxu1 %v9379_v28  ;;  %v9632_v28 = vsub.f32 %v2494_v13, %v9607_v20  ;;  %v10208_v23 = vand.u32 4294901760, %v9618_v61  ;;  %v5168_v22 = vsub.f32 %v9605_v45, %v10209_v5  ;;  %v9660_v51 = vand.u32 4294901760, %v2454_v26 }
 0x431   : > { %5301 = vmatpush.msra.mxu3 %v9578_v44  ;;  %5077 = vmatpush.msrb.mxu2 %v4924_v6  ;;  %v9647_v6 = vand.u32 4294901760, %v2464_v7  ;;  %v5192_v21 = vsub.f32 %v9658_v52, %v10204_v48  ;;  %v9720_v13 = vsub.f32 %v2424_v34, %v9691_v60  ;;  %v9747_v18 = vsub.f32 %v2515_v8, %v9715_v16 }
 0x432   : > { %5123 = vmatpush.msra.mxu0 %v9587_v63  ;;  %5008 = vmatpush.msrb.mxu1 %v9393_v11  ;;  %v9645_v11 = vsub.f32 %v2484_v62, %v9620_v37  ;;  %v10207_v53 = vand.u32 4294901760, %v9632_v28  ;;  %v5174_v15 = vsub.f32 %v9618_v61, %v10208_v23  ;;  %v9686_v36 = vsub.f32 %v2454_v26, %v9660_v51 }
 0x433   : > { %5252 = vmatpush.msra.mxu2 %v9593_v24  ;;  %5303 = vmatpush.msra.mxu3 %v9587_v63  ;;  %v9673_v58 = vsub.f32 %v2464_v7, %v9647_v6  ;;  %v9722_v62 = vand.u32 4294901760, %v2404_v35  ;;  %v10202_v26 = vand.u32 4294901760, %v9700_v38  ;;  %10609 = vst [vmem:[#allocation55_spill] sm:$0xff] %v9747_v18 }
 0x434   : > { %5079 = vmatmul.f32.vlgmr.msrb.gmra.mxu2 %v10599_v2  ;;  %5125 = vmatpush.msra.mxu0 %v9597_v10  ;;  %v10205_v12 = vand.u32 4294901760, %v9645_v11  ;;  %v5180_v43 = vsub.f32 %v9632_v28, %v10207_v53  ;;  %v5175_v41 = vand.u32 4294901760, %v5174_v15  ;;  %v10201_v49 = vand.u32 4294901760, %v9686_v36 }
 0x435   : > { %5255 = vmatpush.msra.mxu2 %v9605_v45  ;;  %5305 = vmatpush.msra.mxu3 %v9597_v10  ;;  %v10203_v27 = vand.u32 4294901760, %v9673_v58  ;;  %10606 = vst [vmem:[#allocation21_spill] sm:$0xff] %v9722_v62  ;;  %v5193_v15 = vand.u32 4294901760, %v5192_v21  ;;  %v5210_v8 = vsub.f32 %v9700_v38, %v10202_v26  ;;  %v9763_v21 = vsub.f32 %v2505_v3, %v9732_v17  ;;  %v3894_v26 = vpop.f32.mrf.mxu0 }
 0x436   : > { %5010 = vmatpush.msrb.mxu1 %v9409_v39  ;;  %4979 = vmatmul.f32.vlgmr.msrb.gmra.mxu0 %v10588_v32  ;;  %v5163_v39 = vand.u32 4294901760, %v5162_v59  ;;  %v5186_v1 = vsub.f32 %v9645_v11, %v10205_v12  ;;  %v5181_v40 = vand.u32 4294901760, %v5180_v43  ;;  %v5204_v34 = vsub.f32 %v9686_v36, %v10201_v49  ;;  %v2465_v49 = vld [vmem:[#allocation3 + $0x278] sm:$0xff] }
 0x437   : > { %5114 = vmatmul.f32.vlgmr.msrb.gmra.mxu3 %v10599_v2  ;;  %5127 = vmatpush.msra.mxu0 %v9607_v20  ;;  %v5198_v59 = vsub.f32 %v9673_v58, %v10203_v27  ;;  %v9754_v43 = vsub.f32 %v2404_v35, %v9722_v62  ;;  %10610 = vst [vmem:[#allocation12_spill] sm:$0xff] %v9763_v21  ;;  %v10217_v27 = vand.u32 4294901760, %v9747_v18  ;;  %v9797_v5 = vand.u32 4294901760, %v2465_v49  ;;  %v2435_v2 = vld [vmem:[#allocation3 + $0x188] sm:$0xff] }
 0x438   : > { %5258 = vmatpush.msra.mxu2 %v9618_v61  ;;  %5307 = vmatpush.msra.mxu3 %v9607_v20  ;;  %v5187_v7 = vand.u32 4294901760, %v5186_v1  ;;  %v2475_v1 = vld [vmem:[#allocation3 + $0x2c8] sm:$0xff]  ;;  %v5216_v35 = vsub.f32 %v9706_v46, %v10206_v57  ;;  %v5205_v3 = vand.u32 4294901760, %v5204_v34  ;;  %v9836_v32 = vand.u32 4294901760, %v2435_v2 }
 0x439   : > { %5012 = vmatpush.msrb.mxu1 %v9422_v29  ;;  %5129 = vmatpush.msra.mxu0 %v9620_v37  ;;  %v5169_v29 = vand.u32 4294901760, %v5168_v22  ;;  %v9739_v22 = vand.u32 4294901760, %v2394_v54  ;;  %v9781_v12 = vand.u32 4294901760, %v2475_v1  ;;  %v2455_v57 = vld [vmem:[#allocation3 + $0x228] sm:$0xff] }
 0x43a   : > { %5016 = vmatmul.f32.vlgmr.msrb.gmra.mxu1 %v10582_v0  ;;  %5261 = vmatpush.msra.mxu2 %v9632_v28 }
 0x43b   : > { %5164 = vmatpush.msra.mxu1 %v5163_v39  ;;  %5309 = vmatpush.msra.mxu3 %v9620_v37  ;;  %10608 = vst [vmem:[#allocation44_spill] sm:$0xff] %v9739_v22  ;;  %v2485_v39 = vld [vmem:[#allocation3 + $0x318] sm:$0xff] }
 0x43c   : > { %5131 = vmatpush.msra.mxu0 %v9634_v50  ;;  %5264 = vmatpush.msra.mxu2 %v9645_v11 }
 0x43d   : > { %5170 = vmatpush.msra.mxu1 %v5169_v29  ;;  %5311 = vmatpush.msra.mxu3 %v9634_v50  ;;  %v9749_v29 = vand.u32 4294901760, %v2495_v19 }
 0x43e   : > { %5133 = vmatpush.msra.mxu0 %v9647_v6  ;;  %5267 = vmatpush.msra.mxu2 %v9658_v52 }
 0x43f   : > { %5176 = vmatpush.msra.mxu1 %v5175_v41  ;;  %5313 = vmatpush.msra.mxu3 %v9647_v6  ;;  %v10211_v41 = vand.u32 4294901760, %v9720_v13  ;;  %v9779_v48 = vsub.f32 %v2495_v19, %v9749_v29  ;;  %v5211_v19 = vand.u32 4294901760, %v5210_v8  ;;  %v3985_v8 = vpop.f32.mrf.mxu1 }
 0x440   : > { %5135 = vmatpush.msra.mxu0 %v9660_v51  ;;  %5270 = vmatpush.msra.mxu2 %v9673_v58 }
 0x441   : > { %5182 = vmatpush.msra.mxu1 %v5181_v40  ;;  %5315 = vmatpush.msra.mxu3 %v9660_v51  ;;  %v5199_v40 = vand.u32 4294901760, %v5198_v59  ;;  %v10214_v59 = vand.u32 4294901760, %v9737_v30  ;;  %v5222_v34 = vsub.f32 %v9720_v13, %v10211_v41 }
 0x442   : > { %5137 = vmatpush.msra.mxu0 %v9665_v9  ;;  %5273 = vmatpush.msra.mxu2 %v9686_v36 }
 0x443   : > { %5188 = vmatpush.msra.mxu1 %v5187_v7  ;;  %5317 = vmatpush.msra.mxu3 %v9665_v9  ;;  %v9765_v7 = vand.u32 4294901760, %v2485_v39  ;;  %v5228_v41 = vsub.f32 %v9737_v30, %v10214_v59  ;;  %v3895_v59 = vadd.f32 %v3894_v26, %v9612_v56  ;;  %v9827_v26 = vsub.f32 %v2465_v49, %v9797_v5 }
 0x444   : > { %5139 = vmatpush.msra.mxu0 %v9679_v31  ;;  %5276 = vmatpush.msra.mxu2 %v9700_v38  ;;  %v10615_v56 = vand.u32 4294901760, %v9779_v48 }
 0x445   : > { %5194 = vmatpush.msra.mxu1 %v5193_v15  ;;  %5319 = vmatpush.msra.mxu3 %v9679_v31  ;;  %v9773_v15 = vsub.f32 %v2394_v54, %v9739_v22  ;;  %v5477_v54 = vsub.f32 %v9725_v47, %v10210_v55  ;;  %v9795_v23 = vsub.f32 %v2485_v39, %v9765_v7  ;;  %v5217_v55 = vand.u32 4294901760, %v5216_v35 }
 0x446   : > { %5141 = vmatpush.msra.mxu0 %v9691_v60  ;;  %5279 = vmatpush.msra.mxu2 %v9706_v46  ;;  %v5483_v39 = vsub.f32 %v9747_v18, %v10217_v27  ;;  %v9813_v35 = vand.u32 4294901760, %v2455_v57  ;;  %v9829_v18 = vand.u32 4294901760, %v2445_v42 }
 0x447   : > { %5200 = vmatpush.msra.mxu1 %v5199_v40  ;;  %5321 = vmatpush.msra.mxu3 %v9691_v60  ;;  %v9811_v40 = vsub.f32 %v2475_v1, %v9781_v12  ;;  %v10612_v1 = vand.u32 4294901760, %v9763_v21 }
 0x448   : > { %5143 = vmatpush.msra.mxu0 %v9708_v25  ;;  %5282 = vmatpush.msra.mxu2 %v9720_v13  ;;  %v5484_v49 = vand.u32 4294901760, %v5483_v39  ;;  %v4135_v39 = vpop.f32.mrf.mxu0 }
 0x449   : > { %5206 = vmatpush.msra.mxu1 %v5205_v3  ;;  %5323 = vmatpush.msra.mxu3 %v9708_v25  ;;  %v5478_v3 = vand.u32 4294901760, %v5477_v54  ;;  %v10611_v25 = vand.u32 4294901760, %v9754_v43  ;;  %v5489_v53 = vsub.f32 %v9763_v21, %v10612_v1  ;;  %v2425_v54 = vld [vmem:[#allocation3 + $0x138] sm:$0xff]  ;;  %v4072_v1 = vpop.f32.mrf.mxu3  ;;  %v5495_v21 = vsub.f32 %v9779_v48, %v10615_v56 }
 0x44a   : > { %5145 = vmatpush.msra.mxu0 %v9722_v62  ;;  %5285 = vmatpush.msra.mxu2 %v9737_v30  ;;  %v9849_v60 = vand.u32 4294901760, %v2425_v54  ;;  %v10617_v56 = vand.u32 4294901760, %v9795_v23 }
 0x44b   : > { %5212 = vmatpush.msra.mxu1 %v5211_v19  ;;  %5325 = vmatpush.msra.mxu3 %v9722_v62  ;;  %v4035_v19 = vpop.f32.mrf.mxu2  ;;  %v5223_v62 = vand.u32 4294901760, %v5222_v34  ;;  %v5234_v27 = vsub.f32 %v9754_v43, %v10611_v25  ;;  %v10613_v34 = vand.u32 4294901760, %v9593_v24  ;;  %v5229_v25 = vand.u32 4294901760, %v5228_v41  ;;  %v2415_v41 = vld [vmem:[#allocation3 + $0xe8] sm:$0xff] }
 0x44c   : > { %5147 = vmatpush.msra.mxu0 %v9739_v22  ;;  %5288 = vmatpush.msra.mxu2 %v9754_v43  ;;  %v5490_v47 = vand.u32 4294901760, %v5489_v53  ;;  %v5501_v24 = vsub.f32 %v9795_v23, %v10617_v56  ;;  %v5496_v53 = vand.u32 4294901760, %v5495_v21 }
 0x44d   : > { %5218 = vmatpush.msra.mxu1 %v5217_v55  ;;  %5327 = vmatpush.msra.mxu3 %v9739_v22  ;;  %v10614_v55 = vand.u32 4294901760, %v9773_v15 }
 0x44e   : > { %5340 = vmatpush.msrb.mxu0 %v10613_v34  ;;  %5291 = vmatpush.msra.mxu2 %v9773_v15  ;;  %v3986_v34 = vadd.f32 %v3985_v8, %v3895_v59  ;;  %v9856_v59 = vsub.f32 %v2445_v42, %v9829_v18  ;;  %v10618_v8 = vand.u32 4294901760, %v9618_v61  ;;  %v9868_v42 = vsub.f32 %v2435_v2, %v9836_v32 }
 0x44f   : > { %5479 = vmatpush.msrb.mxu3 %v5478_v3  ;;  %v5240_v22 = vsub.f32 %v9773_v15, %v10614_v55  ;;  %5224 = vmatpush.msra.mxu1 %v5223_v62  ;;  %v9844_v3 = vsub.f32 %v2455_v57, %v9813_v35  ;;  %v10616_v55 = vand.u32 4294901760, %v9605_v45  ;;  %v5235_v62 = vand.u32 4294901760, %v5234_v27  ;;  %v2405_v45 = vld [vmem:[#allocation3 + $0x98] sm:$0xff]  ;;  %v2395_v57 = vld [vmem:[#allocation3 + $0x48] sm:$0xff] }
 0x450   : > { %5436 = vmatpush.msrb.mxu2 %v9693_v14  ;;  %v4036_v61 = vadd.f32 %v4035_v19, %v3986_v34  ;;  %v9876_v21 = vand.u32 4294901760, %v2405_v45  ;;  %v10621_v2 = vand.u32 4294901760, %v9827_v26  ;;  %v5524_v19 = vand.u32 4294901760, %v9856_v59  ;;  %5153 = vmatmul.f32.vlgmr.msra.gmra.mxu0 %v10581_v33 }
 0x451   : > { %5344 = vmatpush.msrb.mxu0 %v10616_v55  ;;  %5485 = vmatpush.msrb.mxu3 %v5484_v49  ;;  %v5241_v27 = vand.u32 4294901760, %v5240_v22  ;;  %v9861_v49 = vand.u32 4294901760, %v2415_v41  ;;  %v10622_v34 = vand.u32 4294901760, %v9645_v11 }
 0x452   : > { %5230 = vmatpush.msra.mxu1 %v5229_v25  ;;  %5438 = vmatpush.msrb.mxu2 %v9715_v16  ;;  %v10619_v25 = vand.u32 4294901760, %v9811_v40  ;;  %v5513_v56 = vsub.f32 %v9827_v26, %v10621_v2  ;;  %v4073_v11 = vadd.f32 %v4072_v1, %v4036_v61 }
 0x453   : > { %5348 = vmatpush.msrb.mxu0 %v10618_v8  ;;  %5491 = vmatpush.msrb.mxu3 %v5490_v47  ;;  %v10620_v8 = vand.u32 4294901760, %v9632_v28  ;;  %v4209_v22 = vpop.f32.mrf.mxu2  ;;  %v9874_v47 = vsub.f32 %v2425_v54, %v9849_v60  ;;  %v9886_v54 = vand.u32 4294901760, %v2395_v57 }
 0x454   : > { %5236 = vmatpush.msra.mxu1 %v5235_v62  ;;  %v5507_v55 = vsub.f32 %v9811_v40, %v10619_v25  ;;  %5440 = vmatpush.msrb.mxu2 %v9732_v17  ;;  %v4170_v62 = vpop.f32.mrf.mxu1  ;;  %v5502_v25 = vand.u32 4294901760, %v5501_v24  ;;  %v4210_v28 = vadd.f32 %v4209_v22, %v9622_v4  ;;  %v10623_v24 = vand.u32 4294901760, %v9844_v3 }
 0x455   : > { %5352 = vmatpush.msrb.mxu0 %v10620_v8  ;;  %5497 = vmatpush.msrb.mxu3 %v5496_v53  ;;  %v5530_v8 = vand.u32 4294901760, %v9868_v42  ;;  %v9894_v4 = vsub.f32 %v2415_v41, %v9861_v49  ;;  %v10624_v22 = vand.u32 4294901760, %v9658_v52  ;;  %v9905_v41 = vsub.f32 %v2405_v45, %v9876_v21 }
 0x456   : > { %5242 = vmatpush.msra.mxu1 %v5241_v27  ;;  %5442 = vmatpush.msrb.mxu2 %v9749_v29  ;;  %v5508_v27 = vand.u32 4294901760, %v5507_v55  ;;  %v5519_v53 = vsub.f32 %v9844_v3, %v10623_v24  ;;  %v4300_v2 = vpop.f32.mrf.mxu3  ;;  %v5514_v55 = vand.u32 4294901760, %v5513_v56  ;;  %v10625_v52 = vand.u32 4294901760, %v9673_v58 }
 0x457   : > { %5356 = vmatpush.msrb.mxu0 %v10622_v34  ;;  %5503 = vmatpush.msrb.mxu3 %v5502_v25  ;;  %v5525_v25 = vsub.f32 %v9856_v59, %v5524_v19  ;;  %v5536_v34 = vand.u32 4294901760, %v9874_v47  ;;  %v5531_v56 = vsub.f32 %v9868_v42, %v5530_v8  ;;  %v5542_v61 = vand.u32 4294901760, %v9894_v4 }
 0x458   : > { %5401 = vmatpush.msrb.mxu1 %v9578_v44  ;;  %v4301_v44 = vadd.f32 %v4300_v2, %v4210_v28  ;;  %5444 = vmatpush.msrb.mxu2 %v9765_v7  ;;  %v4350_v24 = vpop.f32.mrf.mxu0  ;;  %v5520_v1 = vand.u32 4294901760, %v5519_v53  ;;  %v9916_v28 = vsub.f32 %v2395_v57, %v9886_v54  ;;  %v4136_v45 = vadd.f32 %v4135_v39, %v4073_v11 }
 0x459   : > { %5360 = vmatpush.msrb.mxu0 %v10624_v22  ;;  %5509 = vmatpush.msrb.mxu3 %v5508_v27  ;;  %v10626_v58 = vand.u32 4294901760, %v9686_v36  ;;  %v5537_v27 = vsub.f32 %v9874_v47, %v5536_v34  ;;  %v5548_v53 = vand.u32 4294901760, %v9905_v41  ;;  %v10627_v57 = vand.u32 4294901760, %v9700_v38 }
 0x45a   : > { %5403 = vmatpush.msrb.mxu1 %v9587_v63  ;;  %v4351_v63 = vadd.f32 %v4350_v24, %v4301_v44  ;;  %5446 = vmatpush.msrb.mxu2 %v9781_v12  ;;  %v5543_v39 = vsub.f32 %v9894_v4, %v5542_v61  ;;  %v5554_v11 = vand.u32 4294901760, %v9916_v28  ;;  %v4171_v44 = vadd.f32 %v4170_v62, %v4136_v45  ;;  %v5779_v45 = vld.sshfl [vmem:[#allocation1 + $0x20] sm:$0xff pattern:$0x75316420] }
 0x45b   : > { %5364 = vmatpush.msrb.mxu0 %v10625_v52  ;;  %5515 = vmatpush.msrb.mxu3 %v5514_v55  ;;  %v10628_v55 = vand.u32 4294901760, %v9706_v46  ;;  %v5549_v24 = vsub.f32 %v9905_v41, %v5548_v53  ;;  %v10629_v52 = vand.u32 4294901760, %v9720_v13 }
 0x45c   : > { %5405 = vmatpush.msrb.mxu1 %v9597_v10  ;;  %5448 = vmatpush.msrb.mxu2 %v9797_v5  ;;  %v5526_v10 = vand.u32 4294901760, %v5525_v25  ;;  %v4387_v2 = vpop.f32.mrf.mxu1  ;;  %v4450_v22 = vpop.f32.mrf.mxu2  ;;  %v5555_v46 = vsub.f32 %v9916_v28, %v5554_v11 }
 0x45d   : > { %5368 = vmatpush.msrb.mxu0 %v10626_v58  ;;  %5521 = vmatpush.msrb.mxu3 %v5520_v1  ;;  %v4388_v36 = vadd.f32 %v4387_v2, %v4351_v63  ;;  %v5780_v63 = vld.sshfl [vmem:[#allocation1 + $0x28] sm:$0xff pattern:$0x75316420]  ;;  %v5752_v1 = vmax.f32 %v4171_v44, 0.0  ;;  %v10631_v58 = vand.u32 4294901760, %v9754_v43  ;;  %v10632_v2 = vand.u32 4294901760, %v9773_v15 }
 0x45e   : > { %5407 = vmatpush.msrb.mxu1 %v9607_v20  ;;  %5450 = vmatpush.msrb.mxu2 %v9813_v35  ;;  %v5532_v20 = vand.u32 4294901760, %v5531_v56  ;;  %v10630_v56 = vand.u32 4294901760, %v9737_v30  ;;  %v10633_v43 = vld [vmem:[#allocation53_spill] sm:$0xff]  ;;  %v10634_v15 = vld [vmem:[#allocation52_spill] sm:$0xff] }
 0x45f   : > { %5372 = vmatpush.msrb.mxu0 %v10627_v57  ;;  %5527 = vmatpush.msrb.mxu3 %v5526_v10  ;;  %v4451_v38 = vadd.f32 %v4450_v22, %v4388_v36  ;;  %v4485_v25 = vpop.f32.mrf.mxu3  ;;  %v5800_v30 = vmul.f32 %v5779_v45, %v5752_v1  ;;  %v10636_v22 = vld [vmem:[#allocation55_spill] sm:$0xff]  ;;  %v10637_v57 = vand.u32 4294901760, %v10633_v43  ;;  %v10638_v36 = vld [vmem:[#allocation54_spill] sm:$0xff]  ;;  %v10641_v44 = vld [vmem:[#allocation21_spill] sm:$0xff] }
 0x460   : > { %5409 = vmatpush.msrb.mxu1 %v9620_v37  ;;  %5452 = vmatpush.msrb.mxu2 %v9829_v18  ;;  %v5538_v37 = vand.u32 4294901760, %v5537_v27  ;;  %v5556_v27 = vand.u32 4294901760, %v5555_v46 }
 0x461   : > { %5376 = vmatpush.msrb.mxu0 %v10628_v55  ;;  %5533 = vmatpush.msrb.mxu3 %v5532_v20  ;;  %v4486_v62 = vadd.f32 %v4485_v25, %v4451_v38  ;;  %v10639_v20 = vld [vmem:[#allocation12_spill] sm:$0xff] }
 0x462   : > { %5411 = vmatpush.msrb.mxu1 %v9634_v50  ;;  %5454 = vmatpush.msrb.mxu2 %v9836_v32  ;;  %v5544_v50 = vand.u32 4294901760, %v5543_v39  ;;  %v10640_v39 = vand.u32 4294901760, %v10636_v22  ;;  %v2529_v55 = vld [vmem:[%s10077_s2 + $0x18] sm:$0xff]  ;;  %v10642_v38 = vand.u32 4294901760, %v10639_v20 }
 0x463   : > { %5380 = vmatpush.msrb.mxu0 %v10629_v52  ;;  %5539 = vmatpush.msrb.mxu3 %v5538_v37  ;;  %v5753_v13 = vmax.f32 %v4486_v62, 0.0  ;;  %2542 = vst [vmem:[#allocation1 + $0x30] ss:$2 sm:$0xff] %v2529_v55  ;;  %v10643_v25 = vld [vmem:[#allocation44_spill] sm:$0xff]  ;;  %v10644_v37 = vld [vmem:[#allocation63_spill] sm:$0xff]  ;;  %v10646_v52 = vand.u32 4294901760, %v9795_v23 }
 0x464   : > { %5413 = vmatpush.msrb.mxu1 %v9647_v6  ;;  %5456 = vmatpush.msrb.mxu2 %v9849_v60  ;;  %v5550_v6 = vand.u32 4294901760, %v5549_v24  ;;  %v10645_v24 = vand.u32 4294901760, %v9779_v48  ;;  %v10647_v62 = vand.u32 4294901760, %v9811_v40 }
 0x465   : > { %5384 = vmatpush.msrb.mxu0 %v10630_v56  ;;  %5545 = vmatpush.msrb.mxu3 %v5544_v50  ;;  %v5801_v10 = vmul.f32 %v5780_v63, %v5753_v13  ;;  %v5762_v56 = vld [vmem:[%s10078_s3 + $0x20] sm:$0xff] }
 0x466   : > { %5415 = vmatpush.msrb.mxu1 %v9660_v51  ;;  %5458 = vmatpush.msrb.mxu2 %v9861_v49  ;;  %5783 = vst [vmem:[#allocation1] ss:$2 sm:$0xff] %v5762_v56 }
 0x467   : > { %5388 = vmatpush.msrb.mxu0 %v10631_v58  ;;  %5551 = vmatpush.msrb.mxu3 %v5550_v6  ;;  %v5818_v51 = vrot.slane %v5801_v10, 4  ;;  %v10650_v6 = vld [vmem:[#allocation17_spill] sm:$0xff] }
 0x468   : > { %5417 = vmatpush.msrb.mxu1 %v9665_v9  ;;  %5460 = vmatpush.msrb.mxu2 %v9876_v21 }
 0x469   : > { %5392 = vmatpush.msrb.mxu0 %v10632_v2  ;;  %5557 = vmatpush.msrb.mxu3 %v5556_v27  ;;  %v5823_v9 = vsel %vm200_vm3, %v5800_v30, %v5818_v51 }
 0x46a   : > { %5419 = vmatpush.msrb.mxu1 %v9679_v31  ;;  %5331 = vmatmul.f32.vlgmr.msra.gmra.mxu3 %v10582_v0  ;;  %5833 = vst [vmem:[%s10079_s4 + $0x10] sm:$0xff] %v5823_v9  ;;  %v10635_v31 = vld [vmem:[#allocation64_spill] sm:$0xff] }
 0x46b   : > { %5567 = vmatpush.msra.mxu0 %v10633_v43  ;;  %5716 = vmatpush.msra.mxu3 %v9693_v14 }
 0x46c   : > { %5421 = vmatpush.msrb.mxu1 %v10634_v15  ;;  %5462 = vmatpush.msrb.mxu2 %v9886_v54  ;;  %v10651_v15 = vld [vmem:[#allocation6_spill] sm:$0xff] }
 0x46d   : > { %5294 = vmatmul.f32.vlgmr.msra.gmra.mxu2 %v10635_v31  ;;  %5570 = vmatpush.msra.mxu0 %v10636_v22 }
 0x46e   : > { %5655 = vmatpush.msra.mxu2 %v10637_v57  ;;  %5718 = vmatpush.msra.mxu3 %v9715_v16 }
 0x46f   : > { %5423 = vmatpush.msrb.mxu1 %v10638_v36  ;;  %5573 = vmatpush.msra.mxu0 %v10639_v20 }
 0x470   : > { %5659 = vmatpush.msra.mxu2 %v10640_v39  ;;  %5720 = vmatpush.msra.mxu3 %v9732_v17 }
 0x471   : > { %5425 = vmatpush.msrb.mxu1 %v10641_v44  ;;  %5576 = vmatpush.msra.mxu0 %v9779_v48  ;;  %v10648_v48 = vand.u32 4294901760, %v9827_v26 }
 0x472   : > { %5663 = vmatpush.msra.mxu2 %v10642_v38  ;;  %5722 = vmatpush.msra.mxu3 %v9749_v29 }
 0x473   : > { %5427 = vmatpush.msrb.mxu1 %v10643_v25  ;;  %5579 = vmatpush.msra.mxu0 %v9795_v23  ;;  %v10649_v23 = vand.u32 4294901760, %v9844_v3 }
 0x474   : > { %5244 = vmatmul.f32.vlgmr.msra.gmra.mxu1 %v10644_v37  ;;  %5667 = vmatpush.msra.mxu2 %v10645_v24 }
 0x475   : > { %5616 = vmatpush.msra.mxu1 %v9693_v14  ;;  %5724 = vmatpush.msra.mxu3 %v9765_v7  ;;  %v5761_v14 = vld [vmem:[%s10078_s3 + $0x18] sm:$0xff] }
 0x476   : > { %5582 = vmatpush.msra.mxu0 %v9811_v40  ;;  %5671 = vmatpush.msra.mxu2 %v10646_v52 }
 0x477   : > { %5618 = vmatpush.msra.mxu1 %v9715_v16  ;;  %5726 = vmatpush.msra.mxu3 %v9781_v12 }
 0x478   : > { %5585 = vmatpush.msra.mxu0 %v9827_v26  ;;  %5675 = vmatpush.msra.mxu2 %v10647_v62 }
 0x479   : > { %5620 = vmatpush.msra.mxu1 %v9732_v17  ;;  %5728 = vmatpush.msra.mxu3 %v9797_v5 }
 0x47a   : > { %5394 = vmatmul.f32.vlgmr.msrb.gmra.mxu0 %v10644_v37  ;;  %5679 = vmatpush.msra.mxu2 %v10648_v48  ;;  %v5785_v48 = vld.sshfl [vmem:[#allocation1 + $0x8] sm:$0xff pattern:$0x75316420] }
 0x47b   : > { %5588 = vmatpush.msra.mxu0 %v9844_v3  ;;  %5622 = vmatpush.msra.mxu1 %v9749_v29 }
 0x47c   : > { %5730 = vmatpush.msra.mxu3 %v9813_v35  ;;  %5429 = vmatmul.f32.vlgmr.msrb.gmra.mxu1 %v10644_v37 }
 0x47d   : > { %5591 = vmatpush.msra.mxu0 %v9856_v59  ;;  %5624 = vmatpush.msra.mxu1 %v9765_v7 }
 0x47e   : > { %5683 = vmatpush.msra.mxu2 %v10649_v23  ;;  %5732 = vmatpush.msra.mxu3 %v9829_v18 }
 0x47f   : > { %5594 = vmatpush.msra.mxu0 %v9868_v42  ;;  %5626 = vmatpush.msra.mxu1 %v9781_v12  ;;  %v2550_v12 = vld.sshfl [vmem:[#allocation1 + $0x38] sm:$0xff pattern:$0x75316420] }
 0x480   : > { %5687 = vmatpush.msra.mxu2 %v5524_v19  ;;  %5734 = vmatpush.msra.mxu3 %v9836_v32 }
 0x481   : > { %5597 = vmatpush.msra.mxu0 %v9874_v47  ;;  %5628 = vmatpush.msra.mxu1 %v9797_v5  ;;  %v2549_v5 = vld.sshfl [vmem:[#allocation1 + $0x30] sm:$0xff pattern:$0x75316420] }
 0x482   : > { %5691 = vmatpush.msra.mxu2 %v5530_v8  ;;  %5736 = vmatpush.msra.mxu3 %v9849_v60  ;;  %5774 = vst [vmem:[#allocation1 + $0x30] ss:$2 sm:$0xff] %v5761_v14 }
 0x483   : > { %5600 = vmatpush.msra.mxu0 %v9894_v4  ;;  %5630 = vmatpush.msra.mxu1 %v9813_v35 }
 0x484   : > { %5695 = vmatpush.msra.mxu2 %v5536_v34  ;;  %5738 = vmatpush.msra.mxu3 %v9861_v49 }
 0x485   : > { %5468 = vmatmul.f32.vlgmr.msrb.gmra.mxu2 %v10581_v33  ;;  %5603 = vmatpush.msra.mxu0 %v9905_v41 }
 0x486   : > { %5632 = vmatpush.msra.mxu1 %v9829_v18  ;;  %5699 = vmatpush.msra.mxu2 %v5542_v61 }
 0x487   : > { %5740 = vmatpush.msra.mxu3 %v9876_v21  ;;  %5606 = vmatpush.msra.mxu0 %v9916_v28 }
 0x488   : > { %5559 = vmatmul.f32.vlgmr.msrb.gmra.mxu3 %v10644_v37  ;;  %5634 = vmatpush.msra.mxu1 %v9836_v32 }
 0x489   : > { %5703 = vmatpush.msra.mxu2 %v5548_v53  ;;  %5742 = vmatpush.msra.mxu3 %v9886_v54  ;;  %v5782_v61 = vld.sshfl [vmem:[#allocation1 + $0x38] sm:$0xff pattern:$0x75316420] }
 0x48a   : > { %5636 = vmatpush.msra.mxu1 %v9849_v60  ;;  %5609 = vmatmul.f32.vlgmr.msra.gmra.mxu0 %v10635_v31 }
 0x48b   : > { %5707 = vmatpush.msra.mxu2 %v5554_v11  ;;  %v5781_v11 = vld.sshfl [vmem:[#allocation1 + $0x30] sm:$0xff pattern:$0x75316420] }
 0x48c   : > { %5638 = vmatpush.msra.mxu1 %v9861_v49 }
 0x48d   : > { %5709 = vmatmul.f32.vlgmr.msra.gmra.mxu2 %v10644_v37  ;;  %v4524_v33 = vpop.f32.mrf.mxu0 }
 0x48e   : > { %5640 = vmatpush.msra.mxu1 %v9876_v21  ;;  %v4525_v60 = vadd.f32 %v4524_v33, %v2549_v5  ;;  %v5784_v5 = vld.sshfl [vmem:[#allocation1] sm:$0xff pattern:$0x75316420] }
 0x490   : > { %5744 = vmatmul.f32.vlgmr.msra.gmra.mxu3 %v10644_v37  ;;  %5642 = vmatpush.msra.mxu1 %v9886_v54 }
 0x491   : > { %5646 = vmatmul.f32.vlgmr.msra.gmra.mxu1 %v10582_v0 }
 0x493   : > { %v4702_v17 = vpop.f32.mrf.mxu3 }
 0x496   : > { %v4665_v16 = vpop.f32.mrf.mxu2 }
 0x497   : > { %v4615_v32 = vpop.f32.mrf.mxu1 }
 0x498   : > { %v4616_v18 = vadd.f32 %v4615_v32, %v4525_v60 }
 0x49a   : > { %v4666_v7 = vadd.f32 %v4665_v16, %v4616_v18 }
 0x49c   : > { %v4703_v59 = vadd.f32 %v4702_v17, %v4666_v7 }
 0x49d   : > { %v4765_v29 = vpop.f32.mrf.mxu0 }
 0x49e   : > { %v4766_v21 = vadd.f32 %v4765_v29, %v4703_v59 }
 0x49f   : > { %v4800_v35 = vpop.f32.mrf.mxu1 }
 0x4a0   : > { %v4801_v8 = vadd.f32 %v4800_v35, %v4766_v21 }
 0x4a2   : > { %v5754_v28 = vmax.f32 %v4801_v8, 0.0 }
 0x4a4   : > { %v5802_v46 = vmul.f32 %v5781_v11, %v5754_v28 }
 0x4ae   : > { %v4839_v40 = vpop.f32.mrf.mxu2 }
 0x4af   : > { %v4840_v26 = vadd.f32 %v4839_v40, %v2550_v12 }
 0x4b1   : > { %v4930_v3 = vpop.f32.mrf.mxu3 }
 0x4b2   : > { %v4931_v49 = vadd.f32 %v4930_v3, %v4840_v26 }
 0x4b3   : > { %v4980_v42 = vpop.f32.mrf.mxu0 }
 0x4b4   : > { %v4981_v47 = vadd.f32 %v4980_v42, %v4931_v49 }
 0x4b7   : > { %v5017_v19 = vpop.f32.mrf.mxu1  ;;  %v5080_v54 = vpop.f32.mrf.mxu2 }
 0x4b8   : > { %v5018_v0 = vadd.f32 %v5017_v19, %v4981_v47 }
 0x4ba   : > { %v5081_v4 = vadd.f32 %v5080_v54, %v5018_v0  ;;  %v5115_v34 = vpop.f32.mrf.mxu3 }
 0x4bc   : > { %v5116_v41 = vadd.f32 %v5115_v34, %v5081_v4 }
 0x4be   : > { %v5755_v53 = vmax.f32 %v5116_v41, 0.0 }
 0x4c0   : > { %v5803_v50 = vmul.f32 %v5782_v61, %v5755_v53 }
 0x4c2   : > { %v5819_v63 = vrot.slane %v5803_v50, 4 }
 0x4c4   : > { %v5824_v1 = vsel %vm200_vm3, %v5802_v46, %v5819_v63 }
 0x4c5   : > { %5834 = vst [vmem:[%s10079_s4 + $0x18] sm:$0xff] %v5824_v1 }
 0x4cd   : > { %v5154_v13 = vpop.f32.mrf.mxu0 }
 0x4ce   : > { %v5155_v58 = vadd.f32 %v5154_v13, %v10650_v6 }
 0x4ed   : > { %v5332_v30 = vpop.f32.mrf.mxu3 }
 0x4f0   : > { %v5295_v10 = vpop.f32.mrf.mxu2 }
 0x4f1   : > { %v5245_v45 = vpop.f32.mrf.mxu1 }
 0x4f2   : > { %v5246_v27 = vadd.f32 %v5245_v45, %v5155_v58 }
 0x4f4   : > { %v5296_v51 = vadd.f32 %v5295_v10, %v5246_v27 }
 0x4f6   : > { %v5333_v22 = vadd.f32 %v5332_v30, %v5296_v51 }
 0x4f7   : > { %v5395_v2 = vpop.f32.mrf.mxu0 }
 0x4f8   : > { %v5396_v39 = vadd.f32 %v5395_v2, %v5333_v22 }
 0x4f9   : > { %v5430_v9 = vpop.f32.mrf.mxu1 }
 0x4fa   : > { %v5431_v37 = vadd.f32 %v5430_v9, %v5396_v39 }
 0x4fc   : > { %v5756_v23 = vmax.f32 %v5431_v37, 0.0 }
 0x4fe   : > { %v5804_v33 = vmul.f32 %v5784_v5, %v5756_v23 }
 0x507   : > { %v5610_v36 = vpop.f32.mrf.mxu0 }
 0x508   : > { %v5469_v43 = vpop.f32.mrf.mxu2 }
 0x509   : > { %v5470_v31 = vadd.f32 %v5469_v43, %v10651_v15 }
 0x50b   : > { %v5560_v57 = vpop.f32.mrf.mxu3 }
 0x50c   : > { %v5561_v20 = vadd.f32 %v5560_v57, %v5470_v31 }
 0x50e   : > { %v5611_v44 = vadd.f32 %v5610_v36, %v5561_v20  ;;  %v5647_v55 = vpop.f32.mrf.mxu1 }
 0x510   : > { %v5648_v38 = vadd.f32 %v5647_v55, %v5611_v44  ;;  %v5710_v25 = vpop.f32.mrf.mxu2 }
 0x512   : > { %v5711_v24 = vadd.f32 %v5710_v25, %v5648_v38 }
 0x513   : > { %v5745_v52 = vpop.f32.mrf.mxu3 }
 0x514   : > { %v5746_v62 = vadd.f32 %v5745_v52, %v5711_v24 }
 0x516   : > { %v5757_v12 = vmax.f32 %v5746_v62, 0.0 }
 0x518   : > { %v5805_v14 = vmul.f32 %v5785_v48, %v5757_v12 }
 0x51a   : > { %v5820_v32 = vrot.slane %v5805_v14, 4 }
 0x51c   : > { %v5825_v60 = vsel %vm200_vm3, %v5804_v33, %v5820_v32 }
 0x51d   : > { %5835 = vst.msk [vmem:[%s10079_s4 + $0x20] sm:$0xff] %vm6008_vm5, %v5825_v60 }
 0x51e PF: > { %s14_s15 = sadd.s32 1, %s5899_s15  }
 0x51f   : > { %p11_p4 = scmp.ge.s32.totalorder %s14_s15, 5  }
 0x521   :  { %13 = sbr.rel (!%p11_p4) target bundleno = 1 (0x1), region = 163 }

</bundles_post_ra>
